<compile_context>
chip_gen: v6e
topology: v6e:2x2x1
jax: 0.10.0
libtpu: 0.0.40
codegen_flags: <defaults>
</compile_context>

<pallas_src>
import math

import numpy as np

import jax
import jax.numpy as jnp
from jax import lax
from jax.experimental import pallas as pl
from jax.experimental.pallas import tpu as pltpu

IMG_STACK = 4   # img_stack_len in the reference module
IMG_SIZE = 96   # smallest spatial size that reduces to 1x1 (needed by view(-1,256))

_CONV_CFG = [  # (in_ch, out_ch, kernel, stride)
    (IMG_STACK, 8, 4, 2),
    (8, 16, 3, 2),
    (16, 32, 3, 2),
    (32, 64, 3, 2),
    (64, 128, 3, 1),
    (128, 256, 3, 1),
]
_NUM_CONV = len(_CONV_CFG)


# ----------------------------------------------------------------------------
# Math helpers
# ----------------------------------------------------------------------------
def _softplus_p1(y):
    # PyTorch Softplus (beta=1, threshold=20) followed by the "+ 1" in forward().
    sp = jnp.where(y > 20.0, y, jnp.log1p(jnp.exp(jnp.minimum(y, 20.0))))
    return sp + 1.0


# ----------------------------------------------------------------------------
# The single fused Pallas kernel
# ----------------------------------------------------------------------------
def _cnn_fused_kernel(*refs):
    """Whole forward pass; every intermediate stays VMEM/vreg resident.

    refs layout:
      [0]                x2d        (B*96, 96*4)  bf16   activation, row = (b,h), col = (w,c)
      [1 + 3l .. 3l+3]   S_l        (k, B*OH, B*H)  bf16  0/1 row-gather (stride along H)
                         A_l        (k, W*C, OW*OC) bf16  banded weights (stride along W + conv)
                         bias_l     (1, OW*OC)      f32
      [19..22]           head1_w (256,256) bf16, head1_b (1,256) f32,
                         head2_w (256,128) bf16, head2_b (1,128) f32
      [23]               out        (B, 128) f32  packed [value | alpha | beta | 0...]
    """
    x_ref = refs[0]
    conv_refs = refs[1:1 + 3 * _NUM_CONV]
    h1w_ref, h1b_ref, h2w_ref, h2b_ref = refs[1 + 3 * _NUM_CONV:5 + 3 * _NUM_CONV]
    out_ref = refs[-1]

    x = x_ref[...]                                            # (B*H, W*C) bf16
    for l in range(_NUM_CONV):
        s_ref, a_ref, b_ref = conv_refs[3 * l:3 * l + 3]
        k = s_ref.shape[0]
        acc = jnp.zeros((s_ref.shape[1], a_ref.shape[2]), jnp.float32)
        for kh in range(k):
            # Row gather along H via a 0/1 selection matmul (exact in bf16),
            # then the banded matmul does the W-window gather + channel contraction.
            g = jnp.dot(s_ref[kh], x, preferred_element_type=jnp.float32)
            acc = acc + jnp.dot(g.astype(jnp.bfloat16), a_ref[kh],
                                preferred_element_type=jnp.float32)
        # f32 bias + ReLU (VPU-safe on v5e), bf16 for the next MXU layer.
        x = jnp.maximum(acc + b_ref[...], 0.0).astype(jnp.bfloat16)

    # x is now the conv5+ReLU output laid out as (B, 256) bf16.
    y1 = jnp.dot(x, h1w_ref[...], preferred_element_type=jnp.float32)
    y1 = jnp.maximum(y1 + h1b_ref[...], 0.0).astype(jnp.bfloat16)  # (B, 256)
    y2 = jnp.dot(y1, h2w_ref[...], preferred_element_type=jnp.float32)
    y2 = y2 + h2b_ref[...]                                         # (B, 128) f32

    # Packed lane-dense output: col 0 = value (raw), cols 1..6 = softplus(.)+1.
    col = lax.broadcasted_iota(jnp.int32, y2.shape, 1)
    packed = jnp.where((col >= 1) & (col < 7), _softplus_p1(y2), y2)
    out_ref[...] = packed


# ----------------------------------------------------------------------------
# Wrapper
# ----------------------------------------------------------------------------
def _full_specs(arrays):
    # Full-array blocks (the (8,128) rule is waived when block == array dims).
    return [pl.BlockSpec(a.shape, lambda i, nd=a.ndim: (0,) * nd) for a in arrays]


def cnn_forward(state_nchw, params):
    """Matches CNN.forward: returns ((alpha, beta), value)."""
    B, C, H, W = state_nchw.shape
    assert (C, H, W) == (IMG_STACK, IMG_SIZE, IMG_SIZE), (C, H, W)
    # Operators in `params` are specialized to a fixed batch size — check it.
    assert params["S0"].shape[2] == B * IMG_SIZE, "params built for another batch size"

    # bf16 BEFORE the layout change (halves the bytes the transpose moves),
    # then flatten to the (b*h, w*c) row layout the kernel uses.
    x = jnp.transpose(state_nchw.astype(jnp.bfloat16), (0, 2, 3, 1))  # NHWC
    x2d = x.reshape(B * H, W * C)

    inputs = [x2d]
    for l in range(_NUM_CONV):
        inputs += [params[f"S{l}"], params[f"A{l}"], params[f"bias{l}"]]
    inputs += [params["head1_w"], params["head1_b"],
               params["head2_w"], params["head2_b"]]

    packed = pl.pallas_call(
        _cnn_fused_kernel,
        out_shape=jax.ShapeDtypeStruct((B, 128), jnp.float32),
        grid_spec=pltpu.PrefetchScalarGridSpec(
            num_scalar_prefetch=0,
            grid=(1,),                       # single step: whole net is one tile
            in_specs=_full_specs(inputs),
            out_specs=pl.BlockSpec((B, 128), lambda i: (0, 0)),
        ),
        compiler_params=pltpu.CompilerParams(
            dimension_semantics=("arbitrary",),
            vmem_limit_bytes=32 * 1024 * 1024),
    )(*inputs)

    value = packed[:, 0:1]
    alpha = packed[:, 1:4]
    beta = packed[:, 4:7]
    return (alpha, beta), value


# ----------------------------------------------------------------------------
# Parameter / operator construction (done ONCE at init, in numpy — never per
# forward pass).
# ----------------------------------------------------------------------------
def _build_conv_operators(w_khw_c_oc, bias, k, s, H, W, B):
    """Build the per-layer constant operators.

    w_khw_c_oc : np.ndarray (k, k, C, OC) f32  conv weights (HWIO order).
    Returns S (k, B*OH, B*H) bf16, A (k, W*C, OW*OC) bf16, bias_t (1, OW*OC) f32,
    plus the output spatial size (OH, OW).
    """
    C, OC = w_khw_c_oc.shape[2], w_khw_c_oc.shape[3]
    OH = (H - k) // s + 1
    OW = (W - k) // s + 1

    # Row-gather: out row (b, oh) reads input row (b, s*oh + kh).
    S = np.zeros((k, B * OH, B * H), np.float32)
    for kh in range(k):
        for b in range(B):
            for oh in range(OH):
                S[kh, b * OH + oh, b * H + s * oh + kh] = 1.0

    # Banded weights: A[kh][w*C + c, ow*OC + oc] = w[kh, w - s*ow, c, oc].
    A = np.zeros((k, W * C, OW * OC), np.float32)
    for kh in range(k):
        for kw in range(k):
            for ow in range(OW):
                w_in = s * ow + kw
                A[kh, w_in * C:(w_in + 1) * C, ow * OC:(ow + 1) * OC] = w_khw_c_oc[kh, kw]

    bias_t = np.tile(np.asarray(bias, np.float32), OW).reshape(1, OW * OC)
    return (jnp.asarray(S, dtype=jnp.bfloat16),
            jnp.asarray(A, dtype=jnp.bfloat16),
            jnp.asarray(bias_t, dtype=jnp.float32),
            OH, OW)


def init_params(key, batch_size):
    """Deterministic init mirroring the PyTorch module; returns (params, ref)."""
    params = {}
    ref = {}
    gain = math.sqrt(2.0)  # calculate_gain('relu')

    H = W = IMG_SIZE
    for i, (ic, oc, k, s) in enumerate(_CONV_CFG):
        key, wk = jax.random.split(key)
        fan_in, fan_out = ic * k * k, oc * k * k
        bound = gain * math.sqrt(6.0 / (fan_in + fan_out))    # xavier_uniform
        w = jax.random.uniform(wk, (k, k, ic, oc), jnp.float32, -bound, bound)
        b = jnp.full((oc,), 0.1, jnp.float32)                  # constant_(bias, 0.1)
        ref[f"conv{i}"] = (w, b)
        S, A, bias_t, OH, OW = _build_conv_operators(
            np.asarray(w), np.asarray(b), k, s, H, W, batch_size)
        params[f"S{i}"] = S
        params[f"A{i}"] = A
        params[f"bias{i}"] = bias_t
        H, W = OH, OW
    assert (H, W) == (1, 1), "conv stack must reduce 96x96 to 1x1"

    def linear(lk, fi, fo):  # PyTorch nn.Linear default init
        wk, bk = jax.random.split(lk)
        bound = 1.0 / math.sqrt(fi)
        w = jax.random.uniform(wk, (fi, fo), jnp.float32, -bound, bound)
        b = jax.random.uniform(bk, (fo,), jnp.float32, -bound, bound)
        return w, b

    key, k1, k2, k3, k4, k5 = jax.random.split(key, 6)
    v0_w, v0_b = linear(k1, 256, 100)   # value[0]
    fc_w, fc_b = linear(k2, 256, 100)   # fc[0]
    v1_w, v1_b = linear(k3, 100, 1)     # value[2]
    al_w, al_b = linear(k4, 100, 3)     # alpha[0]
    be_w, be_b = linear(k5, 100, 3)     # beta[0]
    ref["value0"], ref["fc"] = (v0_w, v0_b), (fc_w, fc_b)
    ref["value1"], ref["alpha"], ref["beta"] = (v1_w, v1_b), (al_w, al_b), (be_w, be_b)

    # Stage 1 of the head: cols 0:100 = value-hidden, cols 128:228 = fc-hidden,
    # the rest are zero-weight / zero-bias lanes (relu(0) = 0, exact padding).
    head1_w = jnp.zeros((256, 256), jnp.float32)
    head1_w = head1_w.at[:, 0:100].set(v0_w).at[:, 128:228].set(fc_w)
    head1_b = jnp.zeros((1, 256), jnp.float32)
    head1_b = head1_b.at[0, 0:100].set(v0_b).at[0, 128:228].set(fc_b)

    # Stage 2: block-structured — col 0 reads the value-hidden lanes (value1),
    # cols 1:4 / 4:7 read the fc-hidden lanes (alpha / beta).
    head2_w = jnp.zeros((256, 128), jnp.float32)
    head2_w = head2_w.at[0:100, 0:1].set(v1_w)
    head2_w = head2_w.at[128:228, 1:4].set(al_w)
    head2_w = head2_w.at[128:228, 4:7].set(be_w)
    head2_b = jnp.zeros((1, 128), jnp.float32)
    head2_b = head2_b.at[0, 0:1].set(v1_b)
    head2_b = head2_b.at[0, 1:4].set(al_b)
    head2_b = head2_b.at[0, 4:7].set(be_b)

    params["head1_w"] = head1_w.astype(jnp.bfloat16)  # MXU operand dtype
    params["head1_b"] = head1_b
    params["head2_w"] = head2_w.astype(jnp.bfloat16)
    params["head2_b"] = head2_b
    return params, ref


# ----------------------------------------------------------------------------
# Pure-JAX f32 reference (for a correctness tolerance check only)
# ----------------------------------------------------------------------------
def cnn_forward_reference(state_nchw, ref):
    x = jnp.transpose(state_nchw, (0, 2, 3, 1))  # NHWC f32
    for i, (_, _, _, s) in enumerate(_CONV_CFG):
        w, b = ref[f"conv{i}"]
        x = lax.conv_general_dilated(x, w, (s, s), "VALID",
                                     dimension_numbers=("NHWC", "HWIO", "NHWC"))
        x = jnp.maximum(x + b, 0.0)
    feat = x.reshape(x.shape[0], 256)
    v0_w, v0_b = ref["value0"]
    fc_w, fc_b = ref["fc"]
    v1_w, v1_b = ref["value1"]
    al_w, al_b = ref["alpha"]
    be_w, be_b = ref["beta"]
    vh = jnp.maximum(feat @ v0_w + v0_b, 0.0)
    value = vh @ v1_w + v1_b
    fh = jnp.maximum(feat @ fc_w + fc_b, 0.0)
    alpha = _softplus_p1(fh @ al_w + al_b)
    beta = _softplus_p1(fh @ be_w + be_b)
    return (alpha, beta), value


if __name__ == "__main__":
    key = jax.random.PRNGKey(0)
    pkey, xkey = jax.random.split(key)

    batch = 2
    params, ref = init_params(pkey, batch)
    # 96x96 is required for the conv stack to reduce to 1x1 (state.view(-1, 256)).
    state = jax.random.uniform(xkey, (batch, IMG_STACK, IMG_SIZE, IMG_SIZE),
                               jnp.float32)

    (alpha, beta), value = jax.jit(cnn_forward)(state, params)
    jax.block_until_ready((alpha, beta, value))

    assert alpha.shape == (batch, 3), alpha.shape
    assert beta.shape == (batch, 3), beta.shape
    assert value.shape == (batch, 1), value.shape
    assert bool(jnp.all(alpha >= 1.0)) and bool(jnp.all(beta >= 1.0))
    assert bool(jnp.all(jnp.isfinite(value)))

    # bf16 activations/weights vs. f32 reference: loose tolerance, catches any
    # structural error in the S/A operator construction or head packing.
    (alpha_r, beta_r), value_r = jax.jit(cnn_forward_reference)(state, ref)
    np.testing.assert_allclose(np.asarray(alpha), np.asarray(alpha_r), rtol=0.1, atol=0.1)
    np.testing.assert_allclose(np.asarray(beta), np.asarray(beta_r), rtol=0.1, atol=0.1)
    np.testing.assert_allclose(np.asarray(value), np.asarray(value_r), rtol=0.1, atol=0.1)

    print("KERNEL_OK")
</pallas_src>

<mosaic_0001>
module attributes {stable_mosaic.version = 11 : i64} {
  func.func @_cnn_fused_kernel(%arg0: i32, %arg1: memref<192x384xbf16, #tpu.memory_space<vmem>>, %arg2: memref<4x94x192xbf16, #tpu.memory_space<vmem>>, %arg3: memref<4x384x376xbf16, #tpu.memory_space<vmem>>, %arg4: memref<1x376xf32, #tpu.memory_space<vmem>>, %arg5: memref<3x46x94xbf16, #tpu.memory_space<vmem>>, %arg6: memref<3x376x368xbf16, #tpu.memory_space<vmem>>, %arg7: memref<1x368xf32, #tpu.memory_space<vmem>>, %arg8: memref<3x22x46xbf16, #tpu.memory_space<vmem>>, %arg9: memref<3x368x352xbf16, #tpu.memory_space<vmem>>, %arg10: memref<1x352xf32, #tpu.memory_space<vmem>>, %arg11: memref<3x10x22xbf16, #tpu.memory_space<vmem>>, %arg12: memref<3x352x320xbf16, #tpu.memory_space<vmem>>, %arg13: memref<1x320xf32, #tpu.memory_space<vmem>>, %arg14: memref<3x6x10xbf16, #tpu.memory_space<vmem>>, %arg15: memref<3x320x384xbf16, #tpu.memory_space<vmem>>, %arg16: memref<1x384xf32, #tpu.memory_space<vmem>>, %arg17: memref<3x2x6xbf16, #tpu.memory_space<vmem>>, %arg18: memref<3x384x256xbf16, #tpu.memory_space<vmem>>, %arg19: memref<1x256xf32, #tpu.memory_space<vmem>>, %arg20: memref<256x256xbf16, #tpu.memory_space<vmem>>, %arg21: memref<1x256xf32, #tpu.memory_space<vmem>>, %arg22: memref<256x128xbf16, #tpu.memory_space<vmem>>, %arg23: memref<1x128xf32, #tpu.memory_space<vmem>>, %arg24: memref<2x128xf32, #tpu.memory_space<vmem>>) attributes {dimension_semantics = [#tpu.dimension_semantics<arbitrary>], iteration_bounds = array<i64: 1>, scalar_prefetch = 0 : i64, scratch_operands = 0 : i64, tpu.core_type = #tpu.core_type<tc>, window_params = [{pipeline_mode = #tpu.pipeline_mode<synchronous>, transform_indices = @transform_0, window_bounds = array<i64: 192, 384>}, {pipeline_mode = #tpu.pipeline_mode<synchronous>, transform_indices = @transform_1, window_bounds = array<i64: 4, 94, 192>}, {pipeline_mode = #tpu.pipeline_mode<synchronous>, transform_indices = @transform_2, window_bounds = array<i64: 4, 384, 376>}, {pipeline_mode = #tpu.pipeline_mode<synchronous>, transform_indices = @transform_3, window_bounds = array<i64: 1, 376>}, {pipeline_mode = #tpu.pipeline_mode<synchronous>, transform_indices = @transform_4, window_bounds = array<i64: 3, 46, 94>}, {pipeline_mode = #tpu.pipeline_mode<synchronous>, transform_indices = @transform_5, window_bounds = array<i64: 3, 376, 368>}, {pipeline_mode = #tpu.pipeline_mode<synchronous>, transform_indices = @transform_6, window_bounds = array<i64: 1, 368>}, {pipeline_mode = #tpu.pipeline_mode<synchronous>, transform_indices = @transform_7, window_bounds = array<i64: 3, 22, 46>}, {pipeline_mode = #tpu.pipeline_mode<synchronous>, transform_indices = @transform_8, window_bounds = array<i64: 3, 368, 352>}, {pipeline_mode = #tpu.pipeline_mode<synchronous>, transform_indices = @transform_9, window_bounds = array<i64: 1, 352>}, {pipeline_mode = #tpu.pipeline_mode<synchronous>, transform_indices = @transform_10, window_bounds = array<i64: 3, 10, 22>}, {pipeline_mode = #tpu.pipeline_mode<synchronous>, transform_indices = @transform_11, window_bounds = array<i64: 3, 352, 320>}, {pipeline_mode = #tpu.pipeline_mode<synchronous>, transform_indices = @transform_12, window_bounds = array<i64: 1, 320>}, {pipeline_mode = #tpu.pipeline_mode<synchronous>, transform_indices = @transform_13, window_bounds = array<i64: 3, 6, 10>}, {pipeline_mode = #tpu.pipeline_mode<synchronous>, transform_indices = @transform_14, window_bounds = array<i64: 3, 320, 384>}, {pipeline_mode = #tpu.pipeline_mode<synchronous>, transform_indices = @transform_15, window_bounds = array<i64: 1, 384>}, {pipeline_mode = #tpu.pipeline_mode<synchronous>, transform_indices = @transform_16, window_bounds = array<i64: 3, 2, 6>}, {pipeline_mode = #tpu.pipeline_mode<synchronous>, transform_indices = @transform_17, window_bounds = array<i64: 3, 384, 256>}, {pipeline_mode = #tpu.pipeline_mode<synchronous>, transform_indices = @transform_18, window_bounds = array<i64: 1, 256>}, {pipeline_mode = #tpu.pipeline_mode<synchronous>, transform_indices = @transform_19, window_bounds = array<i64: 256, 256>}, {pipeline_mode = #tpu.pipeline_mode<synchronous>, transform_indices = @transform_20, window_bounds = array<i64: 1, 256>}, {pipeline_mode = #tpu.pipeline_mode<synchronous>, transform_indices = @transform_21, window_bounds = array<i64: 256, 128>}, {pipeline_mode = #tpu.pipeline_mode<synchronous>, transform_indices = @transform_22, window_bounds = array<i64: 1, 128>}, {pipeline_mode = #tpu.pipeline_mode<synchronous>, transform_indices = @transform_23, window_bounds = array<i64: 2, 128>}]} {
    %c0 = arith.constant 0 : index
    %c0_0 = arith.constant 0 : index
    %0 = vector.load %arg1[%c0, %c0_0] : memref<192x384xbf16, #tpu.memory_space<vmem>>, vector<192x384xbf16>
    %cst = arith.constant 0.000000e+00 : f32
    %1 = vector.broadcast %cst : f32 to vector<94x376xf32>
    %c0_1 = arith.constant 0 : index
    %c0_2 = arith.constant 0 : index
    %c0_3 = arith.constant 0 : index
    %2 = vector.load %arg2[%c0_1, %c0_2, %c0_3] : memref<4x94x192xbf16, #tpu.memory_space<vmem>>, vector<1x94x192xbf16>
    %3 = vector.shape_cast %2 : vector<1x94x192xbf16> to vector<94x192xbf16>
    %cst_4 = arith.constant dense<0.000000e+00> : vector<94x384xf32>
    %4 = tpu.matmul %3, %0, %cst_4 {dimension_numbers = #tpu.dot_dimension_numbers<[1], [0], [0], [1], [0, 0, 1, 1], [], []>} : vector<94x192xbf16>, vector<192x384xbf16>, vector<94x384xf32> -> vector<94x384xf32>
    %5 = arith.truncf %4 : vector<94x384xf32> to vector<94x384xbf16>
    %c0_5 = arith.constant 0 : index
    %c0_6 = arith.constant 0 : index
    %c0_7 = arith.constant 0 : index
    %6 = vector.load %arg3[%c0_5, %c0_6, %c0_7] : memref<4x384x376xbf16, #tpu.memory_space<vmem>>, vector<1x384x376xbf16>
    %7 = vector.shape_cast %6 : vector<1x384x376xbf16> to vector<384x376xbf16>
    %cst_8 = arith.constant dense<0.000000e+00> : vector<94x376xf32>
    %8 = tpu.matmul %5, %7, %cst_8 {dimension_numbers = #tpu.dot_dimension_numbers<[1], [0], [0], [1], [0, 0, 1, 1], [], []>} : vector<94x384xbf16>, vector<384x376xbf16>, vector<94x376xf32> -> vector<94x376xf32>
    %9 = arith.addf %1, %8 : vector<94x376xf32>
    %c1 = arith.constant 1 : index
    %c0_9 = arith.constant 0 : index
    %c0_10 = arith.constant 0 : index
    %10 = vector.load %arg2[%c1, %c0_9, %c0_10] : memref<4x94x192xbf16, #tpu.memory_space<vmem>>, vector<1x94x192xbf16>
    %11 = vector.shape_cast %10 : vector<1x94x192xbf16> to vector<94x192xbf16>
    %cst_11 = arith.constant dense<0.000000e+00> : vector<94x384xf32>
    %12 = tpu.matmul %11, %0, %cst_11 {dimension_numbers = #tpu.dot_dimension_numbers<[1], [0], [0], [1], [0, 0, 1, 1], [], []>} : vector<94x192xbf16>, vector<192x384xbf16>, vector<94x384xf32> -> vector<94x384xf32>
    %13 = arith.truncf %12 : vector<94x384xf32> to vector<94x384xbf16>
    %c1_12 = arith.constant 1 : index
    %c0_13 = arith.constant 0 : index
    %c0_14 = arith.constant 0 : index
    %14 = vector.load %arg3[%c1_12, %c0_13, %c0_14] : memref<4x384x376xbf16, #tpu.memory_space<vmem>>, vector<1x384x376xbf16>
    %15 = vector.shape_cast %14 : vector<1x384x376xbf16> to vector<384x376xbf16>
    %cst_15 = arith.constant dense<0.000000e+00> : vector<94x376xf32>
    %16 = tpu.matmul %13, %15, %cst_15 {dimension_numbers = #tpu.dot_dimension_numbers<[1], [0], [0], [1], [0, 0, 1, 1], [], []>} : vector<94x384xbf16>, vector<384x376xbf16>, vector<94x376xf32> -> vector<94x376xf32>
    %17 = arith.addf %9, %16 : vector<94x376xf32>
    %c2 = arith.constant 2 : index
    %c0_16 = arith.constant 0 : index
    %c0_17 = arith.constant 0 : index
    %18 = vector.load %arg2[%c2, %c0_16, %c0_17] : memref<4x94x192xbf16, #tpu.memory_space<vmem>>, vector<1x94x192xbf16>
    %19 = vector.shape_cast %18 : vector<1x94x192xbf16> to vector<94x192xbf16>
    %cst_18 = arith.constant dense<0.000000e+00> : vector<94x384xf32>
    %20 = tpu.matmul %19, %0, %cst_18 {dimension_numbers = #tpu.dot_dimension_numbers<[1], [0], [0], [1], [0, 0, 1, 1], [], []>} : vector<94x192xbf16>, vector<192x384xbf16>, vector<94x384xf32> -> vector<94x384xf32>
    %21 = arith.truncf %20 : vector<94x384xf32> to vector<94x384xbf16>
    %c2_19 = arith.constant 2 : index
    %c0_20 = arith.constant 0 : index
    %c0_21 = arith.constant 0 : index
    %22 = vector.load %arg3[%c2_19, %c0_20, %c0_21] : memref<4x384x376xbf16, #tpu.memory_space<vmem>>, vector<1x384x376xbf16>
    %23 = vector.shape_cast %22 : vector<1x384x376xbf16> to vector<384x376xbf16>
    %cst_22 = arith.constant dense<0.000000e+00> : vector<94x376xf32>
    %24 = tpu.matmul %21, %23, %cst_22 {dimension_numbers = #tpu.dot_dimension_numbers<[1], [0], [0], [1], [0, 0, 1, 1], [], []>} : vector<94x384xbf16>, vector<384x376xbf16>, vector<94x376xf32> -> vector<94x376xf32>
    %25 = arith.addf %17, %24 : vector<94x376xf32>
    %c3 = arith.constant 3 : index
    %c0_23 = arith.constant 0 : index
    %c0_24 = arith.constant 0 : index
    %26 = vector.load %arg2[%c3, %c0_23, %c0_24] : memref<4x94x192xbf16, #tpu.memory_space<vmem>>, vector<1x94x192xbf16>
    %27 = vector.shape_cast %26 : vector<1x94x192xbf16> to vector<94x192xbf16>
    %cst_25 = arith.constant dense<0.000000e+00> : vector<94x384xf32>
    %28 = tpu.matmul %27, %0, %cst_25 {dimension_numbers = #tpu.dot_dimension_numbers<[1], [0], [0], [1], [0, 0, 1, 1], [], []>} : vector<94x192xbf16>, vector<192x384xbf16>, vector<94x384xf32> -> vector<94x384xf32>
    %29 = arith.truncf %28 : vector<94x384xf32> to vector<94x384xbf16>
    %c3_26 = arith.constant 3 : index
    %c0_27 = arith.constant 0 : index
    %c0_28 = arith.constant 0 : index
    %30 = vector.load %arg3[%c3_26, %c0_27, %c0_28] : memref<4x384x376xbf16, #tpu.memory_space<vmem>>, vector<1x384x376xbf16>
    %31 = vector.shape_cast %30 : vector<1x384x376xbf16> to vector<384x376xbf16>
    %cst_29 = arith.constant dense<0.000000e+00> : vector<94x376xf32>
    %32 = tpu.matmul %29, %31, %cst_29 {dimension_numbers = #tpu.dot_dimension_numbers<[1], [0], [0], [1], [0, 0, 1, 1], [], []>} : vector<94x384xbf16>, vector<384x376xbf16>, vector<94x376xf32> -> vector<94x376xf32>
    %33 = arith.addf %25, %32 : vector<94x376xf32>
    %c0_30 = arith.constant 0 : index
    %c0_31 = arith.constant 0 : index
    %34 = vector.load %arg4[%c0_30, %c0_31] : memref<1x376xf32, #tpu.memory_space<vmem>>, vector<1x376xf32>
    %35 = vector.broadcast %34 : vector<1x376xf32> to vector<94x376xf32>
    %36 = arith.addf %33, %35 : vector<94x376xf32>
    %cst_32 = arith.constant 0.000000e+00 : f32
    %37 = vector.broadcast %cst_32 : f32 to vector<94x376xf32>
    %38 = arith.maximumf %36, %37 : vector<94x376xf32>
    %39 = arith.truncf %38 : vector<94x376xf32> to vector<94x376xbf16>
    %cst_33 = arith.constant 0.000000e+00 : f32
    %40 = vector.broadcast %cst_33 : f32 to vector<46x368xf32>
    %c0_34 = arith.constant 0 : index
    %c0_35 = arith.constant 0 : index
    %c0_36 = arith.constant 0 : index
    %41 = vector.load %arg5[%c0_34, %c0_35, %c0_36] : memref<3x46x94xbf16, #tpu.memory_space<vmem>>, vector<1x46x94xbf16>
    %42 = vector.shape_cast %41 : vector<1x46x94xbf16> to vector<46x94xbf16>
    %cst_37 = arith.constant dense<0.000000e+00> : vector<46x376xf32>
    %43 = tpu.matmul %42, %39, %cst_37 {dimension_numbers = #tpu.dot_dimension_numbers<[1], [0], [0], [1], [0, 0, 1, 1], [], []>} : vector<46x94xbf16>, vector<94x376xbf16>, vector<46x376xf32> -> vector<46x376xf32>
    %44 = arith.truncf %43 : vector<46x376xf32> to vector<46x376xbf16>
    %c0_38 = arith.constant 0 : index
    %c0_39 = arith.constant 0 : index
    %c0_40 = arith.constant 0 : index
    %45 = vector.load %arg6[%c0_38, %c0_39, %c0_40] : memref<3x376x368xbf16, #tpu.memory_space<vmem>>, vector<1x376x368xbf16>
    %46 = vector.shape_cast %45 : vector<1x376x368xbf16> to vector<376x368xbf16>
    %cst_41 = arith.constant dense<0.000000e+00> : vector<46x368xf32>
    %47 = tpu.matmul %44, %46, %cst_41 {dimension_numbers = #tpu.dot_dimension_numbers<[1], [0], [0], [1], [0, 0, 1, 1], [], []>} : vector<46x376xbf16>, vector<376x368xbf16>, vector<46x368xf32> -> vector<46x368xf32>
    %48 = arith.addf %40, %47 : vector<46x368xf32>
    %c1_42 = arith.constant 1 : index
    %c0_43 = arith.constant 0 : index
    %c0_44 = arith.constant 0 : index
    %49 = vector.load %arg5[%c1_42, %c0_43, %c0_44] : memref<3x46x94xbf16, #tpu.memory_space<vmem>>, vector<1x46x94xbf16>
    %50 = vector.shape_cast %49 : vector<1x46x94xbf16> to vector<46x94xbf16>
    %cst_45 = arith.constant dense<0.000000e+00> : vector<46x376xf32>
    %51 = tpu.matmul %50, %39, %cst_45 {dimension_numbers = #tpu.dot_dimension_numbers<[1], [0], [0], [1], [0, 0, 1, 1], [], []>} : vector<46x94xbf16>, vector<94x376xbf16>, vector<46x376xf32> -> vector<46x376xf32>
    %52 = arith.truncf %51 : vector<46x376xf32> to vector<46x376xbf16>
    %c1_46 = arith.constant 1 : index
    %c0_47 = arith.constant 0 : index
    %c0_48 = arith.constant 0 : index
    %53 = vector.load %arg6[%c1_46, %c0_47, %c0_48] : memref<3x376x368xbf16, #tpu.memory_space<vmem>>, vector<1x376x368xbf16>
    %54 = vector.shape_cast %53 : vector<1x376x368xbf16> to vector<376x368xbf16>
    %cst_49 = arith.constant dense<0.000000e+00> : vector<46x368xf32>
    %55 = tpu.matmul %52, %54, %cst_49 {dimension_numbers = #tpu.dot_dimension_numbers<[1], [0], [0], [1], [0, 0, 1, 1], [], []>} : vector<46x376xbf16>, vector<376x368xbf16>, vector<46x368xf32> -> vector<46x368xf32>
    %56 = arith.addf %48, %55 : vector<46x368xf32>
    %c2_50 = arith.constant 2 : index
    %c0_51 = arith.constant 0 : index
    %c0_52 = arith.constant 0 : index
    %57 = vector.load %arg5[%c2_50, %c0_51, %c0_52] : memref<3x46x94xbf16, #tpu.memory_space<vmem>>, vector<1x46x94xbf16>
    %58 = vector.shape_cast %57 : vector<1x46x94xbf16> to vector<46x94xbf16>
    %cst_53 = arith.constant dense<0.000000e+00> : vector<46x376xf32>
    %59 = tpu.matmul %58, %39, %cst_53 {dimension_numbers = #tpu.dot_dimension_numbers<[1], [0], [0], [1], [0, 0, 1, 1], [], []>} : vector<46x94xbf16>, vector<94x376xbf16>, vector<46x376xf32> -> vector<46x376xf32>
    %60 = arith.truncf %59 : vector<46x376xf32> to vector<46x376xbf16>
    %c2_54 = arith.constant 2 : index
    %c0_55 = arith.constant 0 : index
    %c0_56 = arith.constant 0 : index
    %61 = vector.load %arg6[%c2_54, %c0_55, %c0_56] : memref<3x376x368xbf16, #tpu.memory_space<vmem>>, vector<1x376x368xbf16>
    %62 = vector.shape_cast %61 : vector<1x376x368xbf16> to vector<376x368xbf16>
    %cst_57 = arith.constant dense<0.000000e+00> : vector<46x368xf32>
    %63 = tpu.matmul %60, %62, %cst_57 {dimension_numbers = #tpu.dot_dimension_numbers<[1], [0], [0], [1], [0, 0, 1, 1], [], []>} : vector<46x376xbf16>, vector<376x368xbf16>, vector<46x368xf32> -> vector<46x368xf32>
    %64 = arith.addf %56, %63 : vector<46x368xf32>
    %c0_58 = arith.constant 0 : index
    %c0_59 = arith.constant 0 : index
    %65 = vector.load %arg7[%c0_58, %c0_59] : memref<1x368xf32, #tpu.memory_space<vmem>>, vector<1x368xf32>
    %66 = vector.broadcast %65 : vector<1x368xf32> to vector<46x368xf32>
    %67 = arith.addf %64, %66 : vector<46x368xf32>
    %cst_60 = arith.constant 0.000000e+00 : f32
    %68 = vector.broadcast %cst_60 : f32 to vector<46x368xf32>
    %69 = arith.maximumf %67, %68 : vector<46x368xf32>
    %70 = arith.truncf %69 : vector<46x368xf32> to vector<46x368xbf16>
    %cst_61 = arith.constant 0.000000e+00 : f32
    %71 = vector.broadcast %cst_61 : f32 to vector<22x352xf32>
    %c0_62 = arith.constant 0 : index
    %c0_63 = arith.constant 0 : index
    %c0_64 = arith.constant 0 : index
    %72 = vector.load %arg8[%c0_62, %c0_63, %c0_64] : memref<3x22x46xbf16, #tpu.memory_space<vmem>>, vector<1x22x46xbf16>
    %73 = vector.shape_cast %72 : vector<1x22x46xbf16> to vector<22x46xbf16>
    %cst_65 = arith.constant dense<0.000000e+00> : vector<22x368xf32>
    %74 = tpu.matmul %73, %70, %cst_65 {dimension_numbers = #tpu.dot_dimension_numbers<[1], [0], [0], [1], [0, 0, 1, 1], [], []>} : vector<22x46xbf16>, vector<46x368xbf16>, vector<22x368xf32> -> vector<22x368xf32>
    %75 = arith.truncf %74 : vector<22x368xf32> to vector<22x368xbf16>
    %c0_66 = arith.constant 0 : index
    %c0_67 = arith.constant 0 : index
    %c0_68 = arith.constant 0 : index
    %76 = vector.load %arg9[%c0_66, %c0_67, %c0_68] : memref<3x368x352xbf16, #tpu.memory_space<vmem>>, vector<1x368x352xbf16>
    %77 = vector.shape_cast %76 : vector<1x368x352xbf16> to vector<368x352xbf16>
    %cst_69 = arith.constant dense<0.000000e+00> : vector<22x352xf32>
    %78 = tpu.matmul %75, %77, %cst_69 {dimension_numbers = #tpu.dot_dimension_numbers<[1], [0], [0], [1], [0, 0, 1, 1], [], []>} : vector<22x368xbf16>, vector<368x352xbf16>, vector<22x352xf32> -> vector<22x352xf32>
    %79 = arith.addf %71, %78 : vector<22x352xf32>
    %c1_70 = arith.constant 1 : index
    %c0_71 = arith.constant 0 : index
    %c0_72 = arith.constant 0 : index
    %80 = vector.load %arg8[%c1_70, %c0_71, %c0_72] : memref<3x22x46xbf16, #tpu.memory_space<vmem>>, vector<1x22x46xbf16>
    %81 = vector.shape_cast %80 : vector<1x22x46xbf16> to vector<22x46xbf16>
    %cst_73 = arith.constant dense<0.000000e+00> : vector<22x368xf32>
    %82 = tpu.matmul %81, %70, %cst_73 {dimension_numbers = #tpu.dot_dimension_numbers<[1], [0], [0], [1], [0, 0, 1, 1], [], []>} : vector<22x46xbf16>, vector<46x368xbf16>, vector<22x368xf32> -> vector<22x368xf32>
    %83 = arith.truncf %82 : vector<22x368xf32> to vector<22x368xbf16>
    %c1_74 = arith.constant 1 : index
    %c0_75 = arith.constant 0 : index
    %c0_76 = arith.constant 0 : index
    %84 = vector.load %arg9[%c1_74, %c0_75, %c0_76] : memref<3x368x352xbf16, #tpu.memory_space<vmem>>, vector<1x368x352xbf16>
    %85 = vector.shape_cast %84 : vector<1x368x352xbf16> to vector<368x352xbf16>
    %cst_77 = arith.constant dense<0.000000e+00> : vector<22x352xf32>
    %86 = tpu.matmul %83, %85, %cst_77 {dimension_numbers = #tpu.dot_dimension_numbers<[1], [0], [0], [1], [0, 0, 1, 1], [], []>} : vector<22x368xbf16>, vector<368x352xbf16>, vector<22x352xf32> -> vector<22x352xf32>
    %87 = arith.addf %79, %86 : vector<22x352xf32>
    %c2_78 = arith.constant 2 : index
    %c0_79 = arith.constant 0 : index
    %c0_80 = arith.constant 0 : index
    %88 = vector.load %arg8[%c2_78, %c0_79, %c0_80] : memref<3x22x46xbf16, #tpu.memory_space<vmem>>, vector<1x22x46xbf16>
    %89 = vector.shape_cast %88 : vector<1x22x46xbf16> to vector<22x46xbf16>
    %cst_81 = arith.constant dense<0.000000e+00> : vector<22x368xf32>
    %90 = tpu.matmul %89, %70, %cst_81 {dimension_numbers = #tpu.dot_dimension_numbers<[1], [0], [0], [1], [0, 0, 1, 1], [], []>} : vector<22x46xbf16>, vector<46x368xbf16>, vector<22x368xf32> -> vector<22x368xf32>
    %91 = arith.truncf %90 : vector<22x368xf32> to vector<22x368xbf16>
    %c2_82 = arith.constant 2 : index
    %c0_83 = arith.constant 0 : index
    %c0_84 = arith.constant 0 : index
    %92 = vector.load %arg9[%c2_82, %c0_83, %c0_84] : memref<3x368x352xbf16, #tpu.memory_space<vmem>>, vector<1x368x352xbf16>
    %93 = vector.shape_cast %92 : vector<1x368x352xbf16> to vector<368x352xbf16>
    %cst_85 = arith.constant dense<0.000000e+00> : vector<22x352xf32>
    %94 = tpu.matmul %91, %93, %cst_85 {dimension_numbers = #tpu.dot_dimension_numbers<[1], [0], [0], [1], [0, 0, 1, 1], [], []>} : vector<22x368xbf16>, vector<368x352xbf16>, vector<22x352xf32> -> vector<22x352xf32>
    %95 = arith.addf %87, %94 : vector<22x352xf32>
    %c0_86 = arith.constant 0 : index
    %c0_87 = arith.constant 0 : index
    %96 = vector.load %arg10[%c0_86, %c0_87] : memref<1x352xf32, #tpu.memory_space<vmem>>, vector<1x352xf32>
    %97 = vector.broadcast %96 : vector<1x352xf32> to vector<22x352xf32>
    %98 = arith.addf %95, %97 : vector<22x352xf32>
    %cst_88 = arith.constant 0.000000e+00 : f32
    %99 = vector.broadcast %cst_88 : f32 to vector<22x352xf32>
    %100 = arith.maximumf %98, %99 : vector<22x352xf32>
    %101 = arith.truncf %100 : vector<22x352xf32> to vector<22x352xbf16>
    %cst_89 = arith.constant 0.000000e+00 : f32
    %102 = vector.broadcast %cst_89 : f32 to vector<10x320xf32>
    %c0_90 = arith.constant 0 : index
    %c0_91 = arith.constant 0 : index
    %c0_92 = arith.constant 0 : index
    %103 = vector.load %arg11[%c0_90, %c0_91, %c0_92] : memref<3x10x22xbf16, #tpu.memory_space<vmem>>, vector<1x10x22xbf16>
    %104 = vector.shape_cast %103 : vector<1x10x22xbf16> to vector<10x22xbf16>
    %cst_93 = arith.constant dense<0.000000e+00> : vector<10x352xf32>
    %105 = tpu.matmul %104, %101, %cst_93 {dimension_numbers = #tpu.dot_dimension_numbers<[1], [0], [0], [1], [0, 0, 1, 1], [], []>} : vector<10x22xbf16>, vector<22x352xbf16>, vector<10x352xf32> -> vector<10x352xf32>
    %106 = arith.truncf %105 : vector<10x352xf32> to vector<10x352xbf16>
    %c0_94 = arith.constant 0 : index
    %c0_95 = arith.constant 0 : index
    %c0_96 = arith.constant 0 : index
    %107 = vector.load %arg12[%c0_94, %c0_95, %c0_96] : memref<3x352x320xbf16, #tpu.memory_space<vmem>>, vector<1x352x320xbf16>
    %108 = vector.shape_cast %107 : vector<1x352x320xbf16> to vector<352x320xbf16>
    %cst_97 = arith.constant dense<0.000000e+00> : vector<10x320xf32>
    %109 = tpu.matmul %106, %108, %cst_97 {dimension_numbers = #tpu.dot_dimension_numbers<[1], [0], [0], [1], [0, 0, 1, 1], [], []>} : vector<10x352xbf16>, vector<352x320xbf16>, vector<10x320xf32> -> vector<10x320xf32>
    %110 = arith.addf %102, %109 : vector<10x320xf32>
    %c1_98 = arith.constant 1 : index
    %c0_99 = arith.constant 0 : index
    %c0_100 = arith.constant 0 : index
    %111 = vector.load %arg11[%c1_98, %c0_99, %c0_100] : memref<3x10x22xbf16, #tpu.memory_space<vmem>>, vector<1x10x22xbf16>
    %112 = vector.shape_cast %111 : vector<1x10x22xbf16> to vector<10x22xbf16>
    %cst_101 = arith.constant dense<0.000000e+00> : vector<10x352xf32>
    %113 = tpu.matmul %112, %101, %cst_101 {dimension_numbers = #tpu.dot_dimension_numbers<[1], [0], [0], [1], [0, 0, 1, 1], [], []>} : vector<10x22xbf16>, vector<22x352xbf16>, vector<10x352xf32> -> vector<10x352xf32>
    %114 = arith.truncf %113 : vector<10x352xf32> to vector<10x352xbf16>
    %c1_102 = arith.constant 1 : index
    %c0_103 = arith.constant 0 : index
    %c0_104 = arith.constant 0 : index
    %115 = vector.load %arg12[%c1_102, %c0_103, %c0_104] : memref<3x352x320xbf16, #tpu.memory_space<vmem>>, vector<1x352x320xbf16>
    %116 = vector.shape_cast %115 : vector<1x352x320xbf16> to vector<352x320xbf16>
    %cst_105 = arith.constant dense<0.000000e+00> : vector<10x320xf32>
    %117 = tpu.matmul %114, %116, %cst_105 {dimension_numbers = #tpu.dot_dimension_numbers<[1], [0], [0], [1], [0, 0, 1, 1], [], []>} : vector<10x352xbf16>, vector<352x320xbf16>, vector<10x320xf32> -> vector<10x320xf32>
    %118 = arith.addf %110, %117 : vector<10x320xf32>
    %c2_106 = arith.constant 2 : index
    %c0_107 = arith.constant 0 : index
    %c0_108 = arith.constant 0 : index
    %119 = vector.load %arg11[%c2_106, %c0_107, %c0_108] : memref<3x10x22xbf16, #tpu.memory_space<vmem>>, vector<1x10x22xbf16>
    %120 = vector.shape_cast %119 : vector<1x10x22xbf16> to vector<10x22xbf16>
    %cst_109 = arith.constant dense<0.000000e+00> : vector<10x352xf32>
    %121 = tpu.matmul %120, %101, %cst_109 {dimension_numbers = #tpu.dot_dimension_numbers<[1], [0], [0], [1], [0, 0, 1, 1], [], []>} : vector<10x22xbf16>, vector<22x352xbf16>, vector<10x352xf32> -> vector<10x352xf32>
    %122 = arith.truncf %121 : vector<10x352xf32> to vector<10x352xbf16>
    %c2_110 = arith.constant 2 : index
    %c0_111 = arith.constant 0 : index
    %c0_112 = arith.constant 0 : index
    %123 = vector.load %arg12[%c2_110, %c0_111, %c0_112] : memref<3x352x320xbf16, #tpu.memory_space<vmem>>, vector<1x352x320xbf16>
    %124 = vector.shape_cast %123 : vector<1x352x320xbf16> to vector<352x320xbf16>
    %cst_113 = arith.constant dense<0.000000e+00> : vector<10x320xf32>
    %125 = tpu.matmul %122, %124, %cst_113 {dimension_numbers = #tpu.dot_dimension_numbers<[1], [0], [0], [1], [0, 0, 1, 1], [], []>} : vector<10x352xbf16>, vector<352x320xbf16>, vector<10x320xf32> -> vector<10x320xf32>
    %126 = arith.addf %118, %125 : vector<10x320xf32>
    %c0_114 = arith.constant 0 : index
    %c0_115 = arith.constant 0 : index
    %127 = vector.load %arg13[%c0_114, %c0_115] : memref<1x320xf32, #tpu.memory_space<vmem>>, vector<1x320xf32>
    %128 = vector.broadcast %127 : vector<1x320xf32> to vector<10x320xf32>
    %129 = arith.addf %126, %128 : vector<10x320xf32>
    %cst_116 = arith.constant 0.000000e+00 : f32
    %130 = vector.broadcast %cst_116 : f32 to vector<10x320xf32>
    %131 = arith.maximumf %129, %130 : vector<10x320xf32>
    %132 = arith.truncf %131 : vector<10x320xf32> to vector<10x320xbf16>
    %cst_117 = arith.constant 0.000000e+00 : f32
    %133 = vector.broadcast %cst_117 : f32 to vector<6x384xf32>
    %c0_118 = arith.constant 0 : index
    %c0_119 = arith.constant 0 : index
    %c0_120 = arith.constant 0 : index
    %134 = vector.load %arg14[%c0_118, %c0_119, %c0_120] : memref<3x6x10xbf16, #tpu.memory_space<vmem>>, vector<1x6x10xbf16>
    %135 = vector.shape_cast %134 : vector<1x6x10xbf16> to vector<6x10xbf16>
    %cst_121 = arith.constant dense<0.000000e+00> : vector<6x320xf32>
    %136 = tpu.matmul %135, %132, %cst_121 {dimension_numbers = #tpu.dot_dimension_numbers<[1], [0], [0], [1], [0, 0, 1, 1], [], []>} : vector<6x10xbf16>, vector<10x320xbf16>, vector<6x320xf32> -> vector<6x320xf32>
    %137 = arith.truncf %136 : vector<6x320xf32> to vector<6x320xbf16>
    %c0_122 = arith.constant 0 : index
    %c0_123 = arith.constant 0 : index
    %c0_124 = arith.constant 0 : index
    %138 = vector.load %arg15[%c0_122, %c0_123, %c0_124] : memref<3x320x384xbf16, #tpu.memory_space<vmem>>, vector<1x320x384xbf16>
    %139 = vector.shape_cast %138 : vector<1x320x384xbf16> to vector<320x384xbf16>
    %cst_125 = arith.constant dense<0.000000e+00> : vector<6x384xf32>
    %140 = tpu.matmul %137, %139, %cst_125 {dimension_numbers = #tpu.dot_dimension_numbers<[1], [0], [0], [1], [0, 0, 1, 1], [], []>} : vector<6x320xbf16>, vector<320x384xbf16>, vector<6x384xf32> -> vector<6x384xf32>
    %141 = arith.addf %133, %140 : vector<6x384xf32>
    %c1_126 = arith.constant 1 : index
    %c0_127 = arith.constant 0 : index
    %c0_128 = arith.constant 0 : index
    %142 = vector.load %arg14[%c1_126, %c0_127, %c0_128] : memref<3x6x10xbf16, #tpu.memory_space<vmem>>, vector<1x6x10xbf16>
    %143 = vector.shape_cast %142 : vector<1x6x10xbf16> to vector<6x10xbf16>
    %cst_129 = arith.constant dense<0.000000e+00> : vector<6x320xf32>
    %144 = tpu.matmul %143, %132, %cst_129 {dimension_numbers = #tpu.dot_dimension_numbers<[1], [0], [0], [1], [0, 0, 1, 1], [], []>} : vector<6x10xbf16>, vector<10x320xbf16>, vector<6x320xf32> -> vector<6x320xf32>
    %145 = arith.truncf %144 : vector<6x320xf32> to vector<6x320xbf16>
    %c1_130 = arith.constant 1 : index
    %c0_131 = arith.constant 0 : index
    %c0_132 = arith.constant 0 : index
    %146 = vector.load %arg15[%c1_130, %c0_131, %c0_132] : memref<3x320x384xbf16, #tpu.memory_space<vmem>>, vector<1x320x384xbf16>
    %147 = vector.shape_cast %146 : vector<1x320x384xbf16> to vector<320x384xbf16>
    %cst_133 = arith.constant dense<0.000000e+00> : vector<6x384xf32>
    %148 = tpu.matmul %145, %147, %cst_133 {dimension_numbers = #tpu.dot_dimension_numbers<[1], [0], [0], [1], [0, 0, 1, 1], [], []>} : vector<6x320xbf16>, vector<320x384xbf16>, vector<6x384xf32> -> vector<6x384xf32>
    %149 = arith.addf %141, %148 : vector<6x384xf32>
    %c2_134 = arith.constant 2 : index
    %c0_135 = arith.constant 0 : index
    %c0_136 = arith.constant 0 : index
    %150 = vector.load %arg14[%c2_134, %c0_135, %c0_136] : memref<3x6x10xbf16, #tpu.memory_space<vmem>>, vector<1x6x10xbf16>
    %151 = vector.shape_cast %150 : vector<1x6x10xbf16> to vector<6x10xbf16>
    %cst_137 = arith.constant dense<0.000000e+00> : vector<6x320xf32>
    %152 = tpu.matmul %151, %132, %cst_137 {dimension_numbers = #tpu.dot_dimension_numbers<[1], [0], [0], [1], [0, 0, 1, 1], [], []>} : vector<6x10xbf16>, vector<10x320xbf16>, vector<6x320xf32> -> vector<6x320xf32>
    %153 = arith.truncf %152 : vector<6x320xf32> to vector<6x320xbf16>
    %c2_138 = arith.constant 2 : index
    %c0_139 = arith.constant 0 : index
    %c0_140 = arith.constant 0 : index
    %154 = vector.load %arg15[%c2_138, %c0_139, %c0_140] : memref<3x320x384xbf16, #tpu.memory_space<vmem>>, vector<1x320x384xbf16>
    %155 = vector.shape_cast %154 : vector<1x320x384xbf16> to vector<320x384xbf16>
    %cst_141 = arith.constant dense<0.000000e+00> : vector<6x384xf32>
    %156 = tpu.matmul %153, %155, %cst_141 {dimension_numbers = #tpu.dot_dimension_numbers<[1], [0], [0], [1], [0, 0, 1, 1], [], []>} : vector<6x320xbf16>, vector<320x384xbf16>, vector<6x384xf32> -> vector<6x384xf32>
    %157 = arith.addf %149, %156 : vector<6x384xf32>
    %c0_142 = arith.constant 0 : index
    %c0_143 = arith.constant 0 : index
    %158 = vector.load %arg16[%c0_142, %c0_143] : memref<1x384xf32, #tpu.memory_space<vmem>>, vector<1x384xf32>
    %159 = vector.broadcast %158 : vector<1x384xf32> to vector<6x384xf32>
    %160 = arith.addf %157, %159 : vector<6x384xf32>
    %cst_144 = arith.constant 0.000000e+00 : f32
    %161 = vector.broadcast %cst_144 : f32 to vector<6x384xf32>
    %162 = arith.maximumf %160, %161 : vector<6x384xf32>
    %163 = arith.truncf %162 : vector<6x384xf32> to vector<6x384xbf16>
    %cst_145 = arith.constant 0.000000e+00 : f32
    %164 = vector.broadcast %cst_145 : f32 to vector<2x256xf32>
    %c0_146 = arith.constant 0 : index
    %c0_147 = arith.constant 0 : index
    %c0_148 = arith.constant 0 : index
    %165 = vector.load %arg17[%c0_146, %c0_147, %c0_148] : memref<3x2x6xbf16, #tpu.memory_space<vmem>>, vector<1x2x6xbf16>
    %166 = vector.shape_cast %165 : vector<1x2x6xbf16> to vector<2x6xbf16>
    %cst_149 = arith.constant dense<0.000000e+00> : vector<2x384xf32>
    %167 = tpu.matmul %166, %163, %cst_149 {dimension_numbers = #tpu.dot_dimension_numbers<[1], [0], [0], [1], [0, 0, 1, 1], [], []>} : vector<2x6xbf16>, vector<6x384xbf16>, vector<2x384xf32> -> vector<2x384xf32>
    %168 = arith.truncf %167 : vector<2x384xf32> to vector<2x384xbf16>
    %c0_150 = arith.constant 0 : index
    %c0_151 = arith.constant 0 : index
    %c0_152 = arith.constant 0 : index
    %169 = vector.load %arg18[%c0_150, %c0_151, %c0_152] : memref<3x384x256xbf16, #tpu.memory_space<vmem>>, vector<1x384x256xbf16>
    %170 = vector.shape_cast %169 : vector<1x384x256xbf16> to vector<384x256xbf16>
    %cst_153 = arith.constant dense<0.000000e+00> : vector<2x256xf32>
    %171 = tpu.matmul %168, %170, %cst_153 {dimension_numbers = #tpu.dot_dimension_numbers<[1], [0], [0], [1], [0, 0, 1, 1], [], []>} : vector<2x384xbf16>, vector<384x256xbf16>, vector<2x256xf32> -> vector<2x256xf32>
    %172 = arith.addf %164, %171 : vector<2x256xf32>
    %c1_154 = arith.constant 1 : index
    %c0_155 = arith.constant 0 : index
    %c0_156 = arith.constant 0 : index
    %173 = vector.load %arg17[%c1_154, %c0_155, %c0_156] : memref<3x2x6xbf16, #tpu.memory_space<vmem>>, vector<1x2x6xbf16>
    %174 = vector.shape_cast %173 : vector<1x2x6xbf16> to vector<2x6xbf16>
    %cst_157 = arith.constant dense<0.000000e+00> : vector<2x384xf32>
    %175 = tpu.matmul %174, %163, %cst_157 {dimension_numbers = #tpu.dot_dimension_numbers<[1], [0], [0], [1], [0, 0, 1, 1], [], []>} : vector<2x6xbf16>, vector<6x384xbf16>, vector<2x384xf32> -> vector<2x384xf32>
    %176 = arith.truncf %175 : vector<2x384xf32> to vector<2x384xbf16>
    %c1_158 = arith.constant 1 : index
    %c0_159 = arith.constant 0 : index
    %c0_160 = arith.constant 0 : index
    %177 = vector.load %arg18[%c1_158, %c0_159, %c0_160] : memref<3x384x256xbf16, #tpu.memory_space<vmem>>, vector<1x384x256xbf16>
    %178 = vector.shape_cast %177 : vector<1x384x256xbf16> to vector<384x256xbf16>
    %cst_161 = arith.constant dense<0.000000e+00> : vector<2x256xf32>
    %179 = tpu.matmul %176, %178, %cst_161 {dimension_numbers = #tpu.dot_dimension_numbers<[1], [0], [0], [1], [0, 0, 1, 1], [], []>} : vector<2x384xbf16>, vector<384x256xbf16>, vector<2x256xf32> -> vector<2x256xf32>
    %180 = arith.addf %172, %179 : vector<2x256xf32>
    %c2_162 = arith.constant 2 : index
    %c0_163 = arith.constant 0 : index
    %c0_164 = arith.constant 0 : index
    %181 = vector.load %arg17[%c2_162, %c0_163, %c0_164] : memref<3x2x6xbf16, #tpu.memory_space<vmem>>, vector<1x2x6xbf16>
    %182 = vector.shape_cast %181 : vector<1x2x6xbf16> to vector<2x6xbf16>
    %cst_165 = arith.constant dense<0.000000e+00> : vector<2x384xf32>
    %183 = tpu.matmul %182, %163, %cst_165 {dimension_numbers = #tpu.dot_dimension_numbers<[1], [0], [0], [1], [0, 0, 1, 1], [], []>} : vector<2x6xbf16>, vector<6x384xbf16>, vector<2x384xf32> -> vector<2x384xf32>
    %184 = arith.truncf %183 : vector<2x384xf32> to vector<2x384xbf16>
    %c2_166 = arith.constant 2 : index
    %c0_167 = arith.constant 0 : index
    %c0_168 = arith.constant 0 : index
    %185 = vector.load %arg18[%c2_166, %c0_167, %c0_168] : memref<3x384x256xbf16, #tpu.memory_space<vmem>>, vector<1x384x256xbf16>
    %186 = vector.shape_cast %185 : vector<1x384x256xbf16> to vector<384x256xbf16>
    %cst_169 = arith.constant dense<0.000000e+00> : vector<2x256xf32>
    %187 = tpu.matmul %184, %186, %cst_169 {dimension_numbers = #tpu.dot_dimension_numbers<[1], [0], [0], [1], [0, 0, 1, 1], [], []>} : vector<2x384xbf16>, vector<384x256xbf16>, vector<2x256xf32> -> vector<2x256xf32>
    %188 = arith.addf %180, %187 : vector<2x256xf32>
    %c0_170 = arith.constant 0 : index
    %c0_171 = arith.constant 0 : index
    %189 = vector.load %arg19[%c0_170, %c0_171] : memref<1x256xf32, #tpu.memory_space<vmem>>, vector<1x256xf32>
    %190 = vector.broadcast %189 : vector<1x256xf32> to vector<2x256xf32>
    %191 = arith.addf %188, %190 : vector<2x256xf32>
    %cst_172 = arith.constant 0.000000e+00 : f32
    %192 = vector.broadcast %cst_172 : f32 to vector<2x256xf32>
    %193 = arith.maximumf %191, %192 : vector<2x256xf32>
    %194 = arith.truncf %193 : vector<2x256xf32> to vector<2x256xbf16>
    %c0_173 = arith.constant 0 : index
    %c0_174 = arith.constant 0 : index
    %195 = vector.load %arg20[%c0_173, %c0_174] : memref<256x256xbf16, #tpu.memory_space<vmem>>, vector<256x256xbf16>
    %cst_175 = arith.constant dense<0.000000e+00> : vector<2x256xf32>
    %196 = tpu.matmul %194, %195, %cst_175 {dimension_numbers = #tpu.dot_dimension_numbers<[1], [0], [0], [1], [0, 0, 1, 1], [], []>} : vector<2x256xbf16>, vector<256x256xbf16>, vector<2x256xf32> -> vector<2x256xf32>
    %c0_176 = arith.constant 0 : index
    %c0_177 = arith.constant 0 : index
    %197 = vector.load %arg21[%c0_176, %c0_177] : memref<1x256xf32, #tpu.memory_space<vmem>>, vector<1x256xf32>
    %198 = vector.broadcast %197 : vector<1x256xf32> to vector<2x256xf32>
    %199 = arith.addf %196, %198 : vector<2x256xf32>
    %cst_178 = arith.constant 0.000000e+00 : f32
    %200 = vector.broadcast %cst_178 : f32 to vector<2x256xf32>
    %201 = arith.maximumf %199, %200 : vector<2x256xf32>
    %202 = arith.truncf %201 : vector<2x256xf32> to vector<2x256xbf16>
    %c0_179 = arith.constant 0 : index
    %c0_180 = arith.constant 0 : index
    %203 = vector.load %arg22[%c0_179, %c0_180] : memref<256x128xbf16, #tpu.memory_space<vmem>>, vector<256x128xbf16>
    %cst_181 = arith.constant dense<0.000000e+00> : vector<2x128xf32>
    %204 = tpu.matmul %202, %203, %cst_181 {dimension_numbers = #tpu.dot_dimension_numbers<[1], [0], [0], [1], [0, 0, 1, 1], [], []>} : vector<2x256xbf16>, vector<256x128xbf16>, vector<2x128xf32> -> vector<2x128xf32>
    %c0_182 = arith.constant 0 : index
    %c0_183 = arith.constant 0 : index
    %205 = vector.load %arg23[%c0_182, %c0_183] : memref<1x128xf32, #tpu.memory_space<vmem>>, vector<1x128xf32>
    %206 = vector.broadcast %205 : vector<1x128xf32> to vector<2x128xf32>
    %207 = arith.addf %204, %206 : vector<2x128xf32>
    %208 = tpu.iota {dimensions = array<i32: 1>} : vector<2x128xi32>
    %c1_i32 = arith.constant 1 : i32
    %209 = vector.broadcast %c1_i32 : i32 to vector<2x128xi32>
    %210 = arith.cmpi sge, %208, %209 : vector<2x128xi32>
    %c7_i32 = arith.constant 7 : i32
    %211 = vector.broadcast %c7_i32 : i32 to vector<2x128xi32>
    %212 = arith.cmpi slt, %208, %211 : vector<2x128xi32>
    %213 = arith.andi %210, %212 : vector<2x128xi1>
    %cst_184 = arith.constant 2.000000e+01 : f32
    %214 = vector.broadcast %cst_184 : f32 to vector<2x128xf32>
    %215 = arith.cmpf ogt, %207, %214 : vector<2x128xf32>
    %cst_185 = arith.constant 2.000000e+01 : f32
    %216 = vector.broadcast %cst_185 : f32 to vector<2x128xf32>
    %217 = arith.minimumf %207, %216 : vector<2x128xf32>
    %218 = math.exp %217 : vector<2x128xf32>
    %219 = math.log1p %218 : vector<2x128xf32>
    %220 = arith.select %215, %207, %219 : vector<2x128xi1>, vector<2x128xf32>
    %cst_186 = arith.constant 1.000000e+00 : f32
    %221 = vector.broadcast %cst_186 : f32 to vector<2x128xf32>
    %222 = arith.addf %220, %221 : vector<2x128xf32>
    %223 = arith.select %213, %222, %207 : vector<2x128xi1>, vector<2x128xf32>
    %c0_187 = arith.constant 0 : index
    %c0_188 = arith.constant 0 : index
    %224 = vector.load %arg24[%c0_187, %c0_188] : memref<2x128xf32, #tpu.memory_space<vmem>>, vector<2x128xf32>
    tpu.vector_store %arg24[%c0_187, %c0_188], %223 {strides = array<i32>} : memref<2x128xf32, #tpu.memory_space<vmem>>, vector<2x128xf32>,
    return
  }
  func.func @transform_0(%arg0: i32) -> (i32, i32) {
    %c0_i32 = arith.constant 0 : i32
    %c0_i32_0 = arith.constant 0 : i32
    %c0_i32_1 = arith.constant 0 : i32
    return %c0_i32, %c0_i32_0 : i32, i32
  }
  func.func @transform_1(%arg0: i32) -> (i32, i32, i32) {
    %c0_i32 = arith.constant 0 : i32
    %c0_i32_0 = arith.constant 0 : i32
    %c0_i32_1 = arith.constant 0 : i32
    %c0_i32_2 = arith.constant 0 : i32
    return %c0_i32, %c0_i32_0, %c0_i32_1 : i32, i32, i32
  }
  func.func @transform_2(%arg0: i32) -> (i32, i32, i32) {
    %c0_i32 = arith.constant 0 : i32
    %c0_i32_0 = arith.constant 0 : i32
    %c0_i32_1 = arith.constant 0 : i32
    %c0_i32_2 = arith.constant 0 : i32
    return %c0_i32, %c0_i32_0, %c0_i32_1 : i32, i32, i32
  }
  func.func @transform_3(%arg0: i32) -> (i32, i32) {
    %c0_i32 = arith.constant 0 : i32
    %c0_i32_0 = arith.constant 0 : i32
    %c0_i32_1 = arith.constant 0 : i32
    return %c0_i32, %c0_i32_0 : i32, i32
  }
  func.func @transform_4(%arg0: i32) -> (i32, i32, i32) {
    %c0_i32 = arith.constant 0 : i32
    %c0_i32_0 = arith.constant 0 : i32
    %c0_i32_1 = arith.constant 0 : i32
    %c0_i32_2 = arith.constant 0 : i32
    return %c0_i32, %c0_i32_0, %c0_i32_1 : i32, i32, i32
  }
  func.func @transform_5(%arg0: i32) -> (i32, i32, i32) {
    %c0_i32 = arith.constant 0 : i32
    %c0_i32_0 = arith.constant 0 : i32
    %c0_i32_1 = arith.constant 0 : i32
    %c0_i32_2 = arith.constant 0 : i32
    return %c0_i32, %c0_i32_0, %c0_i32_1 : i32, i32, i32
  }
  func.func @transform_6(%arg0: i32) -> (i32, i32) {
    %c0_i32 = arith.constant 0 : i32
    %c0_i32_0 = arith.constant 0 : i32
    %c0_i32_1 = arith.constant 0 : i32
    return %c0_i32, %c0_i32_0 : i32, i32
  }
  func.func @transform_7(%arg0: i32) -> (i32, i32, i32) {
    %c0_i32 = arith.constant 0 : i32
    %c0_i32_0 = arith.constant 0 : i32
    %c0_i32_1 = arith.constant 0 : i32
    %c0_i32_2 = arith.constant 0 : i32
    return %c0_i32, %c0_i32_0, %c0_i32_1 : i32, i32, i32
  }
  func.func @transform_8(%arg0: i32) -> (i32, i32, i32) {
    %c0_i32 = arith.constant 0 : i32
    %c0_i32_0 = arith.constant 0 : i32
    %c0_i32_1 = arith.constant 0 : i32
    %c0_i32_2 = arith.constant 0 : i32
    return %c0_i32, %c0_i32_0, %c0_i32_1 : i32, i32, i32
  }
  func.func @transform_9(%arg0: i32) -> (i32, i32) {
    %c0_i32 = arith.constant 0 : i32
    %c0_i32_0 = arith.constant 0 : i32
    %c0_i32_1 = arith.constant 0 : i32
    return %c0_i32, %c0_i32_0 : i32, i32
  }
  func.func @transform_10(%arg0: i32) -> (i32, i32, i32) {
    %c0_i32 = arith.constant 0 : i32
    %c0_i32_0 = arith.constant 0 : i32
    %c0_i32_1 = arith.constant 0 : i32
    %c0_i32_2 = arith.constant 0 : i32
    return %c0_i32, %c0_i32_0, %c0_i32_1 : i32, i32, i32
  }
  func.func @transform_11(%arg0: i32) -> (i32, i32, i32) {
    %c0_i32 = arith.constant 0 : i32
    %c0_i32_0 = arith.constant 0 : i32
    %c0_i32_1 = arith.constant 0 : i32
    %c0_i32_2 = arith.constant 0 : i32
    return %c0_i32, %c0_i32_0, %c0_i32_1 : i32, i32, i32
  }
  func.func @transform_12(%arg0: i32) -> (i32, i32) {
    %c0_i32 = arith.constant 0 : i32
    %c0_i32_0 = arith.constant 0 : i32
    %c0_i32_1 = arith.constant 0 : i32
    return %c0_i32, %c0_i32_0 : i32, i32
  }
  func.func @transform_13(%arg0: i32) -> (i32, i32, i32) {
    %c0_i32 = arith.constant 0 : i32
    %c0_i32_0 = arith.constant 0 : i32
    %c0_i32_1 = arith.constant 0 : i32
    %c0_i32_2 = arith.constant 0 : i32
    return %c0_i32, %c0_i32_0, %c0_i32_1 : i32, i32, i32
  }
  func.func @transform_14(%arg0: i32) -> (i32, i32, i32) {
    %c0_i32 = arith.constant 0 : i32
    %c0_i32_0 = arith.constant 0 : i32
    %c0_i32_1 = arith.constant 0 : i32
    %c0_i32_2 = arith.constant 0 : i32
    return %c0_i32, %c0_i32_0, %c0_i32_1 : i32, i32, i32
  }
  func.func @transform_15(%arg0: i32) -> (i32, i32) {
    %c0_i32 = arith.constant 0 : i32
    %c0_i32_0 = arith.constant 0 : i32
    %c0_i32_1 = arith.constant 0 : i32
    return %c0_i32, %c0_i32_0 : i32, i32
  }
  func.func @transform_16(%arg0: i32) -> (i32, i32, i32) {
    %c0_i32 = arith.constant 0 : i32
    %c0_i32_0 = arith.constant 0 : i32
    %c0_i32_1 = arith.constant 0 : i32
    %c0_i32_2 = arith.constant 0 : i32
    return %c0_i32, %c0_i32_0, %c0_i32_1 : i32, i32, i32
  }
  func.func @transform_17(%arg0: i32) -> (i32, i32, i32) {
    %c0_i32 = arith.constant 0 : i32
    %c0_i32_0 = arith.constant 0 : i32
    %c0_i32_1 = arith.constant 0 : i32
    %c0_i32_2 = arith.constant 0 : i32
    return %c0_i32, %c0_i32_0, %c0_i32_1 : i32, i32, i32
  }
  func.func @transform_18(%arg0: i32) -> (i32, i32) {
    %c0_i32 = arith.constant 0 : i32
    %c0_i32_0 = arith.constant 0 : i32
    %c0_i32_1 = arith.constant 0 : i32
    return %c0_i32, %c0_i32_0 : i32, i32
  }
  func.func @transform_19(%arg0: i32) -> (i32, i32) {
    %c0_i32 = arith.constant 0 : i32
    %c0_i32_0 = arith.constant 0 : i32
    %c0_i32_1 = arith.constant 0 : i32
    return %c0_i32, %c0_i32_0 : i32, i32
  }
  func.func @transform_20(%arg0: i32) -> (i32, i32) {
    %c0_i32 = arith.constant 0 : i32
    %c0_i32_0 = arith.constant 0 : i32
    %c0_i32_1 = arith.constant 0 : i32
    return %c0_i32, %c0_i32_0 : i32, i32
  }
  func.func @transform_21(%arg0: i32) -> (i32, i32) {
    %c0_i32 = arith.constant 0 : i32
    %c0_i32_0 = arith.constant 0 : i32
    %c0_i32_1 = arith.constant 0 : i32
    return %c0_i32, %c0_i32_0 : i32, i32
  }
  func.func @transform_22(%arg0: i32) -> (i32, i32) {
    %c0_i32 = arith.constant 0 : i32
    %c0_i32_0 = arith.constant 0 : i32
    %c0_i32_1 = arith.constant 0 : i32
    return %c0_i32, %c0_i32_0 : i32, i32
  }
  func.func @transform_23(%arg0: i32) -> (i32, i32) {
    %c0_i32 = arith.constant 0 : i32
    %c0_i32_0 = arith.constant 0 : i32
    %c0_i32_1 = arith.constant 0 : i32
    return %c0_i32, %c0_i32_0 : i32, i32
  }
}

</mosaic_0001>

<bundles_post_ra>
// kernel: cnn_forward.1
= control target key start
LH: loop header
LB: loop body
LE: loop exit
PB: predicated region body
PF: predicated region fallthrough
CT: control target
= control target key end

     0   :  { %v28915_v0 = vmov 0   ;;  %vm381_vm0 = vcmask 523264   ;;  %vm22041_vm1 = vmmov 0   ;;  %vm4948_vm2 = vcmask 1046528   ;;  %s28884_s0 = inlined_call_operand.vmem [shape: bf16[192,384], index: 0, kind: input, shape index: {}]   ;;  %s28885_s1 = inlined_call_operand.vmem [shape: bf16[4,94,192], index: 1, kind: input, shape index: {}]   ;;  %s28886_s2 = inlined_call_operand.vmem [shape: bf16[4,384,376], index: 2, kind: input, shape index: {}]   ;;  %s28887_s4 = inlined_call_operand.vmem [shape: bf16[3,46,94], index: 4, kind: input, shape index: {}]   ;;  %s28888_s3 = inlined_call_operand.vmem [shape: f32[1,376], index: 3, kind: input, shape index: {}]   ;;  %s28889_s5 = inlined_call_operand.vmem [shape: bf16[3,376,368], index: 5, kind: input, shape index: {}]   ;;  %s28890_s7 = inlined_call_operand.vmem [shape: bf16[3,22,46], index: 7, kind: input, shape index: {}]   ;;  %s28891_s8 = inlined_call_operand.vmem [shape: bf16[3,368,352], index: 8, kind: input, shape index: {}]   ;;  %s28892_s6 = inlined_call_operand.vmem [shape: f32[1,368], index: 6, kind: input, shape index: {}]   ;;  %s28893_s10 = inlined_call_operand.vmem [shape: bf16[3,10,22], index: 10, kind: input, shape index: {}]   ;;  %s28894_s11 = inlined_call_operand.vmem [shape: bf16[3,352,320], index: 11, kind: input, shape index: {}]   ;;  %s28895_s9 = inlined_call_operand.vmem [shape: f32[1,352], index: 9, kind: input, shape index: {}]   ;;  %s28896_s14 = inlined_call_operand.vmem [shape: bf16[3,320,384], index: 14, kind: input, shape index: {}]   ;;  %s28897_s12 = inlined_call_operand.vmem [shape: f32[1,320], index: 12, kind: input, shape index: {}]   ;;  %s28898_s13 = inlined_call_operand.vmem [shape: bf16[3,6,10], index: 13, kind: input, shape index: {}]   ;;  %s28899_s17 = inlined_call_operand.vmem [shape: bf16[3,384,256], index: 17, kind: input, shape index: {}]   ;;  %s28900_s15 = inlined_call_operand.vmem [shape: f32[1,384], index: 15, kind: input, shape index: {}]   ;;  %s28901_s16 = inlined_call_operand.vmem [shape: bf16[3,2,6], index: 16, kind: input, shape index: {}]   ;;  %s28902_s19 = inlined_call_operand.vmem [shape: bf16[256,256], index: 19, kind: input, shape index: {}]   ;;  %s28903_s21 = inlined_call_operand.vmem [shape: bf16[256,128], index: 21, kind: input, shape index: {}]   ;;  %s28904_s18 = inlined_call_operand.vmem [shape: f32[1,256], index: 18, kind: input, shape index: {}]   ;;  %s28905_s20 = inlined_call_operand.vmem [shape: f32[1,256], index: 20, kind: input, shape index: {}]   ;;  %s28906_s22 = inlined_call_operand.vmem [shape: f32[1,128], index: 22, kind: input, shape index: {}]   ;;  %s28907_s23 = inlined_call_operand.vmem [shape: f32[2,128], index: 23, kind: output, shape index: {}]  }
   0x1   :  { %28927 = sst [smem:[#allocation48_spill]] %s28884_s0  ;;  %493 = vmatprep.subr.bf16.mxu1 %v28915_v0  ;;  %vm4938_vm3 = vcmask 769024   ;;  %vm5822_vm4 = vcmask 1043456   ;;  %vm5812_vm5 = vcmask 982016   ;;  %vm7686_vm6 = vcmask 375808  }
   0x2   :  { %28928 = sst [smem:[#allocation49_spill]] %s28885_s1  ;;  %vm8483_vm7 = vcmask 916480   ;;  %vm10109_vm8 = vcmask 1042432   ;;  %vm10105_vm9 = vcmask 179200   ;;  %vm10833_vm10 = vcmask 785408  }
   0x3   :  { %28929 = sst [smem:[#allocation50_spill]] %s28886_s2  ;;  %vm12281_vm11 = vcmask 1044480   ;;  %vm12277_vm12 = vcmask 80896   ;;  %vm14280_vm13 = vcmask 48128  }
   0x4   :  { %28930 = sst [smem:[#allocation51_spill]] %s28887_s4 }
   0x5   :  { %28931 = sst [smem:[#allocation52_spill]] %s28888_s3 }
   0x6   :  { %28932 = sst [smem:[#allocation53_spill]] %s28889_s5 }
   0x7   :  { %28933 = sst [smem:[#allocation54_spill]] %s28890_s7 }
   0x8   :  { %28934 = sst [smem:[#allocation55_spill]] %s28891_s8 }
   0x9   :  { %s28935_s24 = sld [smem:[#allocation48_spill]] }
   0xa   :  { %s28936_s28 = sld [smem:[#allocation49_spill]] }
   0xb   :  { %s28937_s2 = sld [smem:[#allocation50_spill]] }
   0xc   :  { %s28982_s29 = sld [smem:[#allocation52_spill]] }
   0xd   :  { %s29024_s0 = sld [smem:[#allocation51_spill]] }
   0xe   :  { %s29032_s26 = sld [smem:[#allocation53_spill]] }
   0xf   :  { %v22166_v1 = vld [vmem:[%s28935_s24 + $0xac] ss:$12 sps:$4 sm:$0xff]   ;;  %v22171_v2 = vld [vmem:[%s28935_s24 + $0xb0] ss:$12 sps:$4 sm:$0xff]   ;;  %v22177_v3 = vld [vmem:[%s28935_s24 + $0xa8] ss:$12 sps:$4 sm:$0xff]  }
  0x10   :  { %400 = vmatprep.subr.bf16.mxu0 %v22166_v1  ;;  %494 = vmatpush1.bf16.msra.mxu1 %v22171_v2  ;;  %v22183_v4 = vld [vmem:[%s28935_s24 + $0x94] ss:$12 sps:$4 sm:$0xff]   ;;  %v22190_v5 = vld [vmem:[%s28935_s24 + $0x98] ss:$12 sps:$4 sm:$0xff]   ;;  %v22195_v6 = vld [vmem:[%s28935_s24 + $0x90] ss:$12 sps:$4 sm:$0xff]  }
  0x11   :  { %401 = vmatpush1.bf16.msra.mxu0 %v22177_v3  ;;  %495 = vmatprep.subr.bf16.mxu1 %v28915_v0  ;;  %v22201_v7 = vld [vmem:[%s28935_s24 + $0x7c] ss:$12 sps:$4 sm:$0xff]   ;;  %v22207_v8 = vld [vmem:[%s28935_s24 + $0x80] ss:$12 sps:$4 sm:$0xff]   ;;  %v22214_v9 = vld [vmem:[%s28935_s24 + $0x78] ss:$12 sps:$4 sm:$0xff]  }
  0x12   :  { %402 = vmatprep.subr.bf16.mxu0 %v22183_v4  ;;  %v22220_v10 = vld [vmem:[%s28935_s24 + $0x64] ss:$12 sps:$4 sm:$0xff]   ;;  %v22226_v11 = vld [vmem:[%s28935_s24 + $0x68] ss:$12 sps:$4 sm:$0xff]   ;;  %v22233_v12 = vld [vmem:[%s28935_s24 + $0x60] ss:$12 sps:$4 sm:$0xff]  }
  0x13   :  { %v22239_v13 = vld [vmem:[%s28935_s24 + $0x4c] ss:$12 sps:$4 sm:$0xff]   ;;  %v22245_v14 = vld [vmem:[%s28935_s24 + $0x50] ss:$12 sps:$4 sm:$0xff]   ;;  %v22252_v15 = vld [vmem:[%s28935_s24 + $0x48] ss:$12 sps:$4 sm:$0xff]  }
  0x14   :  { %496 = vmatpush1.bf16.msra.mxu1 %v22190_v5  ;;  %v22258_v16 = vld [vmem:[%s28935_s24 + $0x34] ss:$12 sps:$4 sm:$0xff]   ;;  %v22264_v17 = vld [vmem:[%s28935_s24 + $0x38] ss:$12 sps:$4 sm:$0xff]   ;;  %v22271_v18 = vld [vmem:[%s28935_s24 + $0x30] ss:$12 sps:$4 sm:$0xff]  }
  0x15   :  { %403 = vmatpush1.bf16.msra.mxu0 %v22195_v6  ;;  %497 = vmatprep.subr.bf16.mxu1 %v28915_v0  ;;  %v22277_v19 = vld [vmem:[%s28935_s24 + $0x1c] ss:$12 sps:$4 sm:$0xff]   ;;  %v22283_v20 = vld [vmem:[%s28935_s24 + $0x20] ss:$12 sps:$4 sm:$0xff]   ;;  %v22290_v21 = vld [vmem:[%s28935_s24 + $0x18] ss:$12 sps:$4 sm:$0xff]  }
  0x16   :  { %404 = vmatprep.subr.bf16.mxu0 %v22201_v7  ;;  %v22296_v22 = vld [vmem:[%s28935_s24 + $0x4] ss:$12 sps:$4 sm:$0xff]   ;;  %v22302_v23 = vld [vmem:[%s28935_s24 + $0x8] ss:$12 sps:$4 sm:$0xff]   ;;  %v22307_v24 = vld [vmem:[%s28935_s24] ss:$12 sps:$4 sm:$0xff]  }
  0x17   :  { %v22314_v25 = vld [vmem:[%s28935_s24 + $0x10c] ss:$12 sps:$4 sm:$0xff]   ;;  %v22324_v27 = vld [vmem:[%s28935_s24 + $0x110] ss:$12 sps:$4 sm:$0xff]   ;;  %v22332_v28 = vld [vmem:[%s28935_s24 + $0x108] ss:$12 sps:$4 sm:$0xff]  }
  0x18   :  { %498 = vmatpush1.bf16.msra.mxu1 %v22207_v8  ;;  %v20146_v26 = vld [vmem:[%s28936_s28 + $0x4] ss:$8 sps:$4 sm:$0xff]   ;;  %v22338_v29 = vld [vmem:[%s28935_s24 + $0xf4] ss:$12 sps:$4 sm:$0xff]   ;;  %v22352_v31 = vld [vmem:[%s28935_s24 + $0xf0] ss:$12 sps:$4 sm:$0xff]  }
  0x19   :  { %405 = vmatpush1.bf16.msra.mxu0 %v22214_v9  ;;  %499 = vmatprep.subr.bf16.mxu1 %v28915_v0  ;;  %v22345_v30 = vld [vmem:[%s28935_s24 + $0xf8] ss:$12 sps:$4 sm:$0xff]   ;;  %v22358_v32 = vld [vmem:[%s28935_s24 + $0xdc] ss:$12 sps:$4 sm:$0xff]   ;;  %v22364_v33 = vld [vmem:[%s28935_s24 + $0xe0] ss:$12 sps:$4 sm:$0xff]  }
  0x1a   :  { %406 = vmatprep.subr.bf16.mxu0 %v22220_v10  ;;  %16191 = vmatprep.mubr.msk.bf16.mxu1 %vm381_vm0, %v20146_v26  ;;  %v22371_v34 = vld [vmem:[%s28935_s24 + $0xd8] ss:$12 sps:$4 sm:$0xff]   ;;  %v22383_v36 = vld [vmem:[%s28935_s24 + $0xc8] ss:$12 sps:$4 sm:$0xff]   ;;  %v22390_v37 = vld [vmem:[%s28935_s24 + $0xc0] ss:$12 sps:$4 sm:$0xff]  }
  0x1b   :  { %16185 = vmatprep.mubr.msk.bf16.mxu0 %vm381_vm0, %v20146_v26  ;;  %v22377_v35 = vld [vmem:[%s28935_s24 + $0xc4] ss:$12 sps:$4 sm:$0xff]   ;;  %v20144_v38 = vld [vmem:[%s28936_s28] ss:$8 sps:$4 sm:$0xff]   ;;  %v20147_v39 = vld [vmem:[%s28936_s28 + $0x14] ss:$8 sps:$4 sm:$0xff]  }
  0x1c   :  { %500 = vmatpush1.bf16.msra.mxu1 %v22226_v11  ;;  %v20149_v40 = vld [vmem:[%s28936_s28 + $0x10] ss:$8 sps:$4 sm:$0xff]   ;;  %v20150_v41 = vld [vmem:[%s28936_s28 + $0x24] ss:$8 sps:$4 sm:$0xff]   ;;  %v20152_v42 = vld [vmem:[%s28936_s28 + $0x20] ss:$8 sps:$4 sm:$0xff]  }
  0x1d   :  { %407 = vmatpush1.bf16.msra.mxu0 %v22233_v12  ;;  %501 = vmatprep.subr.bf16.mxu1 %v28915_v0  ;;  %v20153_v43 = vld [vmem:[%s28936_s28 + $0x34] ss:$8 sps:$4 sm:$0xff]   ;;  %v20155_v44 = vld [vmem:[%s28936_s28 + $0x30] ss:$8 sps:$4 sm:$0xff]   ;;  %v20156_v45 = vld [vmem:[%s28936_s28 + $0x44] ss:$8 sps:$4 sm:$0xff]  }
  0x1e   :  { %408 = vmatprep.subr.bf16.mxu0 %v22239_v13  ;;  %v20158_v46 = vld [vmem:[%s28936_s28 + $0x40] ss:$8 sps:$4 sm:$0xff]   ;;  %v20159_v47 = vld [vmem:[%s28936_s28 + $0x54] ss:$8 sps:$4 sm:$0x7f]   ;;  %s29040_s5 = sld [smem:[#allocation55_spill]] }
  0x1f   :  { %v20161_v48 = vld [vmem:[%s28936_s28 + $0x50] ss:$8 sps:$4 sm:$0x7f]   ;;  %v20164_v49 = vld [vmem:[%s28936_s28 + $0x64] ss:$8 sps:$4 sm:$0xff]   ;;  %s29041_s27 = sld [smem:[#allocation54_spill]] }
  0x20   :  { %502 = vmatpush1.bf16.msra.mxu1 %v22245_v14  ;;  %v20182_v50 = vld [vmem:[%s28937_s2 + $0x2ec] ss:$12 sps:$4 sm:$0xff]   ;;  %v20162_v51 = vld [vmem:[%s28936_s28 + $0x60] ss:$8 sps:$4 sm:$0xff]   ;;  %v20165_v52 = vld [vmem:[%s28936_s28 + $0x74] ss:$8 sps:$4 sm:$0xff]  }
  0x21   :  { %409 = vmatpush1.bf16.msra.mxu0 %v22252_v15  ;;  %503 = vmatprep.subr.bf16.mxu1 %v28915_v0  ;;  %v20180_v53 = vld [vmem:[%s28937_s2 + $0x2e8] ss:$12 sps:$4 sm:$0xff]   ;;  %v20183_v55 = vld [vmem:[%s28937_s2 + $0x2d0] ss:$12 sps:$4 sm:$0xff]   ;;  %v20168_v57 = vld [vmem:[%s28936_s28 + $0x84] ss:$8 sps:$4 sm:$0xff]  }
  0x22   :  { %410 = vmatprep.subr.bf16.mxu0 %v22258_v16  ;;  %v20185_v54 = vld [vmem:[%s28937_s2 + $0x2d4] ss:$12 sps:$4 sm:$0xff]   ;;  %v20167_v56 = vld [vmem:[%s28936_s28 + $0x70] ss:$8 sps:$4 sm:$0xff]   ;;  %v20188_v60 = vld [vmem:[%s28937_s2 + $0x2bc] ss:$12 sps:$4 sm:$0xff]  }
  0x23   :  { %v20170_v58 = vld [vmem:[%s28936_s28 + $0x80] ss:$8 sps:$4 sm:$0xff]   ;;  %v20171_v59 = vld [vmem:[%s28936_s28 + $0x94] ss:$8 sps:$4 sm:$0xff]   ;;  %v20173_v61 = vld [vmem:[%s28936_s28 + $0x90] ss:$8 sps:$4 sm:$0xff]  }
  0x24   :  { %504 = vmatpush1.bf16.msra.mxu1 %v22264_v17  ;;  %v20186_v62 = vld [vmem:[%s28937_s2 + $0x2b8] ss:$12 sps:$4 sm:$0xff]  }
  0x25   :  { %411 = vmatpush1.bf16.msra.mxu0 %v22271_v18  ;;  %505 = vmatprep.subr.bf16.mxu1 %v28915_v0  ;;  %v20174_v63 = vld [vmem:[%s28936_s28 + $0xa4] ss:$8 sps:$4 sm:$0xff]  }
  0x26   :  { %412 = vmatprep.subr.bf16.mxu0 %v22277_v19  ;;  %v20219_v26 = vld [vmem:[%s28937_s2 + $0x378] ss:$12 sps:$4 sm:$0xff]  }
  0x28   :  { %506 = vmatpush1.bf16.msra.mxu1 %v22283_v20 }
  0x29   :  { %413 = vmatpush1.bf16.msra.mxu0 %v22290_v21  ;;  %507 = vmatprep.subr.bf16.mxu1 %v28915_v0 }
  0x2a   :  { %414 = vmatprep.subr.bf16.mxu0 %v22296_v22 }
  0x2c   :  { %508 = vmatpush1.bf16.msra.mxu1 %v22302_v23 }
  0x2d   :  { %415 = vmatpush1.bf16.msra.mxu0 %v22307_v24  ;;  %517 = vmatprep.subr.bf16.mxu1 %v28915_v0 }
  0x2e   :  { %424 = vmatprep.subr.bf16.mxu0 %v22314_v25 }
  0x30   :  { %518 = vmatpush2.bf16.msra.mxu1 %v22324_v27 }
  0x31   :  { %425 = vmatpush2.bf16.msra.mxu0 %v22332_v28  ;;  %519 = vmatprep.subr.bf16.mxu1 %v28915_v0 }
  0x32   :  { %426 = vmatprep.subr.bf16.mxu0 %v22338_v29 }
  0x34   :  { %520 = vmatpush2.bf16.msra.mxu1 %v22345_v30 }
  0x35   :  { %427 = vmatpush2.bf16.msra.mxu0 %v22352_v31  ;;  %521 = vmatprep.subr.bf16.mxu1 %v28915_v0 }
  0x36   :  { %428 = vmatprep.subr.bf16.mxu0 %v22358_v32 }
  0x38   :  { %522 = vmatpush2.bf16.msra.mxu1 %v22364_v33 }
  0x39   :  { %429 = vmatpush2.bf16.msra.mxu0 %v22371_v34  ;;  %523 = vmatprep.subr.bf16.mxu1 %v28915_v0 }
  0x3a   :  { %430 = vmatprep.subr.bf16.mxu0 %v22377_v35 }
  0x3c   :  { %524 = vmatpush2.bf16.msra.mxu1 %v22383_v36 }
  0x3d   :  { %431 = vmatpush2.bf16.msra.mxu0 %v22390_v37  ;;  %866 = vmatprep.subr.bf16.mxu1 %v28915_v0 }
  0x3e   :  { %773 = vmatprep.subr.bf16.mxu0 %v22166_v1  ;;  %v20191_v1 = vld [vmem:[%s28937_s2 + $0x2a4] ss:$12 sps:$4 sm:$0xff]  }
  0x3f   :  { %526 = vmatmul.mubr.bf16.vlgmr.msra.gmra.mxu1 %v20144_v38 }
  0x40   :  { %433 = vmatmul.mubr.bf16.vlgmr.msra.gmra.mxu0 %v20144_v38  ;;  %867 = vmatpush1.bf16.msra.mxu1 %v22171_v2  ;;  %v20189_v2 = vld [vmem:[%s28937_s2 + $0x2a0] ss:$12 sps:$4 sm:$0xff]   ;;  %v20237_v38 = vld [vmem:[%s28937_s2 + $0x330] ss:$12 sps:$4 sm:$0xff]  }
  0x41   :  { %774 = vmatpush1.bf16.msra.mxu0 %v22177_v3  ;;  %868 = vmatprep.subr.bf16.mxu1 %v28915_v0  ;;  %v20194_v3 = vld [vmem:[%s28937_s2 + $0x28c] ss:$12 sps:$4 sm:$0xff]  }
  0x42   :  { %775 = vmatprep.subr.bf16.mxu0 %v22183_v4  ;;  %16192 = vmatprep.mubr.msk.bf16.mxu1 %vm381_vm0, %v20147_v39  ;;  %v20176_v4 = vld [vmem:[%s28936_s28 + $0xa0] ss:$8 sps:$4 sm:$0xff]  }
  0x43   :  { %16186 = vmatprep.mubr.msk.bf16.mxu0 %vm381_vm0, %v20147_v39  ;;  %v20240_v39 = vld [vmem:[%s28937_s2 + $0x3d8] ss:$12 sps:$4 sm:$0xff]  }
  0x44   :  { %869 = vmatpush1.bf16.msra.mxu1 %v22190_v5  ;;  %v20192_v5 = vld [vmem:[%s28937_s2 + $0x288] ss:$12 sps:$4 sm:$0xff]  }
  0x45   :  { %776 = vmatpush1.bf16.msra.mxu0 %v22195_v6  ;;  %870 = vmatprep.subr.bf16.mxu1 %v28915_v0  ;;  %v20177_v6 = vld [vmem:[%s28936_s28 + $0xb4] ss:$8 sps:$4 sm:$0x7f]  }
  0x46   :  { %777 = vmatprep.subr.bf16.mxu0 %v22201_v7  ;;  %v20197_v7 = vld [vmem:[%s28937_s2 + $0x274] ss:$12 sps:$4 sm:$0xff]  }
  0x47   :  { %534 = vmatmul.mubr.bf16.gmra.mxu1 %v20149_v40 }
  0x48   :  { %443 = vmatmul.mubr.bf16.gmra.mxu0 %v20149_v40  ;;  %871 = vmatpush1.bf16.msra.mxu1 %v22207_v8  ;;  %v20195_v8 = vld [vmem:[%s28937_s2 + $0x270] ss:$12 sps:$4 sm:$0xff]  }
  0x49   :  { %778 = vmatpush1.bf16.msra.mxu0 %v22214_v9  ;;  %872 = vmatprep.subr.bf16.mxu1 %v28915_v0  ;;  %v20200_v9 = vld [vmem:[%s28937_s2 + $0x25c] ss:$12 sps:$4 sm:$0xff]  }
  0x4a   :  { %779 = vmatprep.subr.bf16.mxu0 %v22220_v10  ;;  %16193 = vmatprep.mubr.msk.bf16.mxu1 %vm381_vm0, %v20150_v41  ;;  %v20179_v10 = vld [vmem:[%s28936_s28 + $0xb0] ss:$8 sps:$4 sm:$0x7f]   ;;  %v20245_v40 = vld [vmem:[%s28937_s2 + $0x31c] ss:$12 sps:$4 sm:$0xff]  }
  0x4b   :  { %16187 = vmatprep.mubr.msk.bf16.mxu0 %vm381_vm0, %v20150_v41  ;;  %v20248_v41 = vld [vmem:[%s28937_s2 + $0x3c4] ss:$12 sps:$4 sm:$0xff]  }
  0x4c   :  { %873 = vmatpush1.bf16.msra.mxu1 %v22226_v11  ;;  %v20198_v11 = vld [vmem:[%s28937_s2 + $0x258] ss:$12 sps:$4 sm:$0xff]  }
  0x4d   :  { %780 = vmatpush1.bf16.msra.mxu0 %v22233_v12  ;;  %874 = vmatprep.subr.bf16.mxu1 %v28915_v0  ;;  %v20203_v12 = vld [vmem:[%s28937_s2 + $0x244] ss:$12 sps:$4 sm:$0xff]  }
  0x4e   :  { %781 = vmatprep.subr.bf16.mxu0 %v22239_v13  ;;  %v20206_v13 = vld [vmem:[%s28937_s2 + $0x46c] ss:$12 sps:$4 sm:$0xff]  }
  0x4f   :  { %542 = vmatmul.mubr.bf16.gmra.mxu1 %v20152_v42 }
  0x50   :  { %453 = vmatmul.mubr.bf16.gmra.mxu0 %v20152_v42  ;;  %875 = vmatpush1.bf16.msra.mxu1 %v22245_v14  ;;  %v20201_v14 = vld [vmem:[%s28937_s2 + $0x240] ss:$12 sps:$4 sm:$0xff]   ;;  %v20243_v42 = vld [vmem:[%s28937_s2 + $0x318] ss:$12 sps:$4 sm:$0xff]  }
  0x51   :  { %782 = vmatpush1.bf16.msra.mxu0 %v22252_v15  ;;  %876 = vmatprep.subr.bf16.mxu1 %v28915_v0  ;;  %v20204_v15 = vld [vmem:[%s28937_s2 + $0x468] ss:$12 sps:$4 sm:$0xff]  }
  0x52   :  { %783 = vmatprep.subr.bf16.mxu0 %v22258_v16  ;;  %16194 = vmatprep.mubr.msk.bf16.mxu1 %vm381_vm0, %v20153_v43  ;;  %v20209_v16 = vld [vmem:[%s28937_s2 + $0x3ac] ss:$12 sps:$4 sm:$0xff]  }
  0x53   :  { %16188 = vmatprep.mubr.msk.bf16.mxu0 %vm381_vm0, %v20153_v43  ;;  %v20246_v43 = vld [vmem:[%s28937_s2 + $0x3c0] ss:$12 sps:$4 sm:$0xff]  }
  0x54   :  { %877 = vmatpush1.bf16.msra.mxu1 %v22264_v17  ;;  %v20212_v17 = vld [vmem:[%s28937_s2 + $0x454] ss:$12 sps:$4 sm:$0xff]  }
  0x55   :  { %784 = vmatpush1.bf16.msra.mxu0 %v22271_v18  ;;  %878 = vmatprep.subr.bf16.mxu1 %v28915_v0  ;;  %v20207_v18 = vld [vmem:[%s28937_s2 + $0x3a8] ss:$12 sps:$4 sm:$0xff]  }
  0x56   :  { %785 = vmatprep.subr.bf16.mxu0 %v22277_v19  ;;  %v20210_v19 = vld [vmem:[%s28937_s2 + $0x450] ss:$12 sps:$4 sm:$0xff]  }
  0x57   :  { %550 = vmatmul.mubr.bf16.gmra.mxu1 %v20155_v44 }
  0x58   :  { %463 = vmatmul.mubr.bf16.gmra.mxu0 %v20155_v44  ;;  %879 = vmatpush1.bf16.msra.mxu1 %v22283_v20  ;;  %v20215_v20 = vld [vmem:[%s28937_s2 + $0x394] ss:$12 sps:$4 sm:$0xff]   ;;  %v20251_v44 = vld [vmem:[%s28937_s2 + $0x304] ss:$12 sps:$4 sm:$0xff]  }
  0x59   :  { %786 = vmatpush1.bf16.msra.mxu0 %v22290_v21  ;;  %880 = vmatprep.subr.bf16.mxu1 %v28915_v0  ;;  %v20218_v21 = vld [vmem:[%s28937_s2 + $0x43c] ss:$12 sps:$4 sm:$0xff]  }
  0x5a   :  { %787 = vmatprep.subr.bf16.mxu0 %v22296_v22  ;;  %16195 = vmatprep.mubr.msk.bf16.mxu1 %vm381_vm0, %v20156_v45  ;;  %v20213_v22 = vld [vmem:[%s28937_s2 + $0x390] ss:$12 sps:$4 sm:$0xff]  }
  0x5b   :  { %16189 = vmatprep.mubr.msk.bf16.mxu0 %vm381_vm0, %v20156_v45  ;;  %v20249_v45 = vld [vmem:[%s28937_s2 + $0x300] ss:$12 sps:$4 sm:$0xff]  }
  0x5c   :  { %881 = vmatpush1.bf16.msra.mxu1 %v22302_v23  ;;  %v20216_v23 = vld [vmem:[%s28937_s2 + $0x438] ss:$12 sps:$4 sm:$0xff]  }
  0x5d   :  { %788 = vmatpush1.bf16.msra.mxu0 %v22307_v24  ;;  %890 = vmatprep.subr.bf16.mxu1 %v28915_v0  ;;  %v20221_v24 = vld [vmem:[%s28937_s2 + $0x37c] ss:$12 sps:$4 sm:$0xff]  }
  0x5e   :  { %797 = vmatprep.subr.bf16.mxu0 %v22314_v25  ;;  %v20224_v25 = vld [vmem:[%s28937_s2 + $0x424] ss:$12 sps:$4 sm:$0xff]  }
  0x5f   :  { %558 = vmatmul.mubr.bf16.gmra.mxu1 %v20158_v46 }
  0x60   :  { %473 = vmatmul.mubr.bf16.gmra.mxu0 %v20158_v46  ;;  %891 = vmatpush2.bf16.msra.mxu1 %v22324_v27  ;;  %v20222_v27 = vld [vmem:[%s28937_s2 + $0x420] ss:$12 sps:$4 sm:$0xff]   ;;  %v20252_v46 = vld [vmem:[%s28937_s2 + $0x3b0] ss:$12 sps:$4 sm:$0xff]  }
  0x61   :  { %798 = vmatpush2.bf16.msra.mxu0 %v22332_v28  ;;  %892 = vmatprep.subr.bf16.mxu1 %v28915_v0  ;;  %v20227_v28 = vld [vmem:[%s28937_s2 + $0x364] ss:$12 sps:$4 sm:$0xff]  }
  0x62   :  { %799 = vmatprep.subr.bf16.mxu0 %v22338_v29  ;;  %16196 = vmatprep.mubr.msk.bf16.mxu1 %vm381_vm0, %v20159_v47  ;;  %v20230_v29 = vld [vmem:[%s28937_s2 + $0x40c] ss:$12 sps:$4 sm:$0xff]  }
  0x63   :  { %16190 = vmatprep.mubr.msk.bf16.mxu0 %vm381_vm0, %v20159_v47  ;;  %v22685_v47 = vld [vmem:[%s28937_s2 + $0x470] ss:$12 sps:$4 sm:$0xff]  }
  0x64   :  { %893 = vmatpush2.bf16.msra.mxu1 %v22345_v30  ;;  %v20225_v30 = vld [vmem:[%s28937_s2 + $0x360] ss:$12 sps:$4 sm:$0xff]  }
  0x65   :  { %800 = vmatpush2.bf16.msra.mxu0 %v22352_v31  ;;  %894 = vmatprep.subr.bf16.mxu1 %v28915_v0  ;;  %v20228_v31 = vld [vmem:[%s28937_s2 + $0x408] ss:$12 sps:$4 sm:$0xff]  }
  0x66   :  { %801 = vmatprep.subr.bf16.mxu0 %v22358_v32  ;;  %v20233_v32 = vld [vmem:[%s28937_s2 + $0x34c] ss:$12 sps:$4 sm:$0xff]  }
  0x67   :  { %566 = vmatmul.mubr.bf16.gmra.mxu1 %v20161_v48 }
  0x68   :  { %483 = vmatmul.mubr.bf16.gmra.mxu0 %v20161_v48  ;;  %895 = vmatpush2.bf16.msra.mxu1 %v22364_v33  ;;  %v20236_v33 = vld [vmem:[%s28937_s2 + $0x3f4] ss:$12 sps:$4 sm:$0xff]  }
  0x69   :  { %802 = vmatpush2.bf16.msra.mxu0 %v22371_v34  ;;  %896 = vmatprep.subr.bf16.mxu1 %v28915_v0  ;;  %v20231_v34 = vld [vmem:[%s28937_s2 + $0x348] ss:$12 sps:$4 sm:$0xff]  }
  0x6a   :  { %803 = vmatprep.subr.bf16.mxu0 %v22377_v35  ;;  %16227 = vmatprep.mubr.msk.bf16.mxu1 %vm381_vm0, %v20164_v49  ;;  %v20234_v35 = vld [vmem:[%s28937_s2 + $0x3f0] ss:$12 sps:$4 sm:$0xff]  }
  0x6b   :  { %16221 = vmatprep.mubr.msk.bf16.mxu0 %vm381_vm0, %v20164_v49 }
  0x6c   :  { %897 = vmatpush2.bf16.msra.mxu1 %v22383_v36  ;;  %v20239_v36 = vld [vmem:[%s28937_s2 + $0x334] ss:$12 sps:$4 sm:$0xff]  }
  0x6d   :  { %804 = vmatpush2.bf16.msra.mxu0 %v22390_v37  ;;  %1539 = vmatprep.subr.bf16.mxu1 %v20206_v13  ;;  %v20242_v37 = vld [vmem:[%s28937_s2 + $0x3dc] ss:$12 sps:$4 sm:$0xff]  }
  0x6e   :  { %1446 = vmatprep.subr.bf16.mxu0 %v20182_v50 }
  0x6f   :  { %899 = vmatmul.mubr.bf16.vlgmr.msra.gmra.mxu1 %v20162_v51 }
  0x70   :  { %806 = vmatmul.mubr.bf16.vlgmr.msra.gmra.mxu0 %v20162_v51  ;;  %16228 = vmatprep.mubr.msk.bf16.mxu1 %vm381_vm0, %v20165_v52 }
  0x71   :  { %16222 = vmatprep.mubr.msk.bf16.mxu0 %vm381_vm0, %v20165_v52  ;;  %1447 = vmatpush1.bf16.msra.mxu0 %v20180_v53 }
  0x72   :  { %1448 = vmatprep.subr.bf16.mxu0 %v20185_v54  ;;  %1540 = vmatpush1.bf16.msra.mxu1 %v20204_v15 }
  0x73   :  { %1541 = vmatprep.subr.bf16.mxu1 %v20212_v17 }
  0x75   :  { %1449 = vmatpush1.bf16.msra.mxu0 %v20183_v55 }
  0x76   :  { %1450 = vmatprep.subr.bf16.mxu0 %v20188_v60  ;;  %1542 = vmatpush1.bf16.msra.mxu1 %v20210_v19 }
  0x77   :  { %907 = vmatmul.mubr.bf16.gmra.mxu1 %v20167_v56  ;;  %1543 = vmatprep.subr.bf16.mxu1 %v20218_v21 }
  0x78   :  { %816 = vmatmul.mubr.bf16.gmra.mxu0 %v20167_v56  ;;  %16229 = vmatprep.mubr.msk.bf16.mxu1 %vm381_vm0, %v20168_v57 }
  0x79   :  { %16223 = vmatprep.mubr.msk.bf16.mxu0 %vm381_vm0, %v20168_v57  ;;  %1451 = vmatpush1.bf16.msra.mxu0 %v20186_v62 }
  0x7a   :  { %1452 = vmatprep.subr.bf16.mxu0 %v20191_v1  ;;  %1544 = vmatpush1.bf16.msra.mxu1 %v20216_v23 }
  0x7b   :  { %1545 = vmatprep.subr.bf16.mxu1 %v20224_v25 }
  0x7d   :  { %1453 = vmatpush1.bf16.msra.mxu0 %v20189_v2 }
  0x7e   :  { %1454 = vmatprep.subr.bf16.mxu0 %v20194_v3  ;;  %1546 = vmatpush1.bf16.msra.mxu1 %v20222_v27 }
  0x7f   :  { %915 = vmatmul.mubr.bf16.gmra.mxu1 %v20170_v58  ;;  %1547 = vmatprep.subr.bf16.mxu1 %v20230_v29 }
  0x80   :  { %826 = vmatmul.mubr.bf16.gmra.mxu0 %v20170_v58  ;;  %16230 = vmatprep.mubr.msk.bf16.mxu1 %vm381_vm0, %v20171_v59 }
  0x81   :  { %16224 = vmatprep.mubr.msk.bf16.mxu0 %vm381_vm0, %v20171_v59  ;;  %1455 = vmatpush1.bf16.msra.mxu0 %v20192_v5 }
  0x82   :  { %1456 = vmatprep.subr.bf16.mxu0 %v20197_v7  ;;  %1548 = vmatpush1.bf16.msra.mxu1 %v20228_v31 }
  0x83   :  { %1549 = vmatprep.subr.bf16.mxu1 %v20236_v33 }
  0x85   :  { %1457 = vmatpush1.bf16.msra.mxu0 %v20195_v8 }
  0x86   :  { %1458 = vmatprep.subr.bf16.mxu0 %v20200_v9  ;;  %1550 = vmatpush1.bf16.msra.mxu1 %v20234_v35 }
  0x87   :  { %923 = vmatmul.mubr.bf16.gmra.mxu1 %v20173_v61  ;;  %1551 = vmatprep.subr.bf16.mxu1 %v20242_v37 }
  0x88   :  { %836 = vmatmul.mubr.bf16.gmra.mxu0 %v20173_v61  ;;  %16231 = vmatprep.mubr.msk.bf16.mxu1 %vm381_vm0, %v20174_v63 }
  0x89   :  { %16225 = vmatprep.mubr.msk.bf16.mxu0 %vm381_vm0, %v20174_v63  ;;  %1459 = vmatpush1.bf16.msra.mxu0 %v20198_v11 }
  0x8a   :  { %1460 = vmatprep.subr.bf16.mxu0 %v20203_v12  ;;  %1552 = vmatpush1.bf16.msra.mxu1 %v20240_v39 }
  0x8b   :  { %1553 = vmatprep.subr.bf16.mxu1 %v20248_v41 }
  0x8d   :  { %1461 = vmatpush1.bf16.msra.mxu0 %v20201_v14 }
  0x8e   :  { %1462 = vmatprep.subr.bf16.mxu0 %v20209_v16  ;;  %1554 = vmatpush1.bf16.msra.mxu1 %v20246_v43 }
  0x8f   :  { %931 = vmatmul.mubr.bf16.gmra.mxu1 %v20176_v4  ;;  %18831 = vmatprep.subr.bf16.mxu1 %v20252_v46 }
  0x90   :  { %846 = vmatmul.mubr.bf16.gmra.mxu0 %v20176_v4  ;;  %16232 = vmatprep.mubr.msk.bf16.mxu1 %vm381_vm0, %v20177_v6 }
  0x91   :  { %16226 = vmatprep.mubr.msk.bf16.mxu0 %vm381_vm0, %v20177_v6  ;;  %1463 = vmatpush2.bf16.msra.mxu0 %v20207_v18 }
  0x92   :  { %1464 = vmatprep.subr.bf16.mxu0 %v20215_v20 }
  0x95   :  { %1465 = vmatpush2.bf16.msra.mxu0 %v20213_v22 }
  0x96   :  { %1466 = vmatprep.subr.bf16.mxu0 %v20221_v24 }
  0x97   :  { %939 = vmatmul.mubr.bf16.gmra.mxu1 %v20179_v10 }
  0x98   :  { %856 = vmatmul.mubr.bf16.gmra.mxu0 %v20179_v10  ;;  %1571 = vmatprep.mubr.bf16.mxu1 %v28915_v0 }
  0x99   :  { %1467 = vmatpush2.bf16.msra.mxu0 %v20219_v26 }
  0x9a   :  { %1468 = vmatprep.subr.bf16.mxu0 %v20227_v28 }
  0x9d   :  { %1469 = vmatpush2.bf16.msra.mxu0 %v20225_v30 }
  0x9e   :  { %1470 = vmatprep.subr.bf16.mxu0 %v20233_v32 }
  0xa1   :  { %1471 = vmatpush2.bf16.msra.mxu0 %v20231_v34 }
  0xa2   :  { %1472 = vmatprep.subr.bf16.mxu0 %v20239_v36 }
  0xa5   :  { %1473 = vmatpush2.bf16.msra.mxu0 %v20237_v38 }
  0xa6   :  { %1474 = vmatprep.subr.bf16.mxu0 %v20245_v40 }
  0xa9   :  { %1475 = vmatpush2.bf16.msra.mxu0 %v20243_v42 }
  0xaa   :  { %1476 = vmatprep.subr.bf16.mxu0 %v20251_v44 }
  0xad   :  { %1477 = vmatpush2.bf16.msra.mxu0 %v20249_v45 }
  0xae   :  { %19594 = vmatprep.subr.bf16.mxu0 %v22685_v47 }
  0xff   :  { %v527_v48 = vpop.f32.mrf.mxu1 }
 0x100   :  { %v434_v49 = vpop.f32.mrf.mxu0 }
 0x101   :  { %v529_v50 = vpop.f32.mrf.mxu1 }
 0x102   :  { %v22688_v51 = vpop.f32.mrf.mxu0 }
 0x103   :  { %v530_v52 = vpop.f32.mrf.mxu1 }
 0x104   :  { %v22690_v53 = vpack.c.bf16 %v530_v52, %v527_v48  ;;  %v438_v54 = vpop.f32.mrf.mxu0  ;;  %v20253_v52 = vld [vmem:[%s28937_s2 + $0x2f0] ss:$12 sps:$4 sm:$0xff]  }
 0x105   :  { %v22692_v55 = vpack.c.bf16 %v438_v54, %v434_v49  ;;  %v532_v56 = vpop.f32.mrf.mxu1 }
 0x106   :  { %v22694_v57 = vpop.f32.mrf.mxu0 }
 0x107   :  { %v535_v58 = vpop.f32.mrf.mxu1 }
 0x108   :  { %v444_v59 = vpop.f32.mrf.mxu0 }
 0x109   :  { %v537_v60 = vpop.f32.mrf.mxu1 }
 0x10a   :  { %v22696_v61 = vpop.f32.mrf.mxu0 }
 0x10b   :  { %v538_v62 = vpop.f32.mrf.mxu1 }
 0x10c   :  { %v22698_v63 = vpack.c.bf16 %v538_v62, %v535_v58  ;;  %v448_v1 = vpop.f32.mrf.mxu0  ;;  %v20254_v58 = vld [vmem:[%s28937_s2 + $0x398] ss:$12 sps:$4 sm:$0xff]  }
 0x10d   :  { %v22700_v2 = vpack.c.bf16 %v448_v1, %v444_v59  ;;  %v540_v3 = vpop.f32.mrf.mxu1 }
 0x10e   :  { %v22702_v4 = vpop.f32.mrf.mxu0 }
 0x10f   :  { %v543_v5 = vpop.f32.mrf.mxu1 }
 0x110   :  { %v454_v6 = vpop.f32.mrf.mxu0 }
 0x111   :  { %v545_v7 = vpop.f32.mrf.mxu1 }
 0x112   :  { %v22704_v8 = vpop.f32.mrf.mxu0  ;;  %v20257_v7 = vld [vmem:[%s28937_s2 + $0x380] ss:$12 sps:$4 sm:$0xff]  }
 0x113   :  { %v546_v9 = vpop.f32.mrf.mxu1 }
 0x114   :  { %v22706_v10 = vpack.c.bf16 %v546_v9, %v543_v5  ;;  %v458_v11 = vpop.f32.mrf.mxu0  ;;  %v20256_v5 = vld [vmem:[%s28937_s2 + $0x2d8] ss:$12 sps:$4 sm:$0xff]  }
 0x115   :  { %v22708_v12 = vpack.c.bf16 %v458_v11, %v454_v6  ;;  %v548_v13 = vpop.f32.mrf.mxu1  ;;  %v20258_v9 = vld [vmem:[%s28937_s2 + $0x458] ss:$12 sps:$4 sm:$0xff]  }
 0x116   :  { %v22710_v14 = vpop.f32.mrf.mxu0 }
 0x117   :  { %v551_v15 = vpop.f32.mrf.mxu1 }
 0x118   :  { %v464_v16 = vpop.f32.mrf.mxu0 }
 0x119   :  { %v553_v17 = vpop.f32.mrf.mxu1 }
 0x11a   :  { %v22712_v18 = vpop.f32.mrf.mxu0 }
 0x11b   :  { %v554_v19 = vpop.f32.mrf.mxu1 }
 0x11c   :  { %v22714_v20 = vpack.c.bf16 %v554_v19, %v551_v15  ;;  %v468_v21 = vpop.f32.mrf.mxu0 }
 0x11d   :  { %v22716_v22 = vpack.c.bf16 %v468_v21, %v464_v16  ;;  %v556_v23 = vpop.f32.mrf.mxu1  ;;  %v20259_v16 = vld [vmem:[%s28937_s2 + $0x2c0] ss:$12 sps:$4 sm:$0xff]   ;;  %v20260_v21 = vld [vmem:[%s28937_s2 + $0x368] ss:$12 sps:$4 sm:$0xff]  }
 0x11e   :  { %v22718_v24 = vpop.f32.mrf.mxu0 }
 0x11f   :  { %v559_v25 = vpop.f32.mrf.mxu1 }
 0x120   :  { %v474_v26 = vpop.f32.mrf.mxu0 }
 0x121   :  { %v561_v27 = vpop.f32.mrf.mxu1 }
 0x122   :  { %v22720_v28 = vpop.f32.mrf.mxu0 }
 0x123   :  { %v562_v29 = vpop.f32.mrf.mxu1 }
 0x124   :  { %v22722_v30 = vpack.c.bf16 %v562_v29, %v559_v25  ;;  %v478_v31 = vpop.f32.mrf.mxu0  ;;  %v20261_v25 = vld [vmem:[%s28937_s2 + $0x440] ss:$12 sps:$4 sm:$0xff]  }
 0x125   :  { %v22724_v32 = vpack.c.bf16 %v478_v31, %v474_v26  ;;  %v564_v33 = vpop.f32.mrf.mxu1  ;;  %v20262_v31 = vld [vmem:[%s28937_s2 + $0x2a8] ss:$12 sps:$4 sm:$0xff]  }
 0x126   :  { %v22726_v34 = vpop.f32.mrf.mxu0 }
 0x127   :  { %v567_v35 = vpop.f32.mrf.mxu1 }
 0x128   :  { %v484_v36 = vpop.f32.mrf.mxu0 }
 0x129   :  { %v569_v37 = vpop.f32.mrf.mxu1 }
 0x12a   :  { %v22728_v38 = vpop.f32.mrf.mxu0  ;;  %v20264_v37 = vld [vmem:[%s28937_s2 + $0x428] ss:$12 sps:$4 sm:$0xff]  }
 0x12b   :  { %v570_v39 = vpop.f32.mrf.mxu1 }
 0x12c   :  { %v22730_v40 = vpack.c.bf16 %v570_v39, %v567_v35  ;;  %v488_v41 = vpop.f32.mrf.mxu0  ;;  %v20263_v35 = vld [vmem:[%s28937_s2 + $0x350] ss:$12 sps:$4 sm:$0xff]  }
 0x12d   :  { %v22732_v42 = vpack.c.bf16 %v488_v41, %v484_v36  ;;  %v572_v43 = vpop.f32.mrf.mxu1 }
 0x12e   :  { %v22734_v44 = vpop.f32.mrf.mxu0  ;;  %v20265_v43 = vld [vmem:[%s28937_s2 + $0x290] ss:$12 sps:$4 sm:$0xff]  }
 0x12f   :  { %v900_v45 = vpop.f32.mrf.mxu1 }
 0x130   :  { %v807_v46 = vpop.f32.mrf.mxu0 }
 0x131   :  { %v902_v48 = vpop.f32.mrf.mxu1 }
 0x132   :  { %v809_v49 = vpop.f32.mrf.mxu0  ;;  %v20266_v48 = vld [vmem:[%s28937_s2 + $0x338] ss:$12 sps:$4 sm:$0xff]  }
 0x133   :  { %v903_v50 = vpop.f32.mrf.mxu1 }
 0x134   :  { %v22739_v54 = vpack.c.bf16 %v903_v50, %v900_v45  ;;  %v811_v56 = vpop.f32.mrf.mxu0  ;;  %v20267_v50 = vld [vmem:[%s28937_s2 + $0x410] ss:$12 sps:$4 sm:$0xff]  }
 0x135   :  { %v905_v59 = vpop.f32.mrf.mxu1  ;;  %v22744_v60 = vpack.c.bf16 %v811_v56, %v807_v46 }
 0x136   :  { %v813_v62 = vpop.f32.mrf.mxu0  ;;  %1572 = vmatmul.mubr.bf16.vlgmr.msra.gmra.mxu1 %v22739_v54 }
 0x137   :  { %v22747_v1 = vpack.c.bf16 %v813_v62, %v809_v49  ;;  %v908_v3 = vpop.f32.mrf.mxu1  ;;  %1581 = vmatprep.mubr.bf16.mxu1 %v28915_v0  ;;  %18832 = vmatpush3.bf16.msra.mxu1 %v20253_v52  ;;  %v20268_v62 = vld [vmem:[%s28937_s2 + $0x278] ss:$12 sps:$4 sm:$0xff]  }
 0x138   :  { %v817_v6 = vpop.f32.mrf.mxu0  ;;  %18833 = vmatprep.subr.bf16.mxu1 %v20254_v58 }
 0x139   :  { %v910_v11 = vpop.f32.mrf.mxu1  ;;  %1478 = vmatprep.mubr.bf16.mxu0 %v22747_v1 }
 0x13a   :  { %v819_v13 = vpop.f32.mrf.mxu0  ;;  %1479 = vmatmul.mubr.bf16.vlgmr.msra.gmra.mxu0 %v22744_v60 }
 0x13b   :  { %v911_v15 = vpop.f32.mrf.mxu1  ;;  %18834 = vmatpush3.bf16.msra.mxu1 %v20256_v5  ;;  %19595 = vmatpush3.bf16.msra.mxu0 %v22685_v47  ;;  %v20269_v5 = vld [vmem:[%s28937_s2 + $0x320] ss:$12 sps:$4 sm:$0xff]  }
 0x13c   :  { %v22765_v17 = vpack.c.bf16 %v911_v15, %v908_v3  ;;  %v821_v19 = vpop.f32.mrf.mxu0  ;;  %18835 = vmatprep.subr.bf16.mxu1 %v20257_v7  ;;  %19596 = vmatprep.subr.bf16.mxu0 %v20258_v9  ;;  %v20270_v7 = vld [vmem:[%s28937_s2 + $0x3f8] ss:$12 sps:$4 sm:$0xff]  }
 0x13d   :  { %v913_v23 = vpop.f32.mrf.mxu1  ;;  %v22773_v26 = vpack.c.bf16 %v821_v19, %v817_v6  ;;  %v20272_v19 = vld [vmem:[%s28937_s2 + $0x308] ss:$12 sps:$4 sm:$0xff]  }
 0x13e   :  { %v823_v47 = vpop.f32.mrf.mxu0  ;;  %1582 = vmatmul.mubr.bf16.gmra.mxu1 %v22765_v17  ;;  %v20273_v23 = vld [vmem:[%s28937_s2 + $0x3e0] ss:$12 sps:$4 sm:$0xff]  }
 0x13f   :  { %v22776_v27 = vpack.c.bf16 %v823_v47, %v819_v13  ;;  %v916_v29 = vpop.f32.mrf.mxu1  ;;  %1591 = vmatprep.mubr.bf16.mxu1 %v28915_v0  ;;  %18836 = vmatpush3.bf16.msra.mxu1 %v20259_v16  ;;  %v20271_v13 = vld [vmem:[%s28937_s2 + $0x260] ss:$12 sps:$4 sm:$0xff]  }
 0x140   :  { %v827_v33 = vpop.f32.mrf.mxu0  ;;  %19597 = vmatpush3.bf16.msra.mxu0 %v20258_v9  ;;  %18837 = vmatprep.subr.bf16.mxu1 %v20260_v21 }
 0x141   :  { %v918_v36 = vpop.f32.mrf.mxu1  ;;  %1488 = vmatprep.mubr.bf16.mxu0 %v22776_v27  ;;  %19598 = vmatprep.subr.bf16.mxu0 %v20261_v25 }
 0x142   :  { %v829_v39 = vpop.f32.mrf.mxu0  ;;  %1489 = vmatmul.mubr.bf16.gmra.mxu0 %v22773_v26  ;;  %v20278_v36 = vld [vmem:[%s28937_s2 + $0xac] ss:$12 sps:$4 sm:$0xff]  }
 0x143   :  { %v919_v41 = vpop.f32.mrf.mxu1  ;;  %18838 = vmatpush3.bf16.msra.mxu1 %v20262_v31 }
 0x144   :  { %v22793_v45 = vpack.c.bf16 %v919_v41, %v916_v29  ;;  %v831_v46 = vpop.f32.mrf.mxu0  ;;  %19599 = vmatpush3.bf16.msra.mxu0 %v20261_v25  ;;  %18839 = vmatprep.subr.bf16.mxu1 %v20263_v35 }
 0x145   :  { %v921_v49 = vpop.f32.mrf.mxu1  ;;  %19600 = vmatprep.subr.bf16.mxu0 %v20264_v37  ;;  %v22801_v52 = vpack.c.bf16 %v831_v46, %v827_v33  ;;  %v20274_v33 = vld [vmem:[%s28937_s2 + $0x248] ss:$12 sps:$4 sm:$0xff]  }
 0x146   :  { %v833_v56 = vpop.f32.mrf.mxu0  ;;  %1592 = vmatmul.mubr.bf16.gmra.mxu1 %v22793_v45 }
 0x147   :  { %v22804_v58 = vpack.c.bf16 %v833_v56, %v829_v39  ;;  %v924_v59 = vpop.f32.mrf.mxu1  ;;  %1601 = vmatprep.mubr.bf16.mxu1 %v28915_v0  ;;  %18840 = vmatpush3.bf16.msra.mxu1 %v20265_v43  ;;  %v20275_v39 = vld [vmem:[%s28937_s2 + $0x3c8] ss:$12 sps:$4 sm:$0xff]  }
 0x148   :  { %v837_v3 = vpop.f32.mrf.mxu0  ;;  %19601 = vmatpush3.bf16.msra.mxu0 %v20264_v37  ;;  %18841 = vmatprep.subr.bf16.mxu1 %v20266_v48 }
 0x149   :  { %v926_v6 = vpop.f32.mrf.mxu1  ;;  %1498 = vmatprep.mubr.bf16.mxu0 %v22804_v58  ;;  %19602 = vmatprep.subr.bf16.mxu0 %v20267_v50 }
 0x14a   :  { %v839_v9 = vpop.f32.mrf.mxu0  ;;  %1499 = vmatmul.mubr.bf16.gmra.mxu0 %v22801_v52 }
 0x14b   :  { %v927_v11 = vpop.f32.mrf.mxu1  ;;  %18842 = vmatpush3.bf16.msra.mxu1 %v20268_v62 }
 0x14c   :  { %v22821_v15 = vpack.c.bf16 %v927_v11, %v924_v59  ;;  %v841_v16 = vpop.f32.mrf.mxu0  ;;  %19603 = vmatpush3.bf16.msra.mxu0 %v20267_v50  ;;  %18843 = vmatprep.subr.bf16.mxu1 %v20269_v5  ;;  %v20284_v50 = vld [vmem:[%s28937_s2 + $0x22c] ss:$12 sps:$4 sm:$0xff]  }
 0x14d   :  { %v929_v21 = vpop.f32.mrf.mxu1  ;;  %19604 = vmatprep.subr.bf16.mxu0 %v20270_v7  ;;  %v22829_v25 = vpack.c.bf16 %v841_v16, %v837_v3 }
 0x14e   :  { %v843_v47 = vpop.f32.mrf.mxu0  ;;  %1602 = vmatmul.mubr.bf16.gmra.mxu1 %v22821_v15 }
 0x14f   :  { %v22832_v29 = vpack.c.bf16 %v843_v47, %v839_v9  ;;  %v932_v31 = vpop.f32.mrf.mxu1  ;;  %1611 = vmatprep.mubr.bf16.mxu1 %v28915_v0  ;;  %18844 = vmatpush3.bf16.msra.mxu1 %v20271_v13  ;;  %v20276_v47 = vld [vmem:[%s28937_s2 + $0xa8] ss:$12 sps:$4 sm:$0xff]  }
 0x150   :  { %v847_v35 = vpop.f32.mrf.mxu0  ;;  %19605 = vmatpush3.bf16.msra.mxu0 %v20270_v7  ;;  %18845 = vmatprep.subr.bf16.mxu1 %v20272_v19 }
 0x151   :  { %v934_v37 = vpop.f32.mrf.mxu1  ;;  %1508 = vmatprep.mubr.bf16.mxu0 %v22832_v29  ;;  %19606 = vmatprep.subr.bf16.mxu0 %v20273_v23 }
 0x152   :  { %v849_v41 = vpop.f32.mrf.mxu0  ;;  %1509 = vmatmul.mubr.bf16.gmra.mxu0 %v22829_v25  ;;  %v20291_v37 = vld [vmem:[%s28937_s2 + $0x60] ss:$12 sps:$4 sm:$0xff]  }
 0x153   :  { %v935_v43 = vpop.f32.mrf.mxu1  ;;  %18846 = vmatpush3.bf16.msra.mxu1 %v20274_v33  ;;  %v20282_v33 = vld [vmem:[%s28937_s2 + $0x228] ss:$12 sps:$4 sm:$0xff]  }
 0x154   :  { %v22846_v46 = vpack.c.bf16 %v935_v43, %v932_v31  ;;  %v851_v48 = vpop.f32.mrf.mxu0  ;;  %19607 = vmatpush3.bf16.msra.mxu0 %v20273_v23  ;;  %2178 = vmatprep.subr.bf16.mxu1 %v20278_v36  ;;  %v20281_v31 = vld [vmem:[%s28937_s2 + $0x94] ss:$12 sps:$4 sm:$0xff]   ;;  %v20293_v36 = vld [vmem:[%s28937_s2 + $0x64] ss:$12 sps:$4 sm:$0xff]  }
 0x155   :  { %v937_v49 = vpop.f32.mrf.mxu1  ;;  %19608 = vmatprep.subr.bf16.mxu0 %v20275_v39  ;;  %v22851_v56 = vpack.c.bf16 %v851_v48, %v847_v35  ;;  %v20285_v35 = vld [vmem:[%s28937_s2 + $0x78] ss:$12 sps:$4 sm:$0xff]   ;;  %v20300_v43 = vld [vmem:[%s28937_s2 + $0x1e0] ss:$12 sps:$4 sm:$0xff]   ;;  %v20303_v48 = vld [vmem:[%s28937_s2 + $0x30] ss:$12 sps:$4 sm:$0xff]  }
 0x156   :  { %v853_v59 = vpop.f32.mrf.mxu0  ;;  %1612 = vmatmul.mubr.bf16.gmra.mxu1 %v22846_v46  ;;  %v20311_v49 = vld [vmem:[%s28937_s2 + $0x1c] ss:$12 sps:$4 sm:$0xff]  }
 0x157   :  { %v22854_v62 = vpack.c.bf16 %v853_v59, %v849_v41  ;;  %v940_v3 = vpop.f32.mrf.mxu1  ;;  %1621 = vmatprep.mubr.bf16.mxu1 %v28915_v0  ;;  %v20297_v41 = vld [vmem:[%s28937_s2 + $0x48] ss:$12 sps:$4 sm:$0xff]   ;;  %v20312_v59 = vld [vmem:[%s28937_s2 + $0x1b0] ss:$12 sps:$4 sm:$0xff]  }
 0x158   :  { %v857_v5 = vpop.f32.mrf.mxu0  ;;  %19609 = vmatpush3.bf16.msra.mxu0 %v20275_v39  ;;  %v20299_v39 = vld [vmem:[%s28937_s2 + $0x4c] ss:$12 sps:$4 sm:$0xff]  }
 0x159   :  { %v942_v6 = vpop.f32.mrf.mxu1  ;;  %1518 = vmatprep.mubr.bf16.mxu0 %v22854_v62  ;;  %2271 = vmatprep.subr.bf16.mxu0 %v20284_v50  ;;  %v20309_v50 = vld [vmem:[%s28937_s2 + $0x18] ss:$12 sps:$4 sm:$0xff]  }
 0x15a   :  { %v859_v7 = vpop.f32.mrf.mxu0  ;;  %1519 = vmatmul.mubr.bf16.gmra.mxu0 %v22851_v56  ;;  %v20318_v6 = vld [vmem:[%s28937_s2 + $0x198] ss:$12 sps:$4 sm:$0xff]  }
 0x15b   :  { %v943_v9 = vpop.f32.mrf.mxu1 }
 0x15c   :  { %v964_v11 = vpack.c.bf16 %v943_v9, %v940_v3  ;;  %v861_v13 = vpop.f32.mrf.mxu0  ;;  %v20317_v3 = vld [vmem:[%s28937_s2 + $0x4] ss:$12 sps:$4 sm:$0xff]   ;;  %v20321_v9 = vld [vmem:[%s28937_s2 + $0x168] ss:$12 sps:$4 sm:$0xff]  }
 0x15d   :  { %v945_v16 = vpop.f32.mrf.mxu1  ;;  %v22859_v19 = vpack.c.bf16 %v861_v13, %v857_v5  ;;  %v20315_v5 = vld [vmem:[%s28937_s2] ss:$12 sps:$4 sm:$0xff]  }
 0x15e   :  { %v863_v21 = vpop.f32.mrf.mxu0  ;;  %1622 = vmatmul.mubr.bf16.gmra.mxu1 %v964_v11  ;;  %v20329_v13 = vld [vmem:[%s28937_s2 + $0x154] ss:$12 sps:$4 sm:$0xff]   ;;  %v20327_v16 = vld [vmem:[%s28937_s2 + $0x150] ss:$12 sps:$4 sm:$0xff]  }
 0x15f   :  { %v22861_v23 = vpack.c.bf16 %v863_v21, %v859_v7  ;;  %1664 = vmatprep.mubr.bf16.mxu1 %v22747_v1  ;;  %v20279_v1 = vld [vmem:[%s28937_s2 + $0x90] ss:$12 sps:$4 sm:$0xff]   ;;  %v20323_v7 = vld [vmem:[%s28937_s2 + $0x16c] ss:$12 sps:$4 sm:$0xff]  }
 0x160   :  { %v20332_v21 = vld [vmem:[%s28937_s2 + $0x13c] ss:$12 sps:$4 sm:$0xff]  }
 0x161   :  { %1528 = vmatprep.mubr.bf16.mxu0 %v22861_v23 }
 0x162   :  { %1529 = vmatmul.mubr.bf16.gmra.mxu0 %v22859_v19 }
 0x163   :  { %19610 = vmatprep.mubr.bf16.mxu0 %v22739_v54  ;;  %v20287_v54 = vld [vmem:[%s28937_s2 + $0x7c] ss:$12 sps:$4 sm:$0xff]  }
 0x166   :  { %1665 = vmatmul.mubr.bf16.vlgmr.msra.gmra.mxu1 %v22744_v60  ;;  %v20290_v60 = vld [vmem:[%s28937_s2 + $0x214] ss:$12 sps:$4 sm:$0xff]  }
 0x167   :  { %2179 = vmatpush1.bf16.msra.mxu1 %v20276_v47  ;;  %1672 = vmatprep.mubr.bf16.mxu1 %v22776_v27  ;;  %v20288_v27 = vld [vmem:[%s28937_s2 + $0x210] ss:$12 sps:$4 sm:$0xff]  }
 0x168   :  { %2180 = vmatprep.subr.bf16.mxu1 %v20281_v31  ;;  %v20343_v47 = vld [vmem:[%s28937_s2 + $0xb0] ss:$12 sps:$4 sm:$0xff]  }
 0x169   :  { %v20335_v31 = vld [vmem:[%s28937_s2 + $0x124] ss:$12 sps:$4 sm:$0xff]  }
 0x16a   :  { %19611 = vmatmul.mubr.bf16.vlgmr.msra.gmra.mxu0 %v22765_v17  ;;  %v20296_v17 = vld [vmem:[%s28937_s2 + $0x1fc] ss:$12 sps:$4 sm:$0xff]  }
 0x16b   :  { %2181 = vmatpush1.bf16.msra.mxu1 %v20279_v1  ;;  %2272 = vmatpush1.bf16.msra.mxu0 %v20282_v33  ;;  %v20348_v1 = vld [vmem:[%s28937_s2 + $0x98] ss:$12 sps:$4 sm:$0xff]   ;;  %v23009_v33 = vpack.c.bf16 %v22694_v57, %v22688_v51  ;;  %v20353_v57 = vld [vmem:[%s28937_s2 + $0x80] ss:$12 sps:$4 sm:$0xff]  }
 0x16c   :  { %19614 = vmatprep.mubr.bf16.mxu0 %v22793_v45  ;;  %2182 = vmatprep.subr.bf16.mxu1 %v20287_v54  ;;  %v20294_v45 = vld [vmem:[%s28937_s2 + $0x1f8] ss:$12 sps:$4 sm:$0xff]   ;;  %v20352_v54 = vld [vmem:[%s28937_s2 + $0x140] ss:$12 sps:$4 sm:$0xff]  }
 0x16d   :  { %2273 = vmatprep.subr.bf16.mxu0 %v20290_v60  ;;  %v20333_v60 = vld [vmem:[%s28937_s2 + $0x120] ss:$12 sps:$4 sm:$0xff]  }
 0x16e   :  { %1673 = vmatmul.mubr.bf16.gmra.mxu1 %v22773_v26  ;;  %v20302_v26 = vld [vmem:[%s28937_s2 + $0x1e4] ss:$12 sps:$4 sm:$0xff]   ;;  %v20338_v51 = vld [vmem:[%s28937_s2 + $0x10c] ss:$12 sps:$4 sm:$0xff]  }
 0x16f   :  { %2183 = vmatpush1.bf16.msra.mxu1 %v20285_v35  ;;  %2274 = vmatpush1.bf16.msra.mxu0 %v20288_v27  ;;  %v20336_v35 = vld [vmem:[%s28937_s2 + $0x108] ss:$12 sps:$4 sm:$0xff]  }
 0x170   :  { %2184 = vmatprep.subr.bf16.mxu1 %v20293_v36  ;;  %2275 = vmatprep.subr.bf16.mxu0 %v20296_v17  ;;  %v20341_v27 = vld [vmem:[%s28937_s2 + $0xf4] ss:$12 sps:$4 sm:$0xff]   ;;  %v20356_v17 = vld [vmem:[%s28937_s2 + $0x110] ss:$12 sps:$4 sm:$0xff]  }
 0x171   :  { %1680 = vmatprep.mubr.bf16.mxu1 %v22804_v58  ;;  %v20305_v58 = vld [vmem:[%s28937_s2 + $0x34] ss:$12 sps:$4 sm:$0xff]  }
 0x172   :  { %19615 = vmatmul.mubr.bf16.gmra.mxu0 %v22821_v15  ;;  %v20308_v15 = vld [vmem:[%s28937_s2 + $0x1cc] ss:$12 sps:$4 sm:$0xff]   ;;  %v20355_v36 = vld [vmem:[%s28937_s2 + $0x68] ss:$12 sps:$4 sm:$0xff]  }
 0x173   :  { %2185 = vmatpush1.bf16.msra.mxu1 %v20291_v37  ;;  %2276 = vmatpush1.bf16.msra.mxu0 %v20294_v45  ;;  %v20339_v37 = vld [vmem:[%s28937_s2 + $0xf0] ss:$12 sps:$4 sm:$0xff]  }
 0x174   :  { %19618 = vmatprep.mubr.bf16.mxu0 %v22846_v46  ;;  %2186 = vmatprep.subr.bf16.mxu1 %v20299_v39  ;;  %v20306_v46 = vld [vmem:[%s28937_s2 + $0x1c8] ss:$12 sps:$4 sm:$0xff]   ;;  %v20357_v39 = vld [vmem:[%s28937_s2 + $0x50] ss:$12 sps:$4 sm:$0xff]  }
 0x175   :  { %2277 = vmatprep.subr.bf16.mxu0 %v20302_v26  ;;  %v20346_v45 = vld [vmem:[%s28937_s2 + $0xdc] ss:$12 sps:$4 sm:$0xff]   ;;  %v20358_v26 = vld [vmem:[%s28937_s2 + $0xf8] ss:$12 sps:$4 sm:$0xff]  }
 0x176   :  { %1681 = vmatmul.mubr.bf16.gmra.mxu1 %v22801_v52  ;;  %v20314_v52 = vld [vmem:[%s28937_s2 + $0x1b4] ss:$12 sps:$4 sm:$0xff]  }
 0x177   :  { %2187 = vmatpush1.bf16.msra.mxu1 %v20297_v41  ;;  %2278 = vmatpush1.bf16.msra.mxu0 %v20300_v43  ;;  %v20344_v41 = vld [vmem:[%s28937_s2 + $0xd8] ss:$12 sps:$4 sm:$0xff]  }
 0x178   :  { %2188 = vmatprep.subr.bf16.mxu1 %v20305_v58  ;;  %2279 = vmatprep.subr.bf16.mxu0 %v20308_v15  ;;  %v20351_v43 = vld [vmem:[%s28937_s2 + $0xc4] ss:$12 sps:$4 sm:$0xff]   ;;  %v20360_v15 = vld [vmem:[%s28937_s2 + $0xe0] ss:$12 sps:$4 sm:$0xff]  }
 0x179   :  { %1688 = vmatprep.mubr.bf16.mxu1 %v22832_v29  ;;  %v20320_v29 = vld [vmem:[%s28937_s2 + $0x19c] ss:$12 sps:$4 sm:$0xff]   ;;  %v20359_v58 = vld [vmem:[%s28937_s2 + $0x38] ss:$12 sps:$4 sm:$0xff]  }
 0x17a   :  { %19619 = vmatmul.mubr.bf16.gmra.mxu0 %v964_v11  ;;  %v20324_v11 = vld [vmem:[%s28937_s2 + $0x180] ss:$12 sps:$4 sm:$0xff]  }
 0x17b   :  { %2189 = vmatpush1.bf16.msra.mxu1 %v20303_v48  ;;  %2280 = vmatpush1.bf16.msra.mxu0 %v20306_v46  ;;  %v20349_v48 = vld [vmem:[%s28937_s2 + $0xc0] ss:$12 sps:$4 sm:$0xff]  }
 0x17c   :  { %2190 = vmatprep.subr.bf16.mxu1 %v20311_v49  ;;  %2281 = vmatprep.subr.bf16.mxu0 %v20314_v52  ;;  %v20361_v46 = vld [vmem:[%s28937_s2 + $0x20] ss:$12 sps:$4 sm:$0xff]   ;;  %v20362_v49 = vld [vmem:[%s28937_s2 + $0x230] ss:$12 sps:$4 sm:$0xff]   ;;  %v20363_v52 = vld [vmem:[%s28937_s2 + $0xc8] ss:$12 sps:$4 sm:$0xff]  }
 0x17d   :  { %2303 = vmatprep.mubr.bf16.mxu0 %v28915_v0 }
 0x17e   :  { %1689 = vmatmul.mubr.bf16.gmra.mxu1 %v22829_v25  ;;  %v20326_v25 = vld [vmem:[%s28937_s2 + $0x184] ss:$12 sps:$4 sm:$0xff]  }
 0x17f   :  { %2191 = vmatpush1.bf16.msra.mxu1 %v20309_v50  ;;  %2282 = vmatpush1.bf16.msra.mxu0 %v20312_v59  ;;  %v20364_v50 = vld [vmem:[%s28937_s2 + $0x8] ss:$12 sps:$4 sm:$0xff]   ;;  %v20365_v59 = vld [vmem:[%s28937_s2 + $0x218] ss:$12 sps:$4 sm:$0xff]  }
 0x180   :  { %2192 = vmatprep.subr.bf16.mxu1 %v20317_v3  ;;  %2283 = vmatprep.subr.bf16.mxu0 %v20320_v29  ;;  %v578_v3 = vpack.c.bf16 %v22702_v4, %v22696_v61  ;;  %v20366_v29 = vld [vmem:[%s28937_s2 + $0x200] ss:$12 sps:$4 sm:$0xff]   ;;  %v20367_v61 = vld [vmem:[%s28937_s2 + $0x1e8] ss:$12 sps:$4 sm:$0xff]   ;;  %v581_v4 = vpack.c.bf16 %v22710_v14, %v22704_v8  ;;  %v584_v8 = vpack.c.bf16 %v22718_v24, %v22712_v18 }
 0x181   :  { %1696 = vmatprep.mubr.bf16.mxu1 %v22854_v62  ;;  %v20342_v62 = vld [vmem:[%s28937_s2 + $0x170] ss:$12 sps:$4 sm:$0xff]   ;;  %v20370_v14 = vld [vmem:[%s28937_s2 + $0x1a0] ss:$12 sps:$4 sm:$0xff]   ;;  %v587_v24 = vpack.c.bf16 %v22726_v34, %v22720_v28  ;;  %v21972_v28 = vld [vmem:[%s28935_s24 + $0x78] ss:$12 sps:$4 sm:$0xff]  }
 0x182   :  { %v21969_v18 = vld [vmem:[%s28935_s24 + $0x94] ss:$12 sps:$4 sm:$0xff]   ;;  %v21973_v34 = vld [vmem:[%s28935_s24 + $0x64] ss:$12 sps:$4 sm:$0xff]  }
 0x183   :  { %2193 = vmatpush1.bf16.msra.mxu1 %v20315_v5  ;;  %2284 = vmatpush1.bf16.msra.mxu0 %v20318_v6  ;;  %v21967_v5 = vld [vmem:[%s28935_s24 + $0xac] ss:$12 sps:$4 sm:$0xff]   ;;  %v20368_v6 = vld [vmem:[%s28937_s2 + $0x1d0] ss:$12 sps:$4 sm:$0xff]  }
 0x184   :  { %2194 = vmatprep.subr.bf16.mxu1 %v20323_v7  ;;  %2285 = vmatprep.subr.bf16.mxu0 %v20326_v25  ;;  %v20369_v7 = vld [vmem:[%s28937_s2 + $0x1b8] ss:$12 sps:$4 sm:$0xff]   ;;  %v21968_v25 = vld [vmem:[%s28935_s24 + $0xa8] ss:$12 sps:$4 sm:$0xff]  }
 0x186   :  { %1697 = vmatmul.mubr.bf16.gmra.mxu1 %v22851_v56  ;;  %v20347_v56 = vld [vmem:[%s28937_s2 + $0x158] ss:$12 sps:$4 sm:$0xff]  }
 0x187   :  { %2195 = vmatpush2.bf16.msra.mxu1 %v20321_v9  ;;  %2286 = vmatpush1.bf16.msra.mxu0 %v20324_v11  ;;  %v21970_v9 = vld [vmem:[%s28935_s24 + $0x90] ss:$12 sps:$4 sm:$0xff]  }
 0x188   :  { %2196 = vmatprep.subr.bf16.mxu1 %v20329_v13  ;;  %1704 = vmatprep.mubr.bf16.mxu1 %v22861_v23  ;;  %v20330_v23 = vld [vmem:[%s28937_s2 + $0x138] ss:$12 sps:$4 sm:$0xff]   ;;  %v21971_v11 = vld [vmem:[%s28935_s24 + $0x7c] ss:$12 sps:$4 sm:$0xff]   ;;  %v590_v13 = vpack.c.bf16 %v22734_v44, %v22728_v38  ;;  %v21977_v44 = vld [vmem:[%s28935_s24 + $0x34] ss:$12 sps:$4 sm:$0xff]  }
 0x189   :  { %18897 = vmatprep.subr.bf16.mxu0 %v20342_v62  ;;  %v21975_v62 = vld [vmem:[%s28935_s24 + $0x4c] ss:$12 sps:$4 sm:$0xff]   ;;  %v21976_v38 = vld [vmem:[%s28935_s24 + $0x48] ss:$12 sps:$4 sm:$0xff]  }
 0x18a   :  { %2304 = vmatmul.mubr.bf16.vlgmr.msra.gmra.mxu0 %v22690_v53 }
 0x18b   :  { %2197 = vmatpush2.bf16.msra.mxu1 %v20327_v16  ;;  %2313 = vmatprep.mubr.bf16.mxu0 %v28915_v0  ;;  %v21978_v16 = vld [vmem:[%s28935_s24 + $0x30] ss:$12 sps:$4 sm:$0xff]  }
 0x18c   :  { %2198 = vmatprep.subr.bf16.mxu1 %v20332_v21  ;;  %18898 = vmatpush3.bf16.msra.mxu0 %v20343_v47  ;;  %v21980_v21 = vld [vmem:[%s28935_s24 + $0x18] ss:$12 sps:$4 sm:$0xff]   ;;  %v21982_v47 = vld [vmem:[%s28935_s24 + $0xb0] ss:$12 sps:$4 sm:$0xff]  }
 0x18d   :  { %18899 = vmatprep.subr.bf16.mxu0 %v20347_v56  ;;  %v21984_v56 = vld [vmem:[%s28935_s24 + $0x10c] ss:$12 sps:$4 sm:$0xff]  }
 0x18e   :  { %1705 = vmatmul.mubr.bf16.gmra.mxu1 %v22859_v19  ;;  %v20354_v19 = vld [vmem:[%s28937_s2 + $0x128] ss:$12 sps:$4 sm:$0xff]  }
 0x18f   :  { %2199 = vmatpush2.bf16.msra.mxu1 %v20330_v23  ;;  %2210 = vmatprep.mubr.bf16.mxu1 %v23009_v33  ;;  %v21987_v23 = vld [vmem:[%s28935_s24 + $0xf4] ss:$12 sps:$4 sm:$0xff]  }
 0x190   :  { %2200 = vmatprep.subr.bf16.mxu1 %v20335_v31  ;;  %18900 = vmatpush3.bf16.msra.mxu0 %v20348_v1  ;;  %v20374_v31 = vld [vmem:[%s28936_s28 + $0xc4] ss:$8 sps:$4 sm:$0xff]   ;;  %v21989_v1 = vld [vmem:[%s28935_s24 + $0xf0] ss:$12 sps:$4 sm:$0xff]  }
 0x191   :  { %18901 = vmatprep.subr.bf16.mxu0 %v20352_v54  ;;  %v21993_v54 = vld [vmem:[%s28935_s24 + $0xc4] ss:$12 sps:$4 sm:$0xff]  }
 0x192   :  { %2314 = vmatmul.mubr.bf16.gmra.mxu0 %v22698_v63 }
 0x193   :  { %2201 = vmatpush2.bf16.msra.mxu1 %v20333_v60  ;;  %2323 = vmatprep.mubr.bf16.mxu0 %v28915_v0  ;;  %v23234_v60 = vld [vmem:[%s28936_s28 + $0xc0] ss:$8 sps:$4 sm:$0xff]  }
 0x194   :  { %2202 = vmatprep.subr.bf16.mxu1 %v20338_v51  ;;  %18902 = vmatpush3.bf16.msra.mxu0 %v20353_v57  ;;  %v21995_v51 = vld [vmem:[%s28935_s24 + $0xc0] ss:$12 sps:$4 sm:$0xff]   ;;  %v21996_v57 = vld [vmem:[%s28935_s24 + $0x38] ss:$12 sps:$4 sm:$0xff]  }
 0x195   :  { %18903 = vmatprep.subr.bf16.mxu0 %v20354_v19  ;;  %v21997_v19 = vld [vmem:[%s28935_s24 + $0x20] ss:$12 sps:$4 sm:$0xff]  }
 0x197   :  { %2203 = vmatpush2.bf16.msra.mxu1 %v20336_v35  ;;  %v23259_v35 = vld [vmem:[%s28936_s28 + $0xd0] ss:$8 sps:$4 sm:$0xff]  }
 0x198   :  { %2204 = vmatprep.subr.bf16.mxu1 %v20341_v27  ;;  %18904 = vmatpush3.bf16.msra.mxu0 %v20355_v36  ;;  %v23265_v27 = vld [vmem:[%s28936_s28 + $0xe4] ss:$8 sps:$4 sm:$0xff]   ;;  %v21998_v36 = vld [vmem:[%s28935_s24 + $0x8] ss:$12 sps:$4 sm:$0xff]  }
 0x199   :  { %18905 = vmatprep.subr.bf16.mxu0 %v20356_v17  ;;  %v20392_v17 = vld [vmem:[%s28937_s2 + $0x52c] ss:$12 sps:$4 sm:$0xff]  }
 0x19a   :  { %2324 = vmatmul.mubr.bf16.gmra.mxu0 %v22706_v10 }
 0x19b   :  { %2205 = vmatpush2.bf16.msra.mxu1 %v20339_v37  ;;  %2333 = vmatprep.mubr.bf16.mxu0 %v28915_v0  ;;  %v20390_v37 = vld [vmem:[%s28937_s2 + $0x528] ss:$12 sps:$4 sm:$0xff]  }
 0x19c   :  { %2206 = vmatprep.subr.bf16.mxu1 %v20346_v45  ;;  %18906 = vmatpush3.bf16.msra.mxu0 %v20357_v39  ;;  %v21999_v39 = vld [vmem:[%s28935_s24 + $0x110] ss:$12 sps:$4 sm:$0xff]  }
 0x19d   :  { %18907 = vmatprep.subr.bf16.mxu0 %v20358_v26  ;;  %v23286_v26 = vld [vmem:[%s28936_s28 + $0xe0] ss:$8 sps:$4 sm:$0xff]  }
 0x19f   :  { %2207 = vmatpush2.bf16.msra.mxu1 %v20344_v41  ;;  %v20395_v41 = vld [vmem:[%s28937_s2 + $0x514] ss:$12 sps:$4 sm:$0xff]  }
 0x1a0   :  { %2208 = vmatprep.subr.bf16.mxu1 %v20351_v43  ;;  %18908 = vmatpush3.bf16.msra.mxu0 %v20359_v58  ;;  %v23295_v58 = vld [vmem:[%s28936_s28 + $0xf4] ss:$8 sps:$4 sm:$0xff]  }
 0x1a1   :  { %18909 = vmatprep.subr.bf16.mxu0 %v20360_v15  ;;  %v20393_v15 = vld [vmem:[%s28937_s2 + $0x510] ss:$12 sps:$4 sm:$0xff]  }
 0x1a2   :  { %2334 = vmatmul.mubr.bf16.gmra.mxu0 %v22714_v20 }
 0x1a3   :  { %2209 = vmatpush2.bf16.msra.mxu1 %v20349_v48  ;;  %2343 = vmatprep.mubr.bf16.mxu0 %v28915_v0 }
 0x1a4   :  { %18910 = vmatpush3.bf16.msra.mxu0 %v20361_v46  ;;  %19622 = vmatprep.subr.bf16.mxu1 %v20362_v49 }
 0x1a5   :  { %18911 = vmatprep.subr.bf16.mxu0 %v20363_v52 }
 0x1a6   :  { %2211 = vmatmul.mubr.bf16.vlgmr.msra.gmra.mxu1 %v22692_v55 }
 0x1a7   :  { %2220 = vmatprep.mubr.bf16.mxu1 %v578_v3  ;;  %19623 = vmatpush3.bf16.msra.mxu1 %v20362_v49  ;;  %v22000_v49 = vld [vmem:[%s28935_s24 + $0xf8] ss:$12 sps:$4 sm:$0xff]  }
 0x1a8   :  { %18912 = vmatpush3.bf16.msra.mxu0 %v20364_v50  ;;  %19624 = vmatprep.subr.bf16.mxu1 %v20365_v59  ;;  %v20398_v50 = vld [vmem:[%s28937_s2 + $0x4fc] ss:$12 sps:$4 sm:$0xff]  }
 0x1a9   :  { %2611 = vmatprep.subr.bf16.mxu0 %v21967_v5 }
 0x1aa   :  { %2344 = vmatmul.mubr.bf16.gmra.mxu0 %v22722_v30 }
 0x1ab   :  { %2353 = vmatprep.mubr.bf16.mxu0 %v28915_v0  ;;  %19625 = vmatpush3.bf16.msra.mxu1 %v20365_v59 }
 0x1ac   :  { %19626 = vmatprep.subr.bf16.mxu1 %v20366_v29 }
 0x1ae   :  { %2221 = vmatmul.mubr.bf16.gmra.mxu1 %v22700_v2 }
 0x1af   :  { %2230 = vmatprep.mubr.bf16.mxu1 %v581_v4  ;;  %19627 = vmatpush3.bf16.msra.mxu1 %v20366_v29  ;;  %v20396_v29 = vld [vmem:[%s28937_s2 + $0x4f8] ss:$12 sps:$4 sm:$0xff]  }
 0x1b0   :  { %19628 = vmatprep.subr.bf16.mxu1 %v20367_v61 }
 0x1b2   :  { %2354 = vmatmul.mubr.bf16.gmra.mxu0 %v22730_v40 }
 0x1b3   :  { %2396 = vmatprep.mubr.bf16.mxu0 %v23009_v33  ;;  %19629 = vmatpush3.bf16.msra.mxu1 %v20367_v61  ;;  %v21992_v33 = vld [vmem:[%s28935_s24 + $0xd8] ss:$12 sps:$4 sm:$0xff]  }
 0x1b4   :  { %19630 = vmatprep.subr.bf16.mxu1 %v20368_v6 }
 0x1b6   :  { %2231 = vmatmul.mubr.bf16.gmra.mxu1 %v22708_v12 }
 0x1b7   :  { %2240 = vmatprep.mubr.bf16.mxu1 %v584_v8  ;;  %19631 = vmatpush3.bf16.msra.mxu1 %v20368_v6  ;;  %v22001_v6 = vld [vmem:[%s28935_s24 + $0xe0] ss:$12 sps:$4 sm:$0xff]  }
 0x1b8   :  { %19632 = vmatprep.subr.bf16.mxu1 %v20369_v7 }
 0x1ba   :  { %2397 = vmatmul.mubr.bf16.vlgmr.msra.gmra.mxu0 %v22692_v55  ;;  %v20371_v55 = vld [vmem:[%s28937_s2 + $0x188] ss:$12 sps:$4 sm:$0xff]  }
 0x1bb   :  { %2404 = vmatprep.mubr.bf16.mxu0 %v578_v3  ;;  %2612 = vmatpush1.bf16.msra.mxu0 %v21968_v25 }
 0x1bc   :  { %2613 = vmatprep.subr.bf16.mxu0 %v21969_v18  ;;  %19633 = vmatpush3.bf16.msra.mxu1 %v20369_v7 }
 0x1bd   :  { %19634 = vmatprep.subr.bf16.mxu1 %v20370_v14 }
 0x1be   :  { %2241 = vmatmul.mubr.bf16.gmra.mxu1 %v22716_v22 }
 0x1bf   :  { %2250 = vmatprep.mubr.bf16.mxu1 %v587_v24  ;;  %2614 = vmatpush1.bf16.msra.mxu0 %v21970_v9 }
 0x1c0   :  { %2615 = vmatprep.subr.bf16.mxu0 %v21971_v11  ;;  %19635 = vmatpush3.bf16.msra.mxu1 %v20370_v14  ;;  %v20401_v14 = vld [vmem:[%s28937_s2 + $0x4e4] ss:$12 sps:$4 sm:$0xff]  }
 0x1c1   :  { %19636 = vmatprep.subr.bf16.mxu1 %v20371_v55 }
 0x1c2   :  { %2405 = vmatmul.mubr.bf16.gmra.mxu0 %v22700_v2  ;;  %v21974_v2 = vld [vmem:[%s28935_s24 + $0x60] ss:$12 sps:$4 sm:$0xff]  }
 0x1c3   :  { %2412 = vmatprep.mubr.bf16.mxu0 %v581_v4  ;;  %2616 = vmatpush1.bf16.msra.mxu0 %v21972_v28  ;;  %v22002_v28 = vld [vmem:[%s28935_s24 + $0xc8] ss:$12 sps:$4 sm:$0xff]  }
 0x1c4   :  { %2617 = vmatprep.subr.bf16.mxu0 %v21973_v34  ;;  %19637 = vmatpush3.bf16.msra.mxu1 %v20371_v55  ;;  %v20399_v55 = vld [vmem:[%s28937_s2 + $0x4e0] ss:$12 sps:$4 sm:$0xff]  }
 0x1c5   :  { %2704 = vmatprep.subr.bf16.mxu1 %v28915_v0 }
 0x1c6   :  { %2251 = vmatmul.mubr.bf16.gmra.mxu1 %v22724_v32 }
 0x1c7   :  { %2260 = vmatprep.mubr.bf16.mxu1 %v590_v13  ;;  %2618 = vmatpush1.bf16.msra.mxu0 %v21974_v2 }
 0x1c8   :  { %2619 = vmatprep.subr.bf16.mxu0 %v21975_v62 }
 0x1ca   :  { %2413 = vmatmul.mubr.bf16.gmra.mxu0 %v22708_v12  ;;  %v21979_v12 = vld [vmem:[%s28935_s24 + $0x1c] ss:$12 sps:$4 sm:$0xff]  }
 0x1cb   :  { %2420 = vmatprep.mubr.bf16.mxu0 %v584_v8  ;;  %2620 = vmatpush1.bf16.msra.mxu0 %v21976_v38  ;;  %v23327_v8 = vld [vmem:[%s28936_s28 + $0xf0] ss:$8 sps:$4 sm:$0xff]   ;;  %v20402_v38 = vld [vmem:[%s28937_s2 + $0x4c8] ss:$12 sps:$4 sm:$0xff]  }
 0x1cc   :  { %2621 = vmatprep.subr.bf16.mxu0 %v21977_v44 }
 0x1ce   :  { %2261 = vmatmul.mubr.bf16.gmra.mxu1 %v22732_v42 }
 0x1cf   :  { %19638 = vmatprep.mubr.bf16.mxu1 %v22690_v53  ;;  %2622 = vmatpush1.bf16.msra.mxu0 %v21978_v16  ;;  %v21981_v53 = vld [vmem:[%s28935_s24 + $0x4] ss:$12 sps:$4 sm:$0xff]  }
 0x1d0   :  { %2623 = vmatprep.subr.bf16.mxu0 %v21979_v12 }
 0x1d2   :  { %2421 = vmatmul.mubr.bf16.gmra.mxu0 %v22716_v22  ;;  %v21983_v22 = vld [vmem:[%s28935_s24] ss:$12 sps:$4 sm:$0xff]  }
 0x1d3   :  { %2428 = vmatprep.mubr.bf16.mxu0 %v587_v24  ;;  %2624 = vmatpush1.bf16.msra.mxu0 %v21980_v21  ;;  %v23338_v24 = vld [vmem:[%s28936_s28 + $0x104] ss:$8 sps:$4 sm:$0xff]  }
 0x1d4   :  { %2625 = vmatprep.subr.bf16.mxu0 %v21981_v53  ;;  %v23367_v53 = vld [vmem:[%s28936_s28 + $0x100] ss:$8 sps:$4 sm:$0xff]  }
 0x1d6   :  { %19639 = vmatmul.mubr.bf16.vlgmr.msra.gmra.mxu1 %v22698_v63  ;;  %v21985_v63 = vld [vmem:[%s28935_s24 + $0x98] ss:$12 sps:$4 sm:$0xff]  }
 0x1d7   :  { %2705 = vmatpush1.bf16.msra.mxu1 %v21982_v47  ;;  %19642 = vmatprep.mubr.bf16.mxu1 %v22706_v10  ;;  %v21986_v10 = vld [vmem:[%s28935_s24 + $0x108] ss:$12 sps:$4 sm:$0xff]  }
 0x1d8   :  { %2626 = vmatpush1.bf16.msra.mxu0 %v21983_v22  ;;  %2706 = vmatprep.subr.bf16.mxu1 %v28915_v0  ;;  %v20407_v47 = vld [vmem:[%s28937_s2 + $0x4b4] ss:$12 sps:$4 sm:$0xff]  }
 0x1d9   :  { %2635 = vmatprep.subr.bf16.mxu0 %v21984_v56 }
 0x1da   :  { %2429 = vmatmul.mubr.bf16.gmra.mxu0 %v22724_v32  ;;  %v21988_v32 = vld [vmem:[%s28935_s24 + $0x80] ss:$12 sps:$4 sm:$0xff]  }
 0x1db   :  { %2707 = vmatpush1.bf16.msra.mxu1 %v21985_v63  ;;  %2436 = vmatprep.mubr.bf16.mxu0 %v590_v13  ;;  %v20404_v13 = vld [vmem:[%s28937_s2 + $0x4cc] ss:$12 sps:$4 sm:$0xff]   ;;  %v23379_v63 = vld [vmem:[%s28936_s28 + $0x114] ss:$8 sps:$4 sm:$0x7f]  }
 0x1dc   :  { %2636 = vmatpush2.bf16.msra.mxu0 %v21986_v10  ;;  %2708 = vmatprep.subr.bf16.mxu1 %v28915_v0  ;;  %v20405_v10 = vld [vmem:[%s28937_s2 + $0x4b0] ss:$12 sps:$4 sm:$0xff]  }
 0x1dd   :  { %2637 = vmatprep.subr.bf16.mxu0 %v21987_v23 }
 0x1de   :  { %19643 = vmatmul.mubr.bf16.gmra.mxu1 %v22714_v20  ;;  %v21990_v20 = vld [vmem:[%s28935_s24 + $0xdc] ss:$12 sps:$4 sm:$0xff]  }
 0x1df   :  { %2709 = vmatpush1.bf16.msra.mxu1 %v21988_v32  ;;  %19646 = vmatprep.mubr.bf16.mxu1 %v22722_v30  ;;  %v21991_v30 = vld [vmem:[%s28935_s24 + $0x68] ss:$12 sps:$4 sm:$0xff]  }
 0x1e0   :  { %2638 = vmatpush2.bf16.msra.mxu0 %v21989_v1  ;;  %2710 = vmatprep.subr.bf16.mxu1 %v28915_v0  ;;  %v20410_v1 = vld [vmem:[%s28937_s2 + $0x49c] ss:$12 sps:$4 sm:$0xff]  }
 0x1e1   :  { %2639 = vmatprep.subr.bf16.mxu0 %v21990_v20 }
 0x1e2   :  { %2437 = vmatmul.mubr.bf16.gmra.mxu0 %v22732_v42  ;;  %v21994_v42 = vld [vmem:[%s28935_s24 + $0x50] ss:$12 sps:$4 sm:$0xff]  }
 0x1e3   :  { %2711 = vmatpush1.bf16.msra.mxu1 %v21991_v30  ;;  %16497 = vmatprep.mubr.msk.bf16.mxu0 %vm381_vm0, %v20374_v31 }
 0x1e4   :  { %2640 = vmatpush2.bf16.msra.mxu0 %v21992_v33  ;;  %2712 = vmatprep.subr.bf16.mxu1 %v28915_v0  ;;  %v20408_v33 = vld [vmem:[%s28937_s2 + $0x498] ss:$12 sps:$4 sm:$0xff]  }
 0x1e5   :  { %2641 = vmatprep.subr.bf16.mxu0 %v21993_v54 }
 0x1e6   :  { %19647 = vmatmul.mubr.bf16.gmra.mxu1 %v22730_v40  ;;  %v23244_v40 = vld [vmem:[%s28936_s28 + $0xd4] ss:$8 sps:$4 sm:$0xff]  }
 0x1e7   :  { %2713 = vmatpush1.bf16.msra.mxu1 %v21994_v42  ;;  %16503 = vmatprep.mubr.msk.bf16.mxu1 %vm381_vm0, %v20374_v31 }
 0x1e8   :  { %2642 = vmatpush2.bf16.msra.mxu0 %v21995_v51  ;;  %2714 = vmatprep.subr.bf16.mxu1 %v28915_v0 }
 0x1e9   :  { %3284 = vmatprep.subr.bf16.mxu0 %v20392_v17 }
 0x1eb   :  { %2644 = vmatmul.mubr.bf16.vlgmr.msra.gmra.mxu0 %v23234_v60  ;;  %2715 = vmatpush1.bf16.msra.mxu1 %v21996_v57  ;;  %v20413_v57 = vld [vmem:[%s28937_s2 + $0x484] ss:$12 sps:$4 sm:$0xff]  }
 0x1ec   :  { %2716 = vmatprep.subr.bf16.mxu1 %v28915_v0  ;;  %16498 = vmatprep.mubr.msk.bf16.mxu0 %vm381_vm0, %v23244_v40 }
 0x1ed   :  { %3285 = vmatpush1.bf16.msra.mxu0 %v20390_v37 }
 0x1ee   :  { %3286 = vmatprep.subr.bf16.mxu0 %v20395_v41 }
 0x1ef   :  { %2717 = vmatpush1.bf16.msra.mxu1 %v21997_v19 }
 0x1f0   :  { %2718 = vmatprep.subr.bf16.mxu1 %v28915_v0 }
 0x1f1   :  { %3287 = vmatpush1.bf16.msra.mxu0 %v20393_v15 }
 0x1f2   :  { %3288 = vmatprep.subr.bf16.mxu0 %v20398_v50  ;;  %v20419_v50 = vld [vmem:[%s28937_s2 + $0x5d4] ss:$12 sps:$4 sm:$0xff]  }
 0x1f3   :  { %2654 = vmatmul.mubr.bf16.gmra.mxu0 %v23259_v35  ;;  %2719 = vmatpush1.bf16.msra.mxu1 %v21998_v36  ;;  %v20411_v36 = vld [vmem:[%s28937_s2 + $0x480] ss:$12 sps:$4 sm:$0xff]  }
 0x1f4   :  { %2728 = vmatprep.subr.bf16.mxu1 %v28915_v0  ;;  %16499 = vmatprep.mubr.msk.bf16.mxu0 %vm381_vm0, %v23265_v27 }
 0x1f5   :  { %3289 = vmatpush1.bf16.msra.mxu0 %v20396_v29 }
 0x1f6   :  { %v1573_v45 = vpop.f32.mrf.mxu1  ;;  %3290 = vmatprep.subr.bf16.mxu0 %v20401_v14 }
 0x1f7   :  { %2729 = vmatpush2.bf16.msra.mxu1 %v21999_v39 }
 0x1f8   :  { %v1575_v43 = vpop.f32.mrf.mxu1  ;;  %2730 = vmatprep.subr.bf16.mxu1 %v28915_v0 }
 0x1f9   :  { %3291 = vmatpush1.bf16.msra.mxu0 %v20399_v55  ;;  %v20420_v55 = vld [vmem:[%s28937_s2 + $0x5b8] ss:$12 sps:$4 sm:$0xff]  }
 0x1fa   :  { %v1480_v48 = vpop.f32.mrf.mxu0  ;;  %v1577_v46 = vpop.f32.mrf.mxu1  ;;  %3292 = vmatprep.subr.bf16.mxu0 %v20404_v13 }
 0x1fb   :  { %2664 = vmatmul.mubr.bf16.gmra.mxu0 %v23286_v26  ;;  %2731 = vmatpush2.bf16.msra.mxu1 %v22000_v49  ;;  %v23304_v52 = vadd.f32 %v1573_v45, %v1480_v48 }
 0x1fc   :  { %v1482_v59 = vpop.f32.mrf.mxu0  ;;  %v23309_v3 = vpop.f32.mrf.mxu1  ;;  %2732 = vmatprep.subr.bf16.mxu1 %v28915_v0  ;;  %16500 = vmatprep.mubr.msk.bf16.mxu0 %vm381_vm0, %v23295_v58 }
 0x1fd   :  { %28938 = vst [vmem:[#allocation2_spill] sm:$0xff] %v23309_v3  ;;  %v23317_v5 = vadd.f32 %v1575_v43, %v1482_v59  ;;  %3293 = vmatpush1.bf16.msra.mxu0 %v20402_v38  ;;  %v20414_v43 = vld [vmem:[%s28937_s2 + $0x5e8] ss:$12 sps:$4 sm:$0xff]  }
 0x1fe   :  { %v1484_v61 = vpop.f32.mrf.mxu0  ;;  %v1583_v4 = vpop.f32.mrf.mxu1  ;;  %3294 = vmatprep.subr.bf16.mxu0 %v20407_v47 }
 0x1ff   :  { %2733 = vmatpush2.bf16.msra.mxu1 %v22001_v6  ;;  %v23322_v7 = vadd.f32 %v1577_v46, %v1484_v61  ;;  %v20417_v61 = vld [vmem:[%s28937_s2 + $0x5d0] ss:$12 sps:$4 sm:$0xff]  }
 0x200   :  { %v23332_v25 = vpop.f32.mrf.mxu0  ;;  %v1585_v18 = vpop.f32.mrf.mxu1  ;;  %2734 = vmatprep.subr.bf16.mxu1 %v28915_v0 }
 0x201   :  { %28939 = vst [vmem:[#allocation3_spill] sm:$0xff] %v23332_v25  ;;  %3295 = vmatpush1.bf16.msra.mxu0 %v20405_v10  ;;  %v23601_v25 = vld [vmem:[%s28937_s2 + $0x6b0] ss:$12 sps:$4 sm:$0xff]  }
 0x202   :  { %v1490_v9 = vpop.f32.mrf.mxu0  ;;  %v1587_v11 = vpop.f32.mrf.mxu1  ;;  %3296 = vmatprep.subr.bf16.mxu0 %v20410_v1 }
 0x203   :  { %2674 = vmatmul.mubr.bf16.gmra.mxu0 %v23327_v8  ;;  %2735 = vmatpush2.bf16.msra.mxu1 %v22002_v28  ;;  %v23347_v34 = vadd.f32 %v1583_v4, %v1490_v9 }
 0x204   :  { %v1492_v2 = vpop.f32.mrf.mxu0  ;;  %v23352_v62 = vpop.f32.mrf.mxu1  ;;  %16501 = vmatprep.mubr.msk.bf16.mxu0 %vm381_vm0, %v23338_v24 }
 0x205   :  { %28940 = vst [vmem:[#allocation4_spill] sm:$0xff] %v23352_v62  ;;  %v23359_v44 = vadd.f32 %v1585_v18, %v1492_v2  ;;  %3297 = vmatpush1.bf16.msra.mxu0 %v20408_v33  ;;  %v20425_v2 = vld [vmem:[%s28937_s2 + $0x5a4] ss:$12 sps:$4 sm:$0xff]  }
 0x206   :  { %2737 = vmatmul.mubr.bf16.vlgmr.msra.gmra.mxu1 %v23234_v60  ;;  %v1494_v16 = vpop.f32.mrf.mxu0  ;;  %v1593_v12 = vpop.f32.mrf.mxu1  ;;  %3298 = vmatprep.subr.bf16.mxu0 %v20413_v57 }
 0x207   :  { %v23362_v21 = vadd.f32 %v1587_v11, %v1494_v16  ;;  %16504 = vmatprep.mubr.msk.bf16.mxu1 %vm381_vm0, %v23244_v40  ;;  %v23405_v40 = vld [vmem:[%s28936_s28 + $0x110] ss:$8 sps:$4 sm:$0x7f]  }
 0x208   :  { %v23374_v22 = vpop.f32.mrf.mxu0  ;;  %v1595_v56 = vpop.f32.mrf.mxu1 }
 0x209   :  { %3299 = vmatpush1.bf16.msra.mxu0 %v20411_v36  ;;  %v20429_v36 = vld [vmem:[%s28937_s2 + $0x570] ss:$12 sps:$4 sm:$0xff]  }
 0x20a   :  { %v1500_v23 = vpop.f32.mrf.mxu0  ;;  %v1597_v32 = vpop.f32.mrf.mxu1 }
 0x20b   :  { %2684 = vmatmul.mubr.bf16.gmra.mxu0 %v23367_v53  ;;  %v23385_v31 = vadd.f32 %v1593_v12, %v1500_v23  ;;  %v20423_v12 = vld [vmem:[%s28937_s2 + $0x5a0] ss:$12 sps:$4 sm:$0xff]  }
 0x20c   :  { %v1502_v20 = vpop.f32.mrf.mxu0  ;;  %v23390_v30 = vpop.f32.mrf.mxu1  ;;  %16502 = vmatprep.mubr.msk.bf16.mxu0 %vm381_vm0, %v23379_v63 }
 0x20d   :  { %28941 = vst [vmem:[#allocation5_spill] sm:$0xff] %v23390_v30  ;;  %v23397_v54 = vadd.f32 %v1595_v56, %v1502_v20 }
 0x20e   :  { %2745 = vmatmul.mubr.bf16.gmra.mxu1 %v23259_v35  ;;  %v1504_v42 = vpop.f32.mrf.mxu0  ;;  %v1603_v60 = vpop.f32.mrf.mxu1 }
 0x20f   :  { %v23400_v51 = vadd.f32 %v1597_v32, %v1504_v42  ;;  %16505 = vmatprep.mubr.msk.bf16.mxu1 %vm381_vm0, %v23265_v27  ;;  %v20416_v27 = vld [vmem:[%s28937_s2 + $0x5ec] ss:$12 sps:$4 sm:$0xff]   ;;  %v20426_v32 = vld [vmem:[%s28937_s2 + $0x588] ss:$12 sps:$4 sm:$0xff]  }
 0x210   :  { %v23412_v19 = vpop.f32.mrf.mxu0  ;;  %v1605_v35 = vpop.f32.mrf.mxu1  ;;  %3300 = vmatprep.subr.bf16.mxu0 %v20416_v27  ;;  %v20437_v27 = vld [vmem:[%s28937_s2 + $0x6ac] ss:$12 sps:$4 sm:$0xff]  }
 0x211   :  { %28942 = vst [vmem:[#allocation6_spill] sm:$0xff] %v23412_v19  ;;  %3301 = vmatpush2.bf16.msra.mxu0 %v20414_v43  ;;  %3377 = vmatprep.subr.bf16.mxu1 %v20437_v27 }
 0x212   :  { %v1510_v17 = vpop.f32.mrf.mxu0  ;;  %v1607_v37 = vpop.f32.mrf.mxu1  ;;  %3302 = vmatprep.subr.bf16.mxu0 %v20419_v50 }
 0x213   :  { %2694 = vmatmul.mubr.bf16.gmra.mxu0 %v23405_v40  ;;  %v23418_v45 = vadd.f32 %v1603_v60, %v1510_v17  ;;  %v20431_v60 = vld [vmem:[%s28937_s2 + $0x574] ss:$12 sps:$4 sm:$0xff]  }
 0x214   :  { %v1512_v39 = vpop.f32.mrf.mxu0  ;;  %v23423_v41 = vpop.f32.mrf.mxu1 }
 0x215   :  { %28943 = vst [vmem:[#allocation7_spill] sm:$0xff] %v23423_v41  ;;  %v23428_v15 = vadd.f32 %v1605_v35, %v1512_v39  ;;  %3303 = vmatpush2.bf16.msra.mxu0 %v20417_v61 }
 0x216   :  { %2753 = vmatmul.mubr.bf16.gmra.mxu1 %v23286_v26  ;;  %v1514_v48 = vpop.f32.mrf.mxu0  ;;  %v1613_v46 = vpop.f32.mrf.mxu1 }
 0x217   :  { %v23431_v49 = vadd.f32 %v1607_v37, %v1514_v48  ;;  %16506 = vmatprep.mubr.msk.bf16.mxu1 %vm381_vm0, %v23295_v58  ;;  %v20422_v58 = vld [vmem:[%s28937_s2 + $0x5bc] ss:$12 sps:$4 sm:$0xff]   ;;  %v20432_v48 = vld [vmem:[%s28937_s2 + $0x558] ss:$12 sps:$4 sm:$0xff]  }
 0x218   :  { %v23438_v59 = vpop.f32.mrf.mxu0  ;;  %v1615_v29 = vpop.f32.mrf.mxu1  ;;  %3304 = vmatprep.subr.bf16.mxu0 %v20422_v58 }
 0x219   :  { %28944 = vst [vmem:[#allocation8_spill] sm:$0xff] %v23438_v59  ;;  %3305 = vmatpush2.bf16.msra.mxu0 %v20420_v55  ;;  %v20441_v55 = vld [vmem:[%s28937_s2 + $0x690] ss:$12 sps:$4 sm:$0xff]  }
 0x21a   :  { %v1520_v26 = vpop.f32.mrf.mxu0  ;;  %v1617_v4 = vpop.f32.mrf.mxu1  ;;  %3306 = vmatprep.subr.bf16.mxu0 %v20425_v2 }
 0x21b   :  { %v23443_v6 = vadd.f32 %v1613_v46, %v1520_v26  ;;  %v20435_v46 = vld [vmem:[%s28937_s2 + $0x6a8] ss:$12 sps:$4 sm:$0xff]   ;;  %v20440_v26 = vld [vmem:[%s28937_s2 + $0x544] ss:$12 sps:$4 sm:$0xff]  }
 0x21c   :  { %v1522_v14 = vpop.f32.mrf.mxu0  ;;  %v23448_v18 = vpop.f32.mrf.mxu1  ;;  %3378 = vmatpush1.bf16.msra.mxu1 %v20435_v46 }
 0x21d   :  { %28945 = vst [vmem:[#allocation9_spill] sm:$0xff] %v23448_v18  ;;  %v23453_v9 = vadd.f32 %v1615_v29, %v1522_v14  ;;  %3307 = vmatpush2.bf16.msra.mxu0 %v20423_v12  ;;  %v20446_v12 = vld [vmem:[%s28937_s2 + $0x67c] ss:$12 sps:$4 sm:$0xff]  }
 0x21e   :  { %2761 = vmatmul.mubr.bf16.gmra.mxu1 %v23327_v8  ;;  %v1524_v11 = vpop.f32.mrf.mxu0  ;;  %v1623_v28 = vpop.f32.mrf.mxu1 }
 0x21f   :  { %v23456_v13 = vadd.f32 %v1617_v4, %v1524_v11  ;;  %16507 = vmatprep.mubr.msk.bf16.mxu1 %vm381_vm0, %v23338_v24  ;;  %v20428_v24 = vld [vmem:[%s28937_s2 + $0x58c] ss:$12 sps:$4 sm:$0xff]   ;;  %v20443_v4 = vld [vmem:[%s28937_s2 + $0x694] ss:$12 sps:$4 sm:$0xff]  }
 0x220   :  { %v23463_v38 = vpop.f32.mrf.mxu0  ;;  %v1625_v16 = vpop.f32.mrf.mxu1  ;;  %3308 = vmatprep.subr.bf16.mxu0 %v20428_v24  ;;  %3379 = vmatprep.subr.bf16.mxu1 %v20443_v4  ;;  %v20444_v24 = vld [vmem:[%s28937_s2 + $0x678] ss:$12 sps:$4 sm:$0xff]  }
 0x221   :  { %28946 = vst [vmem:[#allocation10_spill] sm:$0xff] %v23463_v38  ;;  %3309 = vmatpush2.bf16.msra.mxu0 %v20426_v32  ;;  %3380 = vmatpush1.bf16.msra.mxu1 %v20441_v55 }
 0x222   :  { %v1530_v8 = vpop.f32.mrf.mxu0  ;;  %v1627_v47 = vpop.f32.mrf.mxu1  ;;  %3310 = vmatprep.subr.bf16.mxu0 %v20431_v60  ;;  %3381 = vmatprep.subr.bf16.mxu1 %v20446_v12  ;;  %v20449_v60 = vld [vmem:[%s28937_s2 + $0x664] ss:$12 sps:$4 sm:$0xff]   ;;  %v20458_v12 = vld [vmem:[%s28937_s2 + $0x61c] ss:$12 sps:$4 sm:$0xff]  }
 0x223   :  { %v23468_v56 = vadd.f32 %v1623_v28, %v1530_v8 }
 0x224   :  { %v1532_v10 = vpop.f32.mrf.mxu0  ;;  %v23473_v23 = vpop.f32.mrf.mxu1 }
 0x225   :  { %28947 = vst [vmem:[#allocation11_spill] sm:$0xff] %v23473_v23  ;;  %v23478_v1 = vadd.f32 %v1625_v16, %v1532_v10  ;;  %3311 = vmatpush2.bf16.msra.mxu0 %v20429_v36  ;;  %3382 = vmatpush1.bf16.msra.mxu1 %v20444_v24 }
 0x226   :  { %2769 = vmatmul.mubr.bf16.gmra.mxu1 %v23367_v53  ;;  %v1534_v20 = vpop.f32.mrf.mxu0  ;;  %v18847_v33 = vpop.f32.mrf.mxu1  ;;  %3383 = vmatprep.subr.bf16.mxu1 %v20449_v60 }
 0x227   :  { %v23481_v42 = vadd.f32 %v1627_v47, %v1534_v20  ;;  %16508 = vmatprep.mubr.msk.bf16.mxu1 %vm381_vm0, %v23379_v63  ;;  %v20434_v63 = vld [vmem:[%s28937_s2 + $0x55c] ss:$12 sps:$4 sm:$0xff]  }
 0x228   :  { %v23488_v57 = vpop.f32.mrf.mxu0  ;;  %v18848_v35 = vpop.f32.mrf.mxu1  ;;  %3312 = vmatprep.subr.bf16.mxu0 %v20434_v63 }
 0x229   :  { %28948 = vst [vmem:[#allocation12_spill] sm:$0xff] %v23488_v57  ;;  %v18849_v53 = vadd.f32 %v18848_v35, %v18847_v33  ;;  %3313 = vmatpush2.bf16.msra.mxu0 %v20432_v48 }
 0x22a   :  { %v23493_v17 = vpop.f32.mrf.mxu1  ;;  %v19612_v37 = vpop.f32.mrf.mxu0  ;;  %3314 = vmatprep.subr.bf16.mxu0 %v20440_v26  ;;  %v20455_v26 = vld [vmem:[%s28937_s2 + $0x634] ss:$12 sps:$4 sm:$0xff]  }
 0x22c   :  { %v23501_v39 = vpop.f32.mrf.mxu1  ;;  %v1747_v43 = vpop.f32.mrf.mxu0 }
 0x22d   :  { %v23509_v50 = vadd.f32 %v18849_v53, %v1747_v43  ;;  %v20447_v53 = vld [vmem:[%s28937_s2 + $0x660] ss:$12 sps:$4 sm:$0xff]  }
 0x22e   :  { %2777 = vmatmul.mubr.bf16.gmra.mxu1 %v23405_v40  ;;  %v18853_v29 = vpop.f32.mrf.mxu1  ;;  %v19613_v61 = vpop.f32.mrf.mxu0  ;;  %v20438_v40 = vld [vmem:[%s28937_s2 + $0x540] ss:$12 sps:$4 sm:$0xff]  }
 0x22f   :  { %3409 = vmatprep.mubr.bf16.mxu1 %v28915_v0  ;;  %3315 = vmatpush2.bf16.msra.mxu0 %v20438_v40  ;;  %v20452_v43 = vld [vmem:[%s28937_s2 + $0x64c] ss:$12 sps:$4 sm:$0xff]   ;;  %v20453_v40 = vld [vmem:[%s28937_s2 + $0x630] ss:$12 sps:$4 sm:$0xff]  }
 0x230   :  { %v18854_v58 = vpop.f32.mrf.mxu1  ;;  %v23519_v14 = vpop.f32.mrf.mxu0  ;;  %3384 = vmatpush1.bf16.msra.mxu1 %v20447_v53 }
 0x231   :  { %v18855_v11 = vadd.f32 %v18854_v58, %v18853_v29  ;;  %v20450_v29 = vld [vmem:[%s28937_s2 + $0x648] ss:$12 sps:$4 sm:$0xff]   ;;  %3385 = vmatprep.subr.bf16.mxu1 %v20452_v43  ;;  %v20461_v43 = vld [vmem:[%s28937_s2 + $0x600] ss:$12 sps:$4 sm:$0xff]  }
 0x232   :  { %v18856_v28 = vpop.f32.mrf.mxu1  ;;  %v19616_v2 = vpop.f32.mrf.mxu0 }
 0x233   :  { %v23527_v16 = vadd.f32 %v19612_v37, %v18855_v11 }
 0x234   :  { %v18857_v8 = vpop.f32.mrf.mxu1  ;;  %v1763_v47 = vpop.f32.mrf.mxu0  ;;  %3386 = vmatpush1.bf16.msra.mxu1 %v20450_v29 }
 0x235   :  { %v18858_v10 = vadd.f32 %v18857_v8, %v18856_v28  ;;  %3387 = vmatprep.subr.bf16.mxu1 %v20455_v26  ;;  %v20459_v8 = vld [vmem:[%s28937_s2 + $0x5f0] ss:$12 sps:$4 sm:$0xff]  }
 0x236   :  { %v18859_v32 = vpop.f32.mrf.mxu1  ;;  %v19617_v20 = vpop.f32.mrf.mxu0  ;;  %18963 = vmatprep.subr.bf16.mxu0 %v20459_v8 }
 0x237   :  { %v23535_v33 = vadd.f32 %v19613_v61, %v18858_v10  ;;  %v20456_v10 = vld [vmem:[%s28937_s2 + $0x618] ss:$12 sps:$4 sm:$0xff]  }
 0x238   :  { %v18860_v35 = vpop.f32.mrf.mxu1  ;;  %v23540_v36 = vpop.f32.mrf.mxu0  ;;  %3388 = vmatpush1.bf16.msra.mxu1 %v20453_v40 }
 0x239   :  { %v18861_v37 = vadd.f32 %v18860_v35, %v18859_v32  ;;  %3389 = vmatprep.subr.bf16.mxu1 %v20458_v12  ;;  %v20463_v35 = vld [vmem:[%s28937_s2 + $0x604] ss:$12 sps:$4 sm:$0xff]  }
 0x23a   :  { %v23545_v63 = vpop.f32.mrf.mxu1  ;;  %v19620_v48 = vpop.f32.mrf.mxu0 }
 0x23b   :  { %v23547_v27 = vadd.f32 %v18861_v37, %v1763_v47 }
 0x23c   :  { %v23552_v46 = vpop.f32.mrf.mxu1  ;;  %v1779_v4 = vpop.f32.mrf.mxu0  ;;  %3390 = vmatpush1.bf16.msra.mxu1 %v20456_v10 }
 0x23d   :  { %3391 = vmatprep.subr.bf16.mxu1 %v20463_v35 }
 0x23e   :  { %v18865_v61 = vpop.f32.mrf.mxu1  ;;  %v19621_v47 = vpop.f32.mrf.mxu0 }
 0x240   :  { %v18866_v58 = vpop.f32.mrf.mxu1  ;;  %v23579_v53 = vpop.f32.mrf.mxu0  ;;  %3392 = vmatpush1.bf16.msra.mxu1 %v20461_v43 }
 0x241   :  { %v18867_v55 = vadd.f32 %v18866_v58, %v18865_v61  ;;  %19650 = vmatprep.subr.bf16.mxu1 %v23601_v25 }
 0x242   :  { %v18868_v11 = vpop.f32.mrf.mxu1 }
 0x243   :  { %v23563_v28 = vadd.f32 %v19616_v2, %v18867_v55 }
 0x244   :  { %v18869_v24 = vpop.f32.mrf.mxu1 }
 0x245   :  { %v18870_v32 = vadd.f32 %v18869_v24, %v18868_v11 }
 0x246   :  { %v18871_v2 = vpop.f32.mrf.mxu1 }
 0x247   :  { %v23574_v60 = vadd.f32 %v19617_v20, %v18870_v32 }
 0x248   :  { %v18872_v37 = vpop.f32.mrf.mxu1 }
 0x249   :  { %v18873_v29 = vadd.f32 %v18872_v37, %v18871_v2 }
 0x24a   :  { %v2305_v61 = vpop.f32.mrf.mxu0  ;;  %v23584_v26 = vpop.f32.mrf.mxu1 }
 0x24b   :  { %v23586_v58 = vadd.f32 %v18873_v29, %v1779_v4 }
 0x24c   :  { %v2307_v20 = vpop.f32.mrf.mxu0  ;;  %v23588_v40 = vpop.f32.mrf.mxu1 }
 0x24e   :  { %v2309_v55 = vpop.f32.mrf.mxu0  ;;  %v18877_v11 = vpop.f32.mrf.mxu1 }
 0x250   :  { %v23590_v12 = vpop.f32.mrf.mxu0  ;;  %v18878_v8 = vpop.f32.mrf.mxu1 }
 0x251   :  { %28949 = vst [vmem:[#allocation13_spill] sm:$0xff] %v23590_v12  ;;  %v18879_v24 = vadd.f32 %v18878_v8, %v18877_v11 }
 0x252   :  { %v2315_v10 = vpop.f32.mrf.mxu0  ;;  %v18880_v32 = vpop.f32.mrf.mxu1 }
 0x253   :  { %v23592_v0 = vadd.f32 %v19620_v48, %v18879_v24 }
 0x254   :  { %v2317_v2 = vpop.f32.mrf.mxu0  ;;  %v18881_v35 = vpop.f32.mrf.mxu1 }
 0x255   :  { %v18882_v37 = vadd.f32 %v18881_v35, %v18880_v32 }
 0x256   :  { %v2319_v3 = vpop.f32.mrf.mxu0 }
 0x257   :  { %v23594_v4 = vadd.f32 %v19621_v47, %v18882_v37 }
 0x258   :  { %v23596_v43 = vpop.f32.mrf.mxu0 }
 0x259   :  { %28950 = vst [vmem:[#allocation14_spill] sm:$0xff] %v23596_v43 }
 0x25a   :  { %v2325_v29 = vpop.f32.mrf.mxu0 }
 0x25c   :  { %v2327_v12 = vpop.f32.mrf.mxu0 }
 0x25e   :  { %v2329_v11 = vpop.f32.mrf.mxu0 }
 0x260   :  { %v23604_v48 = vpop.f32.mrf.mxu0 }
 0x261   :  { %28951 = vst [vmem:[#allocation15_spill] sm:$0xff] %v23604_v48 }
 0x262   :  { %v2335_v8 = vpop.f32.mrf.mxu0 }
 0x264   :  { %v2337_v24 = vpop.f32.mrf.mxu0 }
 0x266   :  { %v2212_v32 = vpop.f32.mrf.mxu1  ;;  %v2339_v35 = vpop.f32.mrf.mxu0 }
 0x267   :  { %v2213_v47 = vadd.f32 %v2212_v32, %v23304_v52 }
 0x268   :  { %v2214_v37 = vpop.f32.mrf.mxu1  ;;  %v23607_v43 = vpop.f32.mrf.mxu0 }
 0x269   :  { %28952 = vst [vmem:[#allocation16_spill] sm:$0xff] %v23607_v43  ;;  %v23609_v23 = vadd.f32 %v2305_v61, %v2213_v47  ;;  %v2215_v57 = vadd.f32 %v2214_v37, %v23317_v5 }
 0x26a   :  { %v2216_v18 = vpop.f32.mrf.mxu1  ;;  %v2345_v38 = vpop.f32.mrf.mxu0 }
 0x26b   :  { %v23612_v41 = vadd.f32 %v2307_v20, %v2215_v57  ;;  %v2217_v59 = vadd.f32 %v2216_v18, %v23322_v7 }
 0x26c   :  { %v23615_v48 = vpop.f32.mrf.mxu1  ;;  %v2347_v30 = vpop.f32.mrf.mxu0 }
 0x26d   :  { %28953 = vst [vmem:[#allocation17_spill] sm:$0xff] %v23615_v48  ;;  %v23617_v19 = vadd.f32 %v2309_v55, %v2217_v59 }
 0x26e   :  { %v2222_v62 = vpop.f32.mrf.mxu1  ;;  %v23619_v52 = vpop.f32.mrf.mxu0 }
 0x26f   :  { %v2223_v32 = vadd.f32 %v2222_v62, %v23347_v34 }
 0x270   :  { %v2224_v61 = vpop.f32.mrf.mxu1  ;;  %v23622_v47 = vpop.f32.mrf.mxu0 }
 0x271   :  { %28954 = vst [vmem:[#allocation18_spill] sm:$0xff] %v23622_v47  ;;  %v23624_v5 = vadd.f32 %v2315_v10, %v2223_v32  ;;  %v2225_v57 = vadd.f32 %v2224_v61, %v23359_v44 }
 0x272   :  { %v2226_v20 = vpop.f32.mrf.mxu1  ;;  %v23627_v37 = vpop.f32.mrf.mxu0 }
 0x273   :  { %v23629_v7 = vadd.f32 %v2317_v2, %v2225_v57  ;;  %v2227_v59 = vadd.f32 %v2226_v20, %v23362_v21 }
 0x274   :  { %v23632_v18 = vpop.f32.mrf.mxu1  ;;  %v23634_v55 = vpop.f32.mrf.mxu0 }
 0x275   :  { %28955 = vst [vmem:[#allocation19_spill] sm:$0xff] %v23632_v18  ;;  %v23636_v43 = vadd.f32 %v2319_v3, %v2227_v59 }
 0x276   :  { %v2232_v34 = vpop.f32.mrf.mxu1  ;;  %v23638_v62 = vpop.f32.mrf.mxu0 }
 0x277   :  { %v2233_v10 = vadd.f32 %v2232_v34, %v23385_v31 }
 0x278   :  { %v2234_v32 = vpop.f32.mrf.mxu1  ;;  %v23641_v44 = vpop.f32.mrf.mxu0 }
 0x279   :  { %28956 = vst [vmem:[#allocation20_spill] sm:$0xff] %v23641_v44  ;;  %v23643_v61 = vadd.f32 %v2325_v29, %v2233_v10  ;;  %v2235_v2 = vadd.f32 %v2234_v32, %v23397_v54  ;;  %v18852_v29 = vadd.f32 %v23501_v39, %v23493_v17 }
 0x27a   :  { %v2236_v57 = vpop.f32.mrf.mxu1  ;;  %v18913_v21 = vpop.f32.mrf.mxu0 }
 0x27b   :  { %v23646_v20 = vadd.f32 %v2327_v12, %v2235_v2  ;;  %v2237_v47 = vadd.f32 %v2236_v57, %v23400_v51  ;;  %v1751_v2 = vadd.f32 %v18852_v29, %v23519_v14 }
 0x27c   :  { %v23649_v3 = vpop.f32.mrf.mxu1  ;;  %v18914_v59 = vpop.f32.mrf.mxu0 }
 0x27d   :  { %v23651_v48 = vadd.f32 %v2329_v11, %v2237_v47  ;;  %v18915_v18 = vadd.f32 %v18914_v59, %v18913_v21 }
 0x27e   :  { %v2242_v31 = vpop.f32.mrf.mxu1  ;;  %v18916_v34 = vpop.f32.mrf.mxu0 }
 0x27f   :  { %v2243_v10 = vadd.f32 %v2242_v31, %v23418_v45  ;;  %v2399_v54 = vadd.f32 %v18915_v18, %v23509_v50 }
 0x280   :  { %v2244_v32 = vpop.f32.mrf.mxu1  ;;  %v18917_v12 = vpop.f32.mrf.mxu0 }
 0x281   :  { %v23658_v51 = vadd.f32 %v2335_v8, %v2243_v10  ;;  %v2245_v57 = vadd.f32 %v2244_v32, %v23428_v15  ;;  %v18918_v11 = vadd.f32 %v18917_v12, %v18916_v34 }
 0x282   :  { %v2246_v47 = vpop.f32.mrf.mxu1  ;;  %v18919_v21 = vpop.f32.mrf.mxu0 }
 0x283   :  { %v23661_v59 = vadd.f32 %v2337_v24, %v2245_v57  ;;  %v2247_v44 = vadd.f32 %v2246_v47, %v23431_v49  ;;  %v23664_v17 = vadd.f32 %v18918_v11, %v1751_v2 }
 0x284   :  { %v23666_v45 = vpop.f32.mrf.mxu1  ;;  %v18920_v39 = vpop.f32.mrf.mxu0 }
 0x285   :  { %v23668_v50 = vadd.f32 %v2339_v35, %v2247_v44  ;;  %v18921_v18 = vadd.f32 %v18920_v39, %v18919_v21 }
 0x286   :  { %v2252_v14 = vpop.f32.mrf.mxu1  ;;  %v18922_v8 = vpop.f32.mrf.mxu0 }
 0x287   :  { %v2253_v31 = vadd.f32 %v2252_v14, %v23443_v6  ;;  %v2407_v15 = vadd.f32 %v18921_v18, %v23527_v16  ;;  %v18864_v16 = vadd.f32 %v23552_v46, %v23545_v63 }
 0x288   :  { %v2254_v34 = vpop.f32.mrf.mxu1  ;;  %v18923_v29 = vpop.f32.mrf.mxu0 }
 0x289   :  { %v23672_v24 = vadd.f32 %v2345_v38, %v2253_v31  ;;  %v2255_v49 = vadd.f32 %v2254_v34, %v23453_v9  ;;  %v18924_v10 = vadd.f32 %v18923_v29, %v18922_v8 }
 0x28a   :  { %v2256_v32 = vpop.f32.mrf.mxu1  ;;  %v18925_v12 = vpop.f32.mrf.mxu0 }
 0x28b   :  { %v23675_v2 = vadd.f32 %v2347_v30, %v2255_v49  ;;  %v2257_v35 = vadd.f32 %v2256_v32, %v23456_v13  ;;  %v2410_v44 = vadd.f32 %v18924_v10, %v23535_v33  ;;  %v1767_v33 = vadd.f32 %v18864_v16, %v23540_v36 }
 0x28c   :  { %v23679_v57 = vpop.f32.mrf.mxu1  ;;  %v18926_v6 = vpop.f32.mrf.mxu0 }
 0x28d   :  { %v23684_v38 = vadd.f32 %v23619_v52, %v2257_v35  ;;  %v18927_v11 = vadd.f32 %v18926_v6, %v18925_v12 }
 0x28e   :  { %v2262_v9 = vpop.f32.mrf.mxu1  ;;  %v18928_v47 = vpop.f32.mrf.mxu0 }
 0x28f   :  { %v2263_v21 = vadd.f32 %v2262_v9, %v23468_v56  ;;  %v2415_v30 = vadd.f32 %v18927_v11, %v23547_v27 }
 0x290   :  { %v2264_v39 = vpop.f32.mrf.mxu1  ;;  %v18929_v13 = vpop.f32.mrf.mxu0 }
 0x291   :  { %v23690_v18 = vadd.f32 %v23627_v37, %v2263_v21  ;;  %v2265_v14 = vadd.f32 %v2264_v39, %v23478_v1  ;;  %v18930_v63 = vadd.f32 %v18929_v13, %v18928_v47 }
 0x292   :  { %v2266_v46 = vpop.f32.mrf.mxu1  ;;  %v18931_v52 = vpop.f32.mrf.mxu0 }
 0x293   :  { %v23694_v8 = vadd.f32 %v23634_v55, %v2265_v14  ;;  %v2267_v31 = vadd.f32 %v2266_v46, %v23481_v42  ;;  %v23697_v56 = vadd.f32 %v18930_v63, %v1767_v33 }
 0x294   :  { %v23699_v27 = vpop.f32.mrf.mxu1  ;;  %v18932_v34 = vpop.f32.mrf.mxu0 }
 0x295   :  { %28957 = vst [vmem:[#allocation21_spill] sm:$0xff] %v23699_v27  ;;  %v23702_v36 = vadd.f32 %v23638_v62, %v2267_v31  ;;  %v18933_v37 = vadd.f32 %v18932_v34, %v18931_v52 }
 0x296   :  { %v18934_v29 = vpop.f32.mrf.mxu0  ;;  %v19640_v49 = vpop.f32.mrf.mxu1 }
 0x297   :  { %v23704_v1 = vadd.f32 %v19640_v49, %v2407_v15  ;;  %v2423_v10 = vadd.f32 %v18933_v37, %v23563_v28  ;;  %v18876_v15 = vadd.f32 %v23588_v40, %v23584_v26 }
 0x298   :  { %v18935_v32 = vpop.f32.mrf.mxu0  ;;  %v2479_v55 = vpop.f32.mrf.mxu1 }
 0x299   :  { %v18936_v12 = vadd.f32 %v18935_v32, %v18934_v29  ;;  %v23707_v35 = vadd.f32 %v2479_v55, %v2399_v54 }
 0x29a   :  { %v18937_v42 = vpop.f32.mrf.mxu0  ;;  %v19641_v6 = vpop.f32.mrf.mxu1 }
 0x29b   :  { %v23709_v16 = vadd.f32 %v19641_v6, %v2410_v44  ;;  %v2426_v11 = vadd.f32 %v18936_v12, %v23574_v60  ;;  %v1783_v44 = vadd.f32 %v18876_v15, %v23579_v53 }
 0x29c   :  { %v18938_v62 = vpop.f32.mrf.mxu0  ;;  %v23712_v9 = vpop.f32.mrf.mxu1 }
 0x29d   :  { %v18939_v47 = vadd.f32 %v18938_v62, %v18937_v42 }
 0x29e   :  { %v18940_v21 = vpop.f32.mrf.mxu0  ;;  %v19644_v28 = vpop.f32.mrf.mxu1 }
 0x29f   :  { %v23716_v39 = vadd.f32 %v19644_v28, %v2423_v10  ;;  %v2431_v54 = vadd.f32 %v18939_v47, %v23586_v58 }
 0x2a0   :  { %v18941_v13 = vpop.f32.mrf.mxu0  ;;  %v2495_v33 = vpop.f32.mrf.mxu1 }
 0x2a1   :  { %v18942_v14 = vadd.f32 %v18941_v13, %v18940_v21  ;;  %v23720_v63 = vadd.f32 %v2495_v33, %v2415_v30  ;;  %v20465_v13 = vld [vmem:[%s28937_s2 + $0x518] ss:$12 sps:$4 sm:$0xff]  }
 0x2a2   :  { %v18943_v60 = vpop.f32.mrf.mxu0  ;;  %v19645_v46 = vpop.f32.mrf.mxu1 }
 0x2a3   :  { %v23722_v52 = vadd.f32 %v19645_v46, %v2426_v11  ;;  %v23724_v31 = vadd.f32 %v18942_v14, %v1783_v44  ;;  %v20466_v44 = vld [vmem:[%s28937_s2 + $0x5c0] ss:$12 sps:$4 sm:$0xff]  }
 0x2a4   :  { %v18944_v26 = vpop.f32.mrf.mxu0  ;;  %v23726_v40 = vpop.f32.mrf.mxu1 }
 0x2a5   :  { %v18945_v34 = vadd.f32 %v18944_v26, %v18943_v60  ;;  %v20467_v26 = vld [vmem:[%s28937_s2 + $0x500] ss:$12 sps:$4 sm:$0xff]  }
 0x2a6   :  { %v18946_v37 = vpop.f32.mrf.mxu0  ;;  %v19648_v29 = vpop.f32.mrf.mxu1 }
 0x2a7   :  { %v2439_v58 = vadd.f32 %v18945_v34, %v23592_v0  ;;  %v20460_v0 = vld [vmem:[%s28937_s2 + $0x530] ss:$12 sps:$4 sm:$0xff]  }
 0x2a8   :  { %v18947_v49 = vpop.f32.mrf.mxu0  ;;  %v2511_v10 = vpop.f32.mrf.mxu1 }
 0x2a9   :  { %v23729_v53 = vadd.f32 %v19648_v29, %v2439_v58  ;;  %v18948_v30 = vadd.f32 %v18947_v49, %v18946_v37  ;;  %v23731_v32 = vadd.f32 %v2511_v10, %v2431_v54  ;;  %v20468_v37 = vld [vmem:[%s28937_s2 + $0x5a8] ss:$12 sps:$4 sm:$0xff]   ;;  %v20470_v10 = vld [vmem:[%s28937_s2 + $0x590] ss:$12 sps:$4 sm:$0xff]  }
 0x2aa   :  { %v19649_v42 = vpop.f32.mrf.mxu1  ;;  %v20469_v58 = vld [vmem:[%s28937_s2 + $0x4e8] ss:$12 sps:$4 sm:$0xff]  }
 0x2ab   :  { %v2442_v55 = vadd.f32 %v18948_v30, %v23594_v4  ;;  %v2645_v12 = vpop.f32.mrf.mxu0  ;;  %v20464_v4 = vld [vmem:[%s28937_s2 + $0x5d8] ss:$12 sps:$4 sm:$0xff]  }
 0x2ad   :  { %v23734_v6 = vadd.f32 %v19649_v42, %v2442_v55  ;;  %v2647_v11 = vpop.f32.mrf.mxu0  ;;  %v20471_v42 = vld [vmem:[%s28937_s2 + $0x4d0] ss:$12 sps:$4 sm:$0xff]  }
 0x2af   :  { %v2649_v62 = vpop.f32.mrf.mxu0 }
 0x2b0   :  { %v23736_v15 = vpack.c.bf16 %v2649_v62, %v2645_v12  ;;  %v20472_v62 = vld [vmem:[%s28937_s2 + $0x578] ss:$12 sps:$4 sm:$0xff]  }
 0x2b1   :  { %v2651_v47 = vpop.f32.mrf.mxu0 }
 0x2b2   :  { %v23738_v21 = vpack.c.bf16 %v2651_v47, %v2647_v11  ;;  %v23782_v47 = vpop.f32.mrf.mxu1 }
 0x2b3   :  { %v2655_v28 = vpop.f32.mrf.mxu0 }
 0x2b4   :  { %3316 = vmatprep.mubr.bf16.mxu0 %v23738_v21 }
 0x2b5   :  { %v2657_v54 = vpop.f32.mrf.mxu0  ;;  %3317 = vmatmul.mubr.bf16.vlgmr.msra.gmra.mxu0 %v23736_v15 }
 0x2b6   :  { %18964 = vmatpush3.bf16.msra.mxu0 %v20460_v0 }
 0x2b7   :  { %v2659_v33 = vpop.f32.mrf.mxu0  ;;  %18965 = vmatprep.subr.bf16.mxu0 %v20464_v4  ;;  %v20473_v4 = vld [vmem:[%s28937_s2 + $0x4b8] ss:$12 sps:$4 sm:$0xff]  }
 0x2b8   :  { %v23754_v14 = vpack.c.bf16 %v2659_v33, %v2655_v28 }
 0x2b9   :  { %v2661_v60 = vpop.f32.mrf.mxu0 }
 0x2ba   :  { %v23756_v46 = vpack.c.bf16 %v2661_v60, %v2657_v54  ;;  %18966 = vmatpush3.bf16.msra.mxu0 %v20465_v13  ;;  %v20475_v13 = vld [vmem:[%s28937_s2 + $0x560] ss:$12 sps:$4 sm:$0xff]  }
 0x2bb   :  { %v2665_v34 = vpop.f32.mrf.mxu0  ;;  %18967 = vmatprep.subr.bf16.mxu0 %v20466_v44 }
 0x2bc   :  { %3326 = vmatprep.mubr.bf16.mxu0 %v23756_v46 }
 0x2bd   :  { %v2667_v29 = vpop.f32.mrf.mxu0  ;;  %3327 = vmatmul.mubr.bf16.gmra.mxu0 %v23754_v14 }
 0x2be   :  { %18968 = vmatpush3.bf16.msra.mxu0 %v20467_v26 }
 0x2bf   :  { %v2669_v49 = vpop.f32.mrf.mxu0  ;;  %18969 = vmatprep.subr.bf16.mxu0 %v20468_v37 }
 0x2c0   :  { %v23772_v30 = vpack.c.bf16 %v2669_v49, %v2665_v34  ;;  %v20477_v49 = vld [vmem:[%s28937_s2 + $0x698] ss:$12 sps:$4 sm:$0xff]  }
 0x2c1   :  { %v2671_v55 = vpop.f32.mrf.mxu0 }
 0x2c2   :  { %v23774_v12 = vpack.c.bf16 %v2671_v55, %v2667_v29  ;;  %18970 = vmatpush3.bf16.msra.mxu0 %v20469_v58  ;;  %v20476_v58 = vld [vmem:[%s28937_s2 + $0x4a0] ss:$12 sps:$4 sm:$0xff]   ;;  %v20478_v55 = vld [vmem:[%s28937_s2 + $0x548] ss:$12 sps:$4 sm:$0xff]  }
 0x2c3   :  { %v2675_v11 = vpop.f32.mrf.mxu0  ;;  %18971 = vmatprep.subr.bf16.mxu0 %v20470_v10 }
 0x2c4   :  { %3336 = vmatprep.mubr.bf16.mxu0 %v23774_v12 }
 0x2c5   :  { %v2677_v0 = vpop.f32.mrf.mxu0  ;;  %3337 = vmatmul.mubr.bf16.gmra.mxu0 %v23772_v30 }
 0x2c6   :  { %v2738_v28 = vpop.f32.mrf.mxu1  ;;  %18972 = vmatpush3.bf16.msra.mxu0 %v20471_v42 }
 0x2c7   :  { %v2679_v54 = vpop.f32.mrf.mxu0  ;;  %18973 = vmatprep.subr.bf16.mxu0 %v20472_v62  ;;  %v28958_v62 = vmov 0  }
 0x2c8   :  { %v2740_v33 = vpop.f32.mrf.mxu1  ;;  %v23792_v44 = vpack.c.bf16 %v2679_v54, %v2675_v11 }
 0x2c9   :  { %v2681_v60 = vpop.f32.mrf.mxu0 }
 0x2ca   :  { %v23794_v26 = vpack.c.bf16 %v2681_v60, %v2677_v0  ;;  %v2741_v34 = vpop.f32.mrf.mxu1  ;;  %18974 = vmatpush3.bf16.msra.mxu0 %v20473_v4  ;;  %v20480_v4 = vld [vmem:[%s28937_s2 + $0x680] ss:$12 sps:$4 sm:$0xff]  }
 0x2cb   :  { %v23796_v37 = vpack.c.bf16 %v2741_v34, %v2738_v28  ;;  %v2685_v29 = vpop.f32.mrf.mxu0  ;;  %18975 = vmatprep.subr.bf16.mxu0 %v20475_v13  ;;  %v20479_v28 = vld [vmem:[%s28937_s2 + $0x488] ss:$12 sps:$4 sm:$0xff]  }
 0x2cc   :  { %v2743_v10 = vpop.f32.mrf.mxu1  ;;  %3346 = vmatprep.mubr.bf16.mxu0 %v23794_v26 }
 0x2cd   :  { %v2687_v42 = vpop.f32.mrf.mxu0  ;;  %3347 = vmatmul.mubr.bf16.gmra.mxu0 %v23792_v44  ;;  %3410 = vmatmul.mubr.bf16.vlgmr.msra.gmra.mxu1 %v23796_v37  ;;  %v20481_v10 = vld [vmem:[%s28937_s2 + $0x668] ss:$12 sps:$4 sm:$0xff]  }
 0x2ce   :  { %v2746_v11 = vpop.f32.mrf.mxu1  ;;  %3419 = vmatprep.mubr.bf16.mxu1 %v28958_v62  ;;  %19651 = vmatpush3.bf16.msra.mxu1 %v23601_v25 }
 0x2cf   :  { %v2689_v0 = vpop.f32.mrf.mxu0  ;;  %18976 = vmatpush3.bf16.msra.mxu0 %v20476_v58  ;;  %19652 = vmatprep.subr.bf16.mxu1 %v20477_v49 }
 0x2d0   :  { %v2748_v54 = vpop.f32.mrf.mxu1  ;;  %18977 = vmatprep.subr.bf16.mxu0 %v20478_v55  ;;  %v23818_v13 = vpack.c.bf16 %v2689_v0, %v2685_v29  ;;  %v22003_v29 = vld [vmem:[%s28935_s24 + $0xac] ss:$12 sps:$4 sm:$0xff]  }
 0x2d1   :  { %v2691_v33 = vpop.f32.mrf.mxu0 }
 0x2d2   :  { %v23820_v60 = vpack.c.bf16 %v2691_v33, %v2687_v42  ;;  %v2749_v34 = vpop.f32.mrf.mxu1  ;;  %19653 = vmatpush3.bf16.msra.mxu1 %v20477_v49 }
 0x2d3   :  { %v23822_v25 = vpack.c.bf16 %v2749_v34, %v2746_v11  ;;  %v2695_v58 = vpop.f32.mrf.mxu0  ;;  %18978 = vmatpush3.bf16.msra.mxu0 %v20479_v28  ;;  %19654 = vmatprep.subr.bf16.mxu1 %v20480_v4 }
 0x2d4   :  { %v2751_v27 = vpop.f32.mrf.mxu1  ;;  %3356 = vmatprep.mubr.bf16.mxu0 %v23820_v60  ;;  %3753 = vmatprep.subr.bf16.mxu0 %v22003_v29 }
 0x2d5   :  { %v2697_v55 = vpop.f32.mrf.mxu0  ;;  %3357 = vmatmul.mubr.bf16.gmra.mxu0 %v23818_v13  ;;  %3420 = vmatmul.mubr.bf16.gmra.mxu1 %v23822_v25  ;;  %v20482_v27 = vld [vmem:[%s28937_s2 + $0x650] ss:$12 sps:$4 sm:$0xff]  }
 0x2d6   :  { %v2754_v49 = vpop.f32.mrf.mxu1  ;;  %3429 = vmatprep.mubr.bf16.mxu1 %v28958_v62  ;;  %19655 = vmatpush3.bf16.msra.mxu1 %v20480_v4  ;;  %v20483_v4 = vld [vmem:[%s28937_s2 + $0x638] ss:$12 sps:$4 sm:$0xff]  }
 0x2d7   :  { %v2699_v42 = vpop.f32.mrf.mxu0  ;;  %19656 = vmatprep.subr.bf16.mxu1 %v20481_v10 }
 0x2d8   :  { %v2756_v11 = vpop.f32.mrf.mxu1  ;;  %v23837_v0 = vpack.c.bf16 %v2699_v42, %v2695_v58 }
 0x2d9   :  { %v2701_v28 = vpop.f32.mrf.mxu0 }
 0x2da   :  { %v23839_v54 = vpack.c.bf16 %v2701_v28, %v2697_v55  ;;  %v2757_v33 = vpop.f32.mrf.mxu1  ;;  %19657 = vmatpush3.bf16.msra.mxu1 %v20481_v10  ;;  %v20484_v55 = vld [vmem:[%s28937_s2 + $0x620] ss:$12 sps:$4 sm:$0xff]   ;;  %v22004_v28 = vld [vmem:[%s28935_s24 + $0xa8] ss:$12 sps:$4 sm:$0xff]  }
 0x2db   :  { %v23841_v34 = vpack.c.bf16 %v2757_v33, %v2754_v49  ;;  %19658 = vmatprep.subr.bf16.mxu1 %v20482_v27  ;;  %v22005_v33 = vld [vmem:[%s28935_s24 + $0x94] ss:$12 sps:$4 sm:$0xff]  }
 0x2dc   :  { %v2759_v29 = vpop.f32.mrf.mxu1  ;;  %3366 = vmatprep.mubr.bf16.mxu0 %v23839_v54 }
 0x2dd   :  { %3367 = vmatmul.mubr.bf16.gmra.mxu0 %v23837_v0  ;;  %3430 = vmatmul.mubr.bf16.gmra.mxu1 %v23841_v34 }
 0x2de   :  { %v2762_v58 = vpop.f32.mrf.mxu1  ;;  %3502 = vmatprep.mubr.bf16.mxu0 %v23738_v21  ;;  %3439 = vmatprep.mubr.bf16.mxu1 %v28958_v62  ;;  %v20485_v21 = vld [vmem:[%s28937_s2 + $0x608] ss:$12 sps:$4 sm:$0xff]  }
 0x2df   :  { %19659 = vmatpush3.bf16.msra.mxu1 %v20482_v27 }
 0x2e0   :  { %v2764_v10 = vpop.f32.mrf.mxu1  ;;  %19660 = vmatprep.subr.bf16.mxu1 %v20483_v4 }
 0x2e2   :  { %v2765_v49 = vpop.f32.mrf.mxu1 }
 0x2e3   :  { %v23854_v42 = vpack.c.bf16 %v2765_v49, %v2762_v58  ;;  %19661 = vmatpush3.bf16.msra.mxu1 %v20483_v4  ;;  %v22007_v58 = vld [vmem:[%s28935_s24 + $0x7c] ss:$12 sps:$4 sm:$0xff]  }
 0x2e4   :  { %v2767_v11 = vpop.f32.mrf.mxu1  ;;  %19662 = vmatprep.subr.bf16.mxu1 %v20484_v55 }
 0x2e5   :  { %3440 = vmatmul.mubr.bf16.gmra.mxu1 %v23854_v42  ;;  %3503 = vmatmul.mubr.bf16.vlgmr.msra.gmra.mxu0 %v23736_v15  ;;  %v22009_v11 = vld [vmem:[%s28935_s24 + $0x64] ss:$12 sps:$4 sm:$0xff]  }
 0x2e6   :  { %v2770_v27 = vpop.f32.mrf.mxu1  ;;  %3510 = vmatprep.mubr.bf16.mxu0 %v23756_v46  ;;  %3754 = vmatpush1.bf16.msra.mxu0 %v22004_v28  ;;  %v22006_v46 = vld [vmem:[%s28935_s24 + $0x90] ss:$12 sps:$4 sm:$0xff]   ;;  %v22011_v28 = vld [vmem:[%s28935_s24 + $0x4c] ss:$12 sps:$4 sm:$0xff]  }
 0x2e7   :  { %3755 = vmatprep.subr.bf16.mxu0 %v22005_v33  ;;  %3449 = vmatprep.mubr.bf16.mxu1 %v28958_v62 }
 0x2e8   :  { %v2772_v15 = vpop.f32.mrf.mxu1  ;;  %19663 = vmatpush3.bf16.msra.mxu1 %v20484_v55  ;;  %v22008_v55 = vld [vmem:[%s28935_s24 + $0x78] ss:$12 sps:$4 sm:$0xff]  }
 0x2e9   :  { %19664 = vmatprep.subr.bf16.mxu1 %v20485_v21  ;;  %v22012_v15 = vld [vmem:[%s28935_s24 + $0x48] ss:$12 sps:$4 sm:$0xff]  }
 0x2ea   :  { %v2773_v29 = vpop.f32.mrf.mxu1  ;;  %3756 = vmatpush1.bf16.msra.mxu0 %v22006_v46  ;;  %v22014_v46 = vld [vmem:[%s28935_s24 + $0x30] ss:$12 sps:$4 sm:$0xff]  }
 0x2eb   :  { %v2799_v4 = vpack.c.bf16 %v2773_v29, %v2770_v27  ;;  %3757 = vmatprep.subr.bf16.mxu0 %v22007_v58  ;;  %v22013_v29 = vld [vmem:[%s28935_s24 + $0x34] ss:$12 sps:$4 sm:$0xff]  }
 0x2ec   :  { %v2775_v10 = vpop.f32.mrf.mxu1  ;;  %19665 = vmatpush3.bf16.msra.mxu1 %v20485_v21  ;;  %v22022_v58 = vld [vmem:[%s28935_s24 + $0x80] ss:$12 sps:$4 sm:$0xff]  }
 0x2ed   :  { %3450 = vmatmul.mubr.bf16.gmra.mxu1 %v2799_v4  ;;  %3511 = vmatmul.mubr.bf16.gmra.mxu0 %v23754_v14  ;;  %v22010_v14 = vld [vmem:[%s28935_s24 + $0x60] ss:$12 sps:$4 sm:$0xff]   ;;  %v22023_v10 = vld [vmem:[%s28935_s24 + $0x108] ss:$12 sps:$4 sm:$0xff]  }
 0x2ee   :  { %v2778_v49 = vpop.f32.mrf.mxu1  ;;  %3518 = vmatprep.mubr.bf16.mxu0 %v23774_v12  ;;  %3758 = vmatpush1.bf16.msra.mxu0 %v22008_v55  ;;  %v22028_v55 = vld [vmem:[%s28935_s24 + $0x50] ss:$12 sps:$4 sm:$0xff]  }
 0x2ef   :  { %3759 = vmatprep.subr.bf16.mxu0 %v22009_v11  ;;  %3459 = vmatprep.mubr.bf16.mxu1 %v28958_v62  ;;  %v22029_v11 = vld [vmem:[%s28935_s24 + $0xd8] ss:$12 sps:$4 sm:$0xff]  }
 0x2f0   :  { %v2780_v27 = vpop.f32.mrf.mxu1  ;;  %3846 = vmatprep.subr.bf16.mxu1 %v28958_v62 }
 0x2f1   :  { %v22030_v27 = vld [vmem:[%s28935_s24 + $0xc4] ss:$12 sps:$4 sm:$0xff]  }
 0x2f2   :  { %v2781_v21 = vpop.f32.mrf.mxu1  ;;  %3760 = vmatpush1.bf16.msra.mxu0 %v22010_v14  ;;  %v22032_v14 = vld [vmem:[%s28935_s24 + $0xc0] ss:$12 sps:$4 sm:$0xff]  }
 0x2f3   :  { %v2802_v12 = vpack.c.bf16 %v2781_v21, %v2778_v49  ;;  %3761 = vmatprep.subr.bf16.mxu0 %v22011_v28  ;;  %v22027_v49 = vld [vmem:[%s28935_s24 + $0xdc] ss:$12 sps:$4 sm:$0xff]   ;;  %v22033_v28 = vld [vmem:[%s28935_s24 + $0x20] ss:$12 sps:$4 sm:$0xff]  }
 0x2f4   :  { %v2783_v33 = vpop.f32.mrf.mxu1  ;;  %v20486_v21 = vld [vmem:[%s28936_s28 + $0x120] ss:$8 sps:$4 sm:$0xff]  }
 0x2f5   :  { %3460 = vmatmul.mubr.bf16.gmra.mxu1 %v2802_v12  ;;  %3519 = vmatmul.mubr.bf16.gmra.mxu0 %v23772_v30  ;;  %v22015_v30 = vld [vmem:[%s28935_s24 + $0x1c] ss:$12 sps:$4 sm:$0xff]  }
 0x2f6   :  { %3526 = vmatprep.mubr.bf16.mxu0 %v23794_v26  ;;  %19666 = vmatprep.mubr.bf16.mxu1 %v23796_v37  ;;  %v22016_v26 = vld [vmem:[%s28935_s24 + $0xb0] ss:$12 sps:$4 sm:$0xff]   ;;  %v22017_v37 = vld [vmem:[%s28935_s24 + $0x18] ss:$12 sps:$4 sm:$0xff]   ;;  %v22034_v33 = vld [vmem:[%s28935_s24 + $0x8] ss:$12 sps:$4 sm:$0xff]  }
 0x2f7   :  { %3762 = vmatpush1.bf16.msra.mxu0 %v22012_v15  ;;  %v20491_v15 = vld [vmem:[%s28936_s28 + $0x130] ss:$8 sps:$4 sm:$0xff]  }
 0x2f8   :  { %3763 = vmatprep.subr.bf16.mxu0 %v22013_v29  ;;  %v20492_v29 = vld [vmem:[%s28936_s28 + $0x144] ss:$8 sps:$4 sm:$0xff]  }
 0x2fb   :  { %3764 = vmatpush1.bf16.msra.mxu0 %v22014_v46  ;;  %v22035_v46 = vld [vmem:[%s28935_s24 + $0x110] ss:$12 sps:$4 sm:$0xff]  }
 0x2fc   :  { %3765 = vmatprep.subr.bf16.mxu0 %v22015_v30  ;;  %v20506_v30 = vld [vmem:[%s28937_s2 + $0x76c] ss:$12 sps:$4 sm:$0xff]  }
 0x2fd   :  { %3527 = vmatmul.mubr.bf16.gmra.mxu0 %v23792_v44  ;;  %19667 = vmatmul.mubr.bf16.vlgmr.msra.gmra.mxu1 %v23822_v25  ;;  %v22018_v44 = vld [vmem:[%s28935_s24 + $0x4] ss:$12 sps:$4 sm:$0xff]  }
 0x2fe   :  { %3847 = vmatpush1.bf16.msra.mxu1 %v22016_v26  ;;  %3534 = vmatprep.mubr.bf16.mxu0 %v23820_v60  ;;  %v22019_v25 = vld [vmem:[%s28935_s24 + $0x98] ss:$12 sps:$4 sm:$0xff]   ;;  %v22020_v60 = vld [vmem:[%s28935_s24] ss:$12 sps:$4 sm:$0xff]   ;;  %v20504_v26 = vld [vmem:[%s28937_s2 + $0x768] ss:$12 sps:$4 sm:$0xff]  }
 0x2ff   :  { %19670 = vmatprep.mubr.bf16.mxu1 %v23841_v34  ;;  %3766 = vmatpush1.bf16.msra.mxu0 %v22017_v37  ;;  %v22021_v34 = vld [vmem:[%s28935_s24 + $0x10c] ss:$12 sps:$4 sm:$0xff]  }
 0x300   :  { %3848 = vmatprep.subr.bf16.mxu1 %v28958_v62  ;;  %3767 = vmatprep.subr.bf16.mxu0 %v22018_v44  ;;  %v22036_v37 = vld [vmem:[%s28935_s24 + $0xf8] ss:$12 sps:$4 sm:$0xff]   ;;  %v20494_v44 = vld [vmem:[%s28936_s28 + $0x140] ss:$8 sps:$4 sm:$0xff]  }
 0x302   :  { %3849 = vmatpush1.bf16.msra.mxu1 %v22019_v25  ;;  %v20509_v25 = vld [vmem:[%s28937_s2 + $0x754] ss:$12 sps:$4 sm:$0xff]  }
 0x303   :  { %3768 = vmatpush1.bf16.msra.mxu0 %v22020_v60  ;;  %3850 = vmatprep.subr.bf16.mxu1 %v28958_v62  ;;  %v20495_v60 = vld [vmem:[%s28936_s28 + $0x154] ss:$8 sps:$4 sm:$0xff]  }
 0x304   :  { %3777 = vmatprep.subr.bf16.mxu0 %v22021_v34  ;;  %v20507_v34 = vld [vmem:[%s28937_s2 + $0x750] ss:$12 sps:$4 sm:$0xff]  }
 0x305   :  { %3535 = vmatmul.mubr.bf16.gmra.mxu0 %v23818_v13  ;;  %19671 = vmatmul.mubr.bf16.gmra.mxu1 %v23854_v42  ;;  %v22024_v13 = vld [vmem:[%s28935_s24 + $0xf4] ss:$12 sps:$4 sm:$0xff]  }
 0x306   :  { %3851 = vmatpush1.bf16.msra.mxu1 %v22022_v58  ;;  %3542 = vmatprep.mubr.bf16.mxu0 %v23839_v54  ;;  %v22025_v42 = vld [vmem:[%s28935_s24 + $0x68] ss:$12 sps:$4 sm:$0xff]   ;;  %v20488_v54 = vld [vmem:[%s28936_s28 + $0x124] ss:$8 sps:$4 sm:$0xff]  }
 0x307   :  { %19674 = vmatprep.mubr.bf16.mxu1 %v2799_v4  ;;  %3778 = vmatpush2.bf16.msra.mxu0 %v22023_v10  ;;  %v22026_v4 = vld [vmem:[%s28935_s24 + $0xf0] ss:$12 sps:$4 sm:$0xff]   ;;  %v22037_v58 = vld [vmem:[%s28935_s24 + $0xe0] ss:$12 sps:$4 sm:$0xff]  }
 0x308   :  { %3852 = vmatprep.subr.bf16.mxu1 %v28958_v62  ;;  %3779 = vmatprep.subr.bf16.mxu0 %v22024_v13  ;;  %v20512_v10 = vld [vmem:[%s28937_s2 + $0x73c] ss:$12 sps:$4 sm:$0xff]   ;;  %v20510_v13 = vld [vmem:[%s28937_s2 + $0x738] ss:$12 sps:$4 sm:$0xff]  }
 0x30a   :  { %3853 = vmatpush1.bf16.msra.mxu1 %v22025_v42  ;;  %v22038_v42 = vld [vmem:[%s28935_s24 + $0xc8] ss:$12 sps:$4 sm:$0xff]  }
 0x30b   :  { %3780 = vmatpush2.bf16.msra.mxu0 %v22026_v4  ;;  %3854 = vmatprep.subr.bf16.mxu1 %v28958_v62  ;;  %v20515_v4 = vld [vmem:[%s28937_s2 + $0x724] ss:$12 sps:$4 sm:$0xff]  }
 0x30c   :  { %3781 = vmatprep.subr.bf16.mxu0 %v22027_v49  ;;  %v20498_v49 = vld [vmem:[%s28936_s28 + $0x164] ss:$8 sps:$4 sm:$0xff]  }
 0x30d   :  { %3543 = vmatmul.mubr.bf16.gmra.mxu0 %v23837_v0  ;;  %19675 = vmatmul.mubr.bf16.gmra.mxu1 %v2802_v12  ;;  %v22031_v0 = vld [vmem:[%s28935_s24 + $0x38] ss:$12 sps:$4 sm:$0xff]   ;;  %v20489_v12 = vld [vmem:[%s28936_s28 + $0x134] ss:$8 sps:$4 sm:$0xff]  }
 0x30e   :  { %3855 = vmatpush1.bf16.msra.mxu1 %v22028_v55  ;;  %16701 = vmatprep.mubr.msk.bf16.mxu0 %vm381_vm0, %v20488_v54  ;;  %v20513_v55 = vld [vmem:[%s28937_s2 + $0x720] ss:$12 sps:$4 sm:$0xff]  }
 0x30f   :  { %3782 = vmatpush2.bf16.msra.mxu0 %v22029_v11  ;;  %3856 = vmatprep.subr.bf16.mxu1 %v28958_v62  ;;  %v20518_v11 = vld [vmem:[%s28937_s2 + $0x70c] ss:$12 sps:$4 sm:$0xff]  }
 0x310   :  { %3783 = vmatprep.subr.bf16.mxu0 %v22030_v27  ;;  %16707 = vmatprep.mubr.msk.bf16.mxu1 %vm381_vm0, %v20488_v54  ;;  %v20497_v54 = vld [vmem:[%s28936_s28 + $0x150] ss:$8 sps:$4 sm:$0xff]   ;;  %v20516_v27 = vld [vmem:[%s28937_s2 + $0x708] ss:$12 sps:$4 sm:$0xff]  }
 0x312   :  { %3857 = vmatpush1.bf16.msra.mxu1 %v22031_v0  ;;  %v20500_v0 = vld [vmem:[%s28936_s28 + $0x160] ss:$8 sps:$4 sm:$0xff]  }
 0x313   :  { %3784 = vmatpush2.bf16.msra.mxu0 %v22032_v14  ;;  %3858 = vmatprep.subr.bf16.mxu1 %v28958_v62  ;;  %v20501_v14 = vld [vmem:[%s28936_s28 + $0x174] ss:$8 sps:$4 sm:$0x7f]  }
 0x314   :  { %4426 = vmatprep.subr.bf16.mxu0 %v20506_v30  ;;  %v20530_v30 = vld [vmem:[%s28937_s2 + $0x82c] ss:$12 sps:$4 sm:$0xff]  }
 0x316   :  { %3786 = vmatmul.mubr.bf16.vlgmr.msra.gmra.mxu0 %v20486_v21  ;;  %3859 = vmatpush1.bf16.msra.mxu1 %v22033_v28  ;;  %v20524_v28 = vld [vmem:[%s28937_s2 + $0x6dc] ss:$12 sps:$4 sm:$0xff]  }
 0x317   :  { %3860 = vmatprep.subr.bf16.mxu1 %v28958_v62  ;;  %16702 = vmatprep.mubr.msk.bf16.mxu0 %vm381_vm0, %v20489_v12 }
 0x318   :  { %4427 = vmatpush1.bf16.msra.mxu0 %v20504_v26  ;;  %v20528_v26 = vld [vmem:[%s28937_s2 + $0x828] ss:$12 sps:$4 sm:$0xff]  }
 0x319   :  { %4428 = vmatprep.subr.bf16.mxu0 %v20509_v25  ;;  %v20536_v25 = vld [vmem:[%s28937_s2 + $0x7fc] ss:$12 sps:$4 sm:$0xff]  }
 0x31a   :  { %3861 = vmatpush1.bf16.msra.mxu1 %v22034_v33  ;;  %v20522_v33 = vld [vmem:[%s28937_s2 + $0x6d8] ss:$12 sps:$4 sm:$0xff]  }
 0x31b   :  { %3870 = vmatprep.subr.bf16.mxu1 %v28958_v62 }
 0x31c   :  { %4429 = vmatpush1.bf16.msra.mxu0 %v20507_v34  ;;  %v20539_v34 = vld [vmem:[%s28937_s2 + $0x7e4] ss:$12 sps:$4 sm:$0xff]  }
 0x31d   :  { %4430 = vmatprep.subr.bf16.mxu0 %v20512_v10  ;;  %v20542_v10 = vld [vmem:[%s28937_s2 + $0x7cc] ss:$12 sps:$4 sm:$0xff]  }
 0x31e   :  { %3796 = vmatmul.mubr.bf16.gmra.mxu0 %v20491_v15  ;;  %3871 = vmatpush2.bf16.msra.mxu1 %v22035_v46  ;;  %v20525_v46 = vld [vmem:[%s28937_s2 + $0x6c0] ss:$12 sps:$4 sm:$0xff]  }
 0x31f   :  { %3872 = vmatprep.subr.bf16.mxu1 %v28958_v62  ;;  %16703 = vmatprep.mubr.msk.bf16.mxu0 %vm381_vm0, %v20492_v29 }
 0x320   :  { %4431 = vmatpush1.bf16.msra.mxu0 %v20510_v13  ;;  %v20540_v13 = vld [vmem:[%s28937_s2 + $0x7c8] ss:$12 sps:$4 sm:$0xff]  }
 0x321   :  { %4432 = vmatprep.subr.bf16.mxu0 %v20515_v4  ;;  %v20543_v4 = vld [vmem:[%s28937_s2 + $0x7b0] ss:$12 sps:$4 sm:$0xff]  }
 0x322   :  { %3873 = vmatpush2.bf16.msra.mxu1 %v22036_v37  ;;  %v20533_v37 = vld [vmem:[%s28937_s2 + $0x814] ss:$12 sps:$4 sm:$0xff]  }
 0x323   :  { %3874 = vmatprep.subr.bf16.mxu1 %v28958_v62 }
 0x324   :  { %4433 = vmatpush1.bf16.msra.mxu0 %v20513_v55  ;;  %v20551_v55 = vld [vmem:[%s28937_s2 + $0x79c] ss:$12 sps:$4 sm:$0xff]  }
 0x325   :  { %4434 = vmatprep.subr.bf16.mxu0 %v20518_v11  ;;  %v20554_v11 = vld [vmem:[%s28937_s2 + $0x8d4] ss:$12 sps:$4 sm:$0xff]  }
 0x326   :  { %3806 = vmatmul.mubr.bf16.gmra.mxu0 %v20494_v44  ;;  %3875 = vmatpush2.bf16.msra.mxu1 %v22037_v58  ;;  %v20537_v58 = vld [vmem:[%s28937_s2 + $0x7e0] ss:$12 sps:$4 sm:$0xff]  }
 0x327   :  { %3876 = vmatprep.subr.bf16.mxu1 %v28958_v62  ;;  %16704 = vmatprep.mubr.msk.bf16.mxu0 %vm381_vm0, %v20495_v60 }
 0x328   :  { %4435 = vmatpush1.bf16.msra.mxu0 %v20516_v27  ;;  %v20549_v27 = vld [vmem:[%s28937_s2 + $0x798] ss:$12 sps:$4 sm:$0xff]  }
 0x32a   :  { %3877 = vmatpush2.bf16.msra.mxu1 %v22038_v42  ;;  %v20545_v42 = vld [vmem:[%s28937_s2 + $0x7b4] ss:$12 sps:$4 sm:$0xff]  }
 0x32d   :  { %3879 = vmatmul.mubr.bf16.vlgmr.msra.gmra.mxu1 %v20486_v21  ;;  %v20521_v21 = vld [vmem:[%s28937_s2 + $0x6f4] ss:$12 sps:$4 sm:$0xff]  }
 0x32e   :  { %3816 = vmatmul.mubr.bf16.gmra.mxu0 %v20497_v54  ;;  %16708 = vmatprep.mubr.msk.bf16.mxu1 %vm381_vm0, %v20489_v12  ;;  %v20519_v12 = vld [vmem:[%s28937_s2 + $0x6f0] ss:$12 sps:$4 sm:$0xff]  }
 0x32f   :  { %16705 = vmatprep.mubr.msk.bf16.mxu0 %vm381_vm0, %v20498_v49  ;;  %4436 = vmatprep.subr.bf16.mxu0 %v20521_v21  ;;  %v20557_v21 = vld [vmem:[%s28937_s2 + $0x784] ss:$12 sps:$4 sm:$0xff]  }
 0x330   :  { %4437 = vmatpush1.bf16.msra.mxu0 %v20519_v12  ;;  %v20555_v12 = vld [vmem:[%s28937_s2 + $0x780] ss:$12 sps:$4 sm:$0xff]  }
 0x331   :  { %4438 = vmatprep.subr.bf16.mxu0 %v20524_v28  ;;  %v20558_v28 = vld [vmem:[%s28937_s2 + $0x8b8] ss:$12 sps:$4 sm:$0xff]  }
 0x334   :  { %4439 = vmatpush1.bf16.msra.mxu0 %v20522_v33  ;;  %v20563_v33 = vld [vmem:[%s28937_s2 + $0x8a4] ss:$12 sps:$4 sm:$0xff]  }
 0x335   :  { %3887 = vmatmul.mubr.bf16.gmra.mxu1 %v20491_v15  ;;  %v20503_v15 = vld [vmem:[%s28936_s28 + $0x170] ss:$8 sps:$4 sm:$0x7f]  }
 0x336   :  { %3826 = vmatmul.mubr.bf16.gmra.mxu0 %v20500_v0  ;;  %16709 = vmatprep.mubr.msk.bf16.mxu1 %vm381_vm0, %v20492_v29  ;;  %v20527_v29 = vld [vmem:[%s28937_s2 + $0x6c4] ss:$12 sps:$4 sm:$0xff]  }
 0x337   :  { %16706 = vmatprep.mubr.msk.bf16.mxu0 %vm381_vm0, %v20501_v14  ;;  %4440 = vmatprep.subr.bf16.mxu0 %v20527_v29  ;;  %v20566_v29 = vld [vmem:[%s28937_s2 + $0x88c] ss:$12 sps:$4 sm:$0xff]  }
 0x338   :  { %4441 = vmatpush1.bf16.msra.mxu0 %v20525_v46  ;;  %v20564_v46 = vld [vmem:[%s28937_s2 + $0x888] ss:$12 sps:$4 sm:$0xff]  }
 0x339   :  { %4442 = vmatprep.subr.bf16.mxu0 %v20530_v30  ;;  %v20569_v30 = vld [vmem:[%s28937_s2 + $0x874] ss:$12 sps:$4 sm:$0xff]  }
 0x33c   :  { %4443 = vmatpush2.bf16.msra.mxu0 %v20528_v26  ;;  %v20567_v26 = vld [vmem:[%s28937_s2 + $0x870] ss:$12 sps:$4 sm:$0xff]  }
 0x33d   :  { %3895 = vmatmul.mubr.bf16.gmra.mxu1 %v20494_v44  ;;  %v20531_v44 = vld [vmem:[%s28937_s2 + $0x810] ss:$12 sps:$4 sm:$0xff]   ;;  %4444 = vmatprep.subr.bf16.mxu0 %v20533_v37 }
 0x33e   :  { %3836 = vmatmul.mubr.bf16.gmra.mxu0 %v20503_v15  ;;  %16710 = vmatprep.mubr.msk.bf16.mxu1 %vm381_vm0, %v20495_v60  ;;  %v20534_v60 = vld [vmem:[%s28937_s2 + $0x7f8] ss:$12 sps:$4 sm:$0xff]   ;;  %v20572_v37 = vld [vmem:[%s28937_s2 + $0x85c] ss:$12 sps:$4 sm:$0xff]  }
 0x340   :  { %4445 = vmatpush2.bf16.msra.mxu0 %v20531_v44  ;;  %v20570_v44 = vld [vmem:[%s28937_s2 + $0x858] ss:$12 sps:$4 sm:$0xff]  }
 0x341   :  { %4446 = vmatprep.subr.bf16.mxu0 %v20536_v25  ;;  %v20575_v25 = vld [vmem:[%s28937_s2 + $0x844] ss:$12 sps:$4 sm:$0xff]  }
 0x344   :  { %4447 = vmatpush2.bf16.msra.mxu0 %v20534_v60  ;;  %v24187_v60 = vld [vmem:[%s28937_s2 + $0x8f0] ss:$12 sps:$4 sm:$0xff]  }
 0x345   :  { %3903 = vmatmul.mubr.bf16.gmra.mxu1 %v20497_v54  ;;  %4448 = vmatprep.subr.bf16.mxu0 %v20539_v34  ;;  %v20548_v54 = vld [vmem:[%s28937_s2 + $0x8ec] ss:$12 sps:$4 sm:$0xff]  }
 0x346   :  { %16711 = vmatprep.mubr.msk.bf16.mxu1 %vm381_vm0, %v20498_v49  ;;  %v20546_v49 = vld [vmem:[%s28937_s2 + $0x8e8] ss:$12 sps:$4 sm:$0xff]   ;;  %4519 = vmatprep.subr.bf16.mxu1 %v20548_v54  ;;  %v20573_v34 = vld [vmem:[%s28937_s2 + $0x840] ss:$12 sps:$4 sm:$0xff]  }
 0x347   :  { %4520 = vmatpush1.bf16.msra.mxu1 %v20546_v49 }
 0x348   :  { %4449 = vmatpush2.bf16.msra.mxu0 %v20537_v58  ;;  %4521 = vmatprep.subr.bf16.mxu1 %v20554_v11 }
 0x349   :  { %4450 = vmatprep.subr.bf16.mxu0 %v20542_v10 }
 0x34c   :  { %4451 = vmatpush2.bf16.msra.mxu0 %v20540_v13 }
 0x34d   :  { %3911 = vmatmul.mubr.bf16.gmra.mxu1 %v20500_v0  ;;  %4452 = vmatprep.subr.bf16.mxu0 %v20545_v42  ;;  %v20552_v0 = vld [vmem:[%s28937_s2 + $0x8d0] ss:$12 sps:$4 sm:$0xff]  }
 0x34e   :  { %16712 = vmatprep.mubr.msk.bf16.mxu1 %vm381_vm0, %v20501_v14  ;;  %4522 = vmatpush1.bf16.msra.mxu1 %v20552_v0  ;;  %v20560_v14 = vld [vmem:[%s28937_s2 + $0x8bc] ss:$12 sps:$4 sm:$0xff]  }
 0x34f   :  { %4523 = vmatprep.subr.bf16.mxu1 %v20560_v14 }
 0x350   :  { %4453 = vmatpush2.bf16.msra.mxu0 %v20543_v4 }
 0x351   :  { %4454 = vmatprep.subr.bf16.mxu0 %v20551_v55  ;;  %v20581_v55 = vld [vmem:[%s28937_s2 + $0x830] ss:$12 sps:$4 sm:$0xff]  }
 0x352   :  { %4524 = vmatpush1.bf16.msra.mxu1 %v20558_v28 }
 0x353   :  { %4525 = vmatprep.subr.bf16.mxu1 %v20563_v33 }
 0x354   :  { %4455 = vmatpush2.bf16.msra.mxu0 %v20549_v27 }
 0x355   :  { %3919 = vmatmul.mubr.bf16.gmra.mxu1 %v20503_v15  ;;  %4456 = vmatprep.subr.bf16.mxu0 %v20557_v21  ;;  %v20561_v15 = vld [vmem:[%s28937_s2 + $0x8a0] ss:$12 sps:$4 sm:$0xff]  }
 0x356   :  { %4551 = vmatprep.mubr.bf16.mxu1 %v28958_v62  ;;  %4526 = vmatpush1.bf16.msra.mxu1 %v20561_v15 }
 0x357   :  { %4527 = vmatprep.subr.bf16.mxu1 %v20566_v29 }
 0x358   :  { %4457 = vmatpush2.bf16.msra.mxu0 %v20555_v12 }
 0x359   :  { %19678 = vmatprep.subr.bf16.mxu0 %v24187_v60 }
 0x35a   :  { %4528 = vmatpush1.bf16.msra.mxu1 %v20564_v46 }
 0x35b   :  { %4529 = vmatprep.subr.bf16.mxu1 %v20569_v30 }
 0x35e   :  { %4530 = vmatpush1.bf16.msra.mxu1 %v20567_v26 }
 0x35f   :  { %4531 = vmatprep.subr.bf16.mxu1 %v20572_v37 }
 0x362   :  { %4532 = vmatpush1.bf16.msra.mxu1 %v20570_v44 }
 0x363   :  { %4533 = vmatprep.subr.bf16.mxu1 %v20575_v25 }
 0x366   :  { %4534 = vmatpush1.bf16.msra.mxu1 %v20573_v34 }
 0x367   :  { %19029 = vmatprep.subr.bf16.mxu1 %v20581_v55 }
 0x375   :  { %v3318_v58 = vpop.f32.mrf.mxu0 }
 0x377   :  { %v3320_v10 = vpop.f32.mrf.mxu0 }
 0x379   :  { %v3322_v13 = vpop.f32.mrf.mxu0 }
 0x37b   :  { %v24193_v42 = vpop.f32.mrf.mxu0 }
 0x37c   :  { %28959 = vst [vmem:[#allocation22_spill] sm:$0xff] %v24193_v42 }
 0x37d   :  { %v3328_v54 = vpop.f32.mrf.mxu0 }
 0x37f   :  { %v3330_v4 = vpop.f32.mrf.mxu0 }
 0x381   :  { %v3332_v49 = vpop.f32.mrf.mxu0 }
 0x383   :  { %v24198_v11 = vpop.f32.mrf.mxu0 }
 0x384   :  { %28960 = vst [vmem:[#allocation23_spill] sm:$0xff] %v24198_v11 }
 0x385   :  { %v3338_v27 = vpop.f32.mrf.mxu0 }
 0x387   :  { %v3340_v0 = vpop.f32.mrf.mxu0 }
 0x389   :  { %v3342_v21 = vpop.f32.mrf.mxu0 }
 0x38b   :  { %v24200_v14 = vpop.f32.mrf.mxu0 }
 0x38c   :  { %28961 = vst [vmem:[#allocation24_spill] sm:$0xff] %v24200_v14 }
 0x38d   :  { %v3348_v12 = vpop.f32.mrf.mxu0  ;;  %v3411_v28 = vpop.f32.mrf.mxu1 }
 0x38e   :  { %v3412_v33 = vadd.f32 %v3411_v28, %v3318_v58 }
 0x38f   :  { %v3350_v15 = vpop.f32.mrf.mxu0  ;;  %v3413_v29 = vpop.f32.mrf.mxu1 }
 0x390   :  { %v24203_v46 = vadd.f32 %v3412_v33, %v23609_v23  ;;  %v3414_v30 = vadd.f32 %v3413_v29, %v3320_v10 }
 0x391   :  { %v3352_v26 = vpop.f32.mrf.mxu0  ;;  %v3415_v37 = vpop.f32.mrf.mxu1 }
 0x392   :  { %v24206_v44 = vadd.f32 %v3414_v30, %v23612_v41  ;;  %v3416_v25 = vadd.f32 %v3415_v37, %v3322_v13 }
 0x393   :  { %v24208_v34 = vpop.f32.mrf.mxu0  ;;  %v24210_v55 = vpop.f32.mrf.mxu1 }
 0x394   :  { %28962 = vst [vmem:[#allocation25_spill] sm:$0xff] %v24206_v44  ;;  %28963 = vst [vmem:[#allocation26_spill] sm:$0xff] %v24208_v34  ;;  %v24213_v14 = vadd.f32 %v3416_v25, %v23617_v19 }
 0x395   :  { %28964 = vst [vmem:[#allocation27_spill] sm:$0xff] %v24210_v55  ;;  %v3358_v58 = vpop.f32.mrf.mxu0  ;;  %v3421_v28 = vpop.f32.mrf.mxu1 }
 0x396   :  { %v3422_v42 = vadd.f32 %v3421_v28, %v3328_v54 }
 0x397   :  { %v3360_v11 = vpop.f32.mrf.mxu0  ;;  %v3423_v23 = vpop.f32.mrf.mxu1 }
 0x398   :  { %v24216_v10 = vadd.f32 %v3422_v42, %v23624_v5  ;;  %v3424_v33 = vadd.f32 %v3423_v23, %v3330_v4 }
 0x399   :  { %v3362_v29 = vpop.f32.mrf.mxu0  ;;  %v3425_v41 = vpop.f32.mrf.mxu1 }
 0x39a   :  { %v24219_v13 = vadd.f32 %v3424_v33, %v23629_v7  ;;  %v3426_v30 = vadd.f32 %v3425_v41, %v3332_v49 }
 0x39b   :  { %v24221_v37 = vpop.f32.mrf.mxu0  ;;  %v24223_v44 = vpop.f32.mrf.mxu1 }
 0x39c   :  { %28965 = vst [vmem:[#allocation28_spill] sm:$0xff] %v24219_v13  ;;  %v24226_v19 = vadd.f32 %v3426_v30, %v23636_v43 }
 0x39d   :  { %v3368_v54 = vpop.f32.mrf.mxu0  ;;  %v3431_v25 = vpop.f32.mrf.mxu1 }
 0x39e   :  { %v3432_v28 = vadd.f32 %v3431_v25, %v3338_v27 }
 0x39f   :  { %v3370_v34 = vpop.f32.mrf.mxu0  ;;  %v3433_v5 = vpop.f32.mrf.mxu1 }
 0x3a0   :  { %v24229_v42 = vadd.f32 %v3432_v28, %v23643_v61  ;;  %v3434_v4 = vadd.f32 %v3433_v5, %v3340_v0 }
 0x3a1   :  { %v3372_v23 = vpop.f32.mrf.mxu0  ;;  %v3435_v7 = vpop.f32.mrf.mxu1 }
 0x3a2   :  { %v24232_v49 = vadd.f32 %v3434_v4, %v23646_v20  ;;  %v3436_v33 = vadd.f32 %v3435_v7, %v3342_v21 }
 0x3a3   :  { %v24234_v41 = vpop.f32.mrf.mxu0  ;;  %v24236_v13 = vpop.f32.mrf.mxu1 }
 0x3a4   :  { %28966 = vst [vmem:[#allocation29_spill] sm:$0xff] %v24232_v49  ;;  %28967 = vst [vmem:[#allocation30_spill] sm:$0xff] %v24234_v41  ;;  %v24239_v43 = vadd.f32 %v3436_v33, %v23651_v48 }
 0x3a5   :  { %28968 = vst [vmem:[#allocation31_spill] sm:$0xff] %v24236_v13  ;;  %v3441_v27 = vpop.f32.mrf.mxu1  ;;  %v18979_v30 = vpop.f32.mrf.mxu0 }
 0x3a6   :  { %v3442_v25 = vadd.f32 %v3441_v27, %v3348_v12 }
 0x3a7   :  { %v3443_v55 = vpop.f32.mrf.mxu1  ;;  %v18980_v61 = vpop.f32.mrf.mxu0 }
 0x3a8   :  { %v24242_v0 = vadd.f32 %v3442_v25, %v23658_v51  ;;  %v3444_v28 = vadd.f32 %v3443_v55, %v3350_v15  ;;  %v18981_v5 = vadd.f32 %v18980_v61, %v18979_v30 }
 0x3a9   :  { %v3445_v20 = vpop.f32.mrf.mxu1  ;;  %v18982_v4 = vpop.f32.mrf.mxu0 }
 0x3aa   :  { %v24245_v21 = vadd.f32 %v3444_v28, %v23661_v59  ;;  %v3446_v7 = vadd.f32 %v3445_v20, %v3352_v26 }
 0x3ab   :  { %v24247_v49 = vpop.f32.mrf.mxu1  ;;  %v18983_v48 = vpop.f32.mrf.mxu0 }
 0x3ac   :  { %28969 = vst [vmem:[#allocation32_spill] sm:$0xff] %v24245_v21  ;;  %v24250_v33 = vadd.f32 %v3446_v7, %v23668_v50 }
 0x3ad   :  { %v3451_v12 = vpop.f32.mrf.mxu1  ;;  %v18985_v27 = vpop.f32.mrf.mxu0 }
 0x3ae   :  { %v3452_v13 = vadd.f32 %v3451_v12, %v3358_v58 }
 0x3af   :  { %v3453_v41 = vpop.f32.mrf.mxu1  ;;  %v18986_v51 = vpop.f32.mrf.mxu0 }
 0x3b0   :  { %v24253_v15 = vadd.f32 %v3452_v13, %v23672_v24  ;;  %v3454_v55 = vadd.f32 %v3453_v41, %v3360_v11  ;;  %v18987_v30 = vadd.f32 %v18986_v51, %v18985_v27 }
 0x3b1   :  { %v3455_v25 = vpop.f32.mrf.mxu1  ;;  %v18988_v59 = vpop.f32.mrf.mxu0 }
 0x3b2   :  { %v24256_v26 = vadd.f32 %v3454_v55, %v23675_v2  ;;  %v3456_v61 = vadd.f32 %v3455_v25, %v3362_v29 }
 0x3b3   :  { %v24258_v28 = vpop.f32.mrf.mxu1  ;;  %v18989_v50 = vpop.f32.mrf.mxu0 }
 0x3b4   :  { %28970 = vst [vmem:[#allocation33_spill] sm:$0xff] %v24256_v26  ;;  %v24261_v20 = vadd.f32 %v3456_v61, %v23684_v38 }
 0x3b5   :  { %v3461_v58 = vpop.f32.mrf.mxu1  ;;  %v18991_v7 = vpop.f32.mrf.mxu0 }
 0x3b6   :  { %v3462_v12 = vadd.f32 %v3461_v58, %v3368_v54 }
 0x3b7   :  { %v3463_v21 = vpop.f32.mrf.mxu1  ;;  %v18992_v24 = vpop.f32.mrf.mxu0 }
 0x3b8   :  { %v24264_v11 = vadd.f32 %v3462_v12, %v23690_v18  ;;  %v3464_v13 = vadd.f32 %v3463_v21, %v3370_v34  ;;  %v18993_v41 = vadd.f32 %v18992_v24, %v18991_v7  ;;  %v18990_v12 = vadd.f32 %v18989_v50, %v18988_v59 }
 0x3b9   :  { %v3465_v27 = vpop.f32.mrf.mxu1  ;;  %v18994_v2 = vpop.f32.mrf.mxu0 }
 0x3ba   :  { %v24267_v29 = vadd.f32 %v3464_v13, %v23694_v8  ;;  %v3466_v51 = vadd.f32 %v3465_v27, %v3372_v23  ;;  %v18984_v23 = vadd.f32 %v18983_v48, %v18982_v4 }
 0x3bb   :  { %v24269_v55 = vpop.f32.mrf.mxu1  ;;  %v18995_v38 = vpop.f32.mrf.mxu0 }
 0x3bc   :  { %v24272_v25 = vadd.f32 %v3466_v51, %v23702_v36 }
 0x3bd   :  { %v18997_v54 = vpop.f32.mrf.mxu0  ;;  %v19668_v61 = vpop.f32.mrf.mxu1 }
 0x3be   :  { %v3594_v58 = vadd.f32 %v19668_v61, %v18987_v30  ;;  %v2483_v30 = vadd.f32 %v23712_v9, %v23664_v17  ;;  %v18996_v17 = vadd.f32 %v18995_v38, %v18994_v2 }
 0x3bf   :  { %v18998_v26 = vpop.f32.mrf.mxu0  ;;  %v3585_v18 = vpop.f32.mrf.mxu1 }
 0x3c0   :  { %v24275_v34 = vadd.f32 %v3594_v58, %v23704_v1  ;;  %v18999_v21 = vadd.f32 %v18998_v26, %v18997_v54  ;;  %v3586_v7 = vadd.f32 %v18981_v5, %v3585_v18 }
 0x3c1   :  { %v19000_v8 = vpop.f32.mrf.mxu0  ;;  %v19669_v24 = vpop.f32.mrf.mxu1 }
 0x3c2   :  { %28971 = vst [vmem:[#allocation34_spill] sm:$0xff] %v24275_v34  ;;  %v24278_v13 = vadd.f32 %v3586_v7, %v23707_v35  ;;  %v3597_v27 = vadd.f32 %v19669_v24, %v18990_v12 }
 0x3c3   :  { %v19001_v36 = vpop.f32.mrf.mxu0  ;;  %v3588_v51 = vpop.f32.mrf.mxu1 }
 0x3c4   :  { %v24283_v61 = vadd.f32 %v3597_v27, %v23709_v16  ;;  %v3589_v59 = vadd.f32 %v18984_v23, %v3588_v51  ;;  %v19002_v48 = vadd.f32 %v19001_v36, %v19000_v8 }
 0x3c5   :  { %v19003_v1 = vpop.f32.mrf.mxu0  ;;  %v19672_v50 = vpop.f32.mrf.mxu1 }
 0x3c6   :  { %28972 = vst [vmem:[#allocation35_spill] sm:$0xff] %v24283_v61  ;;  %v24285_v26 = vadd.f32 %v3589_v59, %v2483_v30  ;;  %v3610_v5 = vadd.f32 %v19672_v50, %v18999_v21  ;;  %v2499_v21 = vadd.f32 %v23726_v40, %v23697_v56 }
 0x3c7   :  { %v19004_v54 = vpop.f32.mrf.mxu0  ;;  %v3601_v4 = vpop.f32.mrf.mxu1 }
 0x3c8   :  { %v24288_v35 = vadd.f32 %v3610_v5, %v23716_v39  ;;  %v19005_v58 = vadd.f32 %v19004_v54, %v19003_v1  ;;  %v3602_v18 = vadd.f32 %v18993_v41, %v3601_v4 }
 0x3c9   :  { %v19006_v12 = vpop.f32.mrf.mxu0  ;;  %v19673_v7 = vpop.f32.mrf.mxu1 }
 0x3ca   :  { %28973 = vst [vmem:[#allocation36_spill] sm:$0xff] %v24288_v35  ;;  %v24291_v16 = vadd.f32 %v3602_v18, %v23720_v63  ;;  %v3613_v9 = vadd.f32 %v19673_v7, %v19002_v48 }
 0x3cb   :  { %v19007_v24 = vpop.f32.mrf.mxu0  ;;  %v3604_v23 = vpop.f32.mrf.mxu1 }
 0x3cc   :  { %28974 = vst [vmem:[#allocation37_spill] sm:$0xff] %v24291_v16  ;;  %v24296_v27 = vadd.f32 %v3613_v9, %v23722_v52  ;;  %v3605_v8 = vadd.f32 %v18996_v17, %v3604_v23  ;;  %v19008_v1 = vadd.f32 %v19007_v24, %v19006_v12  ;;  %v2515_v52 = vadd.f32 %v23782_v47, %v23724_v31  ;;  %v28994_v16 = vld [vmem:[#allocation11_spill] sm:$0xff] }
 0x3cd   :  { %v19009_v39 = vpop.f32.mrf.mxu0  ;;  %v19676_v36 = vpop.f32.mrf.mxu1 }
 0x3ce   :  { %28975 = vst [vmem:[#allocation38_spill] sm:$0xff] %v24296_v27  ;;  %v24298_v51 = vadd.f32 %v3605_v8, %v2499_v21  ;;  %v20578_v21 = vld [vmem:[%s28937_s2 + $0x8c0] ss:$12 sps:$4 sm:$0xff]  }
 0x3cf   :  { %v19010_v41 = vpop.f32.mrf.mxu0  ;;  %v3617_v30 = vpop.f32.mrf.mxu1 }
 0x3d0   :  { %28976 = vst [vmem:[#allocation39_spill] sm:$0xff] %v24298_v51  ;;  %v19011_v2 = vadd.f32 %v19010_v41, %v19009_v39  ;;  %v3618_v38 = vadd.f32 %v19005_v58, %v3617_v30  ;;  %v20579_v30 = vld [vmem:[%s28937_s2 + $0x8a8] ss:$12 sps:$4 sm:$0xff]  }
 0x3d1   :  { %v19012_v63 = vpop.f32.mrf.mxu0  ;;  %v19677_v59 = vpop.f32.mrf.mxu1  ;;  %v28989_v51 = vld [vmem:[#allocation8_spill] sm:$0xff] }
 0x3d2   :  { %v3626_v50 = vadd.f32 %v19676_v36, %v19011_v2  ;;  %v24301_v5 = vadd.f32 %v3618_v38, %v23731_v32  ;;  %v20580_v38 = vld [vmem:[%s28937_s2 + $0x890] ss:$12 sps:$4 sm:$0xff]  }
 0x3d3   :  { %v19013_v56 = vpop.f32.mrf.mxu0  ;;  %v3620_v40 = vpop.f32.mrf.mxu1 }
 0x3d4   :  { %28977 = vst [vmem:[#allocation40_spill] sm:$0xff] %v24301_v5  ;;  %v24306_v54 = vadd.f32 %v3626_v50, %v23729_v53  ;;  %v19014_v4 = vadd.f32 %v19013_v56, %v19012_v63  ;;  %v3621_v48 = vadd.f32 %v19008_v1, %v3620_v40  ;;  %v20577_v53 = vld [vmem:[%s28937_s2 + $0x8d8] ss:$12 sps:$4 sm:$0xff]  }
 0x3d5   :  { %v20582_v40 = vld [vmem:[%s28937_s2 + $0x878] ss:$12 sps:$4 sm:$0xff]  }
 0x3d6   :  { %28978 = vst [vmem:[#allocation41_spill] sm:$0xff] %v24306_v54  ;;  %v3629_v18 = vadd.f32 %v19677_v59, %v19014_v4  ;;  %v24308_v7 = vadd.f32 %v3621_v48, %v2515_v52  ;;  %v3787_v58 = vpop.f32.mrf.mxu0 }
 0x3d8   :  { %28979 = vst [vmem:[#allocation42_spill] sm:$0xff] %v24308_v7  ;;  %v24311_v12 = vadd.f32 %v3629_v18, %v23734_v6  ;;  %v3789_v17 = vpop.f32.mrf.mxu0  ;;  %v20583_v18 = vld [vmem:[%s28937_s2 + $0x770] ss:$12 sps:$4 sm:$0xff]  }
 0x3da   :  { %28980 = vst [vmem:[#allocation43_spill] sm:$0xff] %v24311_v12  ;;  %v3791_v32 = vpop.f32.mrf.mxu0 }
 0x3db   :  { %v24313_v9 = vpack.c.bf16 %v3791_v32, %v3787_v58  ;;  %v20584_v32 = vld [vmem:[%s28937_s2 + $0x818] ss:$12 sps:$4 sm:$0xff]  }
 0x3dc   :  { %v3793_v24 = vpop.f32.mrf.mxu0 }
 0x3dd   :  { %v24315_v23 = vpack.c.bf16 %v3793_v24, %v3789_v17 }
 0x3de   :  { %v3797_v31 = vpop.f32.mrf.mxu0 }
 0x3df   :  { %4458 = vmatprep.mubr.bf16.mxu0 %v24315_v23 }
 0x3e0   :  { %v3799_v47 = vpop.f32.mrf.mxu0  ;;  %4459 = vmatmul.mubr.bf16.vlgmr.msra.gmra.mxu0 %v24313_v9 }
 0x3e1   :  { %19679 = vmatpush3.bf16.msra.mxu0 %v24187_v60 }
 0x3e2   :  { %v3801_v6 = vpop.f32.mrf.mxu0  ;;  %19680 = vmatprep.subr.bf16.mxu0 %v20577_v53 }
 0x3e3   :  { %v24326_v8 = vpack.c.bf16 %v3801_v6, %v3797_v31  ;;  %v20585_v31 = vld [vmem:[%s28937_s2 + $0x860] ss:$12 sps:$4 sm:$0xff]  }
 0x3e4   :  { %v3803_v39 = vpop.f32.mrf.mxu0 }
 0x3e5   :  { %v24328_v36 = vpack.c.bf16 %v3803_v39, %v3799_v47  ;;  %19681 = vmatpush3.bf16.msra.mxu0 %v20577_v53  ;;  %v20586_v39 = vld [vmem:[%s28937_s2 + $0x758] ss:$12 sps:$4 sm:$0xff]  }
 0x3e6   :  { %v3807_v41 = vpop.f32.mrf.mxu0  ;;  %19682 = vmatprep.subr.bf16.mxu0 %v20578_v21 }
 0x3e7   :  { %4468 = vmatprep.mubr.bf16.mxu0 %v24328_v36 }
 0x3e8   :  { %v3809_v60 = vpop.f32.mrf.mxu0  ;;  %4469 = vmatmul.mubr.bf16.gmra.mxu0 %v24326_v8 }
 0x3e9   :  { %19683 = vmatpush3.bf16.msra.mxu0 %v20578_v21 }
 0x3ea   :  { %v3811_v2 = vpop.f32.mrf.mxu0  ;;  %19684 = vmatprep.subr.bf16.mxu0 %v20579_v30 }
 0x3eb   :  { %v24338_v63 = vpack.c.bf16 %v3811_v2, %v3807_v41  ;;  %v20588_v2 = vld [vmem:[%s28937_s2 + $0x848] ss:$12 sps:$4 sm:$0xff]  }
 0x3ec   :  { %v3813_v59 = vpop.f32.mrf.mxu0 }
 0x3ed   :  { %v24340_v1 = vpack.c.bf16 %v3813_v59, %v3809_v60  ;;  %v3880_v50 = vpop.f32.mrf.mxu1  ;;  %19685 = vmatpush3.bf16.msra.mxu0 %v20579_v30  ;;  %v20587_v30 = vld [vmem:[%s28937_s2 + $0x800] ss:$12 sps:$4 sm:$0xff]  }
 0x3ee   :  { %v3817_v56 = vpop.f32.mrf.mxu0  ;;  %19686 = vmatprep.subr.bf16.mxu0 %v20580_v38 }
 0x3ef   :  { %v3882_v52 = vpop.f32.mrf.mxu1  ;;  %4478 = vmatprep.mubr.bf16.mxu0 %v24340_v1 }
 0x3f0   :  { %v3819_v4 = vpop.f32.mrf.mxu0  ;;  %4479 = vmatmul.mubr.bf16.gmra.mxu0 %v24338_v63  ;;  %v20590_v52 = vld [vmem:[%s28937_s2 + $0x7e8] ss:$12 sps:$4 sm:$0xff]  }
 0x3f1   :  { %v3883_v48 = vpop.f32.mrf.mxu1  ;;  %19687 = vmatpush3.bf16.msra.mxu0 %v20580_v38 }
 0x3f2   :  { %v24350_v58 = vpack.c.bf16 %v3883_v48, %v3880_v50  ;;  %v3821_v17 = vpop.f32.mrf.mxu0  ;;  %19688 = vmatprep.subr.bf16.mxu0 %v20582_v40  ;;  %v20589_v50 = vld [vmem:[%s28937_s2 + $0x740] ss:$12 sps:$4 sm:$0xff]  }
 0x3f3   :  { %v3885_v24 = vpop.f32.mrf.mxu1  ;;  %v24358_v53 = vpack.c.bf16 %v3821_v17, %v3817_v56 }
 0x3f4   :  { %v3823_v47 = vpop.f32.mrf.mxu0  ;;  %4552 = vmatmul.mubr.bf16.vlgmr.msra.gmra.mxu1 %v24350_v58  ;;  %v20591_v24 = vld [vmem:[%s28937_s2 + $0x728] ss:$12 sps:$4 sm:$0xff]  }
 0x3f5   :  { %v24361_v6 = vpack.c.bf16 %v3823_v47, %v3819_v4  ;;  %v3888_v21 = vpop.f32.mrf.mxu1  ;;  %4561 = vmatprep.mubr.bf16.mxu1 %v28958_v62  ;;  %19030 = vmatpush3.bf16.msra.mxu1 %v20583_v18  ;;  %v20592_v47 = vld [vmem:[%s28937_s2 + $0x7d0] ss:$12 sps:$4 sm:$0xff]  }
 0x3f6   :  { %v3827_v41 = vpop.f32.mrf.mxu0  ;;  %19689 = vmatpush3.bf16.msra.mxu0 %v20582_v40  ;;  %19031 = vmatprep.subr.bf16.mxu1 %v20584_v32 }
 0x3f7   :  { %v3890_v60 = vpop.f32.mrf.mxu1  ;;  %4488 = vmatprep.mubr.bf16.mxu0 %v24361_v6  ;;  %19690 = vmatprep.subr.bf16.mxu0 %v20585_v31 }
 0x3f8   :  { %v3829_v38 = vpop.f32.mrf.mxu0  ;;  %4489 = vmatmul.mubr.bf16.gmra.mxu0 %v24358_v53 }
 0x3f9   :  { %v3891_v59 = vpop.f32.mrf.mxu1  ;;  %19032 = vmatpush3.bf16.msra.mxu1 %v20586_v39 }
 0x3fa   :  { %v3932_v56 = vpack.c.bf16 %v3891_v59, %v3888_v21  ;;  %v3831_v40 = vpop.f32.mrf.mxu0  ;;  %19691 = vmatpush3.bf16.msra.mxu0 %v20585_v31  ;;  %19033 = vmatprep.subr.bf16.mxu1 %v20587_v30  ;;  %v20593_v30 = vld [vmem:[%s28937_s2 + $0x710] ss:$12 sps:$4 sm:$0xff]  }
 0x3fb   :  { %v3893_v4 = vpop.f32.mrf.mxu1  ;;  %19692 = vmatprep.subr.bf16.mxu0 %v20588_v2  ;;  %v24381_v48 = vpack.c.bf16 %v3831_v40, %v3827_v41 }
 0x3fc   :  { %v3833_v18 = vpop.f32.mrf.mxu0  ;;  %4562 = vmatmul.mubr.bf16.gmra.mxu1 %v3932_v56 }
 0x3fd   :  { %v24383_v17 = vpack.c.bf16 %v3833_v18, %v3829_v38  ;;  %v3896_v32 = vpop.f32.mrf.mxu1  ;;  %4571 = vmatprep.mubr.bf16.mxu1 %v28958_v62  ;;  %19034 = vmatpush3.bf16.msra.mxu1 %v20589_v50  ;;  %v20595_v18 = vld [vmem:[%s28937_s2 + $0x6f8] ss:$12 sps:$4 sm:$0xff]  }
 0x3fe   :  { %v3837_v31 = vpop.f32.mrf.mxu0  ;;  %19693 = vmatpush3.bf16.msra.mxu0 %v20588_v2  ;;  %19035 = vmatprep.subr.bf16.mxu1 %v20590_v52  ;;  %v20594_v2 = vld [vmem:[%s28937_s2 + $0x7b8] ss:$12 sps:$4 sm:$0xff]  }
 0x3ff   :  { %v3898_v21 = vpop.f32.mrf.mxu1  ;;  %4498 = vmatprep.mubr.bf16.mxu0 %v24383_v17 }
 0x400   :  { %v3839_v39 = vpop.f32.mrf.mxu0  ;;  %4499 = vmatmul.mubr.bf16.gmra.mxu0 %v24381_v48 }
 0x401   :  { %v3899_v41 = vpop.f32.mrf.mxu1  ;;  %19036 = vmatpush3.bf16.msra.mxu1 %v20591_v24 }
 0x402   :  { %v3935_v60 = vpack.c.bf16 %v3899_v41, %v3896_v32  ;;  %v3841_v38 = vpop.f32.mrf.mxu0  ;;  %19037 = vmatprep.subr.bf16.mxu1 %v20592_v47  ;;  %v20596_v32 = vld [vmem:[%s28937_s2 + $0x7a0] ss:$12 sps:$4 sm:$0xff]  }
 0x403   :  { %v3901_v59 = vpop.f32.mrf.mxu1  ;;  %v3942_v50 = vpack.c.bf16 %v3841_v38, %v3837_v31  ;;  %v20597_v47 = vld [vmem:[%s28937_s2 + $0x6e0] ss:$12 sps:$4 sm:$0xff]  }
 0x404   :  { %v3843_v40 = vpop.f32.mrf.mxu0  ;;  %4572 = vmatmul.mubr.bf16.gmra.mxu1 %v3935_v60 }
 0x405   :  { %v3943_v52 = vpack.c.bf16 %v3843_v40, %v3839_v39  ;;  %v3904_v4 = vpop.f32.mrf.mxu1  ;;  %4581 = vmatprep.mubr.bf16.mxu1 %v28958_v62  ;;  %19038 = vmatpush3.bf16.msra.mxu1 %v20593_v30  ;;  %v20598_v39 = vld [vmem:[%s28937_s2 + $0x788] ss:$12 sps:$4 sm:$0xff]  }
 0x406   :  { %19039 = vmatprep.subr.bf16.mxu1 %v20594_v2 }
 0x407   :  { %v3906_v24 = vpop.f32.mrf.mxu1  ;;  %4508 = vmatprep.mubr.bf16.mxu0 %v3943_v52 }
 0x408   :  { %4509 = vmatmul.mubr.bf16.gmra.mxu0 %v3942_v50 }
 0x409   :  { %v3907_v31 = vpop.f32.mrf.mxu1  ;;  %19694 = vmatprep.mubr.bf16.mxu0 %v24350_v58  ;;  %19040 = vmatpush3.bf16.msra.mxu1 %v20595_v18  ;;  %v20599_v58 = vld [vmem:[%s28937_s2 + $0x6c8] ss:$12 sps:$4 sm:$0xff]  }
 0x40a   :  { %v3938_v21 = vpack.c.bf16 %v3907_v31, %v3904_v4  ;;  %19041 = vmatprep.subr.bf16.mxu1 %v20596_v32 }
 0x40b   :  { %v3909_v41 = vpop.f32.mrf.mxu1 }
 0x40c   :  { %4582 = vmatmul.mubr.bf16.gmra.mxu1 %v3938_v21 }
 0x40d   :  { %v3912_v30 = vpop.f32.mrf.mxu1  ;;  %4591 = vmatprep.mubr.bf16.mxu1 %v28958_v62  ;;  %19042 = vmatpush3.bf16.msra.mxu1 %v20597_v47 }
 0x40e   :  { %19043 = vmatprep.subr.bf16.mxu1 %v20598_v39  ;;  %v24450_v39 = vld [vmem:[%s28982_s29] sm:$0x7] }
 0x40f   :  { %v3914_v38 = vpop.f32.mrf.mxu1 }
 0x410   :  { %19695 = vmatmul.mubr.bf16.vlgmr.msra.gmra.mxu0 %v3932_v56 }
 0x411   :  { %v3915_v2 = vpop.f32.mrf.mxu1  ;;  %19698 = vmatprep.mubr.bf16.mxu0 %v3935_v60  ;;  %19044 = vmatpush3.bf16.msra.mxu1 %v20599_v58 }
 0x412   :  { %v3941_v59 = vpack.c.bf16 %v3915_v2, %v3912_v30 }
 0x413   :  { %v3917_v40 = vpop.f32.mrf.mxu1 }
 0x414   :  { %4592 = vmatmul.mubr.bf16.gmra.mxu1 %v3941_v59 }
 0x415   :  { %v3920_v4 = vpop.f32.mrf.mxu1  ;;  %4601 = vmatprep.mubr.bf16.mxu1 %v28958_v62 }
 0x417   :  { %v3922_v18 = vpop.f32.mrf.mxu1 }
 0x418   :  { %19699 = vmatmul.mubr.bf16.gmra.mxu0 %v3938_v21 }
 0x419   :  { %v3923_v32 = vpop.f32.mrf.mxu1  ;;  %19702 = vmatprep.mubr.bf16.mxu0 %v3941_v59 }
 0x41a   :  { %v3944_v24 = vpack.c.bf16 %v3923_v32, %v3920_v4 }
 0x41b   :  { %v3925_v31 = vpop.f32.mrf.mxu1 }
 0x41c   :  { %4602 = vmatmul.mubr.bf16.gmra.mxu1 %v3944_v24 }
 0x41d   :  { %4644 = vmatprep.mubr.bf16.mxu1 %v24315_v23  ;;  %v28918_v23 = vmov 0.0  }
 0x41e   :  { %19706 = vmatprep.subr.bf16.mxu1 %v28918_v23 }
 0x420   :  { %19703 = vmatmul.mubr.bf16.gmra.mxu0 %v3944_v24 }
 0x421   :  { %4990 = vmatprep.mubr.bf16.mxu0 %v28958_v62 }
 0x424   :  { %4645 = vmatmul.mubr.bf16.vlgmr.msra.gmra.mxu1 %v24313_v9 }
 0x425   :  { %4652 = vmatprep.mubr.bf16.mxu1 %v24328_v36 }
 0x42c   :  { %4653 = vmatmul.mubr.bf16.gmra.mxu1 %v24326_v8 }
 0x42d   :  { %4660 = vmatprep.mubr.bf16.mxu1 %v24340_v1 }
 0x434   :  { %4661 = vmatmul.mubr.bf16.gmra.mxu1 %v24338_v63 }
 0x435   :  { %4668 = vmatprep.mubr.bf16.mxu1 %v24361_v6  ;;  %v28917_v6 = vlaneseq }
 0x43c   :  { %4669 = vmatmul.mubr.bf16.gmra.mxu1 %v24358_v53 }
 0x43d   :  { %4676 = vmatprep.mubr.bf16.mxu1 %v24383_v17 }
 0x444   :  { %4677 = vmatmul.mubr.bf16.gmra.mxu1 %v24381_v48  ;;  %v24440_v48 = vshrl.u32 %v28917_v6, 7 }
 0x445   :  { %4684 = vmatprep.mubr.bf16.mxu1 %v3943_v52 }
 0x446   :  { %v24445_v52 = vsub.s32 0, %v24440_v48 }
 0x448   :  { %28981 = vst [vmem:[#allocation44_spill] sm:$0xff] %v24445_v52  ;;  %v24461_v2 = vrot.slane %v24450_v39, %v24445_v52 }
 0x44c   :  { %4685 = vmatmul.mubr.bf16.gmra.mxu1 %v3942_v50 }
 0x44d   :  { %19718 = vmatprep.mubr.msk.bf16.mxu1 %vm22041_vm1, %v28918_v23 }
 0x4a0   :  { %v4460_v9 = vpop.f32.mrf.mxu0 }
 0x4a2   :  { %v24431_v36 = vpop.f32.mrf.mxu0 }
 0x4a4   :  { %v4464_v8 = vpop.f32.mrf.mxu0 }
 0x4a6   :  { %v24433_v1 = vpop.f32.mrf.mxu0 }
 0x4a8   :  { %v4470_v63 = vpop.f32.mrf.mxu0 }
 0x4aa   :  { %v24435_v56 = vpop.f32.mrf.mxu0 }
 0x4ac   :  { %v4474_v53 = vpop.f32.mrf.mxu0 }
 0x4ae   :  { %v24437_v60 = vpop.f32.mrf.mxu0 }
 0x4b0   :  { %v4480_v17 = vpop.f32.mrf.mxu0 }
 0x4b2   :  { %v24442_v50 = vpop.f32.mrf.mxu0 }
 0x4b4   :  { %v4484_v47 = vpop.f32.mrf.mxu0  ;;  %v4553_v21 = vpop.f32.mrf.mxu1 }
 0x4b5   :  { %v4554_v41 = vadd.f32 %v4553_v21, %v4460_v9 }
 0x4b6   :  { %v24454_v30 = vpop.f32.mrf.mxu0  ;;  %v24456_v58 = vpop.f32.mrf.mxu1 }
 0x4b7   :  { %v4774_v38 = vadd.f32 %v4554_v41, %v24203_v46 }
 0x4b8   :  { %v4490_v59 = vpop.f32.mrf.mxu0  ;;  %v4557_v40 = vpop.f32.mrf.mxu1 }
 0x4b9   :  { %v4558_v4 = vadd.f32 %v4557_v40, %v4464_v8  ;;  %v4827_v24 = vadd.f32 %v24461_v2, %v4774_v38 }
 0x4ba   :  { %v24463_v18 = vpop.f32.mrf.mxu0  ;;  %v24465_v32 = vpop.f32.mrf.mxu1 }
 0x4bb   :  { %v4777_v31 = vadd.f32 %v4558_v4, %v24213_v14  ;;  %v4863_v52 = vmax.f32 %v4827_v24, 0.0 }
 0x4bc   :  { %v4494_v9 = vpop.f32.mrf.mxu0  ;;  %v4563_v21 = vpop.f32.mrf.mxu1 }
 0x4bd   :  { %v4830_v6 = vadd.f32 %v24461_v2, %v4777_v31  ;;  %v4564_v46 = vadd.f32 %v4563_v21, %v4470_v63 }
 0x4be   :  { %v24470_v41 = vpop.f32.mrf.mxu0  ;;  %v24472_v23 = vpop.f32.mrf.mxu1 }
 0x4bf   :  { %v4866_v12 = vmax.f32 %v4830_v6, 0.0  ;;  %v4780_v8 = vadd.f32 %v4564_v46, %v24216_v10 }
 0x4c0   :  { %v4500_v40 = vpop.f32.mrf.mxu0  ;;  %v4567_v54 = vpop.f32.mrf.mxu1 }
 0x4c1   :  { %v24475_v7 = vpack.c.bf16 %v4866_v12, %v4863_v52  ;;  %v4568_v38 = vadd.f32 %v4567_v54, %v4474_v53  ;;  %v4833_v14 = vadd.f32 %v24461_v2, %v4780_v8 }
 0x4c2   :  { %v24477_v5 = vpop.f32.mrf.mxu1  ;;  %v24481_v63 = vpop.f32.mrf.mxu0 }
 0x4c3   :  { %28983 = vst [vmem:[#allocation45_spill] sm:$0xff] %v24475_v7  ;;  %v4783_v4 = vadd.f32 %v4568_v38, %v24226_v19  ;;  %v4869_v10 = vmax.f32 %v4833_v14, 0.0 }
 0x4c4   :  { %v4573_v31 = vpop.f32.mrf.mxu1  ;;  %v4504_v52 = vpop.f32.mrf.mxu0 }
 0x4c5   :  { %v4836_v21 = vadd.f32 %v24461_v2, %v4783_v4  ;;  %v4574_v24 = vadd.f32 %v4573_v31, %v4480_v17 }
 0x4c6   :  { %v24484_v6 = vpop.f32.mrf.mxu1  ;;  %v4506_v62 = vpop.f32.mrf.mxu0 }
 0x4c7   :  { %v4872_v46 = vmax.f32 %v4836_v21, 0.0  ;;  %v4786_v12 = vadd.f32 %v4574_v24, %v24229_v42 }
 0x4c8   :  { %v4577_v54 = vpop.f32.mrf.mxu1 }
 0x4c9   :  { %v24487_v53 = vpack.c.bf16 %v4872_v46, %v4869_v10  ;;  %v4578_v27 = vadd.f32 %v4577_v54, %v4484_v47  ;;  %v4839_v19 = vadd.f32 %v24461_v2, %v4786_v12  ;;  %v4510_v10 = vpop.f32.mrf.mxu0 }
 0x4ca   :  { %v24489_v8 = vpop.f32.mrf.mxu1 }
 0x4cb   :  { %28984 = vst [vmem:[#allocation46_spill] sm:$0xff] %v24487_v53  ;;  %v4789_v38 = vadd.f32 %v4578_v27, %v24239_v43  ;;  %v4875_v21 = vmax.f32 %v4839_v19, 0.0  ;;  %v28986_v27 = vld [vmem:[#allocation4_spill] sm:$0xff]  ;;  %v4512_v19 = vpop.f32.mrf.mxu0 }
 0x4cc   :  { %v4583_v4 = vpop.f32.mrf.mxu1 }
 0x4cd   :  { %v4842_v17 = vadd.f32 %v24461_v2, %v4789_v38  ;;  %v4584_v31 = vadd.f32 %v4583_v4, %v4490_v59  ;;  %v1590_v38 = vadd.f32 %v28986_v27, %v23374_v22  ;;  %v28987_v59 = vld [vmem:[#allocation6_spill] sm:$0xff]  ;;  %v28988_v4 = vld [vmem:[#allocation5_spill] sm:$0xff]  ;;  %v4514_v34 = vpop.f32.mrf.mxu0 }
 0x4ce   :  { %v24494_v14 = vpop.f32.mrf.mxu1  ;;  %v1600_v7 = vadd.f32 %v28988_v4, %v28987_v59 }
 0x4cf   :  { %v4878_v42 = vmax.f32 %v4842_v17, 0.0  ;;  %v4792_v24 = vadd.f32 %v4584_v31, %v24242_v0  ;;  %v28990_v0 = vld [vmem:[#allocation7_spill] sm:$0xff] }
 0x4d0   :  { %v4587_v46 = vpop.f32.mrf.mxu1  ;;  %v1610_v31 = vadd.f32 %v28990_v0, %v28989_v51  ;;  %v2239_v22 = vadd.f32 %v23649_v3, %v1600_v7  ;;  %v28996_v0 = vld [vmem:[#allocation3_spill] sm:$0xff]  ;;  %v28999_v3 = vld [vmem:[#allocation17_spill] sm:$0xff] }
 0x4d1   :  { %v24497_v47 = vpack.c.bf16 %v4878_v42, %v4875_v21  ;;  %v4588_v54 = vadd.f32 %v4587_v46, %v4494_v9  ;;  %v4845_v12 = vadd.f32 %v24461_v2, %v4792_v24  ;;  %v28991_v9 = vld [vmem:[#allocation10_spill] sm:$0xff]  ;;  %v28992_v46 = vld [vmem:[#allocation9_spill] sm:$0xff]  ;;  %v28993_v24 = vld [vmem:[#allocation12_spill] sm:$0xff] }
 0x4d2   :  { %v4589_v35 = vpop.f32.mrf.mxu1  ;;  %v1620_v53 = vadd.f32 %v28992_v46, %v28991_v9  ;;  %v2249_v59 = vadd.f32 %v23666_v45, %v1610_v31  ;;  %v28998_v9 = vld [vmem:[#allocation21_spill] sm:$0xff]  ;;  %v29000_v45 = vld [vmem:[#allocation14_spill] sm:$0xff] }
 0x4d3   :  { %28985 = vst [vmem:[#allocation47_spill] sm:$0xff] %v24497_v47  ;;  %v4795_v43 = vadd.f32 %v4588_v54, %v24250_v33  ;;  %v1630_v33 = vadd.f32 %v28994_v16, %v28993_v24  ;;  %v28995_v54 = vld [vmem:[#allocation19_spill] sm:$0xff]  ;;  %v4881_v4 = vmax.f32 %v4845_v12, 0.0 }
 0x4d4   :  { %v4593_v17 = vpop.f32.mrf.mxu1  ;;  %v2229_v47 = vadd.f32 %v28995_v54, %v1590_v38  ;;  %v29002_v54 = vld [vmem:[#allocation16_spill] sm:$0xff] }
 0x4d5   :  { %v4848_v21 = vadd.f32 %v24461_v2, %v4795_v43  ;;  %v4594_v42 = vadd.f32 %v4593_v17, %v4500_v40  ;;  %v28997_v43 = vld [vmem:[#allocation2_spill] sm:$0xff]  ;;  %v2259_v17 = vadd.f32 %v23679_v57, %v1620_v53  ;;  %v2269_v46 = vadd.f32 %v28998_v9, %v1630_v33 }
 0x4d6   :  { %v4595_v27 = vpop.f32.mrf.mxu1  ;;  %v1580_v40 = vadd.f32 %v28997_v43, %v28996_v0  ;;  %v2322_v12 = vadd.f32 %v29000_v45, %v2229_v47  ;;  %v2342_v57 = vadd.f32 %v29002_v54, %v2249_v59  ;;  %v29005_v43 = vld [vmem:[#allocation23_spill] sm:$0xff]  ;;  %v4516_v47 = vpop.f32.mrf.mxu0  ;;  %v24546_v45 = vsub.s32 1, %v24440_v48 }
 0x4d7   :  { %v4884_v61 = vmax.f32 %v4848_v21, 0.0  ;;  %v4798_v51 = vadd.f32 %v4594_v42, %v24253_v15  ;;  %v3458_v15 = vadd.f32 %v24258_v28, %v24221_v37  ;;  %v29001_v21 = vld [vmem:[#allocation15_spill] sm:$0xff]  ;;  %v29006_v37 = vld [vmem:[#allocation22_spill] sm:$0xff] }
 0x4d8   :  { %v4597_v16 = vpop.f32.mrf.mxu1  ;;  %v24523_v7 = vadd.f32 %v28999_v3, %v1580_v40  ;;  %v2332_v42 = vadd.f32 %v29001_v21, %v2239_v22  ;;  %v3428_v40 = vadd.f32 %v24223_v44, %v29005_v43  ;;  %v29007_v28 = vld [vmem:[#allocation27_spill] sm:$0xff]  ;;  %v29008_v22 = vld [vmem:[#allocation26_spill] sm:$0xff] }
 0x4d9   :  { %v24520_v24 = vpack.c.bf16 %v4884_v61, %v4881_v4  ;;  %v4598_v38 = vadd.f32 %v4597_v16, %v4504_v52  ;;  %v4851_v53 = vadd.f32 %v24461_v2, %v4798_v51  ;;  %v29003_v61 = vld [vmem:[#allocation18_spill] sm:$0xff]  ;;  %v29004_v52 = vld [vmem:[#allocation20_spill] sm:$0xff]  ;;  %v24538_v3 = vadd.f32 %v29007_v28, %v29006_v37  ;;  %v29011_v43 = vld [vmem:[#allocation31_spill] sm:$0xff] }
 0x4da   :  { %v4599_v31 = vpop.f32.mrf.mxu1  ;;  %v2352_v4 = vadd.f32 %v29003_v61, %v2259_v17  ;;  %v2362_v0 = vadd.f32 %v29004_v52, %v2269_v46  ;;  %v3448_v59 = vadd.f32 %v24247_v49, %v29008_v22  ;;  %v29009_v17 = vld [vmem:[#allocation30_spill] sm:$0xff]  ;;  %v3642_v52 = vadd.f32 %v3428_v40, %v2322_v12  ;;  %v29010_v49 = vld [vmem:[#allocation24_spill] sm:$0xff]  ;;  %v29012_v12 = vld [vmem:[#allocation33_spill] sm:$0xff] }
 0x4db   :  { %v4801_v33 = vadd.f32 %v4598_v38, %v24261_v20  ;;  %v4600_v9 = vadd.f32 %v4599_v31, %v4506_v62  ;;  %v3468_v46 = vadd.f32 %v24269_v55, %v29009_v17  ;;  %v4596_v62 = vadd.f32 %v4595_v27, %v24481_v63 }
 0x4dc   :  { %v4603_v16 = vpop.f32.mrf.mxu1  ;;  %v3660_v38 = vadd.f32 %v3458_v15, %v2352_v4  ;;  %v4887_v31 = vmax.f32 %v4851_v53, 0.0  ;;  %v4590_v15 = vadd.f32 %v4589_v35, %v24470_v41  ;;  %v24566_v35 = vsub.s32 2, %v24440_v48 }
 0x4dd   :  { %v4854_v51 = vadd.f32 %v24461_v2, %v4801_v33  ;;  %v4604_v20 = vadd.f32 %v4603_v16, %v4510_v10  ;;  %v3438_v33 = vadd.f32 %v29011_v43, %v29010_v49  ;;  %v24552_v10 = vpop.f32.mrf.mxu0  ;;  %v3654_v16 = vadd.f32 %v3448_v59, %v2342_v57 }
 0x4de   :  { %v4605_v44 = vpop.f32.mrf.mxu1  ;;  %v4802_v55 = vadd.f32 %v4600_v9, %v3660_v38  ;;  %v4799_v53 = vadd.f32 %v4596_v62, %v29012_v12  ;;  %v3666_v41 = vadd.f32 %v3468_v46, %v2362_v0  ;;  %v4580_v28 = vadd.f32 %v24489_v8, %v24454_v30 }
 0x4df   :  { %v4890_v21 = vmax.f32 %v4854_v51, 0.0  ;;  %v4804_v54 = vadd.f32 %v4604_v20, %v24264_v11  ;;  %v4606_v61 = vadd.f32 %v4605_v44, %v4512_v19  ;;  %v24560_v11 = vrot.slane %v24450_v39, %v24546_v45  ;;  %v4727_v59 = vpop.f32.mrf.mxu0 }
 0x4e0   :  { %v4607_v4 = vpop.f32.mrf.mxu1  ;;  %v4586_v19 = vadd.f32 %v24494_v14, %v24463_v18  ;;  %v4796_v22 = vadd.f32 %v4590_v15, %v3654_v16  ;;  %v4576_v0 = vadd.f32 %v24484_v6, %v24442_v50  ;;  %v24581_v30 = vrot.slane %v24450_v39, %v24566_v35  ;;  %v29014_v15 = vld [vmem:[#allocation29_spill] sm:$0xff] }
 0x4e1   :  { %v24555_v37 = vpack.c.bf16 %v4890_v21, %v4887_v31  ;;  %v4805_v63 = vadd.f32 %v4606_v61, %v24267_v29  ;;  %v4608_v27 = vadd.f32 %v4607_v4, %v4514_v34  ;;  %v4857_v57 = vadd.f32 %v24461_v2, %v4804_v54  ;;  %v19697_v6 = vpop.f32.mrf.mxu0 }
 0x4e2   :  { %v4609_v40 = vpop.f32.mrf.mxu1  ;;  %v3648_v34 = vadd.f32 %v3438_v33, %v2332_v42  ;;  %v4855_v18 = vadd.f32 %v24560_v11, %v4802_v55  ;;  %v4852_v42 = vadd.f32 %v24560_v11, %v4799_v53  ;;  %v4849_v50 = vadd.f32 %v24560_v11, %v4796_v22 }
 0x4e3   :  { %v4807_v9 = vadd.f32 %v4608_v27, %v24272_v25  ;;  %v4610_v29 = vadd.f32 %v4609_v40, %v4516_v47  ;;  %v4858_v51 = vadd.f32 %v24560_v11, %v4805_v63  ;;  %v29013_v25 = vld [vmem:[#allocation32_spill] sm:$0xff]  ;;  %v4893_v8 = vmax.f32 %v4857_v57, 0.0 }
 0x4e4   :  { %v19045_v14 = vpop.f32.mrf.mxu1  ;;  %v4793_v47 = vadd.f32 %v4586_v19, %v29013_v25  ;;  %v4790_v44 = vadd.f32 %v4580_v28, %v3648_v34  ;;  %v4891_v21 = vmax.f32 %v4855_v18, 0.0  ;;  %v4556_v39 = vadd.f32 %v24456_v58, %v24431_v36  ;;  %v29015_v19 = vld [vmem:[#allocation13_spill] sm:$0xff] }
 0x4e5   :  { %v4860_v48 = vadd.f32 %v24461_v2, %v4807_v9  ;;  %v4808_v20 = vadd.f32 %v4610_v29, %v3666_v41  ;;  %v4570_v2 = vadd.f32 %v24477_v5, %v24437_v60  ;;  %v4894_v54 = vmax.f32 %v4858_v51, 0.0  ;;  %v29016_v9 = vld [vmem:[#allocation25_spill] sm:$0xff] }
 0x4e6   :  { %v19046_v38 = vpop.f32.mrf.mxu1  ;;  %v4566_v33 = vadd.f32 %v24472_v23, %v24435_v56  ;;  %v4787_v55 = vadd.f32 %v4576_v0, %v29014_v15  ;;  %v4846_v5 = vadd.f32 %v24560_v11, %v4793_v47  ;;  %v4888_v4 = vmax.f32 %v4852_v42, 0.0  ;;  %v4730_v56 = vpop.f32.mrf.mxu0 }
 0x4e7   :  { %v4896_v17 = vmax.f32 %v4860_v48, 0.0  ;;  %v4861_v46 = vadd.f32 %v24560_v11, %v4808_v20  ;;  %v19047_v62 = vadd.f32 %v19046_v38, %v19045_v14  ;;  %v2312_v12 = vadd.f32 %v29015_v19, %v24523_v7 }
 0x4e8   :  { %v19048_v31 = vpop.f32.mrf.mxu1  ;;  %v4560_v36 = vadd.f32 %v24465_v32, %v24433_v1  ;;  %v4784_v58 = vadd.f32 %v4570_v2, %v3642_v52  ;;  %v4843_v23 = vadd.f32 %v24560_v11, %v4790_v44  ;;  %v24606_v41 = vpack.c.bf16 %v4891_v21, %v4888_v4  ;;  %v29017_v1 = vld [vmem:[#allocation28_spill] sm:$0xff]  ;;  %v19700_v51 = vpop.f32.mrf.mxu0 }
 0x4e9   :  { %v4897_v61 = vmax.f32 %v4861_v46, 0.0  ;;  %v4728_v49 = vadd.f32 %v19047_v62, %v4727_v59  ;;  %v4914_v43 = vpack.c.bf16 %v4896_v17, %v4893_v8  ;;  %v4885_v57 = vmax.f32 %v4849_v50, 0.0  ;;  %v29018_v62 = vld [vmem:[#allocation34_spill] sm:$0xff] }
 0x4ea   :  { %v19049_v60 = vpop.f32.mrf.mxu1  ;;  %v3636_v7 = vadd.f32 %v24538_v3, %v2312_v12  ;;  %v4775_v29 = vadd.f32 %v4556_v39, %v29016_v9  ;;  %v4781_v32 = vadd.f32 %v4566_v33, %v29017_v1  ;;  %v4840_v52 = vadd.f32 %v24560_v11, %v4787_v55  ;;  %v4743_v50 = vpop.f32.mrf.mxu0  ;;  %v29019_v55 = vld [vmem:[#allocation35_spill] sm:$0xff] }
 0x4eb   :  { %v4776_v16 = vadd.f32 %v4728_v49, %v24278_v13  ;;  %v19050_v63 = vadd.f32 %v19049_v60, %v19048_v31  ;;  %v24594_v27 = vpack.c.bf16 %v4897_v61, %v4894_v54  ;;  %v24604_v13 = vsel %vm4948_vm2, %v4914_v43, 0 }
 0x4ec   :  { %v19051_v53 = vpop.f32.mrf.mxu1  ;;  %v4882_v28 = vmax.f32 %v4846_v5, 0.0  ;;  %v4778_v14 = vadd.f32 %v4560_v36, %v3636_v7  ;;  %v4837_v3 = vadd.f32 %v24560_v11, %v4784_v58  ;;  %v4879_v47 = vmax.f32 %v4843_v23, 0.0  ;;  %v29020_v58 = vld [vmem:[#allocation47_spill] sm:$0xff] }
 0x4ed   :  { %v4731_v40 = vadd.f32 %v19050_v63, %v4730_v56  ;;  %16884 = vmatprep.subr.msk.bf16.mxu0 %vm4948_vm2, %v24594_v27  ;;  %v4829_v22 = vadd.f32 %v24581_v30, %v4776_v16  ;;  %v4828_v42 = vadd.f32 %v24560_v11, %v4775_v29  ;;  %v4834_v38 = vadd.f32 %v24560_v11, %v4781_v32  ;;  %v29021_v56 = vld [vmem:[#allocation37_spill] sm:$0xff] }
 0x4ee   :  { %v19052_v34 = vpop.f32.mrf.mxu1  ;;  %4963 = vmatpush1.bf16.msra.mxu0 %v24604_v13  ;;  %v24619_v25 = vpack.c.bf16 %v4885_v57, %v4882_v28  ;;  %v4873_v21 = vmax.f32 %v4837_v3, 0.0  ;;  %v29023_v28 = vld [vmem:[#allocation39_spill] sm:$0xff] }
 0x4ef   :  { %v4779_v59 = vadd.f32 %v4731_v40, %v24285_v26  ;;  %v19053_v18 = vadd.f32 %v19052_v34, %v19051_v53  ;;  %4964 = vmatprep.subr.bf16.mxu0 %v24606_v41  ;;  %v4876_v26 = vmax.f32 %v4840_v52, 0.0  ;;  %v4865_v17 = vmax.f32 %v4829_v22, 0.0  ;;  %v29022_v34 = vld [vmem:[#allocation46_spill] sm:$0xff] }
 0x4f0   :  { %v19054_v48 = vpop.f32.mrf.mxu1  ;;  %v4864_v33 = vmax.f32 %v4828_v42, 0.0  ;;  %v4870_v15 = vmax.f32 %v4834_v38, 0.0  ;;  %v29025_v42 = vld [vmem:[#allocation45_spill] sm:$0xff] }
 0x4f1   :  { %v4832_v20 = vadd.f32 %v24581_v30, %v4779_v59  ;;  %v4736_v0 = vadd.f32 %v24552_v10, %v19053_v18  ;;  %v4831_v10 = vadd.f32 %v24560_v11, %v4778_v14  ;;  %v24628_v49 = vpack.c.bf16 %v4879_v47, %v4876_v26  ;;  %v19701_v11 = vpop.f32.mrf.mxu0  ;;  %v24652_v18 = vld [vmem:[%s29024_s0] sm:$0xff]   ;;  %v29026_v26 = vld [vmem:[#allocation36_spill] sm:$0xff] }
 0x4f2   :  { %v19055_v8 = vpop.f32.mrf.mxu1  ;;  %4965 = vmatpush1.bf16.msra.mxu0 %v24555_v37  ;;  %v24636_v12 = vpack.c.bf16 %v4873_v21, %v4870_v15 }
 0x4f3   :  { %v4868_v46 = vmax.f32 %v4832_v20, 0.0  ;;  %v4782_v2 = vadd.f32 %v4736_v0, %v29018_v62  ;;  %v19056_v44 = vadd.f32 %v19055_v8, %v19054_v48  ;;  %4966 = vmatprep.subr.bf16.mxu0 %v24619_v25  ;;  %v4867_v63 = vmax.f32 %v4831_v10, 0.0  ;;  %v4746_v57 = vpop.f32.mrf.mxu0 }
 0x4f4   :  { %v19057_v31 = vpop.f32.mrf.mxu1  ;;  %v29027_v10 = vmov 0  }
 0x4f5   :  { %v4835_v54 = vadd.f32 %v24581_v30, %v4782_v2  ;;  %v4739_v61 = vadd.f32 %v19697_v6, %v19056_v44  ;;  %v24630_v43 = vpack.c.bf16 %v4868_v46, %v4865_v17  ;;  %v24641_v29 = vpack.c.bf16 %v4867_v63, %v4864_v33  ;;  %v19704_v14 = vpop.f32.mrf.mxu0 }
 0x4f6   :  { %v19058_v39 = vpop.f32.mrf.mxu1  ;;  %4967 = vmatpush1.bf16.msra.mxu0 %v24520_v24 }
 0x4f7   :  { %v4785_v5 = vadd.f32 %v4739_v61, %v29019_v55  ;;  %v19059_v60 = vadd.f32 %v19058_v39, %v19057_v31  ;;  %4968 = vmatprep.subr.bf16.mxu0 %v24628_v49  ;;  %v4871_v4 = vmax.f32 %v4835_v54, 0.0  ;;  %v4759_v46 = vpop.f32.mrf.mxu0  ;;  %v29028_v31 = vld [vmem:[#allocation38_spill] sm:$0xff]  ;;  %v24671_v61 = vld [vmem:[%s29024_s0 + $0x8] sm:$0xff]  }
 0x4f8   :  { %v19060_v16 = vpop.f32.mrf.mxu1 }
 0x4f9   :  { %v4838_v6 = vadd.f32 %v24581_v30, %v4785_v5  ;;  %v4744_v19 = vadd.f32 %v19059_v60, %v4743_v50  ;;  %v19705_v39 = vpop.f32.mrf.mxu0 }
 0x4fa   :  { %v19061_v36 = vpop.f32.mrf.mxu1  ;;  %4969 = vmatpush1.bf16.msra.mxu0 %v29020_v58 }
 0x4fb   :  { %v4874_v23 = vmax.f32 %v4838_v6, 0.0  ;;  %v4788_v53 = vadd.f32 %v4744_v19, %v29021_v56  ;;  %v19062_v40 = vadd.f32 %v19061_v36, %v19060_v16  ;;  %4970 = vmatprep.subr.bf16.mxu0 %v24636_v12  ;;  %v4762_v6 = vpop.f32.mrf.mxu0 }
 0x4fc   :  { %v19063_v7 = vpop.f32.mrf.mxu1 }
 0x4fd   :  { %v4747_v9 = vadd.f32 %v19062_v40, %v4746_v57  ;;  %v24643_v1 = vpack.c.bf16 %v4874_v23, %v4871_v4  ;;  %v4841_v32 = vadd.f32 %v24581_v30, %v4788_v53  ;;  %v29029_v4 = vld [vmem:[#allocation40_spill] sm:$0xff]  ;;  %v29030_v40 = vld [vmem:[#allocation42_spill] sm:$0xff] }
 0x4fe   :  { %v19064_v52 = vpop.f32.mrf.mxu1  ;;  %4971 = vmatpush1.bf16.msra.mxu0 %v29022_v34 }
 0x4ff   :  { %v4791_v22 = vadd.f32 %v4747_v9, %v29023_v28  ;;  %v19065_v59 = vadd.f32 %v19064_v52, %v19063_v7  ;;  %4972 = vmatprep.subr.bf16.mxu0 %v24641_v29  ;;  %v4877_v0 = vmax.f32 %v4841_v32, 0.0  ;;  %v24689_v9 = vld [vmem:[%s29024_s0 + $0x10] sm:$0x7f]  }
 0x500   :  { %v19066_v3 = vpop.f32.mrf.mxu1 }
 0x501   :  { %v4844_v48 = vadd.f32 %v24581_v30, %v4791_v22  ;;  %v4752_v20 = vadd.f32 %v19700_v51, %v19065_v59 }
 0x502   :  { %v19067_v47 = vpop.f32.mrf.mxu1  ;;  %4973 = vmatpush1.bf16.msra.mxu0 %v29025_v42 }
 0x503   :  { %v4880_v38 = vmax.f32 %v4844_v48, 0.0  ;;  %v4794_v8 = vadd.f32 %v4752_v20, %v29026_v26  ;;  %v19068_v17 = vadd.f32 %v19067_v47, %v19066_v3  ;;  %16900 = vmatprep.subr.msk.bf16.mxu0 %vm4948_vm2, %v24594_v27  ;;  %v29031_v48 = vld [vmem:[#allocation41_spill] sm:$0xff] }
 0x504   :  { %v19069_v62 = vpop.f32.mrf.mxu1 }
 0x505   :  { %v4755_v2 = vadd.f32 %v19701_v11, %v19068_v17  ;;  %16885 = vmatmul.mubr.msk.bf16.vlgmr.msra.gmra.mxu0 %vm4938_vm3, %v24652_v18  ;;  %v24661_v44 = vpack.c.bf16 %v4880_v38, %v4877_v0  ;;  %v4847_v50 = vadd.f32 %v24581_v30, %v4794_v8  ;;  %v29033_v8 = vld [vmem:[#allocation43_spill] sm:$0xff] }
 0x506   :  { %v19070_v51 = vpop.f32.mrf.mxu1  ;;  %5217 = vmatpush1.bf16.msra.mxu0 %v24604_v13  ;;  %5000 = vmatprep.mubr.bf16.mxu0 %v29027_v10 }
 0x507   :  { %v4797_v21 = vadd.f32 %v4755_v2, %v29028_v31  ;;  %v19071_v54 = vadd.f32 %v19070_v51, %v19069_v62  ;;  %5218 = vmatprep.subr.bf16.mxu0 %v24606_v41  ;;  %v4883_v60 = vmax.f32 %v4847_v50, 0.0  ;;  %v20606_v62 = vld [vmem:[%s29032_s26 + $0x2dc] ss:$12 sps:$4 sm:$0xff]  }
 0x508   :  { %v19072_v33 = vpop.f32.mrf.mxu1  ;;  %v20611_v51 = vld [vmem:[%s29032_s26 + $0x2c8] ss:$12 sps:$4 sm:$0xff]  }
 0x509   :  { %v4850_v15 = vadd.f32 %v24581_v30, %v4797_v21  ;;  %v4760_v55 = vadd.f32 %v19071_v54, %v4759_v46  ;;  %v24710_v46 = vld [vmem:[%s29024_s0 + $0x18] sm:$0xff]   ;;  %v20609_v21 = vld [vmem:[%s29032_s26 + $0x2c4] ss:$12 sps:$4 sm:$0xff]  }
 0x50a   :  { %v19073_v5 = vpop.f32.mrf.mxu1  ;;  %5219 = vmatpush1.bf16.msra.mxu0 %v24555_v37 }
 0x50b   :  { %v4886_v11 = vmax.f32 %v4850_v15, 0.0  ;;  %v4800_v16 = vadd.f32 %v4760_v55, %v29029_v4  ;;  %v19074_v63 = vadd.f32 %v19073_v5, %v19072_v33  ;;  %5220 = vmatprep.subr.bf16.mxu0 %v24619_v25  ;;  %v24735_v33 = vld [vmem:[%s29024_s0 + $0x20] sm:$0xff]   ;;  %v20612_v15 = vld [vmem:[%s29032_s26 + $0x2ac] ss:$12 sps:$4 sm:$0xff]   ;;  %v29034_v55 = vmov 0.0  }
 0x50c   :  { %v19075_v19 = vpop.f32.mrf.mxu1  ;;  %v20617_v5 = vld [vmem:[%s29032_s26 + $0x298] ss:$12 sps:$4 sm:$0xff]   ;;  %v24759_v4 = vld [vmem:[%s29024_s0 + $0x28] sm:$0x7f]  }
 0x50d   :  { %v4763_v36 = vadd.f32 %v19074_v63, %v4762_v6  ;;  %16886 = vmatmul.mubr.msk.bf16.gmra.mxu0 %vm4938_vm3, %v24671_v61  ;;  %v24679_v23 = vpack.c.bf16 %v4886_v11, %v4883_v60  ;;  %v4853_v53 = vadd.f32 %v24581_v30, %v4800_v16  ;;  %v20615_v60 = vld [vmem:[%s29032_s26 + $0x294] ss:$12 sps:$4 sm:$0xff]   ;;  %v20618_v16 = vld [vmem:[%s29032_s26 + $0x27c] ss:$12 sps:$4 sm:$0xff]   ;;  %v20621_v6 = vld [vmem:[%s29032_s26 + $0x264] ss:$12 sps:$4 sm:$0xff]  }
 0x50e   :  { %v19076_v56 = vpop.f32.mrf.mxu1  ;;  %5221 = vmatpush1.bf16.msra.mxu0 %v24520_v24  ;;  %5010 = vmatprep.mubr.bf16.mxu0 %v29027_v10  ;;  %v20620_v11 = vld [vmem:[%s29032_s26 + $0x280] ss:$12 sps:$4 sm:$0xff]   ;;  %v20623_v63 = vld [vmem:[%s29032_s26 + $0x268] ss:$12 sps:$4 sm:$0xff]  }
 0x50f   :  { %v4803_v57 = vadd.f32 %v4763_v36, %v29030_v40  ;;  %v19077_v7 = vadd.f32 %v19076_v56, %v19075_v19  ;;  %5222 = vmatprep.subr.bf16.mxu0 %v24628_v49  ;;  %v4889_v59 = vmax.f32 %v4853_v53, 0.0  ;;  %v20626_v19 = vld [vmem:[%s29032_s26 + $0x250] ss:$12 sps:$4 sm:$0xff]   ;;  %v20624_v36 = vld [vmem:[%s29032_s26 + $0x24c] ss:$12 sps:$4 sm:$0xff]  }
 0x510   :  { %v19078_v32 = vpop.f32.mrf.mxu1  ;;  %v20629_v56 = vld [vmem:[%s29032_s26 + $0x238] ss:$12 sps:$4 sm:$0xff]   ;;  %v20627_v53 = vld [vmem:[%s29032_s26 + $0x234] ss:$12 sps:$4 sm:$0xff]  }
 0x511   :  { %v4856_v52 = vadd.f32 %v24581_v30, %v4803_v57  ;;  %v4768_v28 = vadd.f32 %v19704_v14, %v19077_v7  ;;  %v20608_v14 = vld [vmem:[%s29032_s26 + $0x2e0] ss:$12 sps:$4 sm:$0xff]   ;;  %v20635_v57 = vld [vmem:[%s29032_s26 + $0x388] ss:$12 sps:$4 sm:$0xff]  }
 0x512   :  { %v19079_v22 = vpop.f32.mrf.mxu1  ;;  %5223 = vmatpush1.bf16.msra.mxu0 %v29020_v58  ;;  %v20632_v40 = vld [vmem:[%s29032_s26 + $0x3a0] ss:$12 sps:$4 sm:$0xff]  }
 0x513   :  { %v4892_v3 = vmax.f32 %v4856_v52, 0.0  ;;  %v4806_v20 = vadd.f32 %v4768_v28, %v29031_v48  ;;  %v19080_v0 = vadd.f32 %v19079_v22, %v19078_v32  ;;  %5224 = vmatprep.subr.bf16.mxu0 %v24636_v12  ;;  %v20636_v7 = vld [vmem:[%s29032_s26 + $0x36c] ss:$12 sps:$4 sm:$0xff]   ;;  %v20639_v32 = vld [vmem:[%s29032_s26 + $0x354] ss:$12 sps:$4 sm:$0xff]  }
 0x514   :  { %v20641_v52 = vld [vmem:[%s29032_s26 + $0x358] ss:$12 sps:$4 sm:$0xff]   ;;  %v20642_v28 = vld [vmem:[%s29032_s26 + $0x33c] ss:$12 sps:$4 sm:$0xff]   ;;  %v20644_v22 = vld [vmem:[%s29032_s26 + $0x340] ss:$12 sps:$4 sm:$0xff]  }
 0x515   :  { %v4771_v47 = vadd.f32 %v19705_v39, %v19080_v0  ;;  %16887 = vmatmul.mubr.msk.bf16.gmra.mxu0 %vm4938_vm3, %v24689_v9  ;;  %v24697_v38 = vpack.c.bf16 %v4892_v3, %v4889_v59  ;;  %v4859_v26 = vadd.f32 %v24581_v30, %v4806_v20  ;;  %v20645_v59 = vld [vmem:[%s29032_s26 + $0x324] ss:$12 sps:$4 sm:$0xff]   ;;  %v20647_v3 = vld [vmem:[%s29032_s26 + $0x328] ss:$12 sps:$4 sm:$0xff]   ;;  %v20648_v48 = vld [vmem:[%s29032_s26 + $0x30c] ss:$12 sps:$4 sm:$0xff]  }
 0x516   :  { %5225 = vmatpush1.bf16.msra.mxu0 %v29022_v34  ;;  %5244 = vmatprep.mubr.bf16.mxu0 %v29027_v10  ;;  %v20650_v20 = vld [vmem:[%s29032_s26 + $0x310] ss:$12 sps:$4 sm:$0xff]   ;;  %v20651_v0 = vld [vmem:[%s29032_s26 + $0x2f4] ss:$12 sps:$4 sm:$0xff]  }
 0x517   :  { %v4809_v17 = vadd.f32 %v4771_v47, %v29033_v8  ;;  %5226 = vmatprep.subr.bf16.mxu0 %v24641_v29  ;;  %v4895_v50 = vmax.f32 %v4859_v26, 0.0  ;;  %v20653_v47 = vld [vmem:[%s29032_s26 + $0x2f8] ss:$12 sps:$4 sm:$0xff]  }
 0x519   :  { %v4862_v2 = vadd.f32 %v24581_v30, %v4809_v17  ;;  %v20614_v30 = vld [vmem:[%s29032_s26 + $0x2b0] ss:$12 sps:$4 sm:$0xff]  }
 0x51a   :  { %5227 = vmatpush1.bf16.msra.mxu0 %v29025_v42 }
 0x51b   :  { %v4898_v31 = vmax.f32 %v4862_v2, 0.0  ;;  %5832 = vmatprep.subr.bf16.mxu0 %v20608_v14  ;;  %v16999_v14 = vld [vmem:[%s29032_s26 + $0x45c] sm:$0xff] }
 0x51c   :  { %v17071_v26 = vcombine.high %v16999_v14, %v16999_v14  ;;  %v17070_v8 = vcombine.low %v16999_v14, %v16999_v14  ;;  %v20663_v2 = vld [vmem:[%s29032_s26 + $0x430] ss:$12 sps:$4 sm:$0xff]  }
 0x51d   :  { %v4916_v54 = vpack.c.bf16 %v4898_v31, %v4895_v50  ;;  %16901 = vmatmul.mubr.msk.bf16.vlgmr.msra.gmra.mxu0 %vm4938_vm3, %v24710_v46  ;;  %v20667_v50 = vld [vmem:[%s29032_s26 + $0x418] ss:$12 sps:$4 sm:$0xff]   ;;  %v20665_v31 = vld [vmem:[%s29032_s26 + $0x414] ss:$12 sps:$4 sm:$0xff]  }
 0x51e   :  { %5254 = vmatprep.mubr.bf16.mxu0 %v29027_v10  ;;  %5833 = vmatpush1.bf16.msra.mxu0 %v20606_v62  ;;  %v5824_v17 = vsel %vm5822_vm4, %v17070_v8, 0  ;;  %v20657_v62 = vld [vmem:[%s29032_s26 + $0x444] ss:$12 sps:$4 sm:$0xff]   ;;  %v20660_v8 = vld [vmem:[%s29032_s26 + $0x44c] ss:$12 sps:$4 sm:$0xff]  }
 0x51f   :  { %v24730_v39 = vsel %vm4948_vm2, %v4916_v54, 0  ;;  %5834 = vmatprep.subr.bf16.mxu0 %v20611_v51  ;;  %v20661_v51 = vld [vmem:[%s29032_s26 + $0x42c] ss:$12 sps:$4 sm:$0xff]   ;;  %v20669_v54 = vld [vmem:[%s29032_s26 + $0x3fc] ss:$12 sps:$4 sm:$0xff]  }
 0x520   :  { %19707 = vmatpush3.bf16.msra.mxu1 %v24730_v39 }
 0x521   :  { %19708 = vmatprep.subr.bf16.mxu1 %v29034_v55 }
 0x522   :  { %5835 = vmatpush1.bf16.msra.mxu0 %v20609_v21  ;;  %v20671_v21 = vld [vmem:[%s29032_s26 + $0x400] ss:$12 sps:$4 sm:$0xff]  }
 0x523   :  { %5836 = vmatprep.subr.bf16.mxu0 %v20614_v30  ;;  %v20675_v30 = vld [vmem:[%s29032_s26 + $0x3e8] ss:$12 sps:$4 sm:$0xff]  }
 0x524   :  { %19709 = vmatpush3.bf16.msra.mxu1 %v24697_v38 }
 0x525   :  { %19710 = vmatprep.subr.bf16.mxu1 %v29034_v55  ;;  %16902 = vmatmul.mubr.msk.bf16.gmra.mxu0 %vm4938_vm3, %v24735_v33 }
 0x526   :  { %5264 = vmatprep.mubr.bf16.mxu0 %v29027_v10  ;;  %5837 = vmatpush1.bf16.msra.mxu0 %v20612_v15  ;;  %v20679_v15 = vld [vmem:[%s29032_s26 + $0x3d0] ss:$12 sps:$4 sm:$0xff]  }
 0x527   :  { %5838 = vmatprep.subr.bf16.mxu0 %v20617_v5  ;;  %v20677_v5 = vld [vmem:[%s29032_s26 + $0x3cc] ss:$12 sps:$4 sm:$0xff]  }
 0x528   :  { %19711 = vmatpush3.bf16.msra.mxu1 %v24679_v23 }
 0x529   :  { %19712 = vmatprep.subr.bf16.mxu1 %v29034_v55 }
 0x52a   :  { %5839 = vmatpush1.bf16.msra.mxu0 %v20615_v60  ;;  %v20683_v60 = vld [vmem:[%s29032_s26 + $0x3b8] ss:$12 sps:$4 sm:$0xff]  }
 0x52b   :  { %5840 = vmatprep.subr.bf16.mxu0 %v20620_v11  ;;  %v20681_v11 = vld [vmem:[%s29032_s26 + $0x3b4] ss:$12 sps:$4 sm:$0xff]  }
 0x52c   :  { %19713 = vmatpush3.bf16.msra.mxu1 %v24661_v44 }
 0x52d   :  { %19714 = vmatprep.subr.bf16.mxu1 %v29034_v55  ;;  %16903 = vmatmul.mubr.msk.bf16.gmra.mxu0 %vm4938_vm3, %v24759_v4 }
 0x52e   :  { %5841 = vmatpush1.bf16.msra.mxu0 %v20618_v16 }
 0x52f   :  { %5842 = vmatprep.subr.bf16.mxu0 %v20623_v63 }
 0x530   :  { %19715 = vmatpush3.bf16.msra.mxu1 %v24643_v1 }
 0x531   :  { %19716 = vmatprep.subr.bf16.mxu1 %v29034_v55 }
 0x532   :  { %5843 = vmatpush1.bf16.msra.mxu0 %v20621_v6 }
 0x533   :  { %5844 = vmatprep.subr.bf16.mxu0 %v20626_v19 }
 0x534   :  { %19717 = vmatpush3.bf16.msra.mxu1 %v24630_v43 }
 0x535   :  { %19730 = vmatprep.subr.bf16.mxu1 %v29034_v55 }
 0x536   :  { %5845 = vmatpush1.bf16.msra.mxu0 %v20624_v36 }
 0x537   :  { %19719 = vmatmul.mubr.msk.bf16.vlgmr.msra.gmra.mxu1 %vm4938_vm3, %v24652_v18  ;;  %5846 = vmatprep.subr.bf16.mxu0 %v20629_v56  ;;  %v20630_v18 = vld [vmem:[%s29032_s26 + $0x39c] ss:$12 sps:$4 sm:$0xff]  }
 0x538   :  { %19731 = vmatpush3.bf16.msra.mxu1 %v24730_v39  ;;  %19722 = vmatprep.mubr.msk.bf16.mxu1 %vm22041_vm1, %v29034_v55 }
 0x539   :  { %19732 = vmatprep.subr.bf16.mxu1 %v29034_v55 }
 0x53a   :  { %5847 = vmatpush1.bf16.msra.mxu0 %v20627_v53 }
 0x53b   :  { %5848 = vmatprep.subr.bf16.mxu0 %v20632_v40 }
 0x53c   :  { %19733 = vmatpush3.bf16.msra.mxu1 %v24697_v38 }
 0x53d   :  { %19734 = vmatprep.subr.bf16.mxu1 %v29034_v55 }
 0x53e   :  { %5849 = vmatpush2.bf16.msra.mxu0 %v20630_v18 }
 0x53f   :  { %19723 = vmatmul.mubr.msk.bf16.gmra.mxu1 %vm4938_vm3, %v24671_v61  ;;  %v20633_v61 = vld [vmem:[%s29032_s26 + $0x384] ss:$12 sps:$4 sm:$0xff]   ;;  %5850 = vmatprep.subr.bf16.mxu0 %v20635_v57 }
 0x540   :  { %19735 = vmatpush3.bf16.msra.mxu1 %v24679_v23  ;;  %19726 = vmatprep.mubr.msk.bf16.mxu1 %vm22041_vm1, %v29034_v55 }
 0x541   :  { %19736 = vmatprep.subr.bf16.mxu1 %v29034_v55 }
 0x542   :  { %5851 = vmatpush2.bf16.msra.mxu0 %v20633_v61 }
 0x544   :  { %19737 = vmatpush3.bf16.msra.mxu1 %v24661_v44 }
 0x545   :  { %19738 = vmatprep.subr.bf16.mxu1 %v29034_v55 }
 0x547   :  { %19727 = vmatmul.mubr.msk.bf16.gmra.mxu1 %vm4938_vm3, %v24689_v9  ;;  %v20638_v9 = vld [vmem:[%s29032_s26 + $0x370] ss:$12 sps:$4 sm:$0xff]  }
 0x548   :  { %19739 = vmatpush3.bf16.msra.mxu1 %v24643_v1  ;;  %19742 = vmatprep.mubr.msk.bf16.mxu1 %vm22041_vm1, %v29034_v55 }
 0x549   :  { %19740 = vmatprep.subr.bf16.mxu1 %v29034_v55  ;;  %5852 = vmatprep.subr.bf16.mxu0 %v20638_v9 }
 0x54a   :  { %5853 = vmatpush2.bf16.msra.mxu0 %v20636_v7 }
 0x54b   :  { %5854 = vmatprep.subr.bf16.mxu0 %v20641_v52 }
 0x54c   :  { %19741 = vmatpush3.bf16.msra.mxu1 %v24630_v43 }
 0x54d   :  { %17073 = vmatprep.subr.msk.bf16.mxu1 %vm5822_vm4, %v17071_v26 }
 0x54e   :  { %5855 = vmatpush2.bf16.msra.mxu0 %v20639_v32 }
 0x54f   :  { %19743 = vmatmul.mubr.msk.bf16.vlgmr.msra.gmra.mxu1 %vm4938_vm3, %v24710_v46  ;;  %5856 = vmatprep.subr.bf16.mxu0 %v20644_v22  ;;  %v20659_v46 = vld [vmem:[%s29032_s26 + $0x448] ss:$12 sps:$4 sm:$0xff]  }
 0x550   :  { %19746 = vmatprep.mubr.msk.bf16.mxu1 %vm22041_vm1, %v29034_v55  ;;  %5896 = vmatpush1.bf16.msra.mxu1 %v5824_v17 }
 0x551   :  { %5897 = vmatprep.subr.bf16.mxu1 %v20659_v46 }
 0x552   :  { %5857 = vmatpush2.bf16.msra.mxu0 %v20642_v28 }
 0x553   :  { %5858 = vmatprep.subr.bf16.mxu0 %v20647_v3  ;;  %v20656_v3 = vld [vmem:[%s29032_s26 + $0x464] ss:$0 sps:$4 sm:$0xff]  }
 0x554   :  { %5898 = vmatpush1.bf16.msra.mxu1 %v20657_v62 }
 0x555   :  { %5899 = vmatprep.subr.bf16.mxu1 %v20663_v2  ;;  %v20664_v2 = vld [vmem:[%s29032_s26 + $0x434] ss:$12 sps:$4 sm:$0xff]  }
 0x556   :  { %5859 = vmatpush2.bf16.msra.mxu0 %v20645_v59 }
 0x557   :  { %19747 = vmatmul.mubr.msk.bf16.gmra.mxu1 %vm4938_vm3, %v24735_v33  ;;  %5860 = vmatprep.subr.bf16.mxu0 %v20650_v20  ;;  %v20673_v33 = vld [vmem:[%s29032_s26 + $0x3e4] ss:$12 sps:$4 sm:$0xff]  }
 0x558   :  { %19750 = vmatprep.mubr.msk.bf16.mxu1 %vm22041_vm1, %v29034_v55  ;;  %5900 = vmatpush1.bf16.msra.mxu1 %v20661_v51 }
 0x559   :  { %5901 = vmatprep.subr.bf16.mxu1 %v20667_v50 }
 0x55a   :  { %5861 = vmatpush2.bf16.msra.mxu0 %v20648_v48 }
 0x55b   :  { %5862 = vmatprep.subr.bf16.mxu0 %v20653_v47  ;;  %v5830_v47 = vsel %vm5822_vm4, %v20656_v3, 0 }
 0x55c   :  { %5902 = vmatpush1.bf16.msra.mxu1 %v20665_v31 }
 0x55d   :  { %5903 = vmatprep.subr.bf16.mxu1 %v20671_v21  ;;  %v20668_v21 = vld [vmem:[%s29032_s26 + $0x41c] ss:$12 sps:$4 sm:$0xff]  }
 0x55e   :  { %5863 = vmatpush2.bf16.msra.mxu0 %v20651_v0 }
 0x55f   :  { %19751 = vmatmul.mubr.msk.bf16.gmra.mxu1 %vm4938_vm3, %v24759_v4  ;;  %19754 = vmatprep.subr.bf16.mxu0 %v29034_v55  ;;  %v20685_v4 = vld [vmem:[%s29032_s26 + $0x3a4] ss:$12 sps:$4 sm:$0xff]  }
 0x560   :  { %5927 = vmatprep.mubr.bf16.mxu1 %v29027_v10  ;;  %5904 = vmatpush1.bf16.msra.mxu1 %v20669_v54 }
 0x561   :  { %5905 = vmatprep.subr.bf16.mxu1 %v20675_v30 }
 0x564   :  { %5906 = vmatpush1.bf16.msra.mxu1 %v20673_v33 }
 0x565   :  { %5907 = vmatprep.subr.bf16.mxu1 %v20679_v15  ;;  %v20672_v15 = vld [vmem:[%s29032_s26 + $0x404] ss:$12 sps:$4 sm:$0xff]  }
 0x568   :  { %5908 = vmatpush1.bf16.msra.mxu1 %v20677_v5 }
 0x569   :  { %5909 = vmatprep.subr.bf16.mxu1 %v20683_v60 }
 0x56c   :  { %5910 = vmatpush1.bf16.msra.mxu1 %v20681_v11  ;;  %v20676_v11 = vld [vmem:[%s29032_s26 + $0x3ec] ss:$12 sps:$4 sm:$0xff]  }
 0x56d   :  { %19113 = vmatprep.subr.bf16.mxu1 %v20685_v4 }
 0x5c5   :  { %v4992_v16 = vpop.f32.mrf.mxu0 }
 0x5c7   :  { %v24925_v63 = vpop.f32.mrf.mxu0 }
 0x5c9   :  { %v4996_v6 = vpop.f32.mrf.mxu0 }
 0x5ca   :  { %v24927_v19 = vpack.c.bf16 %v4996_v6, %v4992_v16  ;;  %v20680_v6 = vld [vmem:[%s29032_s26 + $0x3d4] ss:$12 sps:$4 sm:$0xff]  }
 0x5cb   :  { %v24929_v36 = vpop.f32.mrf.mxu0 }
 0x5cd   :  { %v5002_v56 = vpop.f32.mrf.mxu0 }
 0x5cf   :  { %v24931_v53 = vpop.f32.mrf.mxu0 }
 0x5d1   :  { %v5006_v18 = vpop.f32.mrf.mxu0 }
 0x5d2   :  { %v24933_v40 = vpack.c.bf16 %v5006_v18, %v5002_v56  ;;  %v5179_v18 = vld [vmem:[%s29032_s26 + $0x228] sm:$0xff] }
 0x5d3   :  { %v24935_v61 = vpop.f32.mrf.mxu0 }
 0x5d5   :  { %v5012_v57 = vpop.f32.mrf.mxu0 }
 0x5d7   :  { %v24937_v7 = vpop.f32.mrf.mxu0 }
 0x5d9   :  { %v5016_v9 = vpop.f32.mrf.mxu0 }
 0x5da   :  { %v24939_v32 = vpack.c.bf16 %v5016_v9, %v5012_v57  ;;  %v20684_v9 = vld [vmem:[%s29032_s26 + $0x3bc] ss:$12 sps:$4 sm:$0xff]  }
 0x5db   :  { %v24941_v52 = vpop.f32.mrf.mxu0 }
 0x5dd   :  { %v5246_v28 = vpop.f32.mrf.mxu0 }
 0x5df   :  { %v5248_v22 = vpop.f32.mrf.mxu0 }
 0x5e1   :  { %v5250_v59 = vpop.f32.mrf.mxu0 }
 0x5e2   :  { %v24946_v48 = vpack.c.bf16 %v5250_v59, %v5246_v28 }
 0x5e3   :  { %v5252_v20 = vpop.f32.mrf.mxu0 }
 0x5e4   :  { %v24948_v0 = vpack.c.bf16 %v5252_v20, %v5248_v22  ;;  %v17150_v22 = vcombine.high %v5179_v18, %v5179_v18 }
 0x5e5   :  { %v5256_v14 = vpop.f32.mrf.mxu0 }
 0x5e6   :  { %5864 = vmatprep.mubr.bf16.mxu0 %v24948_v0 }
 0x5e7   :  { %5865 = vmatmul.mubr.bf16.vlgmr.msra.gmra.mxu0 %v24946_v48  ;;  %v5258_v26 = vpop.f32.mrf.mxu0 }
 0x5e8   :  { %19755 = vmatpush3.bf16.msra.mxu0 %v5830_v47 }
 0x5e9   :  { %19756 = vmatprep.subr.bf16.mxu0 %v29034_v55  ;;  %v5260_v17 = vpop.f32.mrf.mxu0 }
 0x5ea   :  { %v24957_v46 = vpack.c.bf16 %v5260_v17, %v5256_v14  ;;  %v17149_v17 = vcombine.low %v5179_v18, %v5179_v18  ;;  %v20697_v18 = vld [vmem:[%s29032_s26 + $0x1fc] ss:$12 sps:$4 sm:$0xff]  }
 0x5eb   :  { %v5262_v62 = vpop.f32.mrf.mxu0 }
 0x5ec   :  { %19757 = vmatpush3.bf16.msra.mxu0 %v20660_v8  ;;  %v24962_v51 = vpack.c.bf16 %v5262_v62, %v5258_v26 }
 0x5ed   :  { %19758 = vmatprep.subr.bf16.mxu0 %v29034_v55  ;;  %v5266_v50 = vpop.f32.mrf.mxu0 }
 0x5ee   :  { %5874 = vmatprep.mubr.bf16.mxu0 %v24962_v51 }
 0x5ef   :  { %v5268_v31 = vpop.f32.mrf.mxu0  ;;  %5875 = vmatmul.mubr.bf16.gmra.mxu0 %v24957_v46 }
 0x5f0   :  { %19759 = vmatpush3.bf16.msra.mxu0 %v20664_v2 }
 0x5f1   :  { %19760 = vmatprep.subr.bf16.mxu0 %v29034_v55  ;;  %v5270_v54 = vpop.f32.mrf.mxu0 }
 0x5f2   :  { %v24971_v30 = vpack.c.bf16 %v5270_v54, %v5266_v50  ;;  %v20687_v50 = vld [vmem:[%s29032_s26 + $0x2e4] ss:$12 sps:$4 sm:$0xff]   ;;  %v20689_v54 = vld [vmem:[%s29032_s26 + $0x38c] ss:$12 sps:$4 sm:$0xff]  }
 0x5f3   :  { %v5272_v33 = vpop.f32.mrf.mxu0 }
 0x5f4   :  { %19761 = vmatpush3.bf16.msra.mxu0 %v20668_v21  ;;  %v24976_v5 = vpack.c.bf16 %v5272_v33, %v5268_v31  ;;  %v6458_v21 = vsel %vm5822_vm4, %v17149_v17, 0  ;;  %v20692_v33 = vld [vmem:[%s29032_s26 + $0x214] ss:$12 sps:$4 sm:$0xff]  }
 0x5f5   :  { %19762 = vmatprep.subr.bf16.mxu0 %v29034_v55 }
 0x5f6   :  { %5884 = vmatprep.mubr.bf16.mxu0 %v24976_v5 }
 0x5f7   :  { %v24980_v60 = vpop.f32.mrf.mxu1  ;;  %5885 = vmatmul.mubr.bf16.gmra.mxu0 %v24971_v30 }
 0x5f8   :  { %19763 = vmatpush3.bf16.msra.mxu0 %v20672_v15  ;;  %19770 = vmatprep.mubr.msk.bf16.mxu0 %vm22041_vm1, %v29034_v55 }
 0x5f9   :  { %v19720_v4 = vpop.f32.mrf.mxu1  ;;  %19764 = vmatprep.subr.bf16.mxu0 %v29034_v55 }
 0x5fa   :  { %v20693_v4 = vld [vmem:[%s29032_s26 + $0x2cc] ss:$12 sps:$4 sm:$0xff]  }
 0x5fb   :  { %v24989_v16 = vpop.f32.mrf.mxu1 }
 0x5fc   :  { %19765 = vmatpush3.bf16.msra.mxu0 %v20676_v11  ;;  %v20690_v11 = vld [vmem:[%s29032_s26 + $0x210] ss:$12 sps:$4 sm:$0xff]  }
 0x5fd   :  { %v19721_v56 = vpop.f32.mrf.mxu1  ;;  %19766 = vmatprep.subr.bf16.mxu0 %v29034_v55 }
 0x5fe   :  { %v20694_v56 = vld [vmem:[%s29032_s26 + $0x374] ss:$12 sps:$4 sm:$0xff]  }
 0x5ff   :  { %v24998_v57 = vpop.f32.mrf.mxu1 }
 0x600   :  { %19767 = vmatpush3.bf16.msra.mxu0 %v20680_v6 }
 0x601   :  { %v19724_v28 = vpop.f32.mrf.mxu1  ;;  %19768 = vmatprep.subr.bf16.mxu0 %v29034_v55 }
 0x602   :  { %v20695_v28 = vld [vmem:[%s29032_s26 + $0x1f8] ss:$12 sps:$4 sm:$0xff]  }
 0x603   :  { %v25004_v59 = vpop.f32.mrf.mxu1 }
 0x604   :  { %19769 = vmatpush3.bf16.msra.mxu0 %v20684_v9 }
 0x605   :  { %v19725_v3 = vpop.f32.mrf.mxu1  ;;  %17152 = vmatprep.subr.msk.bf16.mxu0 %vm5822_vm4, %v17150_v22  ;;  %v20698_v22 = vld [vmem:[%s29032_s26 + $0x2b4] ss:$12 sps:$4 sm:$0xff]  }
 0x607   :  { %v25007_v20 = vpop.f32.mrf.mxu1 }
 0x609   :  { %v19728_v47 = vpop.f32.mrf.mxu1 }
 0x60a   :  { %v20699_v47 = vld [vmem:[%s29032_s26 + $0x35c] ss:$12 sps:$4 sm:$0xff]  }
 0x60b   :  { %v25009_v14 = vpop.f32.mrf.mxu1 }
 0x60d   :  { %v19729_v26 = vpop.f32.mrf.mxu1 }
 0x60e   :  { %v20702_v26 = vld [vmem:[%s29032_s26 + $0x1e4] ss:$12 sps:$4 sm:$0xff]  }
 0x60f   :  { %v5309_v8 = vpop.f32.mrf.mxu1 }
 0x611   :  { %v19744_v62 = vpop.f32.mrf.mxu1 }
 0x612   :  { %v20700_v62 = vld [vmem:[%s29032_s26 + $0x1e0] ss:$12 sps:$4 sm:$0xff]  }
 0x613   :  { %v5312_v2 = vpop.f32.mrf.mxu1 }
 0x614   :  { %v5334_v31 = vpack.c.bf16 %v5312_v2, %v5309_v8  ;;  %v20703_v2 = vld [vmem:[%s29032_s26 + $0x29c] ss:$12 sps:$4 sm:$0xff]  }
 0x615   :  { %v19745_v15 = vpop.f32.mrf.mxu1 }
 0x616   :  { %17074 = vmatmul.mubr.msk.bf16.vlgmr.msra.gmra.mxu1 %vm5812_vm5, %v5334_v31  ;;  %19771 = vmatmul.mubr.msk.bf16.vlgmr.msra.gmra.mxu0 %vm5812_vm5, %v5334_v31  ;;  %v20704_v31 = vld [vmem:[%s29032_s26 + $0x344] ss:$12 sps:$4 sm:$0xff]  }
 0x617   :  { %19114 = vmatpush3.bf16.msra.mxu1 %v20687_v50  ;;  %6530 = vmatpush1.bf16.msra.mxu0 %v6458_v21  ;;  %v5317_v6 = vpop.f32.mrf.mxu1  ;;  %v20707_v21 = vld [vmem:[%s29032_s26 + $0x1cc] ss:$12 sps:$4 sm:$0xff]   ;;  %v20708_v15 = vld [vmem:[%s29032_s26 + $0x284] ss:$12 sps:$4 sm:$0xff]  }
 0x618   :  { %19115 = vmatprep.subr.bf16.mxu1 %v20689_v54  ;;  %6531 = vmatprep.subr.bf16.mxu0 %v20692_v33  ;;  %v20705_v33 = vld [vmem:[%s29032_s26 + $0x1c8] ss:$12 sps:$4 sm:$0xff]  }
 0x619   :  { %v19748_v9 = vpop.f32.mrf.mxu1  ;;  %5937 = vmatprep.mubr.bf16.mxu1 %v29027_v10  ;;  %19774 = vmatprep.mubr.msk.bf16.mxu0 %vm22041_vm1, %v29034_v55 }
 0x61a   :  { %v20710_v9 = vld [vmem:[%s29032_s26 + $0x1b0] ss:$12 sps:$4 sm:$0xff]  }
 0x61b   :  { %19116 = vmatpush3.bf16.msra.mxu1 %v20693_v4  ;;  %6532 = vmatpush1.bf16.msra.mxu0 %v20690_v11  ;;  %v5320_v3 = vpop.f32.mrf.mxu1  ;;  %v20709_v4 = vld [vmem:[%s29032_s26 + $0x32c] ss:$12 sps:$4 sm:$0xff]  }
 0x61c   :  { %19117 = vmatprep.subr.bf16.mxu1 %v20694_v56  ;;  %6533 = vmatprep.subr.bf16.mxu0 %v20697_v18  ;;  %v5337_v8 = vpack.c.bf16 %v5320_v3, %v5317_v6  ;;  %v20712_v6 = vld [vmem:[%s29032_s26 + $0x1b4] ss:$12 sps:$4 sm:$0xff]   ;;  %v20717_v3 = vld [vmem:[%s29032_s26 + $0x19c] ss:$12 sps:$4 sm:$0xff]  }
 0x61d   :  { %v19749_v17 = vpop.f32.mrf.mxu1 }
 0x61e   :  { %17075 = vmatmul.mubr.msk.bf16.gmra.mxu1 %vm5812_vm5, %v5337_v8  ;;  %19775 = vmatmul.mubr.msk.bf16.gmra.mxu0 %vm5812_vm5, %v5337_v8  ;;  %v20719_v8 = vld [vmem:[%s29032_s26 + $0x2fc] ss:$12 sps:$4 sm:$0xff]   ;;  %v20720_v17 = vld [vmem:[%s29032_s26 + $0x180] ss:$12 sps:$4 sm:$0xff]  }
 0x61f   :  { %19118 = vmatpush3.bf16.msra.mxu1 %v20698_v22  ;;  %6534 = vmatpush1.bf16.msra.mxu0 %v20695_v28  ;;  %v5325_v50 = vpop.f32.mrf.mxu1  ;;  %v20713_v28 = vld [vmem:[%s29032_s26 + $0x26c] ss:$12 sps:$4 sm:$0xff]   ;;  %v20714_v22 = vld [vmem:[%s29032_s26 + $0x314] ss:$12 sps:$4 sm:$0xff]  }
 0x620   :  { %19119 = vmatprep.subr.bf16.mxu1 %v20699_v47  ;;  %6535 = vmatprep.subr.bf16.mxu0 %v20702_v26  ;;  %v20715_v47 = vld [vmem:[%s29032_s26 + $0x198] ss:$12 sps:$4 sm:$0xff]   ;;  %v20718_v26 = vld [vmem:[%s29032_s26 + $0x254] ss:$12 sps:$4 sm:$0xff]  }
 0x621   :  { %v19752_v54 = vpop.f32.mrf.mxu1  ;;  %5947 = vmatprep.mubr.bf16.mxu1 %v29027_v10  ;;  %19778 = vmatprep.mubr.msk.bf16.mxu0 %vm22041_vm1, %v29034_v55 }
 0x622   :  { %v25127_v54 = vpack.c.bf16 %v24989_v16, %v24980_v60  ;;  %v20729_v60 = vld [vmem:[%s29032_s26 + $0x90] ss:$12 sps:$4 sm:$0xff]   ;;  %v20733_v16 = vld [vmem:[%s29032_s26 + $0x98] ss:$12 sps:$4 sm:$0xff]  }
 0x623   :  { %19120 = vmatpush3.bf16.msra.mxu1 %v20703_v2  ;;  %6536 = vmatpush1.bf16.msra.mxu0 %v20700_v62  ;;  %v5328_v11 = vpop.f32.mrf.mxu1  ;;  %v20723_v62 = vld [vmem:[%s29032_s26 + $0x23c] ss:$12 sps:$4 sm:$0xff]   ;;  %v20726_v2 = vld [vmem:[%s29032_s26 + $0xac] ss:$12 sps:$4 sm:$0xff]  }
 0x624   :  { %19121 = vmatprep.subr.bf16.mxu1 %v20704_v31  ;;  %6537 = vmatprep.subr.bf16.mxu0 %v20707_v21  ;;  %v5340_v56 = vpack.c.bf16 %v5328_v11, %v5325_v50  ;;  %v20727_v50 = vld [vmem:[%s29032_s26 + $0x170] ss:$12 sps:$4 sm:$0xff]   ;;  %v20724_v31 = vld [vmem:[%s29032_s26 + $0xa8] ss:$12 sps:$4 sm:$0xff]  }
 0x625   :  { %v19753_v18 = vpop.f32.mrf.mxu1  ;;  %v20728_v21 = vld [vmem:[%s29032_s26 + $0xb0] ss:$12 sps:$4 sm:$0xff]  }
 0x626   :  { %17076 = vmatmul.mubr.msk.bf16.gmra.mxu1 %vm5812_vm5, %v5340_v56  ;;  %19779 = vmatmul.mubr.msk.bf16.gmra.mxu0 %vm5812_vm5, %v5340_v56  ;;  %v20736_v11 = vld [vmem:[%s29032_s26 + $0x7c] ss:$12 sps:$4 sm:$0xff]   ;;  %v25160_v56 = vpack.c.bf16 %v25004_v59, %v24998_v57  ;;  %v20739_v57 = vld [vmem:[%s29032_s26 + $0x60] ss:$12 sps:$4 sm:$0xff]  }
 0x627   :  { %19122 = vmatpush3.bf16.msra.mxu1 %v20708_v15  ;;  %6538 = vmatpush1.bf16.msra.mxu0 %v20705_v33  ;;  %v20731_v33 = vld [vmem:[%s29032_s26 + $0x94] ss:$12 sps:$4 sm:$0xff]   ;;  %v20732_v15 = vld [vmem:[%s29032_s26 + $0x158] ss:$12 sps:$4 sm:$0xff]  }
 0x628   :  { %19123 = vmatprep.subr.bf16.mxu1 %v20709_v4  ;;  %6539 = vmatprep.subr.bf16.mxu0 %v20712_v6  ;;  %v20734_v4 = vld [vmem:[%s29032_s26 + $0x78] ss:$12 sps:$4 sm:$0xff]   ;;  %v20738_v6 = vld [vmem:[%s29032_s26 + $0x80] ss:$12 sps:$4 sm:$0xff]   ;;  %v20742_v18 = vld [vmem:[%s29032_s26 + $0x128] ss:$12 sps:$4 sm:$0xff]  }
 0x629   :  { %5990 = vmatprep.mubr.bf16.mxu1 %v24948_v0  ;;  %6561 = vmatprep.mubr.bf16.mxu0 %v29027_v10  ;;  %v20722_v0 = vld [vmem:[%s29032_s26 + $0x184] ss:$12 sps:$4 sm:$0xff]   ;;  %v20743_v59 = vld [vmem:[%s29032_s26 + $0x68] ss:$12 sps:$4 sm:$0xff]  }
 0x62b   :  { %19124 = vmatpush3.bf16.msra.mxu1 %v20713_v28  ;;  %6540 = vmatpush1.bf16.msra.mxu0 %v20710_v9  ;;  %v20746_v9 = vld [vmem:[%s29032_s26 + $0x4c] ss:$12 sps:$4 sm:$0xff]   ;;  %v20744_v28 = vld [vmem:[%s29032_s26 + $0x48] ss:$12 sps:$4 sm:$0xff]  }
 0x62c   :  { %19125 = vmatprep.subr.bf16.mxu1 %v20714_v22  ;;  %6541 = vmatprep.subr.bf16.mxu0 %v20717_v3  ;;  %v25190_v22 = vpack.c.bf16 %v25009_v14, %v25007_v20  ;;  %v20748_v3 = vld [vmem:[%s29032_s26 + $0x50] ss:$12 sps:$4 sm:$0xff]   ;;  %v20754_v14 = vld [vmem:[%s29032_s26 + $0x18] ss:$12 sps:$4 sm:$0xff]  }
 0x62d   :  { %v20749_v20 = vld [vmem:[%s29032_s26 + $0x30] ss:$12 sps:$4 sm:$0xff]  }
 0x62f   :  { %19126 = vmatpush3.bf16.msra.mxu1 %v20718_v26  ;;  %6542 = vmatpush1.bf16.msra.mxu0 %v20715_v47  ;;  %v20751_v47 = vld [vmem:[%s29032_s26 + $0x34] ss:$12 sps:$4 sm:$0xff]   ;;  %v20752_v26 = vld [vmem:[%s29032_s26 + $0xf8] ss:$12 sps:$4 sm:$0xff]  }
 0x630   :  { %19127 = vmatprep.subr.bf16.mxu1 %v20719_v8  ;;  %6543 = vmatprep.subr.bf16.mxu0 %v20722_v0  ;;  %v20758_v8 = vld [vmem:[%s29032_s26 + $0x20] ss:$12 sps:$4 sm:$0xff]   ;;  %v20761_v0 = vld [vmem:[%s29032_s26 + $0x4] ss:$12 sps:$4 sm:$0xff]  }
 0x633   :  { %19128 = vmatpush3.bf16.msra.mxu1 %v20723_v62  ;;  %6544 = vmatpush1.bf16.msra.mxu0 %v20720_v17  ;;  %v20762_v17 = vld [vmem:[%s29032_s26 + $0xc8] ss:$12 sps:$4 sm:$0xff]   ;;  %v20759_v62 = vld [vmem:[%s29032_s26] ss:$12 sps:$4 sm:$0xff]  }
 0x634   :  { %6466 = vmatprep.subr.bf16.mxu1 %v20726_v2  ;;  %19158 = vmatprep.subr.bf16.mxu0 %v20727_v50  ;;  %v20763_v2 = vld [vmem:[%s29032_s26 + $0x8] ss:$12 sps:$4 sm:$0xff]   ;;  %v20766_v50 = vld [vmem:[%s29032_s26 + $0x16c] ss:$12 sps:$4 sm:$0xff]  }
 0x636   :  { %5991 = vmatmul.mubr.bf16.vlgmr.msra.gmra.mxu1 %v24946_v48  ;;  %17153 = vmatmul.mubr.msk.bf16.vlgmr.msra.gmra.mxu0 %vm5812_vm5, %v25127_v54  ;;  %v20737_v48 = vld [vmem:[%s29032_s26 + $0x140] ss:$12 sps:$4 sm:$0xff]  }
 0x637   :  { %6467 = vmatpush1.bf16.msra.mxu1 %v20724_v31  ;;  %19159 = vmatpush3.bf16.msra.mxu0 %v20728_v21  ;;  %v20764_v31 = vld [vmem:[%s29032_s26 + $0x168] ss:$12 sps:$4 sm:$0xff]  }
 0x638   :  { %6468 = vmatprep.subr.bf16.mxu1 %v20731_v33  ;;  %19160 = vmatprep.subr.bf16.mxu0 %v20732_v15  ;;  %v20769_v21 = vld [vmem:[%s29032_s26 + $0x154] ss:$12 sps:$4 sm:$0xff]   ;;  %v5082_v33 = vpack.c.bf16 %v24935_v61, %v24931_v53  ;;  %v20767_v15 = vld [vmem:[%s29032_s26 + $0x150] ss:$12 sps:$4 sm:$0xff]   ;;  %v20770_v53 = vld [vmem:[%s29032_s26 + $0x138] ss:$12 sps:$4 sm:$0xff]   ;;  %v5085_v61 = vpack.c.bf16 %v24941_v52, %v24937_v7 }
 0x639   :  { %5998 = vmatprep.mubr.bf16.mxu1 %v24962_v51  ;;  %6571 = vmatprep.mubr.bf16.mxu0 %v29027_v10  ;;  %v20741_v51 = vld [vmem:[%s29032_s26 + $0x64] ss:$12 sps:$4 sm:$0xff]   ;;  %v20781_v7 = vld [vmem:[%s29032_s26 + $0xf4] ss:$12 sps:$4 sm:$0xff]  }
 0x63a   :  { %v20788_v52 = vld [vmem:[%s29032_s26 + $0x230] ss:$0 sps:$4 sm:$0xff]  }
 0x63b   :  { %6469 = vmatpush1.bf16.msra.mxu1 %v20729_v60  ;;  %19161 = vmatpush3.bf16.msra.mxu0 %v20733_v16  ;;  %v25321_v60 = vld [vmem:[%s29024_s0 + $0x38] sm:$0xff]  }
 0x63c   :  { %6470 = vmatprep.subr.bf16.mxu1 %v20736_v11  ;;  %19162 = vmatprep.subr.bf16.mxu0 %v20737_v48  ;;  %v20789_v16 = vld [vmem:[%s29032_s26 + $0x218] ss:$12 sps:$4 sm:$0xff]   ;;  %v20790_v11 = vld [vmem:[%s29032_s26 + $0x200] ss:$12 sps:$4 sm:$0xff]   ;;  %v20791_v48 = vld [vmem:[%s29032_s26 + $0x1e8] ss:$12 sps:$4 sm:$0xff]  }
 0x63e   :  { %5999 = vmatmul.mubr.bf16.gmra.mxu1 %v24957_v46  ;;  %17154 = vmatmul.mubr.msk.bf16.gmra.mxu0 %vm5812_vm5, %v25160_v56  ;;  %v20747_v46 = vld [vmem:[%s29032_s26 + $0x110] ss:$12 sps:$4 sm:$0xff]  }
 0x63f   :  { %6471 = vmatpush1.bf16.msra.mxu1 %v20734_v4  ;;  %19163 = vmatpush3.bf16.msra.mxu0 %v20738_v6  ;;  %v20792_v4 = vld [vmem:[%s29032_s26 + $0x1d0] ss:$12 sps:$4 sm:$0xff]   ;;  %v20794_v6 = vld [vmem:[%s29032_s26 + $0x1a0] ss:$12 sps:$4 sm:$0xff]  }
 0x640   :  { %6472 = vmatprep.subr.bf16.mxu1 %v20741_v51  ;;  %19164 = vmatprep.subr.bf16.mxu0 %v20742_v18  ;;  %v20801_v51 = vld [vmem:[%s29032_s26 + $0x514] ss:$12 sps:$4 sm:$0xff]   ;;  %v20799_v18 = vld [vmem:[%s29032_s26 + $0x510] ss:$12 sps:$4 sm:$0xff]  }
 0x641   :  { %6006 = vmatprep.mubr.bf16.mxu1 %v24976_v5  ;;  %6581 = vmatprep.mubr.bf16.mxu0 %v29027_v10  ;;  %v5079_v5 = vpack.c.bf16 %v24929_v36, %v24925_v63  ;;  %v20753_v63 = vld [vmem:[%s29032_s26 + $0x38] ss:$12 sps:$4 sm:$0xff]   ;;  %v20756_v36 = vld [vmem:[%s29032_s26 + $0x1c] ss:$12 sps:$4 sm:$0xff]  }
 0x643   :  { %6473 = vmatpush1.bf16.msra.mxu1 %v20739_v57  ;;  %19165 = vmatpush3.bf16.msra.mxu0 %v20743_v59  ;;  %v20804_v57 = vld [vmem:[%s29032_s26 + $0x4fc] ss:$12 sps:$4 sm:$0xff]   ;;  %v20802_v59 = vld [vmem:[%s29032_s26 + $0x4f8] ss:$12 sps:$4 sm:$0xff]  }
 0x644   :  { %6474 = vmatprep.subr.bf16.mxu1 %v20746_v9  ;;  %19166 = vmatprep.subr.bf16.mxu0 %v20747_v46  ;;  %v20808_v9 = vld [vmem:[%s29032_s26 + $0x4c8] ss:$12 sps:$4 sm:$0xff]  }
 0x645   :  { %v20816_v46 = vld [vmem:[%s29032_s26 + $0x49c] ss:$12 sps:$4 sm:$0xff]  }
 0x646   :  { %6007 = vmatmul.mubr.bf16.gmra.mxu1 %v24971_v30  ;;  %17155 = vmatmul.mubr.msk.bf16.gmra.mxu0 %vm5812_vm5, %v25190_v22  ;;  %v20757_v30 = vld [vmem:[%s29032_s26 + $0xe0] ss:$12 sps:$4 sm:$0xff]  }
 0x647   :  { %6475 = vmatpush1.bf16.msra.mxu1 %v20744_v28  ;;  %6498 = vmatprep.mubr.bf16.mxu1 %v5079_v5  ;;  %v20814_v28 = vld [vmem:[%s29032_s26 + $0x498] ss:$12 sps:$4 sm:$0xff]  }
 0x648   :  { %19167 = vmatpush3.bf16.msra.mxu0 %v20748_v3  ;;  %6624 = vmatprep.mubr.bf16.mxu0 %v5079_v5  ;;  %v20817_v3 = vld [vmem:[%s29032_s26 + $0x480] ss:$12 sps:$4 sm:$0xff]  }
 0x649   :  { %6476 = vmatprep.subr.bf16.mxu1 %v20751_v47  ;;  %19168 = vmatprep.subr.bf16.mxu0 %v20752_v26  ;;  %v20820_v47 = vld [vmem:[%s29032_s26 + $0x468] ss:$12 sps:$4 sm:$0xff]  }
 0x64b   :  { %6477 = vmatpush1.bf16.msra.mxu1 %v20749_v20  ;;  %v20825_v20 = vld [vmem:[%s29032_s26 + $0x5d4] ss:$12 sps:$4 sm:$0xff]  }
 0x64c   :  { %19169 = vmatpush3.bf16.msra.mxu0 %v20753_v63  ;;  %6478 = vmatprep.subr.bf16.mxu1 %v20756_v36  ;;  %v20823_v63 = vld [vmem:[%s29032_s26 + $0x5d0] ss:$12 sps:$4 sm:$0xff]  }
 0x64d   :  { %19170 = vmatprep.subr.bf16.mxu0 %v20757_v30  ;;  %v20828_v30 = vld [vmem:[%s29032_s26 + $0x5bc] ss:$12 sps:$4 sm:$0xff]  }
 0x64f   :  { %6479 = vmatpush1.bf16.msra.mxu1 %v20754_v14  ;;  %v20826_v14 = vld [vmem:[%s29032_s26 + $0x5b8] ss:$12 sps:$4 sm:$0xff]  }
 0x650   :  { %19171 = vmatpush3.bf16.msra.mxu0 %v20758_v8  ;;  %6480 = vmatprep.subr.bf16.mxu1 %v20761_v0  ;;  %v20831_v0 = vld [vmem:[%s29032_s26 + $0x5a4] ss:$12 sps:$4 sm:$0xff]  }
 0x651   :  { %19172 = vmatprep.subr.bf16.mxu0 %v20762_v17  ;;  %v20829_v17 = vld [vmem:[%s29032_s26 + $0x5a0] ss:$12 sps:$4 sm:$0xff]  }
 0x653   :  { %6481 = vmatpush1.bf16.msra.mxu1 %v20759_v62 }
 0x654   :  { %19173 = vmatpush3.bf16.msra.mxu0 %v20763_v2  ;;  %6482 = vmatprep.subr.bf16.mxu1 %v20766_v50  ;;  %v20834_v2 = vld [vmem:[%s29032_s26 + $0x58c] ss:$12 sps:$4 sm:$0xff]   ;;  %v20832_v50 = vld [vmem:[%s29032_s26 + $0x588] ss:$12 sps:$4 sm:$0xff]  }
 0x655   :  { %17168 = vmatprep.subr.msk.bf16.mxu0 %vm4948_vm2, %v24594_v27  ;;  %v20772_v27 = vld [vmem:[%s29032_s26 + $0x13c] ss:$12 sps:$4 sm:$0xff]  }
 0x657   :  { %6625 = vmatmul.mubr.bf16.vlgmr.msra.gmra.mxu0 %v24927_v19  ;;  %6483 = vmatpush2.bf16.msra.mxu1 %v20764_v31 }
 0x658   :  { %6632 = vmatprep.mubr.bf16.mxu0 %v5082_v33  ;;  %6742 = vmatpush1.bf16.msra.mxu0 %v24604_v13  ;;  %v20775_v13 = vld [vmem:[%s29032_s26 + $0x124] ss:$12 sps:$4 sm:$0xff]  }
 0x659   :  { %6743 = vmatprep.subr.bf16.mxu0 %v24606_v41  ;;  %6484 = vmatprep.subr.bf16.mxu1 %v20769_v21  ;;  %v20773_v41 = vld [vmem:[%s29032_s26 + $0x120] ss:$12 sps:$4 sm:$0xff]  }
 0x65a   :  { %v20837_v21 = vld [vmem:[%s29032_s26 + $0x574] ss:$12 sps:$4 sm:$0xff]  }
 0x65b   :  { %6485 = vmatpush2.bf16.msra.mxu1 %v20767_v15 }
 0x65c   :  { %6744 = vmatpush1.bf16.msra.mxu0 %v24555_v37  ;;  %6486 = vmatprep.subr.bf16.mxu1 %v20772_v27  ;;  %v20778_v37 = vld [vmem:[%s29032_s26 + $0x10c] ss:$12 sps:$4 sm:$0xff]   ;;  %v20840_v27 = vld [vmem:[%s29032_s26 + $0x55c] ss:$12 sps:$4 sm:$0xff]  }
 0x65d   :  { %6745 = vmatprep.subr.bf16.mxu0 %v24619_v25  ;;  %v20776_v25 = vld [vmem:[%s29032_s26 + $0x108] ss:$12 sps:$4 sm:$0xff]  }
 0x65f   :  { %6633 = vmatmul.mubr.bf16.gmra.mxu0 %v24933_v40  ;;  %6487 = vmatpush2.bf16.msra.mxu1 %v20770_v53  ;;  %v20838_v53 = vld [vmem:[%s29032_s26 + $0x558] ss:$12 sps:$4 sm:$0xff]  }
 0x660   :  { %6640 = vmatprep.mubr.bf16.mxu0 %v5085_v61  ;;  %6746 = vmatpush1.bf16.msra.mxu0 %v24520_v24  ;;  %v20779_v24 = vld [vmem:[%s29032_s26 + $0xf0] ss:$12 sps:$4 sm:$0xff]  }
 0x661   :  { %6747 = vmatprep.subr.bf16.mxu0 %v24628_v49  ;;  %6488 = vmatprep.subr.bf16.mxu1 %v20775_v13  ;;  %v20784_v49 = vld [vmem:[%s29032_s26 + $0xdc] ss:$12 sps:$4 sm:$0xff]  }
 0x663   :  { %6489 = vmatpush2.bf16.msra.mxu1 %v20773_v41  ;;  %v20843_v41 = vld [vmem:[%s29032_s26 + $0x540] ss:$12 sps:$4 sm:$0xff]  }
 0x664   :  { %6748 = vmatpush1.bf16.msra.mxu0 %v29020_v58  ;;  %6490 = vmatprep.subr.bf16.mxu1 %v20778_v37  ;;  %v25301_v58 = vld [vmem:[%s29024_s0 + $0x30] sm:$0xff]  }
 0x665   :  { %6749 = vmatprep.subr.bf16.mxu0 %v24636_v12  ;;  %v20782_v12 = vld [vmem:[%s29032_s26 + $0xd8] ss:$12 sps:$4 sm:$0xff]  }
 0x667   :  { %6641 = vmatmul.mubr.bf16.gmra.mxu0 %v24939_v32  ;;  %6491 = vmatpush2.bf16.msra.mxu1 %v20776_v25  ;;  %v17267_v25 = vld [vmem:[%s29032_s26 + $0x690] sm:$0xff] }
 0x668   :  { %6750 = vmatpush1.bf16.msra.mxu0 %v29022_v34  ;;  %6492 = vmatprep.subr.bf16.mxu1 %v20781_v7  ;;  %v20787_v34 = vld [vmem:[%s29032_s26 + $0xc4] ss:$12 sps:$4 sm:$0xff]   ;;  %v17339_v7 = vcombine.high %v17267_v25, %v17267_v25 }
 0x669   :  { %6751 = vmatprep.subr.bf16.mxu0 %v24641_v29  ;;  %6769 = vmatprep.mubr.bf16.mxu0 %v29027_v10  ;;  %v20785_v29 = vld [vmem:[%s29032_s26 + $0xc0] ss:$12 sps:$4 sm:$0xff]  }
 0x66b   :  { %6493 = vmatpush2.bf16.msra.mxu1 %v20779_v24  ;;  %v17338_v24 = vcombine.low %v17267_v25, %v17267_v25 }
 0x66c   :  { %6752 = vmatpush1.bf16.msra.mxu0 %v29025_v42  ;;  %6494 = vmatprep.subr.bf16.mxu1 %v20784_v49  ;;  %v6464_v42 = vsel %vm5822_vm4, %v20788_v52, 0  ;;  %v20851_v49 = vld [vmem:[%s29032_s26 + $0x52c] ss:$12 sps:$4 sm:$0xff]  }
 0x66d   :  { %7355 = vmatprep.subr.bf16.mxu0 %v20801_v51 }
 0x66f   :  { %6495 = vmatpush2.bf16.msra.mxu1 %v20782_v12  ;;  %17169 = vmatmul.mubr.msk.bf16.vlgmr.msra.gmra.mxu0 %vm4938_vm3, %v25301_v58  ;;  %v20849_v12 = vld [vmem:[%s29032_s26 + $0x528] ss:$12 sps:$4 sm:$0xff]  }
 0x670   :  { %6496 = vmatprep.subr.bf16.mxu1 %v20787_v34  ;;  %6779 = vmatprep.mubr.bf16.mxu0 %v29027_v10  ;;  %v7347_v34 = vsel %vm5822_vm4, %v17338_v24, 0 }
 0x671   :  { %7356 = vmatpush1.bf16.msra.mxu0 %v20799_v18 }
 0x672   :  { %7357 = vmatprep.subr.bf16.mxu0 %v20804_v57  ;;  %v20852_v57 = vld [vmem:[%s29032_s26 + $0x660] ss:$12 sps:$4 sm:$0xff]  }
 0x673   :  { %6497 = vmatpush2.bf16.msra.mxu1 %v20785_v29 }
 0x674   :  { %19782 = vmatprep.subr.bf16.mxu1 %v29034_v55 }
 0x675   :  { %7358 = vmatpush1.bf16.msra.mxu0 %v20802_v59 }
 0x676   :  { %6499 = vmatmul.mubr.bf16.vlgmr.msra.gmra.mxu1 %v24927_v19  ;;  %v25338_v19 = vld [vmem:[%s29024_s0 + $0x40] sm:$0x7f]  }
 0x677   :  { %6508 = vmatprep.mubr.bf16.mxu1 %v5082_v33  ;;  %19783 = vmatpush3.bf16.msra.mxu1 %v6464_v42  ;;  %v20835_v33 = vld [vmem:[%s29032_s26 + $0x570] ss:$12 sps:$4 sm:$0xff]  }
 0x678   :  { %19784 = vmatprep.subr.bf16.mxu1 %v29034_v55  ;;  %17170 = vmatmul.mubr.msk.bf16.gmra.mxu0 %vm4938_vm3, %v25321_v60 }
 0x679   :  { %6789 = vmatprep.mubr.bf16.mxu0 %v29027_v10 }
 0x67b   :  { %19785 = vmatpush3.bf16.msra.mxu1 %v20789_v16 }
 0x67c   :  { %19786 = vmatprep.subr.bf16.mxu1 %v29034_v55 }
 0x67e   :  { %6509 = vmatmul.mubr.bf16.gmra.mxu1 %v24933_v40  ;;  %v20793_v40 = vld [vmem:[%s29032_s26 + $0x1b8] ss:$12 sps:$4 sm:$0xff]  }
 0x67f   :  { %6518 = vmatprep.mubr.bf16.mxu1 %v5085_v61  ;;  %19787 = vmatpush3.bf16.msra.mxu1 %v20790_v11  ;;  %v20845_v61 = vld [vmem:[%s29032_s26 + $0x544] ss:$12 sps:$4 sm:$0xff]  }
 0x680   :  { %19788 = vmatprep.subr.bf16.mxu1 %v29034_v55  ;;  %17171 = vmatmul.mubr.msk.bf16.gmra.mxu0 %vm4938_vm3, %v25338_v19 }
 0x683   :  { %19789 = vmatpush3.bf16.msra.mxu1 %v20791_v48 }
 0x684   :  { %19790 = vmatprep.subr.bf16.mxu1 %v29034_v55 }
 0x686   :  { %6519 = vmatmul.mubr.bf16.gmra.mxu1 %v24939_v32  ;;  %v20795_v32 = vld [vmem:[%s29032_s26 + $0x188] ss:$12 sps:$4 sm:$0xff]  }
 0x687   :  { %19791 = vmatpush3.bf16.msra.mxu1 %v20792_v4  ;;  %19798 = vmatprep.mubr.msk.bf16.mxu1 %vm22041_vm1, %v29034_v55 }
 0x688   :  { %19792 = vmatprep.subr.bf16.mxu1 %v29034_v55 }
 0x68b   :  { %19793 = vmatpush3.bf16.msra.mxu1 %v20793_v40 }
 0x68c   :  { %19794 = vmatprep.subr.bf16.mxu1 %v29034_v55 }
 0x68f   :  { %19795 = vmatpush3.bf16.msra.mxu1 %v20794_v6 }
 0x690   :  { %19796 = vmatprep.subr.bf16.mxu1 %v29034_v55 }
 0x693   :  { %19797 = vmatpush3.bf16.msra.mxu1 %v20795_v32  ;;  %v20854_v32 = vld [vmem:[%s29032_s26 + $0x664] ss:$12 sps:$4 sm:$0xff]  }
 0x694   :  { %19810 = vmatprep.subr.bf16.mxu1 %v29034_v55 }
 0x696   :  { %19799 = vmatmul.mubr.msk.bf16.vlgmr.msra.gmra.mxu1 %vm5812_vm5, %v25127_v54  ;;  %v20805_v54 = vld [vmem:[%s29032_s26 + $0x4e0] ss:$12 sps:$4 sm:$0xff]  }
 0x697   :  { %19811 = vmatpush3.bf16.msra.mxu1 %v24730_v39  ;;  %19802 = vmatprep.mubr.msk.bf16.mxu1 %vm22041_vm1, %v29034_v55  ;;  %v20807_v39 = vld [vmem:[%s29032_s26 + $0x4e4] ss:$12 sps:$4 sm:$0xff]  }
 0x698   :  { %19812 = vmatprep.subr.bf16.mxu1 %v29034_v55  ;;  %7359 = vmatprep.subr.bf16.mxu0 %v20807_v39 }
 0x699   :  { %7360 = vmatpush1.bf16.msra.mxu0 %v20805_v54 }
 0x69b   :  { %19813 = vmatpush3.bf16.msra.mxu1 %v24697_v38  ;;  %v20810_v38 = vld [vmem:[%s29032_s26 + $0x4cc] ss:$12 sps:$4 sm:$0xff]  }
 0x69c   :  { %19814 = vmatprep.subr.bf16.mxu1 %v29034_v55  ;;  %7361 = vmatprep.subr.bf16.mxu0 %v20810_v38  ;;  %v20857_v38 = vld [vmem:[%s29032_s26 + $0x64c] ss:$12 sps:$4 sm:$0xff]  }
 0x69d   :  { %7362 = vmatpush1.bf16.msra.mxu0 %v20808_v9 }
 0x69e   :  { %19803 = vmatmul.mubr.msk.bf16.gmra.mxu1 %vm5812_vm5, %v25160_v56  ;;  %v20811_v56 = vld [vmem:[%s29032_s26 + $0x4b0] ss:$12 sps:$4 sm:$0xff]  }
 0x69f   :  { %19815 = vmatpush3.bf16.msra.mxu1 %v24679_v23  ;;  %19806 = vmatprep.mubr.msk.bf16.mxu1 %vm22041_vm1, %v29034_v55  ;;  %v20813_v23 = vld [vmem:[%s29032_s26 + $0x4b4] ss:$12 sps:$4 sm:$0xff]  }
 0x6a0   :  { %19816 = vmatprep.subr.bf16.mxu1 %v29034_v55  ;;  %7363 = vmatprep.subr.bf16.mxu0 %v20813_v23 }
 0x6a1   :  { %7364 = vmatpush1.bf16.msra.mxu0 %v20811_v56  ;;  %v20855_v56 = vld [vmem:[%s29032_s26 + $0x648] ss:$12 sps:$4 sm:$0xff]  }
 0x6a2   :  { %7365 = vmatprep.subr.bf16.mxu0 %v20816_v46 }
 0x6a3   :  { %19817 = vmatpush3.bf16.msra.mxu1 %v24661_v44 }
 0x6a4   :  { %19818 = vmatprep.subr.bf16.mxu1 %v29034_v55 }
 0x6a5   :  { %7366 = vmatpush1.bf16.msra.mxu0 %v20814_v28 }
 0x6a6   :  { %19807 = vmatmul.mubr.msk.bf16.gmra.mxu1 %vm5812_vm5, %v25190_v22 }
 0x6a7   :  { %19819 = vmatpush3.bf16.msra.mxu1 %v24643_v1  ;;  %19822 = vmatprep.mubr.msk.bf16.mxu1 %vm22041_vm1, %v29034_v55  ;;  %v25418_v44 = vpop.f32.mrf.mxu0  ;;  %v20819_v1 = vld [vmem:[%s29032_s26 + $0x484] ss:$12 sps:$4 sm:$0xff]  }
 0x6a8   :  { %19820 = vmatprep.subr.bf16.mxu1 %v29034_v55  ;;  %7367 = vmatprep.subr.bf16.mxu0 %v20819_v1  ;;  %v20861_v1 = vld [vmem:[%s29032_s26 + $0x634] ss:$12 sps:$4 sm:$0xff]  }
 0x6a9   :  { %v25427_v22 = vpop.f32.mrf.mxu0  ;;  %7368 = vmatpush1.bf16.msra.mxu0 %v20817_v3 }
 0x6ab   :  { %19821 = vmatpush3.bf16.msra.mxu1 %v24630_v43  ;;  %v25438_v5 = vpop.f32.mrf.mxu0  ;;  %v20822_v43 = vld [vmem:[%s29032_s26 + $0x46c] ss:$12 sps:$4 sm:$0xff]  }
 0x6ac   :  { %7369 = vmatprep.subr.bf16.mxu0 %v20822_v43  ;;  %17341 = vmatprep.subr.msk.bf16.mxu1 %vm5822_vm4, %v17339_v7  ;;  %v20859_v43 = vld [vmem:[%s29032_s26 + $0x630] ss:$12 sps:$4 sm:$0xff]  }
 0x6ad   :  { %v25448_v26 = vpop.f32.mrf.mxu0  ;;  %7370 = vmatpush1.bf16.msra.mxu0 %v20820_v47 }
 0x6ae   :  { %19823 = vmatmul.mubr.msk.bf16.vlgmr.msra.gmra.mxu1 %vm4938_vm3, %v25301_v58  ;;  %7371 = vmatprep.subr.bf16.mxu0 %v20825_v20 }
 0x6af   :  { %19826 = vmatprep.mubr.msk.bf16.mxu1 %vm22041_vm1, %v29034_v55  ;;  %v25458_v36 = vpop.f32.mrf.mxu0  ;;  %7419 = vmatpush1.bf16.msra.mxu1 %v7347_v34 }
 0x6b1   :  { %7372 = vmatpush2.bf16.msra.mxu0 %v20823_v63  ;;  %v25468_v8 = vpop.f32.mrf.mxu0 }
 0x6b2   :  { %7373 = vmatprep.subr.bf16.mxu0 %v20828_v30 }
 0x6b3   :  { %v25478_v62 = vpop.f32.mrf.mxu0 }
 0x6b5   :  { %7374 = vmatpush2.bf16.msra.mxu0 %v20826_v14  ;;  %v25487_v31 = vpop.f32.mrf.mxu0 }
 0x6b6   :  { %19827 = vmatmul.mubr.msk.bf16.gmra.mxu1 %vm4938_vm3, %v25321_v60  ;;  %7375 = vmatprep.subr.bf16.mxu0 %v20831_v0  ;;  %v20848_v60 = vld [vmem:[%s29032_s26 + $0x67c] ss:$12 sps:$4 sm:$0xff]  }
 0x6b7   :  { %19830 = vmatprep.mubr.msk.bf16.mxu1 %vm22041_vm1, %v29034_v55  ;;  %v25495_v15 = vpop.f32.mrf.mxu0  ;;  %7420 = vmatprep.subr.bf16.mxu1 %v20848_v60 }
 0x6b9   :  { %7376 = vmatpush2.bf16.msra.mxu0 %v20829_v17  ;;  %v25503_v13 = vpop.f32.mrf.mxu0 }
 0x6ba   :  { %7377 = vmatprep.subr.bf16.mxu0 %v20834_v2 }
 0x6bb   :  { %v25511_v37 = vpop.f32.mrf.mxu0 }
 0x6bd   :  { %7378 = vmatpush2.bf16.msra.mxu0 %v20832_v50  ;;  %v25522_v58 = vpop.f32.mrf.mxu0  ;;  %v20869_v50 = vld [vmem:[%s29032_s26 + $0x604] ss:$12 sps:$4 sm:$0xff]  }
 0x6be   :  { %19831 = vmatmul.mubr.msk.bf16.gmra.mxu1 %vm4938_vm3, %v25338_v19  ;;  %7379 = vmatprep.subr.bf16.mxu0 %v20837_v21  ;;  %v20846_v19 = vld [vmem:[%s29032_s26 + $0x678] ss:$12 sps:$4 sm:$0xff]  }
 0x6bf   :  { %7450 = vmatprep.mubr.bf16.mxu1 %v29027_v10  ;;  %7421 = vmatpush1.bf16.msra.mxu1 %v20846_v19 }
 0x6c0   :  { %7422 = vmatprep.subr.bf16.mxu1 %v20854_v32 }
 0x6c1   :  { %7380 = vmatpush2.bf16.msra.mxu0 %v20835_v33  ;;  %v20867_v33 = vld [vmem:[%s29032_s26 + $0x600] ss:$12 sps:$4 sm:$0xff]  }
 0x6c2   :  { %7381 = vmatprep.subr.bf16.mxu0 %v20840_v27  ;;  %v20871_v27 = vld [vmem:[%s29032_s26 + $0x5e8] ss:$12 sps:$4 sm:$0xff]  }
 0x6c3   :  { %7423 = vmatpush1.bf16.msra.mxu1 %v20852_v57 }
 0x6c4   :  { %7424 = vmatprep.subr.bf16.mxu1 %v20857_v38 }
 0x6c5   :  { %7382 = vmatpush2.bf16.msra.mxu0 %v20838_v53  ;;  %v20875_v53 = vld [vmem:[%s29032_s26 + $0x5d8] ss:$12 sps:$4 sm:$0xff]  }
 0x6c6   :  { %7383 = vmatprep.subr.bf16.mxu0 %v20845_v61 }
 0x6c7   :  { %7425 = vmatpush1.bf16.msra.mxu1 %v20855_v56 }
 0x6c8   :  { %7426 = vmatprep.subr.bf16.mxu1 %v20861_v1 }
 0x6c9   :  { %7384 = vmatpush2.bf16.msra.mxu0 %v20843_v41 }
 0x6ca   :  { %7385 = vmatprep.subr.bf16.mxu0 %v20851_v49 }
 0x6cb   :  { %7427 = vmatpush1.bf16.msra.mxu1 %v20859_v43 }
 0x6cd   :  { %7386 = vmatpush2.bf16.msra.mxu0 %v20849_v12 }
 0x6ce   :  { %19834 = vmatprep.subr.bf16.mxu0 %v29034_v55 }
 0x6d6   :  { %v5929_v29 = vpop.f32.mrf.mxu1  ;;  %v25527_v52 = vpop.f32.mrf.mxu0 }
 0x6d7   :  { %v25530_v42 = vadd.f32 %v5929_v29, %v25418_v44 }
 0x6d8   :  { %v5931_v16 = vpop.f32.mrf.mxu1  ;;  %v19772_v11 = vpop.f32.mrf.mxu0 }
 0x6d9   :  { %v25539_v48 = vadd.f32 %v5931_v16, %v25427_v22 }
 0x6da   :  { %v5933_v4 = vpop.f32.mrf.mxu1  ;;  %v25541_v40 = vpop.f32.mrf.mxu0 }
 0x6db   :  { %v25544_v6 = vadd.f32 %v5933_v4, %v25438_v5 }
 0x6dc   :  { %v25549_v51 = vpop.f32.mrf.mxu1  ;;  %v19773_v18 = vpop.f32.mrf.mxu0 }
 0x6de   :  { %v5939_v59 = vpop.f32.mrf.mxu1  ;;  %v25554_v39 = vpop.f32.mrf.mxu0 }
 0x6df   :  { %v25557_v54 = vadd.f32 %v5939_v59, %v25458_v36  ;;  %v20865_v36 = vld [vmem:[%s29032_s26 + $0x61c] ss:$12 sps:$4 sm:$0xff]  }
 0x6e0   :  { %v5941_v9 = vpop.f32.mrf.mxu1  ;;  %v19776_v23 = vpop.f32.mrf.mxu0  ;;  %7428 = vmatprep.subr.bf16.mxu1 %v20865_v36 }
 0x6e1   :  { %v25566_v44 = vadd.f32 %v5941_v9, %v25468_v8  ;;  %v20863_v8 = vld [vmem:[%s29032_s26 + $0x618] ss:$12 sps:$4 sm:$0xff]  }
 0x6e2   :  { %v5943_v46 = vpop.f32.mrf.mxu1  ;;  %v6060_v28 = vpop.f32.mrf.mxu0  ;;  %7429 = vmatpush1.bf16.msra.mxu1 %v20863_v8 }
 0x6e3   :  { %v25569_v22 = vadd.f32 %v5943_v46, %v25478_v62  ;;  %7430 = vmatprep.subr.bf16.mxu1 %v20869_v50 }
 0x6e4   :  { %v25574_v3 = vpop.f32.mrf.mxu1  ;;  %v19777_v5 = vpop.f32.mrf.mxu0 }
 0x6e6   :  { %v5949_v47 = vpop.f32.mrf.mxu1  ;;  %v6065_v20 = vpop.f32.mrf.mxu0  ;;  %7431 = vmatpush1.bf16.msra.mxu1 %v20867_v33 }
 0x6e7   :  { %v25580_v63 = vadd.f32 %v5949_v47, %v25495_v15  ;;  %v20873_v15 = vld [vmem:[%s29032_s26 + $0x5ec] ss:$12 sps:$4 sm:$0xff]  }
 0x6e8   :  { %v5951_v30 = vpop.f32.mrf.mxu1  ;;  %v19780_v14 = vpop.f32.mrf.mxu0  ;;  %7432 = vmatprep.subr.bf16.mxu1 %v20873_v15 }
 0x6e9   :  { %v25589_v0 = vadd.f32 %v5951_v30, %v25503_v13 }
 0x6ea   :  { %v5953_v17 = vpop.f32.mrf.mxu1  ;;  %v6068_v62 = vpop.f32.mrf.mxu0  ;;  %7433 = vmatpush1.bf16.msra.mxu1 %v20871_v27 }
 0x6eb   :  { %v25592_v2 = vadd.f32 %v5953_v17, %v25511_v37  ;;  %19212 = vmatprep.subr.bf16.mxu1 %v20875_v53 }
 0x6ec   :  { %v19781_v21 = vpop.f32.mrf.mxu0  ;;  %v25609_v13 = vpop.f32.mrf.mxu1 }
 0x6f6   :  { %v19129_v61 = vpop.f32.mrf.mxu1  ;;  %v25611_v41 = vpop.f32.mrf.mxu0 }
 0x6f8   :  { %v19130_v37 = vpop.f32.mrf.mxu1  ;;  %v25613_v25 = vpop.f32.mrf.mxu0 }
 0x6f9   :  { %v19131_v7 = vadd.f32 %v19130_v37, %v19129_v61 }
 0x6fa   :  { %v19132_v24 = vpop.f32.mrf.mxu1  ;;  %v25615_v49 = vpop.f32.mrf.mxu0 }
 0x6fb   :  { %v6050_v12 = vadd.f32 %v19131_v7, %v25527_v52 }
 0x6fc   :  { %v19133_v34 = vpop.f32.mrf.mxu1  ;;  %v25618_v29 = vpop.f32.mrf.mxu0 }
 0x6fd   :  { %v19134_v60 = vadd.f32 %v19133_v34, %v19132_v24 }
 0x6fe   :  { %v19135_v16 = vpop.f32.mrf.mxu1  ;;  %v25620_v11 = vpop.f32.mrf.mxu0 }
 0x6ff   :  { %v6053_v19 = vadd.f32 %v19134_v60, %v25541_v40 }
 0x700   :  { %v19136_v4 = vpop.f32.mrf.mxu1  ;;  %v25623_v32 = vpop.f32.mrf.mxu0 }
 0x701   :  { %v19137_v18 = vadd.f32 %v19136_v4, %v19135_v16 }
 0x702   :  { %v19138_v57 = vpop.f32.mrf.mxu1  ;;  %v25625_v59 = vpop.f32.mrf.mxu0 }
 0x703   :  { %v6058_v38 = vadd.f32 %v19137_v18, %v25554_v39 }
 0x704   :  { %v19139_v9 = vpop.f32.mrf.mxu1  ;;  %v25628_v23 = vpop.f32.mrf.mxu0 }
 0x705   :  { %v19140_v52 = vadd.f32 %v19139_v9, %v19138_v57 }
 0x706   :  { %v19141_v56 = vpop.f32.mrf.mxu1  ;;  %v25630_v5 = vpop.f32.mrf.mxu0 }
 0x707   :  { %v6061_v46 = vadd.f32 %v19140_v52, %v6060_v28 }
 0x708   :  { %v19142_v1 = vpop.f32.mrf.mxu1  ;;  %v25632_v30 = vpop.f32.mrf.mxu0 }
 0x709   :  { %v19143_v43 = vadd.f32 %v19142_v1, %v19141_v56 }
 0x70a   :  { %v19144_v40 = vpop.f32.mrf.mxu1  ;;  %v25634_v17 = vpop.f32.mrf.mxu0 }
 0x70b   :  { %v6066_v47 = vadd.f32 %v19143_v43, %v6065_v20 }
 0x70c   :  { %v19145_v36 = vpop.f32.mrf.mxu1  ;;  %v25636_v39 = vpop.f32.mrf.mxu0 }
 0x70d   :  { %v19146_v14 = vadd.f32 %v19145_v36, %v19144_v40 }
 0x70f   :  { %v6069_v8 = vadd.f32 %v19146_v14, %v6068_v62 }
 0x717   :  { %v19174_v50 = vpop.f32.mrf.mxu0 }
 0x719   :  { %v19175_v21 = vpop.f32.mrf.mxu0 }
 0x71a   :  { %v19176_v33 = vadd.f32 %v19175_v21, %v19174_v50 }
 0x71b   :  { %v19177_v15 = vpop.f32.mrf.mxu0 }
 0x71c   :  { %v25638_v28 = vadd.f32 %v19176_v33, %v6050_v12 }
 0x71d   :  { %v19178_v27 = vpop.f32.mrf.mxu0 }
 0x71e   :  { %v19179_v53 = vadd.f32 %v19178_v27, %v19177_v15 }
 0x71f   :  { %v19180_v61 = vpop.f32.mrf.mxu0 }
 0x720   :  { %v25640_v37 = vadd.f32 %v19179_v53, %v6053_v19  ;;  %v20862_v53 = vld [vmem:[%s29032_s26 + $0x680] ss:$12 sps:$4 sm:$0xff]  }
 0x721   :  { %v19181_v20 = vpop.f32.mrf.mxu0 }
 0x722   :  { %v19182_v7 = vadd.f32 %v19181_v20, %v19180_v61 }
 0x723   :  { %v19183_v24 = vpop.f32.mrf.mxu0 }
 0x724   :  { %v25642_v34 = vadd.f32 %v19182_v7, %v6058_v38  ;;  %v20858_v38 = vld [vmem:[%s29032_s26 + $0x698] ss:$0 sps:$4 sm:$0xff]  }
 0x725   :  { %v19184_v62 = vpop.f32.mrf.mxu0  ;;  %v7353_v21 = vsel %vm5822_vm4, %v20858_v38, 0  ;;  %v20874_v38 = vld [vmem:[%s29032_s26 + $0x638] ss:$12 sps:$4 sm:$0xff]  }
 0x726   :  { %v19185_v60 = vadd.f32 %v19184_v62, %v19183_v24 }
 0x727   :  { %v19186_v16 = vpop.f32.mrf.mxu0 }
 0x728   :  { %v25644_v4 = vadd.f32 %v19185_v60, %v6061_v46 }
 0x729   :  { %v19187_v18 = vpop.f32.mrf.mxu0 }
 0x72a   :  { %v19188_v57 = vadd.f32 %v19187_v18, %v19186_v16 }
 0x72b   :  { %v19189_v9 = vpop.f32.mrf.mxu0 }
 0x72c   :  { %v25646_v12 = vadd.f32 %v19188_v57, %v6066_v47 }
 0x72d   :  { %v19190_v52 = vpop.f32.mrf.mxu0 }
 0x72e   :  { %v19191_v56 = vadd.f32 %v19190_v52, %v19189_v9 }
 0x72f   :  { %v6771_v1 = vpop.f32.mrf.mxu0 }
 0x730   :  { %v25648_v19 = vadd.f32 %v19191_v56, %v6069_v8 }
 0x731   :  { %v6773_v43 = vpop.f32.mrf.mxu0 }
 0x733   :  { %v6775_v40 = vpop.f32.mrf.mxu0 }
 0x734   :  { %v25653_v36 = vpack.c.bf16 %v6775_v40, %v6771_v1 }
 0x735   :  { %v6777_v46 = vpop.f32.mrf.mxu0 }
 0x736   :  { %v6500_v14 = vpop.f32.mrf.mxu1  ;;  %v25655_v50 = vpack.c.bf16 %v6777_v46, %v6773_v43 }
 0x737   :  { %v25658_v47 = vadd.f32 %v6500_v14, %v25530_v42 }
 0x738   :  { %v6502_v33 = vpop.f32.mrf.mxu1  ;;  %7387 = vmatprep.mubr.bf16.mxu0 %v25655_v50  ;;  %v6781_v8 = vpop.f32.mrf.mxu0 }
 0x739   :  { %v25663_v15 = vadd.f32 %v6502_v33, %v25539_v48  ;;  %7388 = vmatmul.mubr.bf16.vlgmr.msra.gmra.mxu0 %v25653_v36  ;;  %v20866_v48 = vld [vmem:[%s29032_s26 + $0x668] ss:$12 sps:$4 sm:$0xff]  }
 0x73a   :  { %v6504_v27 = vpop.f32.mrf.mxu1  ;;  %19835 = vmatpush3.bf16.msra.mxu0 %v7353_v21  ;;  %v6783_v61 = vpop.f32.mrf.mxu0 }
 0x73b   :  { %v25670_v42 = vadd.f32 %v6504_v27, %v25544_v6  ;;  %19836 = vmatprep.subr.bf16.mxu0 %v29034_v55 }
 0x73c   :  { %v25673_v20 = vpop.f32.mrf.mxu1  ;;  %v6785_v7 = vpop.f32.mrf.mxu0 }
 0x73d   :  { %v25682_v16 = vpack.c.bf16 %v6785_v7, %v6781_v8 }
 0x73e   :  { %v6510_v24 = vpop.f32.mrf.mxu1  ;;  %19837 = vmatpush3.bf16.msra.mxu0 %v20862_v53  ;;  %v6787_v62 = vpop.f32.mrf.mxu0  ;;  %v20876_v53 = vld [vmem:[%s29032_s26 + $0x620] ss:$12 sps:$4 sm:$0xff]  }
 0x73f   :  { %v25679_v60 = vadd.f32 %v6510_v24, %v25557_v54  ;;  %19838 = vmatprep.subr.bf16.mxu0 %v29034_v55  ;;  %v25684_v6 = vpack.c.bf16 %v6787_v62, %v6783_v61  ;;  %v20870_v54 = vld [vmem:[%s29032_s26 + $0x650] ss:$12 sps:$4 sm:$0xff]  }
 0x740   :  { %v6512_v18 = vpop.f32.mrf.mxu1  ;;  %v6791_v57 = vpop.f32.mrf.mxu0 }
 0x741   :  { %v25687_v9 = vadd.f32 %v6512_v18, %v25566_v44  ;;  %7397 = vmatprep.mubr.bf16.mxu0 %v25684_v6 }
 0x742   :  { %v6514_v52 = vpop.f32.mrf.mxu1  ;;  %19839 = vmatpush3.bf16.msra.mxu0 %v20866_v48  ;;  %v6793_v56 = vpop.f32.mrf.mxu0 }
 0x743   :  { %v25694_v1 = vadd.f32 %v6514_v52, %v25569_v22  ;;  %19840 = vmatprep.subr.bf16.mxu0 %v29034_v55  ;;  %7398 = vmatmul.mubr.bf16.gmra.mxu0 %v25682_v16 }
 0x744   :  { %v25698_v43 = vpop.f32.mrf.mxu1  ;;  %v6795_v44 = vpop.f32.mrf.mxu0 }
 0x745   :  { %v25707_v22 = vpack.c.bf16 %v6795_v44, %v6791_v57 }
 0x746   :  { %v6520_v40 = vpop.f32.mrf.mxu1  ;;  %19841 = vmatpush3.bf16.msra.mxu0 %v20870_v54  ;;  %v6797_v46 = vpop.f32.mrf.mxu0 }
 0x747   :  { %v25704_v14 = vadd.f32 %v6520_v40, %v25580_v63  ;;  %19842 = vmatprep.subr.bf16.mxu0 %v29034_v55  ;;  %v25709_v21 = vpack.c.bf16 %v6797_v46, %v6793_v56 }
 0x748   :  { %v6522_v33 = vpop.f32.mrf.mxu1 }
 0x749   :  { %v25712_v8 = vadd.f32 %v6522_v33, %v25589_v0  ;;  %7407 = vmatprep.mubr.bf16.mxu0 %v25709_v21  ;;  %v20879_v0 = vld [vmem:[%s29032_s26 + $0x608] ss:$12 sps:$4 sm:$0xff]  }
 0x74a   :  { %v6524_v27 = vpop.f32.mrf.mxu1  ;;  %19843 = vmatpush3.bf16.msra.mxu0 %v20874_v38 }
 0x74b   :  { %v25719_v63 = vadd.f32 %v6524_v27, %v25592_v2  ;;  %19844 = vmatprep.subr.bf16.mxu0 %v29034_v55  ;;  %7408 = vmatmul.mubr.bf16.gmra.mxu0 %v25707_v22  ;;  %v20882_v2 = vld [vmem:[%s29032_s26 + $0x5f0] ss:$12 sps:$4 sm:$0xff]  }
 0x74c   :  { %19850 = vmatprep.mubr.msk.bf16.mxu0 %vm22041_vm1, %v29034_v55  ;;  %v25733_v61 = vpop.f32.mrf.mxu1 }
 0x74e   :  { %19845 = vmatpush3.bf16.msra.mxu0 %v20876_v53 }
 0x74f   :  { %19846 = vmatprep.subr.bf16.mxu0 %v29034_v55 }
 0x752   :  { %19847 = vmatpush3.bf16.msra.mxu0 %v20879_v0 }
 0x753   :  { %19848 = vmatprep.subr.bf16.mxu0 %v29034_v55 }
 0x756   :  { %v6683_v7 = vpop.f32.mrf.mxu1  ;;  %19849 = vmatpush3.bf16.msra.mxu0 %v20882_v2 }
 0x757   :  { %v25736_v24 = vadd.f32 %v6683_v7, %v25638_v28  ;;  %v20877_v7 = vld [vmem:[%s29032_s26 + $0x518] ss:$12 sps:$4 sm:$0xff]  }
 0x758   :  { %v19800_v48 = vpop.f32.mrf.mxu1 }
 0x759   :  { %v20878_v48 = vld [vmem:[%s29032_s26 + $0x5c0] ss:$12 sps:$4 sm:$0xff]  }
 0x75a   :  { %v6686_v62 = vpop.f32.mrf.mxu1 }
 0x75b   :  { %v25739_v18 = vadd.f32 %v6686_v62, %v25640_v37  ;;  %v20880_v62 = vld [vmem:[%s29032_s26 + $0x500] ss:$12 sps:$4 sm:$0xff]  }
 0x75c   :  { %v19801_v57 = vpop.f32.mrf.mxu1 }
 0x75d   :  { %v20881_v57 = vld [vmem:[%s29032_s26 + $0x5a8] ss:$12 sps:$4 sm:$0xff]  }
 0x75e   :  { %v6691_v52 = vpop.f32.mrf.mxu1 }
 0x75f   :  { %v25742_v54 = vadd.f32 %v6691_v52, %v25642_v34 }
 0x760   :  { %v19804_v56 = vpop.f32.mrf.mxu1 }
 0x761   :  { %29035 = vst [vmem:[#allocation4_spill] sm:$0xff] %v25742_v54 }
 0x762   :  { %v6694_v44 = vpop.f32.mrf.mxu1 }
 0x763   :  { %v25745_v40 = vadd.f32 %v6694_v44, %v25644_v4  ;;  %v20883_v44 = vld [vmem:[%s29032_s26 + $0x4e8] ss:$12 sps:$4 sm:$0xff]  }
 0x764   :  { %v19805_v38 = vpop.f32.mrf.mxu1 }
 0x765   :  { %29036 = vst [vmem:[#allocation6_spill] sm:$0xff] %v25745_v40 }
 0x766   :  { %v6699_v46 = vpop.f32.mrf.mxu1 }
 0x767   :  { %v25748_v28 = vadd.f32 %v6699_v46, %v25646_v12  ;;  %v20884_v46 = vld [vmem:[%s29032_s26 + $0x590] ss:$12 sps:$4 sm:$0xff]  }
 0x768   :  { %v19808_v33 = vpop.f32.mrf.mxu1 }
 0x769   :  { %29037 = vst [vmem:[#allocation5_spill] sm:$0xff] %v25748_v28 }
 0x76a   :  { %v6702_v27 = vpop.f32.mrf.mxu1 }
 0x76b   :  { %v25751_v37 = vadd.f32 %v6702_v27, %v25648_v19 }
 0x76c   :  { %v19809_v53 = vpop.f32.mrf.mxu1 }
 0x76d   :  { %29038 = vst [vmem:[#allocation8_spill] sm:$0xff] %v25751_v37  ;;  %v20885_v53 = vld [vmem:[%s29032_s26 + $0x4d0] ss:$12 sps:$4 sm:$0xff]  }
 0x76e   :  { %v6834_v0 = vpop.f32.mrf.mxu1 }
 0x770   :  { %v19824_v2 = vpop.f32.mrf.mxu1 }
 0x772   :  { %v6837_v34 = vpop.f32.mrf.mxu1 }
 0x773   :  { %v6859_v4 = vpack.c.bf16 %v6837_v34, %v6834_v0  ;;  %v20886_v0 = vld [vmem:[%s29032_s26 + $0x578] ss:$12 sps:$4 sm:$0xff]  }
 0x774   :  { %v19825_v12 = vpop.f32.mrf.mxu1 }
 0x775   :  { %17342 = vmatmul.mubr.msk.bf16.vlgmr.msra.gmra.mxu1 %vm5812_vm5, %v6859_v4  ;;  %19851 = vmatmul.mubr.msk.bf16.vlgmr.msra.gmra.mxu0 %vm5812_vm5, %v6859_v4 }
 0x776   :  { %19213 = vmatpush3.bf16.msra.mxu1 %v20877_v7  ;;  %v6842_v19 = vpop.f32.mrf.mxu1  ;;  %7460 = vmatprep.mubr.bf16.mxu1 %v29027_v10  ;;  %v20887_v7 = vld [vmem:[%s29032_s26 + $0x4b8] ss:$12 sps:$4 sm:$0xff]  }
 0x777   :  { %19214 = vmatprep.subr.bf16.mxu1 %v20878_v48  ;;  %19854 = vmatprep.mubr.msk.bf16.mxu0 %vm22041_vm1, %v29034_v55  ;;  %v20888_v48 = vld [vmem:[%s29032_s26 + $0x560] ss:$12 sps:$4 sm:$0xff]  }
 0x778   :  { %v19828_v52 = vpop.f32.mrf.mxu1 }
 0x779   :  { %v20893_v52 = vld [vmem:[%s29032_s26 + $0x470] ss:$12 sps:$4 sm:$0xff]  }
 0x77a   :  { %19215 = vmatpush3.bf16.msra.mxu1 %v20880_v62  ;;  %v6845_v56 = vpop.f32.mrf.mxu1  ;;  %v20890_v62 = vld [vmem:[%s29032_s26 + $0x548] ss:$12 sps:$4 sm:$0xff]  }
 0x77b   :  { %v6862_v38 = vpack.c.bf16 %v6845_v56, %v6842_v19  ;;  %19216 = vmatprep.subr.bf16.mxu1 %v20881_v57  ;;  %v20889_v19 = vld [vmem:[%s29032_s26 + $0x4a0] ss:$12 sps:$4 sm:$0xff]   ;;  %v20891_v57 = vld [vmem:[%s29032_s26 + $0x488] ss:$12 sps:$4 sm:$0xff]  }
 0x77c   :  { %v19829_v33 = vpop.f32.mrf.mxu1 }
 0x77d   :  { %17343 = vmatmul.mubr.msk.bf16.gmra.mxu1 %vm5812_vm5, %v6862_v38  ;;  %19855 = vmatmul.mubr.msk.bf16.gmra.mxu0 %vm5812_vm5, %v6862_v38 }
 0x77e   :  { %19217 = vmatpush3.bf16.msra.mxu1 %v20883_v44  ;;  %v6850_v27 = vpop.f32.mrf.mxu1  ;;  %7470 = vmatprep.mubr.bf16.mxu1 %v29027_v10 }
 0x77f   :  { %19218 = vmatprep.subr.bf16.mxu1 %v20884_v46  ;;  %19858 = vmatprep.mubr.msk.bf16.mxu0 %vm22041_vm1, %v29034_v55  ;;  %v6568_v55 = vadd.f32 %v25615_v49, %v25670_v42 }
 0x780   :  { %v19832_v2 = vpop.f32.mrf.mxu1 }
 0x782   :  { %19219 = vmatpush3.bf16.msra.mxu1 %v20885_v53  ;;  %v6853_v34 = vpop.f32.mrf.mxu1 }
 0x783   :  { %v6865_v4 = vpack.c.bf16 %v6853_v34, %v6850_v27  ;;  %19220 = vmatprep.subr.bf16.mxu1 %v20886_v0 }
 0x784   :  { %v19833_v12 = vpop.f32.mrf.mxu1 }
 0x785   :  { %17344 = vmatmul.mubr.msk.bf16.gmra.mxu1 %vm5812_vm5, %v6865_v4  ;;  %19859 = vmatmul.mubr.msk.bf16.gmra.mxu0 %vm5812_vm5, %v6865_v4 }
 0x786   :  { %19221 = vmatpush3.bf16.msra.mxu1 %v20887_v7  ;;  %7513 = vmatprep.mubr.bf16.mxu1 %v25655_v50  ;;  %v20892_v50 = vld [vmem:[%s29032_s26 + $0x530] ss:$12 sps:$4 sm:$0xff]   ;;  %v6564_v7 = vadd.f32 %v25611_v41, %v25658_v47 }
 0x787   :  { %19222 = vmatprep.subr.bf16.mxu1 %v20888_v48  ;;  %7949 = vmatprep.mubr.bf16.mxu0 %v29027_v10  ;;  %v29039_v48 = vld [vmem:[#allocation44_spill] sm:$0xff] }
 0x78a   :  { %19223 = vmatpush3.bf16.msra.mxu1 %v20889_v19 }
 0x78b   :  { %19224 = vmatprep.subr.bf16.mxu1 %v20890_v62 }
 0x78e   :  { %19225 = vmatpush3.bf16.msra.mxu1 %v20891_v57 }
 0x78f   :  { %19226 = vmatprep.subr.bf16.mxu1 %v20892_v50 }
 0x792   :  { %19227 = vmatpush3.bf16.msra.mxu1 %v20893_v52 }
 0x795   :  { %7514 = vmatmul.mubr.bf16.vlgmr.msra.gmra.mxu1 %v25653_v36 }
 0x796   :  { %7521 = vmatprep.mubr.bf16.mxu1 %v25684_v6 }
 0x79d   :  { %7522 = vmatmul.mubr.bf16.gmra.mxu1 %v25682_v16 }
 0x79e   :  { %7529 = vmatprep.mubr.bf16.mxu1 %v25709_v21 }
 0x7a5   :  { %7530 = vmatmul.mubr.bf16.gmra.mxu1 %v25707_v22  ;;  %v25829_v22 = vld [vmem:[%s28892_s6] sm:$0x7] }
 0x7a6   :  { %7734 = vmatprep.mubr.bf16.mxu1 %v29027_v10  ;;  %v25837_v12 = vrot.slane %v25829_v22, %v29039_v48  ;;  %v6574_v48 = vadd.f32 %v25620_v11, %v25679_v60  ;;  %v6578_v11 = vadd.f32 %v25625_v59, %v25694_v1  ;;  %v6584_v59 = vadd.f32 %v25630_v5, %v25704_v14 }
 0x7a7   :  { %v6588_v14 = vadd.f32 %v25634_v17, %v25719_v63 }
 0x7f9   :  { %v7389_v56 = vpop.f32.mrf.mxu0 }
 0x7fb   :  { %v25818_v44 = vpop.f32.mrf.mxu0 }
 0x7fd   :  { %v7393_v38 = vpop.f32.mrf.mxu0 }
 0x7ff   :  { %v7395_v46 = vpop.f32.mrf.mxu0 }
 0x803   :  { %v7399_v33 = vpop.f32.mrf.mxu0 }
 0x805   :  { %v7401_v27 = vpop.f32.mrf.mxu0 }
 0x807   :  { %v7403_v53 = vpop.f32.mrf.mxu0 }
 0x809   :  { %v7405_v0 = vpop.f32.mrf.mxu0 }
 0x80b   :  { %v7409_v36 = vpop.f32.mrf.mxu0 }
 0x80d   :  { %v25820_v2 = vpop.f32.mrf.mxu0 }
 0x80f   :  { %v25822_v6 = vpop.f32.mrf.mxu0 }
 0x811   :  { %v25824_v16 = vpop.f32.mrf.mxu0 }
 0x835   :  { %v7452_v21 = vpop.f32.mrf.mxu1  ;;  %v25831_v34 = vpop.f32.mrf.mxu0 }
 0x836   :  { %v7453_v4 = vadd.f32 %v7452_v21, %v7389_v56 }
 0x837   :  { %v25839_v19 = vpop.f32.mrf.mxu1  ;;  %v19852_v62 = vpop.f32.mrf.mxu0 }
 0x838   :  { %v7595_v57 = vadd.f32 %v7453_v4, %v6564_v7  ;;  %v5936_v62 = vadd.f32 %v25549_v51, %v25448_v26  ;;  %v7455_v17 = vadd.f32 %v25839_v19, %v25818_v44 }
 0x839   :  { %v7456_v50 = vpop.f32.mrf.mxu1  ;;  %v25841_v52 = vpop.f32.mrf.mxu0 }
 0x83a   :  { %v7457_v37 = vadd.f32 %v7456_v50, %v7393_v38  ;;  %v7630_v28 = vadd.f32 %v25837_v12, %v7595_v57 }
 0x83b   :  { %v7458_v40 = vpop.f32.mrf.mxu1  ;;  %v19853_v41 = vpop.f32.mrf.mxu0 }
 0x83c   :  { %v7598_v47 = vadd.f32 %v7457_v37, %v6568_v55  ;;  %v7648_v54 = vmax.f32 %v7630_v28, 0.0  ;;  %v5946_v55 = vadd.f32 %v25574_v3, %v25487_v31  ;;  %v6507_v37 = vadd.f32 %v25673_v20, %v5936_v62 }
 0x83d   :  { %v7462_v56 = vpop.f32.mrf.mxu1  ;;  %v25846_v21 = vpop.f32.mrf.mxu0  ;;  %v5956_v31 = vadd.f32 %v25609_v13, %v25522_v58  ;;  %v7459_v20 = vadd.f32 %v7458_v40, %v7395_v46  ;;  %v6586_v46 = vadd.f32 %v25632_v30, %v25712_v8  ;;  %v7622_v8 = vrot.slane %v25829_v22, %v24546_v45 }
 0x83e   :  { %v7633_v7 = vadd.f32 %v25837_v12, %v7598_v47  ;;  %v7463_v4 = vadd.f32 %v7462_v56, %v7399_v33  ;;  %v6517_v26 = vadd.f32 %v25698_v43, %v5946_v55  ;;  %v6570_v3 = vadd.f32 %v25618_v29, %v6507_v37 }
 0x83f   :  { %v7464_v49 = vpop.f32.mrf.mxu1  ;;  %v19856_v42 = vpop.f32.mrf.mxu0  ;;  %v6527_v58 = vadd.f32 %v25733_v61, %v5956_v31 }
 0x840   :  { %v7651_v38 = vmax.f32 %v7633_v7, 0.0  ;;  %v7601_v57 = vadd.f32 %v7463_v4, %v6574_v48  ;;  %v7465_v56 = vadd.f32 %v7464_v49, %v7401_v27  ;;  %v6580_v62 = vadd.f32 %v25628_v23, %v6517_v26 }
 0x841   :  { %v7466_v50 = vpop.f32.mrf.mxu1  ;;  %v25856_v41 = vpop.f32.mrf.mxu0  ;;  %v6590_v30 = vadd.f32 %v25636_v39, %v6527_v58 }
 0x842   :  { %v25860_v60 = vpack.c.bf16 %v7651_v38, %v7648_v54  ;;  %v7467_v33 = vadd.f32 %v7466_v50, %v7403_v53  ;;  %v7636_v51 = vadd.f32 %v25837_v12, %v7601_v57  ;;  %v6576_v53 = vadd.f32 %v25623_v32, %v25687_v9 }
 0x843   :  { %v7468_v28 = vpop.f32.mrf.mxu1  ;;  %v19857_v48 = vpop.f32.mrf.mxu0  ;;  %v6566_v50 = vadd.f32 %v25613_v25, %v25663_v15 }
 0x844   :  { %v7604_v47 = vadd.f32 %v7467_v33, %v6578_v11  ;;  %v7469_v43 = vadd.f32 %v7468_v28, %v7405_v0  ;;  %v7654_v13 = vmax.f32 %v7636_v51, 0.0  ;;  %v7599_v0 = vadd.f32 %v7459_v20, %v6570_v3 }
 0x845   :  { %v7472_v7 = vpop.f32.mrf.mxu1  ;;  %v25867_v4 = vpop.f32.mrf.mxu0  ;;  %v7596_v28 = vadd.f32 %v7455_v17, %v6566_v50 }
 0x846   :  { %v7639_v1 = vadd.f32 %v25837_v12, %v7604_v47  ;;  %v7473_v54 = vadd.f32 %v7472_v7, %v7409_v36  ;;  %v7602_v36 = vadd.f32 %v7465_v56, %v6576_v53  ;;  %v7605_v61 = vadd.f32 %v7469_v43, %v6580_v62 }
 0x847   :  { %v7474_v29 = vpop.f32.mrf.mxu1  ;;  %v19860_v40 = vpop.f32.mrf.mxu0  ;;  %v7634_v11 = vadd.f32 %v7622_v8, %v7599_v0  ;;  %v7631_v7 = vadd.f32 %v7622_v8, %v7596_v28  ;;  %v20903_v0 = vld [vmem:[%s29040_s5 + $0x2bc] ss:$12 sps:$4 sm:$0xff]  }
 0x848   :  { %v7657_v27 = vmax.f32 %v7639_v1, 0.0  ;;  %v7607_v49 = vadd.f32 %v7473_v54, %v6584_v59  ;;  %v7475_v5 = vadd.f32 %v7474_v29, %v25820_v2  ;;  %v7640_v33 = vadd.f32 %v7622_v8, %v7605_v61 }
 0x849   :  { %v7476_v32 = vpop.f32.mrf.mxu1  ;;  %v25881_v9 = vpop.f32.mrf.mxu0  ;;  %v7652_v19 = vmax.f32 %v7634_v11, 0.0  ;;  %v7649_v43 = vmax.f32 %v7631_v7, 0.0 }
 0x84a   :  { %v25883_v23 = vpack.c.bf16 %v7657_v27, %v7654_v13  ;;  %v7608_v42 = vadd.f32 %v7475_v5, %v6586_v46  ;;  %v7477_v38 = vadd.f32 %v7476_v32, %v25822_v6  ;;  %v7642_v63 = vadd.f32 %v25837_v12, %v7607_v49  ;;  %v20900_v13 = vld [vmem:[%s29040_s5 + $0x2d4] ss:$12 sps:$4 sm:$0xff]  }
 0x84b   :  { %v7478_v2 = vpop.f32.mrf.mxu1  ;;  %v19861_v57 = vpop.f32.mrf.mxu0  ;;  %v7637_v6 = vadd.f32 %v7622_v8, %v7602_v36  ;;  %v25912_v58 = vpack.c.bf16 %v7652_v19, %v7649_v43  ;;  %v25922_v46 = vrot.slane %v25829_v22, %v24566_v35  ;;  %v20895_v49 = vld [vmem:[%s29041_s27] sm:$0xff]   ;;  %v20898_v22 = vld [vmem:[%s29040_s5 + $0x2d0] ss:$12 sps:$4 sm:$0xff]   ;;  %v20907_v19 = vld [vmem:[%s29040_s5 + $0x288] ss:$12 sps:$4 sm:$0xff]  }
 0x84c   :  { %v7610_v55 = vadd.f32 %v7477_v38, %v6588_v14  ;;  %v7479_v37 = vadd.f32 %v7478_v2, %v25824_v16  ;;  %v7643_v39 = vadd.f32 %v7622_v8, %v7608_v42  ;;  %v7660_v48 = vmax.f32 %v7642_v63, 0.0  ;;  %v29042_v57 = vld [vmem:[#allocation4_spill] sm:$0xff] }
 0x84d   :  { %v7655_v44 = vmax.f32 %v7637_v6, 0.0  ;;  %v7658_v16 = vmax.f32 %v7640_v33, 0.0  ;;  %v20904_v33 = vld [vmem:[%s29040_s5 + $0x2a0] ss:$12 sps:$4 sm:$0xff]  }
 0x84e   :  { %v7645_v26 = vadd.f32 %v25837_v12, %v7610_v55  ;;  %v7611_v51 = vadd.f32 %v7479_v37, %v6590_v30  ;;  %v7661_v3 = vmax.f32 %v7643_v39, 0.0  ;;  %v20901_v30 = vld [vmem:[%s29040_s5 + $0x2b8] ss:$12 sps:$4 sm:$0xff]   ;;  %v25962_v55 = vld [vmem:[%s29041_s27 + $0x8] ss:$0 sps:$4 sm:$0x77]  }
 0x84f   :  { %v25905_v12 = vpack.c.bf16 %v7658_v16, %v7655_v44  ;;  %v25967_v37 = vld [vmem:[%s29041_s27 + $0x14] ss:$0 sps:$4 sm:$0x77]  }
 0x850   :  { %v7663_v47 = vmax.f32 %v7645_v26, 0.0  ;;  %v7646_v31 = vadd.f32 %v7622_v8, %v7611_v51  ;;  %v29043_v51 = vld [vmem:[#allocation6_spill] sm:$0xff] }
 0x852   :  { %v7664_v20 = vmax.f32 %v7646_v31, 0.0  ;;  %v7672_v56 = vpack.c.bf16 %v7663_v47, %v7660_v48  ;;  %v20909_v47 = vld [vmem:[%s29040_s5 + $0x28c] ss:$12 sps:$4 sm:$0xff]  }
 0x854   :  { %v25896_v59 = vpack.c.bf16 %v7664_v20, %v7661_v3  ;;  %v25899_v25 = vsel %vm4948_vm2, %v7672_v56, 0  ;;  %v20912_v20 = vld [vmem:[%s29040_s5 + $0x274] ss:$12 sps:$4 sm:$0xff]  }
 0x855   :  { %v19228_v15 = vpop.f32.mrf.mxu1 }
 0x856   :  { %17350 = vmatprep.subr.msk.bf16.mxu1 %vm4948_vm2, %v25896_v59  ;;  %17360 = vmatprep.subr.msk.bf16.mxu0 %vm4948_vm2, %v25896_v59 }
 0x857   :  { %v19229_v1 = vpop.f32.mrf.mxu1  ;;  %7713 = vmatpush1.bf16.msra.mxu1 %v25899_v25  ;;  %7928 = vmatpush1.bf16.msra.mxu0 %v25899_v25 }
 0x858   :  { %v19230_v54 = vadd.f32 %v19229_v1, %v19228_v15  ;;  %7714 = vmatprep.subr.bf16.mxu1 %v25905_v12  ;;  %7929 = vmatprep.subr.bf16.mxu0 %v25905_v12 }
 0x859   :  { %v19231_v53 = vpop.f32.mrf.mxu1 }
 0x85a   :  { %v7573_v62 = vadd.f32 %v19230_v54, %v25831_v34  ;;  %v25929_v34 = vld [vmem:[%s29041_s27 + $0xc] sm:$0xff]  }
 0x85b   :  { %v19232_v29 = vpop.f32.mrf.mxu1  ;;  %7715 = vmatpush1.bf16.msra.mxu1 %v25883_v23  ;;  %7930 = vmatpush1.bf16.msra.mxu0 %v25883_v23  ;;  %v20910_v54 = vld [vmem:[%s29040_s5 + $0x270] ss:$12 sps:$4 sm:$0xff]  }
 0x85c   :  { %v7597_v40 = vadd.f32 %v7573_v62, %v25736_v24  ;;  %v19233_v27 = vadd.f32 %v19232_v29, %v19231_v53  ;;  %7716 = vmatprep.subr.bf16.mxu1 %v25912_v58  ;;  %7931 = vmatprep.subr.bf16.mxu0 %v25912_v58  ;;  %v29045_v62 = vld [vmem:[#allocation8_spill] sm:$0xff]  ;;  %v20915_v29 = vld [vmem:[%s29040_s5 + $0x25c] ss:$12 sps:$4 sm:$0xff]  }
 0x85d   :  { %v19234_v5 = vpop.f32.mrf.mxu1 }
 0x85e   :  { %v7576_v24 = vadd.f32 %v19233_v27, %v25841_v52  ;;  %v7632_v36 = vadd.f32 %v25922_v46, %v7597_v40  ;;  %v20918_v27 = vld [vmem:[%s29040_s5 + $0x244] ss:$12 sps:$4 sm:$0xff]  }
 0x85f   :  { %v19235_v14 = vpop.f32.mrf.mxu1  ;;  %7717 = vmatpush1.bf16.msra.mxu1 %v25860_v60  ;;  %7932 = vmatpush1.bf16.msra.mxu0 %v25860_v60 }
 0x860   :  { %v7600_v32 = vadd.f32 %v7576_v24, %v25739_v18  ;;  %v19236_v61 = vadd.f32 %v19235_v14, %v19234_v5  ;;  %8490 = vmatprep.subr.bf16.mxu0 %v20900_v13  ;;  %v20906_v18 = vld [vmem:[%s29040_s5 + $0x2a4] ss:$12 sps:$4 sm:$0xff]   ;;  %v7650_v2 = vmax.f32 %v7632_v36, 0.0  ;;  %v20921_v14 = vld [vmem:[%s29040_s5 + $0x22c] ss:$12 sps:$4 sm:$0xff]  }
 0x861   :  { %v19237_v52 = vpop.f32.mrf.mxu1  ;;  %v20924_v36 = vld [vmem:[%s29040_s5 + $0x394] ss:$12 sps:$4 sm:$0xff]  }
 0x862   :  { %v7635_v42 = vadd.f32 %v25922_v46, %v7600_v32  ;;  %v7581_v38 = vadd.f32 %v19236_v61, %v25846_v21  ;;  %17361 = vmatmul.mubr.msk.bf16.vlgmr.msra.gmra.mxu0 %vm7686_vm6, %v25929_v34  ;;  %17351 = vmatmul.mubr.msk.bf16.vlgmr.msra.gmra.mxu1 %vm7686_vm6, %v20895_v49  ;;  %v20922_v32 = vld [vmem:[%s29040_s5 + $0x390] ss:$12 sps:$4 sm:$0xff]  }
 0x863   :  { %v19238_v8 = vpop.f32.mrf.mxu1  ;;  %7744 = vmatprep.mubr.bf16.mxu1 %v29027_v10  ;;  %7959 = vmatprep.mubr.bf16.mxu0 %v29027_v10  ;;  %v20927_v61 = vld [vmem:[%s29040_s5 + $0x37c] ss:$12 sps:$4 sm:$0xff]  }
 0x864   :  { %v7653_v21 = vmax.f32 %v7635_v42, 0.0  ;;  %v7603_v17 = vadd.f32 %v7581_v38, %v29042_v57  ;;  %v19239_v63 = vadd.f32 %v19238_v8, %v19237_v52  ;;  %8491 = vmatpush1.bf16.msra.mxu0 %v20898_v22  ;;  %v20916_v22 = vld [vmem:[%s29040_s5 + $0x240] ss:$12 sps:$4 sm:$0xff]   ;;  %v20925_v52 = vld [vmem:[%s29040_s5 + $0x378] ss:$12 sps:$4 sm:$0xff]  }
 0x865   :  { %v19240_v50 = vpop.f32.mrf.mxu1  ;;  %8492 = vmatprep.subr.bf16.mxu0 %v20903_v0  ;;  %v20919_v0 = vld [vmem:[%s29040_s5 + $0x228] ss:$12 sps:$4 sm:$0xff]   ;;  %v20930_v42 = vld [vmem:[%s29040_s5 + $0x364] ss:$12 sps:$4 sm:$0xff]   ;;  %v20928_v38 = vld [vmem:[%s29040_s5 + $0x360] ss:$12 sps:$4 sm:$0xff]  }
 0x866   :  { %v25969_v11 = vpack.c.bf16 %v7653_v21, %v7650_v2  ;;  %v7584_v6 = vadd.f32 %v19239_v63, %v25856_v41  ;;  %v7638_v26 = vadd.f32 %v25922_v46, %v7603_v17  ;;  %v20936_v8 = vld [vmem:[%s29040_s5 + $0x334] ss:$12 sps:$4 sm:$0xff]   ;;  %v20939_v2 = vld [vmem:[%s29040_s5 + $0x31c] ss:$12 sps:$4 sm:$0xff]   ;;  %v20937_v21 = vld [vmem:[%s29040_s5 + $0x318] ss:$12 sps:$4 sm:$0xff]  }
 0x867   :  { %v19241_v39 = vpop.f32.mrf.mxu1  ;;  %v20940_v57 = vld [vmem:[%s29040_s5 + $0x300] ss:$12 sps:$4 sm:$0xff]   ;;  %v20942_v17 = vld [vmem:[%s29040_s5 + $0x304] ss:$12 sps:$4 sm:$0xff]   ;;  %v20943_v63 = vld [vmem:[%s29040_s5 + $0x2e8] ss:$12 sps:$4 sm:$0xff]  }
 0x868   :  { %v7606_v28 = vadd.f32 %v7584_v6, %v29043_v51  ;;  %v19242_v48 = vadd.f32 %v19241_v39, %v19240_v50  ;;  %8493 = vmatpush1.bf16.msra.mxu0 %v20901_v30  ;;  %v7656_v56 = vmax.f32 %v7638_v26, 0.0  ;;  %v20933_v30 = vld [vmem:[%s29040_s5 + $0x34c] ss:$12 sps:$4 sm:$0xff]   ;;  %v20948_v50 = vld [vmem:[%s29040_s5 + $0x43c] ss:$12 sps:$4 sm:$0xff]  }
 0x869   :  { %v19243_v31 = vpop.f32.mrf.mxu1  ;;  %8494 = vmatprep.subr.bf16.mxu0 %v20906_v18  ;;  %v20934_v18 = vld [vmem:[%s29040_s5 + $0x330] ss:$12 sps:$4 sm:$0xff]   ;;  %v20949_v6 = vld [vmem:[%s29040_s5 + $0x440] ss:$12 sps:$4 sm:$0xff]   ;;  %v20954_v26 = vld [vmem:[%s29040_s5 + $0x408] ss:$12 sps:$4 sm:$0xff]  }
 0x86a   :  { %v7641_v44 = vadd.f32 %v25922_v46, %v7606_v28  ;;  %v7589_v41 = vadd.f32 %v19242_v48, %v25867_v4  ;;  %17352 = vmatmul.mubr.msk.bf16.gmra.mxu1 %vm7686_vm6, %v25962_v55  ;;  %17362 = vmatmul.mubr.msk.bf16.gmra.mxu0 %vm7686_vm6, %v25967_v37  ;;  %v29044_v4 = vld [vmem:[#allocation5_spill] sm:$0xff]  ;;  %v20952_v39 = vld [vmem:[%s29040_s5 + $0x424] ss:$12 sps:$4 sm:$0xff]   ;;  %v20960_v48 = vld [vmem:[%s29040_s5 + $0x3f4] ss:$12 sps:$4 sm:$0xff]  }
 0x86b   :  { %v19244_v3 = vpop.f32.mrf.mxu1  ;;  %19868 = vmatprep.mubr.msk.bf16.mxu1 %vm7686_vm6, %v20895_v49  ;;  %v20956_v51 = vld [vmem:[%s29040_s5 + $0x40c] ss:$12 sps:$4 sm:$0xff]   ;;  %v20958_v28 = vld [vmem:[%s29040_s5 + $0x3f0] ss:$12 sps:$4 sm:$0xff]  }
 0x86c   :  { %v7659_v16 = vmax.f32 %v7641_v44, 0.0  ;;  %v7609_v7 = vadd.f32 %v7589_v41, %v29044_v4  ;;  %v19245_v15 = vadd.f32 %v19244_v3, %v19243_v31  ;;  %8495 = vmatpush1.bf16.msra.mxu0 %v20904_v33  ;;  %v20950_v33 = vld [vmem:[%s29040_s5 + $0x420] ss:$12 sps:$4 sm:$0xff]   ;;  %v20964_v31 = vld [vmem:[%s29040_s5 + $0x3dc] ss:$12 sps:$4 sm:$0xff]  }
 0x86d   :  { %8496 = vmatprep.subr.bf16.mxu0 %v20909_v47  ;;  %v20962_v47 = vld [vmem:[%s29040_s5 + $0x3d8] ss:$12 sps:$4 sm:$0xff]   ;;  %v20966_v41 = vld [vmem:[%s29040_s5 + $0x3c0] ss:$12 sps:$4 sm:$0xff]   ;;  %v20970_v3 = vld [vmem:[%s29040_s5 + $0x3a8] ss:$12 sps:$4 sm:$0xff]  }
 0x86e   :  { %v25994_v1 = vpack.c.bf16 %v7659_v16, %v7656_v56  ;;  %v7592_v43 = vadd.f32 %v19245_v15, %v25881_v9  ;;  %v7644_v53 = vadd.f32 %v25922_v46, %v7609_v7  ;;  %v20913_v9 = vld [vmem:[%s29040_s5 + $0x258] ss:$12 sps:$4 sm:$0xff]  }
 0x86f   :  { %v20968_v44 = vld [vmem:[%s29040_s5 + $0x3c4] ss:$12 sps:$4 sm:$0xff]  }
 0x870   :  { %v7612_v13 = vadd.f32 %v7592_v43, %v29045_v62  ;;  %8497 = vmatpush1.bf16.msra.mxu0 %v20907_v19  ;;  %v7662_v49 = vmax.f32 %v7644_v53, 0.0  ;;  %v20972_v19 = vld [vmem:[%s29040_s5 + $0x3ac] ss:$12 sps:$4 sm:$0xff]  }
 0x871   :  { %8498 = vmatprep.subr.bf16.mxu0 %v20912_v20  ;;  %v20974_v20 = vld [vmem:[%s29040_s5 + $0x398] ss:$12 sps:$4 sm:$0xff]  }
 0x872   :  { %v7647_v40 = vadd.f32 %v25922_v46, %v7612_v13 }
 0x874   :  { %v7665_v5 = vmax.f32 %v7647_v40, 0.0  ;;  %8499 = vmatpush1.bf16.msra.mxu0 %v20910_v54 }
 0x875   :  { %8500 = vmatprep.subr.bf16.mxu0 %v20915_v29 }
 0x876   :  { %v26012_v24 = vpack.c.bf16 %v7665_v5, %v7662_v49 }
 0x878   :  { %20090 = vmatprep.subr.msk.bf16.mxu1 %vm4948_vm2, %v26012_v24  ;;  %v26018_v46 = vsel %vm4948_vm2, %v26012_v24, 0  ;;  %8501 = vmatpush1.bf16.msra.mxu0 %v20913_v9  ;;  %v20953_v9 = vld [vmem:[%s29040_s5 + $0x428] ss:$12 sps:$4 sm:$0xff]  }
 0x879   :  { %19863 = vmatpush3.bf16.msra.mxu1 %v26018_v46  ;;  %8502 = vmatprep.subr.bf16.mxu0 %v20918_v27 }
 0x87a   :  { %19864 = vmatprep.subr.bf16.mxu1 %v25994_v1 }
 0x87c   :  { %8503 = vmatpush1.bf16.msra.mxu0 %v20916_v22 }
 0x87d   :  { %19865 = vmatpush3.bf16.msra.mxu1 %v25994_v1  ;;  %8504 = vmatprep.subr.bf16.mxu0 %v20921_v14 }
 0x87e   :  { %19866 = vmatprep.subr.bf16.mxu1 %v25969_v11 }
 0x880   :  { %8505 = vmatpush1.bf16.msra.mxu0 %v20919_v0  ;;  %v20957_v0 = vld [vmem:[%s29040_s5 + $0x410] ss:$12 sps:$4 sm:$0xff]  }
 0x881   :  { %19867 = vmatpush3.bf16.msra.mxu1 %v25969_v11  ;;  %8506 = vmatprep.subr.bf16.mxu0 %v20924_v36 }
 0x882   :  { %20091 = vmatprep.subr.msk.bf16.mxu1 %vm4948_vm2, %v26012_v24 }
 0x884   :  { %19869 = vmatmul.mubr.msk.bf16.vlgmr.msra.gmra.mxu1 %vm7686_vm6, %v25962_v55  ;;  %8507 = vmatpush2.bf16.msra.mxu0 %v20922_v32  ;;  %v20945_v55 = vld [vmem:[%s29040_s5 + $0x2ec] ss:$12 sps:$4 sm:$0xff]  }
 0x885   :  { %19873 = vmatpush3.bf16.msra.mxu1 %v26018_v46  ;;  %19878 = vmatprep.mubr.msk.bf16.mxu1 %vm7686_vm6, %v25929_v34  ;;  %v20931_v34 = vld [vmem:[%s29040_s5 + $0x348] ss:$12 sps:$4 sm:$0xff]  }
 0x886   :  { %19874 = vmatprep.subr.bf16.mxu1 %v25994_v1  ;;  %8508 = vmatprep.subr.bf16.mxu0 %v20927_v61 }
 0x888   :  { %8509 = vmatpush2.bf16.msra.mxu0 %v20925_v52 }
 0x889   :  { %19875 = vmatpush3.bf16.msra.mxu1 %v25994_v1  ;;  %8510 = vmatprep.subr.bf16.mxu0 %v20930_v42  ;;  %v20961_v42 = vld [vmem:[%s29040_s5 + $0x3f8] ss:$12 sps:$4 sm:$0xff]  }
 0x88a   :  { %19876 = vmatprep.subr.bf16.mxu1 %v25969_v11 }
 0x88c   :  { %8511 = vmatpush2.bf16.msra.mxu0 %v20928_v38  ;;  %v20965_v38 = vld [vmem:[%s29040_s5 + $0x3e0] ss:$12 sps:$4 sm:$0xff]  }
 0x88d   :  { %19877 = vmatpush3.bf16.msra.mxu1 %v25969_v11  ;;  %8512 = vmatprep.subr.bf16.mxu0 %v20933_v30  ;;  %v20969_v30 = vld [vmem:[%s29040_s5 + $0x3c8] ss:$12 sps:$4 sm:$0xff]  }
 0x88e   :  { %8543 = vmatprep.subr.bf16.mxu1 %v20948_v50  ;;  %v20975_v50 = vld [vmem:[%s29040_s5 + $0x2d8] ss:$12 sps:$4 sm:$0xff]  }
 0x890   :  { %19879 = vmatmul.mubr.msk.bf16.vlgmr.msra.gmra.mxu1 %vm7686_vm6, %v25967_v37  ;;  %8513 = vmatpush2.bf16.msra.mxu0 %v20931_v34  ;;  %v20946_v37 = vld [vmem:[%s29040_s5 + $0x438] ss:$12 sps:$4 sm:$0xff]   ;;  %v20973_v34 = vld [vmem:[%s29040_s5 + $0x3b0] ss:$12 sps:$4 sm:$0xff]  }
 0x891   :  { %8514 = vmatprep.subr.bf16.mxu0 %v20936_v8  ;;  %8573 = vmatprep.mubr.bf16.mxu1 %v29027_v10  ;;  %v20978_v8 = vld [vmem:[%s29040_s5 + $0x214] ss:$12 sps:$4 sm:$0xff]  }
 0x892   :  { %8544 = vmatpush1.bf16.msra.mxu1 %v20946_v37 }
 0x893   :  { %8545 = vmatprep.subr.bf16.mxu1 %v20952_v39  ;;  %v20979_v39 = vld [vmem:[%s29040_s5 + $0x380] ss:$12 sps:$4 sm:$0xff]  }
 0x894   :  { %8515 = vmatpush2.bf16.msra.mxu0 %v20934_v18 }
 0x895   :  { %8516 = vmatprep.subr.bf16.mxu0 %v20939_v2 }
 0x896   :  { %8546 = vmatpush1.bf16.msra.mxu1 %v20950_v33  ;;  %v20976_v33 = vld [vmem:[%s29040_s5 + $0x210] ss:$12 sps:$4 sm:$0xff]  }
 0x897   :  { %8547 = vmatprep.subr.bf16.mxu1 %v20956_v51  ;;  %v20983_v51 = vld [vmem:[%s29040_s5 + $0x1fc] ss:$12 sps:$4 sm:$0xff]  }
 0x898   :  { %8517 = vmatpush2.bf16.msra.mxu0 %v20937_v21 }
 0x899   :  { %8518 = vmatprep.subr.bf16.mxu0 %v20942_v17 }
 0x89a   :  { %8548 = vmatpush1.bf16.msra.mxu1 %v20954_v26 }
 0x89b   :  { %8549 = vmatprep.subr.bf16.mxu1 %v20960_v48  ;;  %v20981_v48 = vld [vmem:[%s29040_s5 + $0x1f8] ss:$12 sps:$4 sm:$0xff]  }
 0x89c   :  { %8519 = vmatpush2.bf16.msra.mxu0 %v20940_v57 }
 0x89d   :  { %8520 = vmatprep.subr.bf16.mxu0 %v20945_v55 }
 0x89e   :  { %8550 = vmatpush1.bf16.msra.mxu1 %v20958_v28  ;;  %v20980_v28 = vld [vmem:[%s29040_s5 + $0x2c0] ss:$12 sps:$4 sm:$0xff]  }
 0x89f   :  { %8551 = vmatprep.subr.bf16.mxu1 %v20964_v31  ;;  %v20988_v31 = vld [vmem:[%s29040_s5 + $0x1e4] ss:$12 sps:$4 sm:$0xff]  }
 0x8a0   :  { %8521 = vmatpush2.bf16.msra.mxu0 %v20943_v63 }
 0x8a1   :  { %19882 = vmatprep.subr.bf16.mxu0 %v20949_v6 }
 0x8a2   :  { %8552 = vmatpush1.bf16.msra.mxu1 %v20962_v47  ;;  %v20984_v47 = vld [vmem:[%s29040_s5 + $0x368] ss:$12 sps:$4 sm:$0xff]  }
 0x8a3   :  { %8553 = vmatprep.subr.bf16.mxu1 %v20968_v44  ;;  %v20985_v44 = vld [vmem:[%s29040_s5 + $0x2a8] ss:$12 sps:$4 sm:$0xff]  }
 0x8a6   :  { %8554 = vmatpush1.bf16.msra.mxu1 %v20966_v41  ;;  %v20986_v41 = vld [vmem:[%s29040_s5 + $0x1e0] ss:$12 sps:$4 sm:$0xff]  }
 0x8a7   :  { %8555 = vmatprep.subr.bf16.mxu1 %v20972_v19  ;;  %v20989_v19 = vld [vmem:[%s29040_s5 + $0x350] ss:$12 sps:$4 sm:$0xff]  }
 0x8aa   :  { %8556 = vmatpush1.bf16.msra.mxu1 %v20970_v3  ;;  %v20993_v3 = vld [vmem:[%s29040_s5 + $0x1cc] ss:$12 sps:$4 sm:$0xff]  }
 0x8ab   :  { %19267 = vmatprep.subr.bf16.mxu1 %v20974_v20  ;;  %v20990_v20 = vld [vmem:[%s29040_s5 + $0x290] ss:$12 sps:$4 sm:$0xff]  }
 0x922   :  { %v7951_v56 = vpop.f32.mrf.mxu0  ;;  %v7736_v16 = vpop.f32.mrf.mxu1 }
 0x924   :  { %v7953_v4 = vpop.f32.mrf.mxu0  ;;  %v26144_v7 = vpop.f32.mrf.mxu1 }
 0x926   :  { %v7955_v15 = vpop.f32.mrf.mxu0  ;;  %v7740_v43 = vpop.f32.mrf.mxu1 }
 0x927   :  { %v26146_v54 = vpack.c.bf16 %v7740_v43, %v7736_v16  ;;  %v26148_v53 = vpack.c.bf16 %v7955_v15, %v7951_v56  ;;  %v20991_v56 = vld [vmem:[%s29040_s5 + $0x1c8] ss:$12 sps:$4 sm:$0xff]   ;;  %v20994_v16 = vld [vmem:[%s29040_s5 + $0x338] ss:$12 sps:$4 sm:$0xff]   ;;  %v20996_v43 = vld [vmem:[%s29040_s5 + $0x1b0] ss:$12 sps:$4 sm:$0xff]  }
 0x928   :  { %v7957_v62 = vpop.f32.mrf.mxu0  ;;  %v26150_v13 = vpop.f32.mrf.mxu1  ;;  %v20995_v15 = vld [vmem:[%s29040_s5 + $0x278] ss:$12 sps:$4 sm:$0xff]  }
 0x929   :  { %v26152_v29 = vpack.c.bf16 %v7957_v62, %v7953_v4  ;;  %v20998_v4 = vld [vmem:[%s29040_s5 + $0x1b4] ss:$12 sps:$4 sm:$0xff]  }
 0x92a   :  { %v26154_v40 = vpop.f32.mrf.mxu1  ;;  %v7961_v27 = vpop.f32.mrf.mxu0  ;;  %v20999_v62 = vld [vmem:[%s29040_s5 + $0x320] ss:$12 sps:$4 sm:$0xff]  }
 0x92b   :  { %8522 = vmatprep.mubr.bf16.mxu0 %v26152_v29  ;;  %v26169_v61 = vpack.c.bf16 %v7961_v27, %v7961_v27  ;;  %v21001_v27 = vld [vmem:[%s29040_s5 + $0x198] ss:$12 sps:$4 sm:$0xff]  }
 0x92c   :  { %8523 = vmatmul.mubr.bf16.vlgmr.msra.gmra.mxu0 %v26148_v53  ;;  %v26161_v49 = vpop.f32.mrf.mxu1  ;;  %v7963_v5 = vpop.f32.mrf.mxu0 }
 0x92d   :  { %19883 = vmatpush3.bf16.msra.mxu0 %v20949_v6  ;;  %v26163_v22 = vpack.c.bf16 %v7963_v5, %v7963_v5  ;;  %v21004_v5 = vld [vmem:[%s29040_s5 + $0x308] ss:$12 sps:$4 sm:$0xff]  }
 0x92e   :  { %19884 = vmatprep.subr.bf16.mxu0 %v20953_v9  ;;  %v7750_v14 = vpop.f32.mrf.mxu1  ;;  %v7965_v36 = vpop.f32.mrf.mxu0 }
 0x92f   :  { %8532 = vmatprep.mubr.bf16.mxu0 %v26163_v22  ;;  %v21008_v14 = vld [vmem:[%s29040_s5 + $0x184] ss:$12 sps:$4 sm:$0xff]   ;;  %v21006_v36 = vld [vmem:[%s29040_s5 + $0x180] ss:$12 sps:$4 sm:$0xff]  }
 0x930   :  { %v7751_v32 = vpop.f32.mrf.mxu1  ;;  %v7966_v52 = vpop.f32.mrf.mxu0 }
 0x931   :  { %19885 = vmatpush3.bf16.msra.mxu0 %v20953_v9  ;;  %v21000_v9 = vld [vmem:[%s29040_s5 + $0x260] ss:$12 sps:$4 sm:$0xff]   ;;  %v21009_v32 = vld [vmem:[%s29040_s5 + $0x2f0] ss:$12 sps:$4 sm:$0xff]  }
 0x932   :  { %19886 = vmatprep.subr.bf16.mxu0 %v20957_v0  ;;  %v21011_v52 = vld [vmem:[%s29040_s5 + $0x170] ss:$12 sps:$4 sm:$0xff]  }
 0x934   :  { %8533 = vmatmul.mubr.bf16.gmra.mxu0 %v26169_v61 }
 0x935   :  { %19887 = vmatpush3.bf16.msra.mxu0 %v20957_v0  ;;  %v21005_v0 = vld [vmem:[%s29040_s5 + $0x248] ss:$12 sps:$4 sm:$0xff]  }
 0x936   :  { %19888 = vmatprep.subr.bf16.mxu0 %v20961_v42 }
 0x939   :  { %19889 = vmatpush3.bf16.msra.mxu0 %v20961_v42  ;;  %v21010_v42 = vld [vmem:[%s29040_s5 + $0x230] ss:$12 sps:$4 sm:$0xff]  }
 0x93a   :  { %19890 = vmatprep.subr.bf16.mxu0 %v20965_v38 }
 0x93d   :  { %19891 = vmatpush3.bf16.msra.mxu0 %v20965_v38  ;;  %v21012_v38 = vld [vmem:[%s29040_s5 + $0xb0] ss:$12 sps:$4 sm:$0xff]  }
 0x93e   :  { %19892 = vmatprep.subr.bf16.mxu0 %v20969_v30 }
 0x941   :  { %19893 = vmatpush3.bf16.msra.mxu0 %v20969_v30  ;;  %v21015_v30 = vld [vmem:[%s29040_s5 + $0xac] ss:$12 sps:$4 sm:$0xff]  }
 0x942   :  { %19894 = vmatprep.subr.bf16.mxu0 %v20973_v34 }
 0x944   :  { %v26187_v18 = vpop.f32.mrf.mxu1 }
 0x945   :  { %19895 = vmatpush3.bf16.msra.mxu0 %v20973_v34 }
 0x946   :  { %v26189_v2 = vpop.f32.mrf.mxu1  ;;  %9115 = vmatprep.subr.bf16.mxu0 %v20978_v8  ;;  %v21016_v8 = vld [vmem:[%s29040_s5 + $0x158] ss:$12 sps:$4 sm:$0xff]  }
 0x948   :  { %v19871_v21 = vpop.f32.mrf.mxu1 }
 0x949   :  { %v21013_v21 = vld [vmem:[%s29040_s5 + $0xa8] ss:$12 sps:$4 sm:$0xff]  }
 0x94a   :  { %v26191_v57 = vpop.f32.mrf.mxu1 }
 0x94b   :  { %v26295_v34 = vpack.c.bf16 %v26191_v57, %v26189_v2  ;;  %v21017_v2 = vld [vmem:[%s29040_s5 + $0x98] ss:$12 sps:$4 sm:$0xff]   ;;  %v21020_v57 = vld [vmem:[%s29040_s5 + $0x94] ss:$12 sps:$4 sm:$0xff]  }
 0x950   :  { %v19880_v17 = vpop.f32.mrf.mxu1 }
 0x951   :  { %v8021_v26 = vpack.c.bf16 %v19880_v17, %v19880_v17  ;;  %v21021_v17 = vld [vmem:[%s29040_s5 + $0x140] ss:$12 sps:$4 sm:$0xff]  }
 0x952   :  { %v8002_v63 = vpop.f32.mrf.mxu1 }
 0x954   :  { %v19881_v55 = vpop.f32.mrf.mxu1 }
 0x955   :  { %v21022_v55 = vld [vmem:[%s29040_s5 + $0x80] ss:$12 sps:$4 sm:$0xff]  }
 0x956   :  { %v8005_v37 = vpop.f32.mrf.mxu1 }
 0x957   :  { %v8018_v6 = vpack.c.bf16 %v8005_v37, %v8002_v63  ;;  %v21018_v63 = vld [vmem:[%s29040_s5 + $0x90] ss:$12 sps:$4 sm:$0xff]   ;;  %v26325_v37 = vpack.c.bf16 %v26187_v18, %v26187_v18  ;;  %v21023_v18 = vld [vmem:[%s29040_s5 + $0x78] ss:$12 sps:$4 sm:$0xff]  }
 0x959   :  { %17526 = vmatmul.mubr.msk.bf16.vlgmr.msra.gmra.mxu1 %vm8483_vm7, %v8018_v6  ;;  %19896 = vmatprep.mubr.msk.bf16.mxu0 %vm8483_vm7, %v8018_v6  ;;  %v21027_v6 = vld [vmem:[%s29040_s5 + $0x68] ss:$12 sps:$4 sm:$0xff]  }
 0x95a   :  { %19268 = vmatpush3.bf16.msra.mxu1 %v20975_v50  ;;  %19897 = vmatmul.mubr.msk.bf16.vlgmr.msra.gmra.mxu0 %vm8483_vm7, %v8021_v26  ;;  %v21026_v50 = vld [vmem:[%s29040_s5 + $0x128] ss:$12 sps:$4 sm:$0xff]  }
 0x95b   :  { %9116 = vmatpush1.bf16.msra.mxu0 %v20976_v33  ;;  %19269 = vmatprep.subr.bf16.mxu1 %v20979_v39  ;;  %v21030_v33 = vld [vmem:[%s29040_s5 + $0x64] ss:$12 sps:$4 sm:$0xff]  }
 0x95c   :  { %9117 = vmatprep.subr.bf16.mxu0 %v20983_v51  ;;  %8583 = vmatprep.mubr.bf16.mxu1 %v29027_v10  ;;  %v21032_v39 = vld [vmem:[%s29040_s5 + $0x50] ss:$12 sps:$4 sm:$0xff]   ;;  %v21033_v51 = vld [vmem:[%s29040_s5 + $0x48] ss:$12 sps:$4 sm:$0xff]  }
 0x95d   :  { %9145 = vmatprep.mubr.bf16.mxu0 %v29027_v10 }
 0x95e   :  { %19270 = vmatpush3.bf16.msra.mxu1 %v20980_v28  ;;  %v21037_v28 = vld [vmem:[%s29040_s5 + $0x38] ss:$12 sps:$4 sm:$0xff]  }
 0x95f   :  { %9118 = vmatpush1.bf16.msra.mxu0 %v20981_v48  ;;  %19271 = vmatprep.subr.bf16.mxu1 %v20984_v47  ;;  %v21040_v48 = vld [vmem:[%s29040_s5 + $0x34] ss:$12 sps:$4 sm:$0xff]  }
 0x960   :  { %9119 = vmatprep.subr.bf16.mxu0 %v20988_v31  ;;  %v21041_v47 = vld [vmem:[%s29040_s5 + $0xe0] ss:$12 sps:$4 sm:$0xff]   ;;  %v21038_v31 = vld [vmem:[%s29040_s5 + $0x30] ss:$12 sps:$4 sm:$0xff]  }
 0x961   :  { %17527 = vmatmul.mubr.msk.bf16.gmra.mxu1 %vm8483_vm7, %v8021_v26  ;;  %v21035_v26 = vld [vmem:[%s29040_s5 + $0x4c] ss:$12 sps:$4 sm:$0xff]  }
 0x962   :  { %19272 = vmatpush3.bf16.msra.mxu1 %v20985_v44  ;;  %8624 = vmatprep.mubr.bf16.mxu1 %v26152_v29  ;;  %v21003_v29 = vld [vmem:[%s29040_s5 + $0x19c] ss:$12 sps:$4 sm:$0xff]   ;;  %v21042_v44 = vld [vmem:[%s29040_s5 + $0x20] ss:$12 sps:$4 sm:$0xff]  }
 0x963   :  { %9120 = vmatpush1.bf16.msra.mxu0 %v20986_v41  ;;  %19273 = vmatprep.subr.bf16.mxu1 %v20989_v19  ;;  %v21045_v41 = vld [vmem:[%s29040_s5 + $0x1c] ss:$12 sps:$4 sm:$0xff]  }
 0x964   :  { %9121 = vmatprep.subr.bf16.mxu0 %v20993_v3  ;;  %v21046_v19 = vld [vmem:[%s29040_s5 + $0xc8] ss:$12 sps:$4 sm:$0xff]   ;;  %v21043_v3 = vld [vmem:[%s29040_s5 + $0x18] ss:$12 sps:$4 sm:$0xff]  }
 0x966   :  { %19274 = vmatpush3.bf16.msra.mxu1 %v20990_v20  ;;  %v21047_v20 = vld [vmem:[%s29040_s5 + $0x8] ss:$12 sps:$4 sm:$0xff]  }
 0x967   :  { %9122 = vmatpush1.bf16.msra.mxu0 %v20991_v56  ;;  %19275 = vmatprep.subr.bf16.mxu1 %v20994_v16  ;;  %v21050_v56 = vld [vmem:[%s29040_s5 + $0x4] ss:$12 sps:$4 sm:$0xff]   ;;  %v21048_v16 = vld [vmem:[%s29040_s5] ss:$12 sps:$4 sm:$0xff]  }
 0x968   :  { %9123 = vmatprep.subr.bf16.mxu0 %v20998_v4  ;;  %v21053_v4 = vld [vmem:[%s29040_s5 + $0x16c] ss:$12 sps:$4 sm:$0xff]  }
 0x96a   :  { %19276 = vmatpush3.bf16.msra.mxu1 %v20995_v15  ;;  %v7805_v15 = vpack.c.bf16 %v26161_v49, %v26161_v49  ;;  %v21054_v49 = vld [vmem:[%s29040_s5 + $0x150] ss:$12 sps:$4 sm:$0xff]  }
 0x96b   :  { %9124 = vmatpush1.bf16.msra.mxu0 %v20996_v43  ;;  %19277 = vmatprep.subr.bf16.mxu1 %v20999_v62  ;;  %v21051_v43 = vld [vmem:[%s29040_s5 + $0x168] ss:$12 sps:$4 sm:$0xff]  }
 0x96c   :  { %9125 = vmatprep.subr.bf16.mxu0 %v21003_v29  ;;  %v21059_v62 = vld [vmem:[%s29040_s5 + $0x13c] ss:$12 sps:$4 sm:$0xff]  }
 0x96d   :  { %v21063_v29 = vld [vmem:[%s29040_s5 + $0x108] ss:$12 sps:$4 sm:$0xff]  }
 0x96e   :  { %19278 = vmatpush3.bf16.msra.mxu1 %v21000_v9  ;;  %v21068_v9 = vld [vmem:[%s29040_s5 + $0xf4] ss:$12 sps:$4 sm:$0xff]  }
 0x96f   :  { %9126 = vmatpush1.bf16.msra.mxu0 %v21001_v27  ;;  %19279 = vmatprep.subr.bf16.mxu1 %v21004_v5  ;;  %v21066_v27 = vld [vmem:[%s29040_s5 + $0xf0] ss:$12 sps:$4 sm:$0xff]  }
 0x970   :  { %9127 = vmatprep.subr.bf16.mxu0 %v21008_v14  ;;  %v21071_v5 = vld [vmem:[%s29040_s5 + $0xdc] ss:$12 sps:$4 sm:$0xff]   ;;  %v21083_v14 = vld [vmem:[%s29041_s27 + $0x20] ss:$0 sps:$4 sm:$0x77]  }
 0x972   :  { %19280 = vmatpush3.bf16.msra.mxu1 %v21005_v0  ;;  %v21069_v0 = vld [vmem:[%s29040_s5 + $0xd8] ss:$12 sps:$4 sm:$0xff]  }
 0x973   :  { %9128 = vmatpush1.bf16.msra.mxu0 %v21006_v36  ;;  %19281 = vmatprep.subr.bf16.mxu1 %v21009_v32  ;;  %v21074_v36 = vld [vmem:[%s29040_s5 + $0xc4] ss:$12 sps:$4 sm:$0xff]   ;;  %v21072_v32 = vld [vmem:[%s29040_s5 + $0xc0] ss:$12 sps:$4 sm:$0xff]  }
 0x974   :  { %19304 = vmatprep.subr.bf16.mxu0 %v21011_v52  ;;  %v21075_v52 = vld [vmem:[%s29040_s5 + $0x218] ss:$12 sps:$4 sm:$0xff]  }
 0x976   :  { %19282 = vmatpush3.bf16.msra.mxu1 %v21010_v42  ;;  %17599 = vmatmul.mubr.msk.bf16.vlgmr.msra.gmra.mxu0 %vm8483_vm7, %v26295_v34  ;;  %v21076_v42 = vld [vmem:[%s29040_s5 + $0x200] ss:$12 sps:$4 sm:$0xff]  }
 0x977   :  { %19305 = vmatpush3.bf16.msra.mxu0 %v21012_v38  ;;  %9062 = vmatprep.subr.bf16.mxu1 %v21015_v30  ;;  %v21077_v38 = vld [vmem:[%s29040_s5 + $0x1e8] ss:$12 sps:$4 sm:$0xff]   ;;  %v21078_v30 = vld [vmem:[%s29040_s5 + $0x1d0] ss:$12 sps:$4 sm:$0xff]  }
 0x978   :  { %19306 = vmatprep.subr.bf16.mxu0 %v21016_v8  ;;  %9155 = vmatprep.mubr.bf16.mxu0 %v29027_v10  ;;  %v21080_v8 = vld [vmem:[%s29040_s5 + $0x1a0] ss:$12 sps:$4 sm:$0xff]  }
 0x979   :  { %8625 = vmatmul.mubr.bf16.vlgmr.msra.gmra.mxu1 %v26148_v53  ;;  %v21025_v53 = vld [vmem:[%s29040_s5 + $0x7c] ss:$12 sps:$4 sm:$0xff]  }
 0x97a   :  { %9063 = vmatpush1.bf16.msra.mxu1 %v21013_v21  ;;  %8632 = vmatprep.mubr.bf16.mxu1 %v26163_v22  ;;  %v7802_v22 = vpack.c.bf16 %v26150_v13, %v26144_v7  ;;  %v21031_v7 = vld [vmem:[%s29040_s5 + $0x110] ss:$12 sps:$4 sm:$0xff]   ;;  %v21028_v13 = vld [vmem:[%s29040_s5 + $0x60] ss:$12 sps:$4 sm:$0xff]   ;;  %v21081_v21 = vld [vmem:[%s29040_s5 + $0x188] ss:$12 sps:$4 sm:$0xff]  }
 0x97b   :  { %19307 = vmatpush3.bf16.msra.mxu0 %v21017_v2  ;;  %9064 = vmatprep.subr.bf16.mxu1 %v21020_v57  ;;  %v21090_v2 = vld [vmem:[%s29040_s5 + $0x4c8] ss:$12 sps:$4 sm:$0xff]  }
 0x97c   :  { %19308 = vmatprep.subr.bf16.mxu0 %v21021_v17  ;;  %v21095_v17 = vld [vmem:[%s29040_s5 + $0x4b4] ss:$12 sps:$4 sm:$0xff]  }
 0x97e   :  { %9065 = vmatpush1.bf16.msra.mxu1 %v21018_v63  ;;  %17600 = vmatmul.mubr.msk.bf16.gmra.mxu0 %vm8483_vm7, %v26325_v37 }
 0x97f   :  { %19309 = vmatpush3.bf16.msra.mxu0 %v21022_v55  ;;  %9196 = vmatprep.mubr.bf16.mxu0 %v7802_v22  ;;  %v21093_v55 = vld [vmem:[%s29040_s5 + $0x4b0] ss:$12 sps:$4 sm:$0xff]  }
 0x980   :  { %9066 = vmatprep.subr.bf16.mxu1 %v21025_v53  ;;  %19310 = vmatprep.subr.bf16.mxu0 %v21026_v50 }
 0x981   :  { %8633 = vmatmul.mubr.bf16.gmra.mxu1 %v26169_v61  ;;  %v21036_v61 = vld [vmem:[%s29040_s5 + $0xf8] ss:$12 sps:$4 sm:$0xff]  }
 0x982   :  { %9067 = vmatpush1.bf16.msra.mxu1 %v21023_v18  ;;  %9094 = vmatprep.mubr.bf16.mxu1 %v7802_v22 }
 0x983   :  { %19311 = vmatpush3.bf16.msra.mxu0 %v21027_v6  ;;  %9068 = vmatprep.subr.bf16.mxu1 %v21030_v33  ;;  %v21098_v6 = vld [vmem:[%s29040_s5 + $0x49c] ss:$12 sps:$4 sm:$0xff]   ;;  %v21096_v33 = vld [vmem:[%s29040_s5 + $0x498] ss:$12 sps:$4 sm:$0xff]  }
 0x984   :  { %19312 = vmatprep.subr.bf16.mxu0 %v21031_v7 }
 0x986   :  { %9069 = vmatpush1.bf16.msra.mxu1 %v21028_v13  ;;  %v21101_v13 = vld [vmem:[%s29040_s5 + $0x484] ss:$12 sps:$4 sm:$0xff]  }
 0x987   :  { %19313 = vmatpush3.bf16.msra.mxu0 %v21032_v39  ;;  %9070 = vmatprep.subr.bf16.mxu1 %v21035_v26  ;;  %v21099_v39 = vld [vmem:[%s29040_s5 + $0x480] ss:$12 sps:$4 sm:$0xff]  }
 0x988   :  { %19314 = vmatprep.subr.bf16.mxu0 %v21036_v61  ;;  %v21104_v26 = vld [vmem:[%s29040_s5 + $0x46c] ss:$12 sps:$4 sm:$0xff]   ;;  %v21102_v61 = vld [vmem:[%s29040_s5 + $0x468] ss:$12 sps:$4 sm:$0xff]  }
 0x98a   :  { %9071 = vmatpush1.bf16.msra.mxu1 %v21033_v51  ;;  %v21107_v51 = vld [vmem:[%s29040_s5 + $0x454] ss:$12 sps:$4 sm:$0xff]  }
 0x98b   :  { %19315 = vmatpush3.bf16.msra.mxu0 %v21037_v28  ;;  %9072 = vmatprep.subr.bf16.mxu1 %v21040_v48  ;;  %v21105_v28 = vld [vmem:[%s29040_s5 + $0x450] ss:$12 sps:$4 sm:$0xff]   ;;  %v21108_v48 = vld [vmem:[%s29040_s5 + $0x5b8] ss:$12 sps:$4 sm:$0xff]  }
 0x98c   :  { %19316 = vmatprep.subr.bf16.mxu0 %v21041_v47  ;;  %v21110_v47 = vld [vmem:[%s29040_s5 + $0x5bc] ss:$12 sps:$4 sm:$0xff]  }
 0x98e   :  { %9073 = vmatpush1.bf16.msra.mxu1 %v21038_v31  ;;  %v21111_v31 = vld [vmem:[%s29040_s5 + $0x660] ss:$12 sps:$4 sm:$0xff]  }
 0x98f   :  { %19317 = vmatpush3.bf16.msra.mxu0 %v21042_v44  ;;  %9074 = vmatprep.subr.bf16.mxu1 %v21045_v41  ;;  %v21113_v44 = vld [vmem:[%s29040_s5 + $0x664] ss:$12 sps:$4 sm:$0xff]  }
 0x990   :  { %19318 = vmatprep.subr.bf16.mxu0 %v21046_v19  ;;  %v21116_v41 = vld [vmem:[%s29040_s5 + $0x5a4] ss:$12 sps:$4 sm:$0xff]   ;;  %v21119_v19 = vld [vmem:[%s29040_s5 + $0x64c] ss:$12 sps:$4 sm:$0xff]  }
 0x992   :  { %9075 = vmatpush1.bf16.msra.mxu1 %v21043_v3  ;;  %v21114_v3 = vld [vmem:[%s29040_s5 + $0x5a0] ss:$12 sps:$4 sm:$0xff]  }
 0x993   :  { %19319 = vmatpush3.bf16.msra.mxu0 %v21047_v20  ;;  %9076 = vmatprep.subr.bf16.mxu1 %v21050_v56  ;;  %v21117_v20 = vld [vmem:[%s29040_s5 + $0x648] ss:$12 sps:$4 sm:$0xff]   ;;  %v21122_v56 = vld [vmem:[%s29040_s5 + $0x58c] ss:$12 sps:$4 sm:$0xff]  }
 0x994   :  { %17608 = vmatprep.subr.msk.bf16.mxu0 %vm4948_vm2, %v25896_v59  ;;  %v21056_v59 = vld [vmem:[%s29040_s5 + $0x154] ss:$12 sps:$4 sm:$0xff]  }
 0x996   :  { %9077 = vmatpush1.bf16.msra.mxu1 %v21048_v16  ;;  %9197 = vmatmul.mubr.bf16.vlgmr.msra.gmra.mxu0 %v26146_v54  ;;  %v21120_v16 = vld [vmem:[%s29040_s5 + $0x588] ss:$12 sps:$4 sm:$0xff]  }
 0x997   :  { %9204 = vmatprep.mubr.bf16.mxu0 %v7805_v15  ;;  %9289 = vmatpush1.bf16.msra.mxu0 %v25899_v25  ;;  %v7804_v25 = vpack.c.bf16 %v26154_v40, %v26154_v40  ;;  %v21082_v40 = vld [vmem:[%s29041_s27 + $0x18] sm:$0xff]  }
 0x998   :  { %9290 = vmatprep.subr.bf16.mxu0 %v25905_v12  ;;  %9078 = vmatprep.subr.bf16.mxu1 %v21053_v4  ;;  %v21057_v12 = vld [vmem:[%s29040_s5 + $0x138] ss:$12 sps:$4 sm:$0xff]   ;;  %v21125_v4 = vld [vmem:[%s29040_s5 + $0x634] ss:$12 sps:$4 sm:$0xff]  }
 0x99a   :  { %9079 = vmatpush2.bf16.msra.mxu1 %v21051_v43  ;;  %v21128_v43 = vld [vmem:[%s29040_s5 + $0x574] ss:$12 sps:$4 sm:$0xff]  }
 0x99b   :  { %9291 = vmatpush1.bf16.msra.mxu0 %v25883_v23  ;;  %9080 = vmatprep.subr.bf16.mxu1 %v21056_v59  ;;  %v21062_v23 = vld [vmem:[%s29040_s5 + $0x124] ss:$12 sps:$4 sm:$0xff]  }
 0x99c   :  { %9292 = vmatprep.subr.bf16.mxu0 %v25912_v58  ;;  %v21060_v58 = vld [vmem:[%s29040_s5 + $0x120] ss:$12 sps:$4 sm:$0xff]   ;;  %v21126_v59 = vld [vmem:[%s29040_s5 + $0x570] ss:$12 sps:$4 sm:$0xff]  }
 0x99e   :  { %9081 = vmatpush2.bf16.msra.mxu1 %v21054_v49  ;;  %9205 = vmatmul.mubr.bf16.gmra.mxu0 %v7804_v25  ;;  %v21131_v49 = vld [vmem:[%s29040_s5 + $0x61c] ss:$12 sps:$4 sm:$0xff]  }
 0x99f   :  { %9293 = vmatpush1.bf16.msra.mxu0 %v25860_v60  ;;  %9082 = vmatprep.subr.bf16.mxu1 %v21059_v62  ;;  %v21065_v60 = vld [vmem:[%s29040_s5 + $0x10c] ss:$12 sps:$4 sm:$0xff]  }
 0x9a0   :  { %9310 = vmatprep.mubr.bf16.mxu0 %v29027_v10  ;;  %v21129_v62 = vld [vmem:[%s29040_s5 + $0x618] ss:$12 sps:$4 sm:$0xff]  }
 0x9a2   :  { %9083 = vmatpush2.bf16.msra.mxu1 %v21057_v12 }
 0x9a3   :  { %9084 = vmatprep.subr.bf16.mxu1 %v21062_v23  ;;  %v21132_v23 = vld [vmem:[%s29040_s5 + $0x558] ss:$12 sps:$4 sm:$0xff]  }
 0x9a6   :  { %9085 = vmatpush2.bf16.msra.mxu1 %v21060_v58  ;;  %17609 = vmatmul.mubr.msk.bf16.vlgmr.msra.gmra.mxu0 %vm7686_vm6, %v21082_v40 }
 0x9a7   :  { %9086 = vmatprep.subr.bf16.mxu1 %v21065_v60  ;;  %9320 = vmatprep.mubr.bf16.mxu0 %v29027_v10 }
 0x9aa   :  { %9087 = vmatpush2.bf16.msra.mxu1 %v21063_v29  ;;  %v21137_v29 = vld [vmem:[%s29040_s5 + $0x604] ss:$12 sps:$4 sm:$0xff]  }
 0x9ab   :  { %9088 = vmatprep.subr.bf16.mxu1 %v21068_v9 }
 0x9ae   :  { %9089 = vmatpush2.bf16.msra.mxu1 %v21066_v27  ;;  %17610 = vmatmul.mubr.msk.bf16.gmra.mxu0 %vm7686_vm6, %v21083_v14 }
 0x9af   :  { %9090 = vmatprep.subr.bf16.mxu1 %v21071_v5  ;;  %v21135_v5 = vld [vmem:[%s29040_s5 + $0x600] ss:$12 sps:$4 sm:$0xff]  }
 0x9b2   :  { %9091 = vmatpush2.bf16.msra.mxu1 %v21069_v0  ;;  %v21140_v0 = vld [vmem:[%s29040_s5 + $0x544] ss:$12 sps:$4 sm:$0xff]  }
 0x9b3   :  { %9092 = vmatprep.subr.bf16.mxu1 %v21074_v36 }
 0x9b6   :  { %9093 = vmatpush2.bf16.msra.mxu1 %v21072_v32 }
 0x9b7   :  { %19900 = vmatprep.subr.bf16.mxu1 %v21075_v52 }
 0x9b9   :  { %9095 = vmatmul.mubr.bf16.vlgmr.msra.gmra.mxu1 %v26146_v54  ;;  %v21079_v54 = vld [vmem:[%s29040_s5 + $0x1b8] ss:$12 sps:$4 sm:$0xff]  }
 0x9ba   :  { %9104 = vmatprep.mubr.bf16.mxu1 %v7805_v15  ;;  %19901 = vmatpush3.bf16.msra.mxu1 %v21075_v52  ;;  %v21123_v15 = vld [vmem:[%s29040_s5 + $0x630] ss:$12 sps:$4 sm:$0xff]  }
 0x9bb   :  { %19902 = vmatprep.subr.bf16.mxu1 %v21076_v42 }
 0x9be   :  { %19903 = vmatpush3.bf16.msra.mxu1 %v21076_v42 }
 0x9bf   :  { %19904 = vmatprep.subr.bf16.mxu1 %v21077_v38 }
 0x9c1   :  { %9105 = vmatmul.mubr.bf16.gmra.mxu1 %v7804_v25  ;;  %v21134_v25 = vld [vmem:[%s29040_s5 + $0x55c] ss:$12 sps:$4 sm:$0xff]  }
 0x9c2   :  { %19905 = vmatpush3.bf16.msra.mxu1 %v21077_v38  ;;  %19914 = vmatprep.mubr.msk.bf16.mxu1 %vm8483_vm7, %v26295_v34  ;;  %v21092_v34 = vld [vmem:[%s29040_s5 + $0x4cc] ss:$12 sps:$4 sm:$0xff]  }
 0x9c3   :  { %19906 = vmatprep.subr.bf16.mxu1 %v21078_v30  ;;  %v21143_v38 = vld [vmem:[%s29040_s5 + $0x5ec] ss:$12 sps:$4 sm:$0xff]  }
 0x9c6   :  { %19907 = vmatpush3.bf16.msra.mxu1 %v21078_v30  ;;  %v21141_v30 = vld [vmem:[%s29040_s5 + $0x5e8] ss:$12 sps:$4 sm:$0xff]  }
 0x9c7   :  { %19908 = vmatprep.subr.bf16.mxu1 %v21079_v54 }
 0x9ca   :  { %19909 = vmatpush3.bf16.msra.mxu1 %v21079_v54  ;;  %v21146_v54 = vld [vmem:[%s29040_s5 + $0x52c] ss:$12 sps:$4 sm:$0xff]  }
 0x9cb   :  { %19910 = vmatprep.subr.bf16.mxu1 %v21080_v8 }
 0x9ce   :  { %19911 = vmatpush3.bf16.msra.mxu1 %v21080_v8 }
 0x9cf   :  { %19912 = vmatprep.subr.bf16.mxu1 %v21081_v21 }
 0x9d2   :  { %19913 = vmatpush3.bf16.msra.mxu1 %v21081_v21  ;;  %v21144_v21 = vld [vmem:[%s29040_s5 + $0x528] ss:$12 sps:$4 sm:$0xff]  }
 0x9d3   :  { %20092 = vmatprep.subr.msk.bf16.mxu1 %vm4948_vm2, %v26012_v24  ;;  %v21084_v24 = vld [vmem:[%s29040_s5 + $0x4f8] ss:$12 sps:$4 sm:$0xff]  }
 0x9d5   :  { %19915 = vmatmul.mubr.msk.bf16.vlgmr.msra.gmra.mxu1 %vm8483_vm7, %v26325_v37 }
 0x9d6   :  { %19919 = vmatpush3.bf16.msra.mxu1 %v26018_v46  ;;  %19924 = vmatprep.mubr.msk.bf16.mxu1 %vm7686_vm6, %v21082_v40  ;;  %v21086_v46 = vld [vmem:[%s29040_s5 + $0x4fc] ss:$12 sps:$4 sm:$0xff]  }
 0x9d7   :  { %19920 = vmatprep.subr.bf16.mxu1 %v25994_v1  ;;  %9850 = vmatprep.subr.bf16.mxu0 %v21086_v46 }
 0x9d8   :  { %9851 = vmatpush1.bf16.msra.mxu0 %v21084_v24 }
 0x9da   :  { %19921 = vmatpush3.bf16.msra.mxu1 %v25994_v1  ;;  %v21089_v1 = vld [vmem:[%s29040_s5 + $0x4e4] ss:$12 sps:$4 sm:$0xff]  }
 0x9db   :  { %19922 = vmatprep.subr.bf16.mxu1 %v25969_v11  ;;  %9852 = vmatprep.subr.bf16.mxu0 %v21089_v1  ;;  %v21149_v1 = vld [vmem:[%s29040_s5 + $0x5d4] ss:$12 sps:$4 sm:$0xff]  }
 0x9de   :  { %19923 = vmatpush3.bf16.msra.mxu1 %v25969_v11  ;;  %v21087_v11 = vld [vmem:[%s29040_s5 + $0x4e0] ss:$12 sps:$4 sm:$0xff]  }
 0x9df   :  { %9853 = vmatpush1.bf16.msra.mxu0 %v21087_v11  ;;  %9903 = vmatprep.subr.bf16.mxu1 %v21113_v44 }
 0x9e0   :  { %9854 = vmatprep.subr.bf16.mxu0 %v21092_v34  ;;  %v21147_v34 = vld [vmem:[%s29040_s5 + $0x5d0] ss:$12 sps:$4 sm:$0xff]  }
 0x9e1   :  { %19925 = vmatmul.mubr.msk.bf16.vlgmr.msra.gmra.mxu1 %vm7686_vm6, %v21083_v14  ;;  %v21138_v14 = vld [vmem:[%s29040_s5 + $0x540] ss:$12 sps:$4 sm:$0xff]  }
 0x9e2   :  { %9933 = vmatprep.mubr.bf16.mxu1 %v29027_v10  ;;  %9904 = vmatpush1.bf16.msra.mxu1 %v21111_v31 }
 0x9e3   :  { %9855 = vmatpush1.bf16.msra.mxu0 %v21090_v2  ;;  %9905 = vmatprep.subr.bf16.mxu1 %v21119_v19  ;;  %v21152_v2 = vld [vmem:[%s29040_s5 + $0x514] ss:$12 sps:$4 sm:$0xff]  }
 0x9e4   :  { %9856 = vmatprep.subr.bf16.mxu0 %v21095_v17  ;;  %v21150_v17 = vld [vmem:[%s29040_s5 + $0x510] ss:$12 sps:$4 sm:$0xff]  }
 0x9e6   :  { %9906 = vmatpush1.bf16.msra.mxu1 %v21117_v20 }
 0x9e7   :  { %9857 = vmatpush1.bf16.msra.mxu0 %v21093_v55  ;;  %9907 = vmatprep.subr.bf16.mxu1 %v21125_v4  ;;  %v21153_v55 = vld [vmem:[%s29040_s5 + $0x5c0] ss:$12 sps:$4 sm:$0xff]  }
 0x9e8   :  { %9858 = vmatprep.subr.bf16.mxu0 %v21098_v6 }
 0x9ea   :  { %9908 = vmatpush1.bf16.msra.mxu1 %v21123_v15 }
 0x9eb   :  { %9859 = vmatpush1.bf16.msra.mxu0 %v21096_v33  ;;  %9909 = vmatprep.subr.bf16.mxu1 %v21131_v49 }
 0x9ec   :  { %v26522_v57 = vpop.f32.mrf.mxu0  ;;  %9860 = vmatprep.subr.bf16.mxu0 %v21101_v13 }
 0x9ee   :  { %v26527_v63 = vpop.f32.mrf.mxu0  ;;  %9910 = vmatpush1.bf16.msra.mxu1 %v21129_v62 }
 0x9ef   :  { %9861 = vmatpush1.bf16.msra.mxu0 %v21099_v39  ;;  %9911 = vmatprep.subr.bf16.mxu1 %v21137_v29 }
 0x9f0   :  { %v26532_v37 = vpop.f32.mrf.mxu0  ;;  %9862 = vmatprep.subr.bf16.mxu0 %v21104_v26 }
 0x9f2   :  { %v26534_v53 = vpop.f32.mrf.mxu0  ;;  %9912 = vmatpush1.bf16.msra.mxu1 %v21135_v5 }
 0x9f3   :  { %9863 = vmatpush1.bf16.msra.mxu0 %v21102_v61  ;;  %9913 = vmatprep.subr.bf16.mxu1 %v21143_v38 }
 0x9f4   :  { %v26536_v50 = vpop.f32.mrf.mxu0  ;;  %9864 = vmatprep.subr.bf16.mxu0 %v21107_v51 }
 0x9f6   :  { %v26538_v22 = vpop.f32.mrf.mxu0  ;;  %9914 = vmatpush1.bf16.msra.mxu1 %v21141_v30 }
 0x9f7   :  { %9865 = vmatpush1.bf16.msra.mxu0 %v21105_v28  ;;  %9915 = vmatprep.subr.bf16.mxu1 %v21149_v1 }
 0x9f8   :  { %v8538_v18 = vpop.f32.mrf.mxu0  ;;  %9866 = vmatprep.subr.bf16.mxu0 %v21110_v47 }
 0x9fa   :  { %v8539_v7 = vpop.f32.mrf.mxu0  ;;  %9916 = vmatpush1.bf16.msra.mxu1 %v21147_v34 }
 0x9fb   :  { %9867 = vmatpush2.bf16.msra.mxu0 %v21108_v48  ;;  %19346 = vmatprep.subr.bf16.mxu1 %v21153_v55 }
 0x9fc   :  { %9868 = vmatprep.subr.bf16.mxu0 %v21116_v41 }
 0x9ff   :  { %9869 = vmatpush2.bf16.msra.mxu0 %v21114_v3 }
 0xa00   :  { %9870 = vmatprep.subr.bf16.mxu0 %v21122_v56 }
 0xa03   :  { %9871 = vmatpush2.bf16.msra.mxu0 %v21120_v16 }
 0xa04   :  { %9872 = vmatprep.subr.bf16.mxu0 %v21128_v43 }
 0xa07   :  { %9873 = vmatpush2.bf16.msra.mxu0 %v21126_v59 }
 0xa08   :  { %9874 = vmatprep.subr.bf16.mxu0 %v21134_v25 }
 0xa0b   :  { %9875 = vmatpush2.bf16.msra.mxu0 %v21132_v23 }
 0xa0c   :  { %9876 = vmatprep.subr.bf16.mxu0 %v21140_v0 }
 0xa0f   :  { %9877 = vmatpush2.bf16.msra.mxu0 %v21138_v14 }
 0xa10   :  { %9878 = vmatprep.subr.bf16.mxu0 %v21146_v54 }
 0xa13   :  { %9879 = vmatpush2.bf16.msra.mxu0 %v21144_v21 }
 0xa14   :  { %9880 = vmatprep.subr.bf16.mxu0 %v21152_v2 }
 0xa17   :  { %9881 = vmatpush2.bf16.msra.mxu0 %v21150_v17 }
 0xa19   :  { %v8575_v12 = vpop.f32.mrf.mxu1 }
 0xa1a   :  { %v26619_v58 = vadd.f32 %v8575_v12, %v26522_v57  ;;  %v19898_v40 = vpop.f32.mrf.mxu0 }
 0xa1b   :  { %v8577_v60 = vpop.f32.mrf.mxu1 }
 0xa1c   :  { %v26625_v9 = vadd.f32 %v8577_v60, %v26527_v63  ;;  %v8674_v27 = vpop.f32.mrf.mxu0 }
 0xa1d   :  { %v8579_v36 = vpop.f32.mrf.mxu1 }
 0xa1e   :  { %v26637_v32 = vadd.f32 %v8579_v36, %v26532_v37  ;;  %v19899_v52 = vpop.f32.mrf.mxu0 }
 0xa1f   :  { %v26639_v42 = vpop.f32.mrf.mxu1 }
 0xa20   :  { %v8677_v37 = vpop.f32.mrf.mxu0 }
 0xa21   :  { %v8585_v8 = vpop.f32.mrf.mxu1 }
 0xa22   :  { %v26654_v24 = vadd.f32 %v8585_v8, %v26536_v50 }
 0xa23   :  { %v8587_v46 = vpop.f32.mrf.mxu1 }
 0xa24   :  { %v26660_v11 = vadd.f32 %v8587_v46, %v26538_v22 }
 0xa25   :  { %v8589_v57 = vpop.f32.mrf.mxu1 }
 0xa27   :  { %v8590_v63 = vpop.f32.mrf.mxu1 }
 0xa36   :  { %v26674_v50 = vpop.f32.mrf.mxu0 }
 0xa38   :  { %v26676_v22 = vpop.f32.mrf.mxu0 }
 0xa39   :  { %v19283_v18 = vpop.f32.mrf.mxu1 }
 0xa3a   :  { %v26678_v6 = vpop.f32.mrf.mxu0 }
 0xa3b   :  { %v19284_v33 = vpop.f32.mrf.mxu1 }
 0xa3c   :  { %v19285_v7 = vadd.f32 %v19284_v33, %v19283_v18  ;;  %v26680_v13 = vpop.f32.mrf.mxu0 }
 0xa3d   :  { %v19286_v39 = vpop.f32.mrf.mxu1 }
 0xa3e   :  { %v8675_v26 = vadd.f32 %v19285_v7, %v8674_v27  ;;  %v26682_v61 = vpop.f32.mrf.mxu0 }
 0xa3f   :  { %v19287_v51 = vpop.f32.mrf.mxu1 }
 0xa40   :  { %v26684_v28 = vpop.f32.mrf.mxu0  ;;  %v19288_v4 = vadd.f32 %v19287_v51, %v19286_v39 }
 0xa41   :  { %v19289_v48 = vpop.f32.mrf.mxu1 }
 0xa42   :  { %v9161_v47 = vpop.f32.mrf.mxu0  ;;  %v8678_v62 = vadd.f32 %v19288_v4, %v8677_v37  ;;  %v21157_v4 = vld [vmem:[%s29040_s5 + $0x590] ss:$12 sps:$4 sm:$0xff]  }
 0xa43   :  { %v19290_v31 = vpop.f32.mrf.mxu1 }
 0xa44   :  { %v19291_v44 = vadd.f32 %v19290_v31, %v19289_v48  ;;  %v9162_v41 = vpop.f32.mrf.mxu0 }
 0xa45   :  { %v19292_v19 = vpop.f32.mrf.mxu1 }
 0xa46   :  { %v8683_v3 = vadd.f32 %v19898_v40, %v19291_v44 }
 0xa47   :  { %v19293_v20 = vpop.f32.mrf.mxu1 }
 0xa56   :  { %v19320_v56 = vpop.f32.mrf.mxu0 }
 0xa58   :  { %v19321_v16 = vpop.f32.mrf.mxu0 }
 0xa59   :  { %v19322_v15 = vadd.f32 %v19321_v16, %v19320_v56  ;;  %v21155_v56 = vld [vmem:[%s29040_s5 + $0x5a8] ss:$12 sps:$4 sm:$0xff]  }
 0xa5a   :  { %v19323_v43 = vpop.f32.mrf.mxu0  ;;  %v21156_v16 = vld [vmem:[%s29040_s5 + $0x4e8] ss:$12 sps:$4 sm:$0xff]  }
 0xa5b   :  { %v9199_v59 = vadd.f32 %v19322_v15, %v8675_v26  ;;  %v21158_v15 = vld [vmem:[%s29040_s5 + $0x4d0] ss:$12 sps:$4 sm:$0xff]  }
 0xa5c   :  { %v19324_v49 = vpop.f32.mrf.mxu0 }
 0xa5d   :  { %v19325_v25 = vadd.f32 %v19324_v49, %v19323_v43  ;;  %v21160_v49 = vld [vmem:[%s29040_s5 + $0x4b8] ss:$12 sps:$4 sm:$0xff]  }
 0xa5e   :  { %v19326_v12 = vpop.f32.mrf.mxu0 }
 0xa5f   :  { %v26686_v23 = vadd.f32 %v19325_v25, %v8678_v62  ;;  %v21161_v62 = vld [vmem:[%s29040_s5 + $0x560] ss:$12 sps:$4 sm:$0xff]  }
 0xa60   :  { %v19327_v60 = vpop.f32.mrf.mxu0  ;;  %v21162_v25 = vld [vmem:[%s29040_s5 + $0x4a0] ss:$12 sps:$4 sm:$0xff]  }
 0xa61   :  { %v19328_v29 = vadd.f32 %v19327_v60, %v19326_v12  ;;  %v21163_v12 = vld [vmem:[%s29040_s5 + $0x548] ss:$12 sps:$4 sm:$0xff]  }
 0xa62   :  { %v19329_v27 = vpop.f32.mrf.mxu0  ;;  %v21164_v60 = vld [vmem:[%s29040_s5 + $0x488] ss:$12 sps:$4 sm:$0xff]  }
 0xa63   :  { %v9207_v5 = vadd.f32 %v19328_v29, %v8683_v3  ;;  %v21165_v29 = vld [vmem:[%s29040_s5 + $0x530] ss:$12 sps:$4 sm:$0xff]  }
 0xa64   :  { %v19330_v14 = vpop.f32.mrf.mxu0  ;;  %v21166_v27 = vld [vmem:[%s29040_s5 + $0x470] ss:$12 sps:$4 sm:$0xff]  }
 0xa65   :  { %v21168_v14 = vld [vmem:[%s29040_s5 + $0x458] ss:$12 sps:$4 sm:$0xff]  }
 0xa66   :  { %v9312_v0 = vpop.f32.mrf.mxu0 }
 0xa68   :  { %v9314_v40 = vpop.f32.mrf.mxu0 }
 0xa6a   :  { %v9316_v36 = vpop.f32.mrf.mxu0 }
 0xa6b   :  { %v26688_v52 = vpack.c.bf16 %v9316_v36, %v9312_v0  ;;  %v21169_v0 = vld [vmem:[%s29040_s5 + $0x668] ss:$12 sps:$4 sm:$0xff]   ;;  %v21171_v36 = vld [vmem:[%s29040_s5 + $0x638] ss:$12 sps:$4 sm:$0xff]  }
 0xa6c   :  { %v9318_v38 = vpop.f32.mrf.mxu0 }
 0xa6d   :  { %v9378_v30 = vpack.c.bf16 %v9318_v38, %v9314_v40  ;;  %v21170_v40 = vld [vmem:[%s29040_s5 + $0x650] ss:$12 sps:$4 sm:$0xff]   ;;  %v21172_v38 = vld [vmem:[%s29040_s5 + $0x620] ss:$12 sps:$4 sm:$0xff]  }
 0xa6e   :  { %v9322_v54 = vpop.f32.mrf.mxu0 }
 0xa6f   :  { %9882 = vmatprep.mubr.bf16.mxu0 %v9378_v30  ;;  %v26694_v1 = vpack.c.bf16 %v9322_v54, %v9322_v54  ;;  %v21175_v54 = vld [vmem:[%s29040_s5 + $0x5d8] ss:$12 sps:$4 sm:$0xff]  }
 0xa70   :  { %9883 = vmatmul.mubr.bf16.vlgmr.msra.gmra.mxu0 %v26688_v52  ;;  %v9324_v8 = vpop.f32.mrf.mxu0 }
 0xa71   :  { %v26691_v21 = vpack.c.bf16 %v9324_v8, %v9324_v8  ;;  %v29046_v8 = vmov 0.0  }
 0xa72   :  { %v9326_v46 = vpop.f32.mrf.mxu0 }
 0xa73   :  { %9892 = vmatprep.mubr.bf16.mxu0 %v26691_v21 }
 0xa74   :  { %v9327_v34 = vpop.f32.mrf.mxu0 }
 0xa78   :  { %9893 = vmatmul.mubr.bf16.gmra.mxu0 %v26694_v1 }
 0xa79   :  { %v9096_v2 = vpop.f32.mrf.mxu1  ;;  %10151 = vmatprep.mubr.bf16.mxu0 %v29027_v10 }
 0xa7a   :  { %v26699_v57 = vadd.f32 %v9096_v2, %v26619_v58 }
 0xa7b   :  { %v9098_v17 = vpop.f32.mrf.mxu1 }
 0xa7c   :  { %v26702_v63 = vadd.f32 %v9098_v17, %v26625_v9 }
 0xa7d   :  { %v9100_v55 = vpop.f32.mrf.mxu1 }
 0xa7e   :  { %v26705_v37 = vadd.f32 %v9100_v55, %v26637_v32 }
 0xa7f   :  { %v26707_v18 = vpop.f32.mrf.mxu1 }
 0xa81   :  { %v9106_v33 = vpop.f32.mrf.mxu1 }
 0xa82   :  { %v26710_v7 = vadd.f32 %v9106_v33, %v26654_v24 }
 0xa83   :  { %v9108_v39 = vpop.f32.mrf.mxu1 }
 0xa84   :  { %v26713_v26 = vadd.f32 %v9108_v39, %v26660_v11  ;;  %v21154_v11 = vld [vmem:[%s29040_s5 + $0x500] ss:$12 sps:$4 sm:$0xff]  }
 0xa85   :  { %v9110_v58 = vpop.f32.mrf.mxu1  ;;  %v26801_v39 = vld [vmem:[%s28895_s9] sm:$0x7] }
 0xa87   :  { %v9111_v51 = vpop.f32.mrf.mxu1 }
 0xa88   :  { %v8582_v51 = vadd.f32 %v26639_v42, %v26534_v53  ;;  %v9152_v53 = vadd.f32 %v26678_v6, %v26705_v37 }
 0xa95   :  { %v19916_v48 = vpop.f32.mrf.mxu1 }
 0xa96   :  { %v26715_v47 = vadd.f32 %v19916_v48, %v9207_v5  ;;  %v21167_v5 = vld [vmem:[%s29040_s5 + $0x518] ss:$12 sps:$4 sm:$0xff]   ;;  %v9148_v48 = vadd.f32 %v26674_v50, %v26699_v57 }
 0xa97   :  { %v9246_v9 = vpop.f32.mrf.mxu1 }
 0xa98   :  { %v26717_v31 = vadd.f32 %v9246_v9, %v9199_v59  ;;  %v21159_v59 = vld [vmem:[%s29040_s5 + $0x578] ss:$12 sps:$4 sm:$0xff]  }
 0xa99   :  { %v19917_v32 = vpop.f32.mrf.mxu1 }
 0xa9a   :  { %v29047_v32 = vld [vmem:[#allocation44_spill] sm:$0xff] }
 0xa9b   :  { %v26719_v44 = vpop.f32.mrf.mxu1 }
 0xaa1   :  { %v19926_v41 = vpop.f32.mrf.mxu1 }
 0xaa2   :  { %v9382_v43 = vpack.c.bf16 %v19926_v41, %v19926_v41  ;;  %v10062_v41 = vrot.slane %v26801_v39, %v29047_v32 }
 0xaa3   :  { %v9363_v19 = vpop.f32.mrf.mxu1 }
 0xaa5   :  { %v19927_v3 = vpop.f32.mrf.mxu1 }
 0xaa6   :  { %v9150_v3 = vadd.f32 %v26676_v22, %v26702_v63 }
 0xaa7   :  { %v9366_v24 = vpop.f32.mrf.mxu1 }
 0xaa8   :  { %v9379_v20 = vpack.c.bf16 %v9366_v24, %v9363_v19  ;;  %v9103_v24 = vadd.f32 %v26707_v18, %v8582_v51  ;;  %v9158_v18 = vadd.f32 %v26682_v61, %v26710_v7 }
 0xaaa   :  { %17774 = vmatmul.mubr.msk.bf16.vlgmr.msra.gmra.mxu1 %vm8483_vm7, %v9379_v20 }
 0xaab   :  { %19347 = vmatpush3.bf16.msra.mxu1 %v21154_v11  ;;  %9943 = vmatprep.mubr.bf16.mxu1 %v29027_v10 }
 0xaac   :  { %19348 = vmatprep.subr.bf16.mxu1 %v21155_v56  ;;  %v10066_v56 = vrot.slane %v26801_v39, %v24546_v45 }
 0xaaf   :  { %19349 = vmatpush3.bf16.msra.mxu1 %v21156_v16 }
 0xab0   :  { %19350 = vmatprep.subr.bf16.mxu1 %v21157_v4 }
 0xab2   :  { %17775 = vmatmul.mubr.msk.bf16.gmra.mxu1 %vm8483_vm7, %v9382_v43 }
 0xab3   :  { %19351 = vmatpush3.bf16.msra.mxu1 %v21158_v15  ;;  %9984 = vmatprep.mubr.bf16.mxu1 %v9378_v30  ;;  %v21174_v30 = vld [vmem:[%s29040_s5 + $0x5f0] ss:$12 sps:$4 sm:$0xff]   ;;  %v9154_v15 = vadd.f32 %v26680_v13, %v9103_v24 }
 0xab4   :  { %19352 = vmatprep.subr.bf16.mxu1 %v21159_v59 }
 0xab7   :  { %19353 = vmatpush3.bf16.msra.mxu1 %v21160_v49 }
 0xab8   :  { %19354 = vmatprep.subr.bf16.mxu1 %v21161_v62 }
 0xabb   :  { %19355 = vmatpush3.bf16.msra.mxu1 %v21162_v25 }
 0xabc   :  { %19356 = vmatprep.subr.bf16.mxu1 %v21163_v12  ;;  %v9160_v12 = vadd.f32 %v26684_v28, %v26713_v26 }
 0xabf   :  { %19357 = vmatpush3.bf16.msra.mxu1 %v21164_v60 }
 0xac0   :  { %19358 = vmatprep.subr.bf16.mxu1 %v21165_v29 }
 0xac3   :  { %19359 = vmatpush3.bf16.msra.mxu1 %v21166_v27 }
 0xac4   :  { %19360 = vmatprep.subr.bf16.mxu1 %v21167_v5 }
 0xac7   :  { %19361 = vmatpush3.bf16.msra.mxu1 %v21168_v14 }
 0xac8   :  { %19928 = vmatprep.subr.bf16.mxu1 %v21169_v0 }
 0xaca   :  { %9985 = vmatmul.mubr.bf16.vlgmr.msra.gmra.mxu1 %v26688_v52  ;;  %v21173_v52 = vld [vmem:[%s29040_s5 + $0x608] ss:$12 sps:$4 sm:$0xff]  }
 0xacb   :  { %19929 = vmatpush3.bf16.msra.mxu1 %v21169_v0  ;;  %9992 = vmatprep.mubr.bf16.mxu1 %v26691_v21 }
 0xacc   :  { %19930 = vmatprep.subr.bf16.mxu1 %v21170_v40 }
 0xacf   :  { %19931 = vmatpush3.bf16.msra.mxu1 %v21170_v40 }
 0xad0   :  { %19932 = vmatprep.subr.bf16.mxu1 %v21171_v36 }
 0xad2   :  { %9993 = vmatmul.mubr.bf16.gmra.mxu1 %v26694_v1 }
 0xad3   :  { %19933 = vmatpush3.bf16.msra.mxu1 %v21171_v36  ;;  %19942 = vmatprep.mubr.msk.bf16.mxu1 %vm8483_vm7, %v9379_v20 }
 0xad4   :  { %19934 = vmatprep.subr.bf16.mxu1 %v21172_v38 }
 0xad7   :  { %19935 = vmatpush3.bf16.msra.mxu1 %v21172_v38 }
 0xad8   :  { %19936 = vmatprep.subr.bf16.mxu1 %v21173_v52 }
 0xadb   :  { %19937 = vmatpush3.bf16.msra.mxu1 %v21173_v52 }
 0xadc   :  { %19938 = vmatprep.subr.bf16.mxu1 %v21174_v30 }
 0xadf   :  { %19939 = vmatpush3.bf16.msra.mxu1 %v21174_v30 }
 0xae0   :  { %19940 = vmatprep.subr.bf16.mxu1 %v21175_v54 }
 0xae3   :  { %19941 = vmatpush3.bf16.msra.mxu1 %v21175_v54 }
 0xae4   :  { %19954 = vmatprep.subr.bf16.mxu1 %v29046_v8 }
 0xae6   :  { %19943 = vmatmul.mubr.msk.bf16.vlgmr.msra.gmra.mxu1 %vm8483_vm7, %v9382_v43 }
 0xae7   :  { %19958 = vmatprep.mubr.msk.bf16.mxu1 %vm22041_vm1, %v29046_v8 }
 0xb30   :  { %v9884_v21 = vpop.f32.mrf.mxu0 }
 0xb32   :  { %v9886_v46 = vpop.f32.mrf.mxu0 }
 0xb34   :  { %v9888_v1 = vpop.f32.mrf.mxu0 }
 0xb36   :  { %v9890_v34 = vpop.f32.mrf.mxu0 }
 0xb38   :  { %v9894_v2 = vpop.f32.mrf.mxu0 }
 0xb3a   :  { %v9896_v17 = vpop.f32.mrf.mxu0 }
 0xb3c   :  { %v9898_v55 = vpop.f32.mrf.mxu0 }
 0xb3e   :  { %v9899_v33 = vpop.f32.mrf.mxu0 }
 0xb6a   :  { %v9935_v58 = vpop.f32.mrf.mxu1 }
 0xb6b   :  { %v9936_v9 = vadd.f32 %v9935_v58, %v9884_v21 }
 0xb6c   :  { %v9937_v19 = vpop.f32.mrf.mxu1 }
 0xb6d   :  { %v10048_v11 = vadd.f32 %v9936_v9, %v9148_v48  ;;  %v9938_v20 = vadd.f32 %v9937_v19, %v9886_v46  ;;  %v21176_v46 = vld [vmem:[%s28893_s10] sm:$0x1f]  }
 0xb6e   :  { %v9939_v16 = vpop.f32.mrf.mxu1 }
 0xb6f   :  { %v10049_v42 = vadd.f32 %v9938_v20, %v9150_v3  ;;  %v9940_v50 = vadd.f32 %v9939_v16, %v9888_v1  ;;  %v10074_v57 = vadd.f32 %v10062_v41, %v10048_v11  ;;  %v10070_v3 = vrot.slane %v26801_v39, %v24566_v35 }
 0xb70   :  { %v9941_v4 = vpop.f32.mrf.mxu1 }
 0xb71   :  { %v10051_v43 = vadd.f32 %v9940_v50, %v9152_v53  ;;  %v9942_v59 = vadd.f32 %v9941_v4, %v9890_v34  ;;  %v10075_v22 = vadd.f32 %v10066_v56, %v10049_v42  ;;  %v10083_v6 = vmax.f32 %v10074_v57, 0.0 }
 0xb72   :  { %v9945_v63 = vpop.f32.mrf.mxu1  ;;  %v9250_v57 = vadd.f32 %v26719_v44, %v26686_v23  ;;  %v21204_v23 = vld [vmem:[%s28894_s11 + $0x40c] ss:$12 sps:$4 sm:$0xff]  }
 0xb73   :  { %v10077_v49 = vadd.f32 %v10062_v41, %v10051_v43  ;;  %v10052_v62 = vadd.f32 %v9942_v59, %v9154_v15  ;;  %v9946_v25 = vadd.f32 %v9945_v63, %v9894_v2  ;;  %v10084_v13 = vmax.f32 %v10075_v22, 0.0  ;;  %v21177_v44 = vld [vmem:[%s28893_s10 + $0x8] sm:$0x1f]  }
 0xb74   :  { %v9947_v37 = vpop.f32.mrf.mxu1 }
 0xb75   :  { %v10086_v60 = vmax.f32 %v10077_v49, 0.0  ;;  %v10078_v29 = vadd.f32 %v10066_v56, %v10052_v62  ;;  %v10054_v27 = vadd.f32 %v9946_v25, %v9158_v18  ;;  %v9948_v5 = vadd.f32 %v9947_v37, %v9896_v17  ;;  %v21202_v49 = vld [vmem:[%s28894_s11 + $0x408] ss:$12 sps:$4 sm:$0xff]   ;;  %v21178_v37 = vld [vmem:[%s28894_s11 + $0x2b8] ss:$12 sps:$4 sm:$0xff]  }
 0xb76   :  { %v9949_v14 = vpop.f32.mrf.mxu1  ;;  %v21210_v62 = vld [vmem:[%s28894_s11 + $0x3f4] ss:$12 sps:$4 sm:$0xff]   ;;  %v21180_v25 = vld [vmem:[%s28894_s11 + $0x2bc] ss:$12 sps:$4 sm:$0xff]  }
 0xb77   :  { %v26821_v0 = vpack.c.bf16 %v10086_v60, %v10083_v6  ;;  %v10080_v40 = vadd.f32 %v10062_v41, %v10054_v27  ;;  %v10055_v36 = vadd.f32 %v9948_v5, %v9160_v12  ;;  %v10087_v61 = vmax.f32 %v10078_v29, 0.0  ;;  %v21208_v12 = vld [vmem:[%s28894_s11 + $0x3f0] ss:$12 sps:$4 sm:$0xff]   ;;  %v21214_v29 = vld [vmem:[%s28894_s11 + $0x3d8] ss:$12 sps:$4 sm:$0xff]  }
 0xb78   :  { %v9950_v7 = vpop.f32.mrf.mxu1  ;;  %v21216_v6 = vld [vmem:[%s28894_s11 + $0x3dc] ss:$12 sps:$4 sm:$0xff]   ;;  %v21183_v60 = vld [vmem:[%s28894_s11 + $0x2a4] ss:$12 sps:$4 sm:$0xff]   ;;  %v21181_v27 = vld [vmem:[%s28894_s11 + $0x2a0] ss:$12 sps:$4 sm:$0xff]  }
 0xb79   :  { %v10089_v38 = vmax.f32 %v10080_v40, 0.0  ;;  %v10081_v52 = vadd.f32 %v10066_v56, %v10055_v36  ;;  %v26823_v30 = vpack.c.bf16 %v10087_v61, %v10084_v13  ;;  %v21186_v5 = vld [vmem:[%s28894_s11 + $0x28c] ss:$12 sps:$4 sm:$0xff]   ;;  %v21184_v13 = vld [vmem:[%s28894_s11 + $0x288] ss:$12 sps:$4 sm:$0xff]  }
 0xb7a   :  { %v21189_v14 = vld [vmem:[%s28894_s11 + $0x274] ss:$12 sps:$4 sm:$0xff]   ;;  %v21222_v36 = vld [vmem:[%s28894_s11 + $0x3c4] ss:$12 sps:$4 sm:$0xff]   ;;  %v21192_v7 = vld [vmem:[%s28894_s11 + $0x25c] ss:$12 sps:$4 sm:$0xff]  }
 0xb7b   :  { %v10090_v28 = vmax.f32 %v10081_v52, 0.0  ;;  %v10095_v26 = vpack.c.bf16 %v10089_v38, %v10089_v38  ;;  %v21220_v40 = vld [vmem:[%s28894_s11 + $0x3c0] ss:$12 sps:$4 sm:$0xff]   ;;  %v21187_v61 = vld [vmem:[%s28894_s11 + $0x270] ss:$12 sps:$4 sm:$0xff]  }
 0xb7c   :  { %v21226_v38 = vld [vmem:[%s28894_s11 + $0x3a8] ss:$12 sps:$4 sm:$0xff]   ;;  %v21228_v52 = vld [vmem:[%s28894_s11 + $0x3ac] ss:$12 sps:$4 sm:$0xff]  }
 0xb7d   :  { %v26825_v54 = vpack.c.bf16 %v10090_v28, %v10090_v28  ;;  %v26828_v21 = vsel %vm10109_vm8, %v10095_v26, 0  ;;  %v21190_v28 = vld [vmem:[%s28894_s11 + $0x258] ss:$12 sps:$4 sm:$0xff]  }
 0xb7e   :  { %v21195_v26 = vld [vmem:[%s28894_s11 + $0x244] ss:$12 sps:$4 sm:$0xff]  }
 0xb7f   :  { %17779 = vmatprep.subr.msk.bf16.mxu0 %vm10109_vm8, %v26825_v54 }
 0xb80   :  { %10132 = vmatpush1.bf16.msra.mxu0 %v26828_v21 }
 0xb81   :  { %10133 = vmatprep.subr.bf16.mxu0 %v26823_v30 }
 0xb84   :  { %10134 = vmatpush1.bf16.msra.mxu0 %v26821_v0 }
 0xb85   :  { %19946 = vmatprep.subr.bf16.mxu0 %v29046_v8 }
 0xb87   :  { %17780 = vmatmul.mubr.msk.bf16.vlgmr.msra.gmra.mxu0 %vm10105_vm9, %v21176_v46 }
 0xb88   :  { %19950 = vmatprep.mubr.msk.bf16.mxu0 %vm22041_vm1, %v29046_v8 }
 0xb8a   :  { %v19362_v1 = vpop.f32.mrf.mxu1 }
 0xb8c   :  { %v19363_v34 = vpop.f32.mrf.mxu1 }
 0xb8d   :  { %v19364_v41 = vadd.f32 %v19363_v34, %v19362_v1  ;;  %v21198_v1 = vld [vmem:[%s28894_s11 + $0x22c] ss:$12 sps:$4 sm:$0xff]   ;;  %v21196_v34 = vld [vmem:[%s28894_s11 + $0x228] ss:$12 sps:$4 sm:$0xff]  }
 0xb8e   :  { %v19365_v2 = vpop.f32.mrf.mxu1 }
 0xb90   :  { %v19366_v17 = vpop.f32.mrf.mxu1 }
 0xb91   :  { %v19367_v16 = vadd.f32 %v19366_v17, %v19365_v2  ;;  %v21201_v2 = vld [vmem:[%s28894_s11 + $0x214] ss:$12 sps:$4 sm:$0xff]   ;;  %v21199_v17 = vld [vmem:[%s28894_s11 + $0x210] ss:$12 sps:$4 sm:$0xff]  }
 0xb92   :  { %v19368_v55 = vpop.f32.mrf.mxu1 }
 0xb94   :  { %v19369_v33 = vpop.f32.mrf.mxu1 }
 0xb95   :  { %v19370_v48 = vadd.f32 %v19369_v33, %v19368_v55  ;;  %v21207_v55 = vld [vmem:[%s28894_s11 + $0x37c] ss:$12 sps:$4 sm:$0xff]   ;;  %v21205_v33 = vld [vmem:[%s28894_s11 + $0x378] ss:$12 sps:$4 sm:$0xff]  }
 0xb96   :  { %v19371_v58 = vpop.f32.mrf.mxu1 }
 0xb97   :  { %v21213_v58 = vld [vmem:[%s28894_s11 + $0x364] ss:$12 sps:$4 sm:$0xff]  }
 0xb98   :  { %v19372_v51 = vpop.f32.mrf.mxu1 }
 0xb99   :  { %v21211_v51 = vld [vmem:[%s28894_s11 + $0x360] ss:$12 sps:$4 sm:$0xff]  }
 0xba6   :  { %v19944_v9 = vpop.f32.mrf.mxu1 }
 0xba7   :  { %v10043_v19 = vadd.f32 %v19944_v9, %v19370_v48  ;;  %v21219_v48 = vld [vmem:[%s28894_s11 + $0x34c] ss:$12 sps:$4 sm:$0xff]   ;;  %v21217_v9 = vld [vmem:[%s28894_s11 + $0x348] ss:$12 sps:$4 sm:$0xff]  }
 0xba8   :  { %v10034_v24 = vpop.f32.mrf.mxu1 }
 0xba9   :  { %v10056_v11 = vadd.f32 %v10043_v19, %v26715_v47  ;;  %v10035_v20 = vadd.f32 %v19364_v41, %v10034_v24  ;;  %v21225_v41 = vld [vmem:[%s28894_s11 + $0x334] ss:$12 sps:$4 sm:$0xff]   ;;  %v21223_v19 = vld [vmem:[%s28894_s11 + $0x330] ss:$12 sps:$4 sm:$0xff]   ;;  %v21229_v24 = vld [vmem:[%s28894_s11 + $0x318] ss:$12 sps:$4 sm:$0xff]  }
 0xbaa   :  { %v19945_v56 = vpop.f32.mrf.mxu1 }
 0xbab   :  { %v10082_v53 = vadd.f32 %v10070_v3, %v10056_v11  ;;  %v10050_v42 = vadd.f32 %v10035_v20, %v26717_v31  ;;  %v21234_v11 = vld [vmem:[%s28894_s11 + $0x394] ss:$12 sps:$4 sm:$0xff]   ;;  %v21232_v20 = vld [vmem:[%s28894_s11 + $0x390] ss:$12 sps:$4 sm:$0xff]  }
 0xbac   :  { %v10037_v50 = vpop.f32.mrf.mxu1  ;;  %v21237_v56 = vld [vmem:[%s28894_s11 + $0x304] ss:$12 sps:$4 sm:$0xff]  }
 0xbad   :  { %v10091_v4 = vmax.f32 %v10082_v53, 0.0  ;;  %v10038_v15 = vadd.f32 %v19367_v16, %v10037_v50  ;;  %v10076_v43 = vadd.f32 %v10070_v3, %v10050_v42  ;;  %v21235_v16 = vld [vmem:[%s28894_s11 + $0x300] ss:$12 sps:$4 sm:$0xff]   ;;  %v21240_v42 = vld [vmem:[%s28894_s11 + $0x2e8] ss:$12 sps:$4 sm:$0xff]  }
 0xbae   :  { %v21238_v53 = vld [vmem:[%s28894_s11 + $0x380] ss:$12 sps:$4 sm:$0xff]  }
 0xbaf   :  { %v10053_v59 = vadd.f32 %v10038_v15, %v9250_v57  ;;  %v10097_v22 = vpack.c.bf16 %v10091_v4, %v10091_v4  ;;  %v10085_v47 = vmax.f32 %v10076_v43, 0.0  ;;  %v21242_v50 = vld [vmem:[%s28894_s11 + $0x2ec] ss:$12 sps:$4 sm:$0xff]   ;;  %v21247_v57 = vld [vmem:[%s28894_s11 + $0x2d4] ss:$12 sps:$4 sm:$0xff]  }
 0xbb0   :  { %v21245_v4 = vld [vmem:[%s28894_s11 + $0x2d0] ss:$12 sps:$4 sm:$0xff]   ;;  %v21252_v15 = vld [vmem:[%s28894_s11 + $0xac] ss:$12 sps:$4 sm:$0xff]  }
 0xbb1   :  { %v10079_v63 = vadd.f32 %v10070_v3, %v10053_v59  ;;  %v26849_v39 = vsel %vm10109_vm8, %v10097_v22, 0  ;;  %v21231_v3 = vld [vmem:[%s28894_s11 + $0x31c] ss:$12 sps:$4 sm:$0xff]  }
 0xbb2   :  { %19947 = vmatpush3.bf16.msra.mxu0 %v26849_v39  ;;  %19955 = vmatpush3.bf16.msra.mxu1 %v26849_v39 }
 0xbb3   :  { %v10088_v18 = vmax.f32 %v10079_v63, 0.0  ;;  %19948 = vmatprep.subr.bf16.mxu0 %v29046_v8  ;;  %19956 = vmatprep.subr.bf16.mxu1 %v29046_v8 }
 0xbb5   :  { %v26858_v31 = vpack.c.bf16 %v10088_v18, %v10085_v47 }
 0xbb7   :  { %19949 = vmatpush3.bf16.msra.mxu0 %v26858_v31  ;;  %19957 = vmatpush3.bf16.msra.mxu1 %v26858_v31 }
 0xbb8   :  { %17785 = vmatprep.subr.msk.bf16.mxu0 %vm10109_vm8, %v26825_v54  ;;  %10884 = vmatprep.subr.bf16.mxu1 %v21204_v23 }
 0xbba   :  { %19951 = vmatmul.mubr.msk.bf16.vlgmr.msra.gmra.mxu0 %vm10105_vm9, %v21176_v46  ;;  %19959 = vmatmul.mubr.msk.bf16.vlgmr.msra.gmra.mxu1 %vm10105_vm9, %v21177_v44  ;;  %v21193_v46 = vld [vmem:[%s28894_s11 + $0x240] ss:$12 sps:$4 sm:$0xff]  }
 0xbbb   :  { %10318 = vmatpush1.bf16.msra.mxu0 %v26828_v21  ;;  %10337 = vmatprep.mubr.bf16.mxu0 %v29027_v10 }
 0xbbc   :  { %10319 = vmatprep.subr.bf16.mxu0 %v26823_v30  ;;  %10885 = vmatpush1.bf16.msra.mxu1 %v21202_v49 }
 0xbbd   :  { %10886 = vmatprep.subr.bf16.mxu1 %v21210_v62  ;;  %10912 = vmatprep.mubr.bf16.mxu1 %v29027_v10 }
 0xbbf   :  { %10320 = vmatpush1.bf16.msra.mxu0 %v26821_v0 }
 0xbc0   :  { %10837 = vmatprep.subr.bf16.mxu0 %v21180_v25  ;;  %10887 = vmatpush1.bf16.msra.mxu1 %v21208_v12  ;;  %v21239_v12 = vld [vmem:[%s28894_s11 + $0x2c0] ss:$12 sps:$4 sm:$0xff]  }
 0xbc1   :  { %10888 = vmatprep.subr.bf16.mxu1 %v21216_v6 }
 0xbc2   :  { %17786 = vmatmul.mubr.msk.bf16.vlgmr.msra.gmra.mxu0 %vm10105_vm9, %v21177_v44 }
 0xbc3   :  { %10838 = vmatpush1.bf16.msra.mxu0 %v21178_v37 }
 0xbc4   :  { %10839 = vmatprep.subr.bf16.mxu0 %v21183_v60  ;;  %10889 = vmatpush1.bf16.msra.mxu1 %v21214_v29  ;;  %v21243_v60 = vld [vmem:[%s28894_s11 + $0x368] ss:$12 sps:$4 sm:$0xff]  }
 0xbc5   :  { %10890 = vmatprep.subr.bf16.mxu1 %v21222_v36 }
 0xbc7   :  { %10840 = vmatpush1.bf16.msra.mxu0 %v21181_v27 }
 0xbc8   :  { %10841 = vmatprep.subr.bf16.mxu0 %v21186_v5  ;;  %10891 = vmatpush1.bf16.msra.mxu1 %v21220_v40 }
 0xbc9   :  { %10892 = vmatprep.subr.bf16.mxu1 %v21228_v52 }
 0xbcb   :  { %10842 = vmatpush1.bf16.msra.mxu0 %v21184_v13  ;;  %v21244_v13 = vld [vmem:[%s28894_s11 + $0x2a8] ss:$12 sps:$4 sm:$0xff]  }
 0xbcc   :  { %10843 = vmatprep.subr.bf16.mxu0 %v21189_v14  ;;  %10893 = vmatpush1.bf16.msra.mxu1 %v21226_v38  ;;  %v21248_v14 = vld [vmem:[%s28894_s11 + $0x350] ss:$12 sps:$4 sm:$0xff]  }
 0xbcd   :  { %10894 = vmatprep.subr.bf16.mxu1 %v21234_v11  ;;  %v21273_v11 = vld [vmem:[%s28894_s11 + $0x2d8] ss:$12 sps:$4 sm:$0xff]  }
 0xbcf   :  { %10844 = vmatpush1.bf16.msra.mxu0 %v21187_v61  ;;  %v21249_v61 = vld [vmem:[%s28894_s11 + $0x290] ss:$12 sps:$4 sm:$0xff]  }
 0xbd0   :  { %10845 = vmatprep.subr.bf16.mxu0 %v21192_v7  ;;  %10895 = vmatpush1.bf16.msra.mxu1 %v21232_v20  ;;  %v21253_v7 = vld [vmem:[%s28894_s11 + $0x338] ss:$12 sps:$4 sm:$0xff]   ;;  %v21270_v20 = vld [vmem:[%s28894_s11 + $0x48] ss:$12 sps:$4 sm:$0xff]  }
 0xbd1   :  { %19389 = vmatprep.subr.bf16.mxu1 %v21238_v53  ;;  %v21275_v53 = vld [vmem:[%s28894_s11 + $0x30] ss:$12 sps:$4 sm:$0xff]  }
 0xbd3   :  { %10846 = vmatpush1.bf16.msra.mxu0 %v21190_v28 }
 0xbd4   :  { %10847 = vmatprep.subr.bf16.mxu0 %v21195_v26  ;;  %v21250_v26 = vld [vmem:[%s28894_s11 + $0xa8] ss:$12 sps:$4 sm:$0xff]  }
 0xbd7   :  { %10848 = vmatpush1.bf16.msra.mxu0 %v21193_v46  ;;  %v21254_v46 = vld [vmem:[%s28894_s11 + $0x278] ss:$12 sps:$4 sm:$0xff]  }
 0xbd8   :  { %10849 = vmatprep.subr.bf16.mxu0 %v21198_v1  ;;  %v21257_v1 = vld [vmem:[%s28894_s11 + $0x94] ss:$12 sps:$4 sm:$0xff]  }
 0xbdb   :  { %10850 = vmatpush1.bf16.msra.mxu0 %v21196_v34 }
 0xbdc   :  { %10851 = vmatprep.subr.bf16.mxu0 %v21201_v2  ;;  %v21258_v2 = vld [vmem:[%s28894_s11 + $0x320] ss:$12 sps:$4 sm:$0xff]  }
 0xbdf   :  { %10852 = vmatpush1.bf16.msra.mxu0 %v21199_v17  ;;  %v21255_v17 = vld [vmem:[%s28894_s11 + $0x90] ss:$12 sps:$4 sm:$0xff]  }
 0xbe0   :  { %10853 = vmatprep.subr.bf16.mxu0 %v21207_v55  ;;  %v21259_v55 = vld [vmem:[%s28894_s11 + $0x260] ss:$12 sps:$4 sm:$0xff]  }
 0xbe3   :  { %10854 = vmatpush2.bf16.msra.mxu0 %v21205_v33  ;;  %v21262_v33 = vld [vmem:[%s28894_s11 + $0x7c] ss:$12 sps:$4 sm:$0xff]  }
 0xbe4   :  { %10855 = vmatprep.subr.bf16.mxu0 %v21213_v58  ;;  %v21263_v58 = vld [vmem:[%s28894_s11 + $0x308] ss:$12 sps:$4 sm:$0xff]  }
 0xbe7   :  { %10856 = vmatpush2.bf16.msra.mxu0 %v21211_v51  ;;  %v21260_v51 = vld [vmem:[%s28894_s11 + $0x78] ss:$12 sps:$4 sm:$0xff]  }
 0xbe8   :  { %10857 = vmatprep.subr.bf16.mxu0 %v21219_v48  ;;  %v21264_v48 = vld [vmem:[%s28894_s11 + $0x248] ss:$12 sps:$4 sm:$0xff]  }
 0xbeb   :  { %10858 = vmatpush2.bf16.msra.mxu0 %v21217_v9  ;;  %v21267_v9 = vld [vmem:[%s28894_s11 + $0x64] ss:$12 sps:$4 sm:$0xff]  }
 0xbec   :  { %10859 = vmatprep.subr.bf16.mxu0 %v21225_v41  ;;  %v21268_v41 = vld [vmem:[%s28894_s11 + $0x2f0] ss:$12 sps:$4 sm:$0xff]  }
 0xbef   :  { %10860 = vmatpush2.bf16.msra.mxu0 %v21223_v19  ;;  %v21265_v19 = vld [vmem:[%s28894_s11 + $0x60] ss:$12 sps:$4 sm:$0xff]  }
 0xbf0   :  { %10861 = vmatprep.subr.bf16.mxu0 %v21231_v3  ;;  %v21269_v3 = vld [vmem:[%s28894_s11 + $0x230] ss:$12 sps:$4 sm:$0xff]  }
 0xbf3   :  { %10862 = vmatpush2.bf16.msra.mxu0 %v21229_v24  ;;  %v21272_v24 = vld [vmem:[%s28894_s11 + $0x4c] ss:$12 sps:$4 sm:$0xff]  }
 0xbf4   :  { %10863 = vmatprep.subr.bf16.mxu0 %v21237_v56  ;;  %v21274_v56 = vld [vmem:[%s28894_s11 + $0x218] ss:$12 sps:$4 sm:$0xff]  }
 0xbf7   :  { %10864 = vmatpush2.bf16.msra.mxu0 %v21235_v16  ;;  %v21277_v16 = vld [vmem:[%s28894_s11 + $0x34] ss:$12 sps:$4 sm:$0xff]  }
 0xbf8   :  { %10865 = vmatprep.subr.bf16.mxu0 %v21242_v50  ;;  %v21281_v50 = vld [vmem:[%s28894_s11 + $0x1c] ss:$12 sps:$4 sm:$0xff]  }
 0xbfb   :  { %10866 = vmatpush2.bf16.msra.mxu0 %v21240_v42  ;;  %v21278_v42 = vld [vmem:[%s28894_s11 + $0x410] ss:$12 sps:$4 sm:$0xff]  }
 0xbfc   :  { %10867 = vmatprep.subr.bf16.mxu0 %v21247_v57  ;;  %v21279_v57 = vld [vmem:[%s28894_s11 + $0x18] ss:$12 sps:$4 sm:$0xff]  }
 0xbff   :  { %10868 = vmatpush2.bf16.msra.mxu0 %v21245_v4  ;;  %v21282_v4 = vld [vmem:[%s28894_s11 + $0x3f8] ss:$12 sps:$4 sm:$0xff]  }
 0xc00   :  { %11360 = vmatprep.subr.bf16.mxu0 %v21252_v15  ;;  %v21285_v15 = vld [vmem:[%s28894_s11 + $0x4] ss:$12 sps:$4 sm:$0xff]  }
 0xc47   :  { %v10153_v43 = vpop.f32.mrf.mxu0 }
 0xc49   :  { %v10155_v59 = vpop.f32.mrf.mxu0 }
 0xc4b   :  { %v10157_v22 = vpop.f32.mrf.mxu0 }
 0xc4c   :  { %v27010_v63 = vpack.c.bf16 %v10157_v22, %v10153_v43  ;;  %v21283_v43 = vld [vmem:[%s28894_s11] ss:$12 sps:$4 sm:$0xff]  }
 0xc4d   :  { %v10159_v47 = vpop.f32.mrf.mxu0  ;;  %v21289_v22 = vld [vmem:[%s28894_s11 + $0x16c] ss:$12 sps:$4 sm:$0xff]  }
 0xc4e   :  { %v27045_v34 = vpack.c.bf16 %v10159_v47, %v10155_v59  ;;  %v21286_v59 = vld [vmem:[%s28894_s11 + $0x3e0] ss:$12 sps:$4 sm:$0xff]   ;;  %v21287_v47 = vld [vmem:[%s28894_s11 + $0x168] ss:$12 sps:$4 sm:$0xff]  }
 0xc7a   :  { %v10196_v18 = vpop.f32.mrf.mxu0  ;;  %v10382_v23 = vpop.f32.mrf.mxu1 }
 0xc7c   :  { %v19952_v44 = vpop.f32.mrf.mxu0  ;;  %v19960_v49 = vpop.f32.mrf.mxu1 }
 0xc7d   :  { %v21291_v44 = vld [vmem:[%s28894_s11 + $0x150] ss:$12 sps:$4 sm:$0xff]  }
 0xc7e   :  { %v10199_v62 = vpop.f32.mrf.mxu0  ;;  %v10385_v25 = vpop.f32.mrf.mxu1  ;;  %v21294_v49 = vld [vmem:[%s28894_s11 + $0x3b0] ss:$12 sps:$4 sm:$0xff]  }
 0xc7f   :  { %v27015_v6 = vpack.c.bf16 %v10199_v62, %v10196_v18  ;;  %v27017_v37 = vpack.c.bf16 %v10385_v25, %v10382_v23  ;;  %v21290_v18 = vld [vmem:[%s28894_s11 + $0x3c8] ss:$12 sps:$4 sm:$0xff]   ;;  %v21295_v25 = vld [vmem:[%s28894_s11 + $0x138] ss:$12 sps:$4 sm:$0xff]  }
 0xc80   :  { %v19953_v29 = vpop.f32.mrf.mxu0  ;;  %v19961_v27 = vpop.f32.mrf.mxu1  ;;  %v21293_v23 = vld [vmem:[%s28894_s11 + $0x154] ss:$12 sps:$4 sm:$0xff]   ;;  %v21297_v62 = vld [vmem:[%s28894_s11 + $0x13c] ss:$12 sps:$4 sm:$0xff]  }
 0xc81   :  { %17942 = vmatmul.mubr.msk.bf16.vlgmr.msra.gmra.mxu1 %vm10833_vm10, %v27017_v37  ;;  %v21304_v29 = vld [vmem:[%s28894_s11 + $0x1fc] ss:$12 sps:$4 sm:$0xff]   ;;  %v21299_v27 = vld [vmem:[%s28894_s11 + $0x120] ss:$12 sps:$4 sm:$0xff]  }
 0xc82   :  { %19390 = vmatpush3.bf16.msra.mxu1 %v21239_v12  ;;  %v10339_v5 = vpop.f32.mrf.mxu0  ;;  %v21298_v12 = vld [vmem:[%s28894_s11 + $0x398] ss:$12 sps:$4 sm:$0xff]  }
 0xc83   :  { %19391 = vmatprep.subr.bf16.mxu1 %v21243_v60  ;;  %v21301_v60 = vld [vmem:[%s28894_s11 + $0x124] ss:$12 sps:$4 sm:$0xff]  }
 0xc84   :  { %v10341_v40 = vpop.f32.mrf.mxu0 }
 0xc86   :  { %19392 = vmatpush3.bf16.msra.mxu1 %v21244_v13  ;;  %v10343_v36 = vpop.f32.mrf.mxu0  ;;  %v21307_v13 = vld [vmem:[%s28894_s11 + $0x10c] ss:$12 sps:$4 sm:$0xff]  }
 0xc87   :  { %19393 = vmatprep.subr.bf16.mxu1 %v21248_v14  ;;  %v10389_v38 = vpack.c.bf16 %v10343_v36, %v10339_v5  ;;  %v21302_v5 = vld [vmem:[%s28894_s11 + $0x1f8] ss:$12 sps:$4 sm:$0xff]   ;;  %v21308_v36 = vld [vmem:[%s28894_s11 + $0x1e0] ss:$12 sps:$4 sm:$0xff]  }
 0xc88   :  { %v10345_v52 = vpop.f32.mrf.mxu0  ;;  %v21310_v14 = vld [vmem:[%s28894_s11 + $0x1e4] ss:$12 sps:$4 sm:$0xff]  }
 0xc89   :  { %v10390_v28 = vpack.c.bf16 %v10345_v52, %v10341_v40  ;;  %v21305_v40 = vld [vmem:[%s28894_s11 + $0x108] ss:$12 sps:$4 sm:$0xff]  }
 0xc8a   :  { %19394 = vmatpush3.bf16.msra.mxu1 %v21249_v61  ;;  %v21313_v61 = vld [vmem:[%s28894_s11 + $0xf4] ss:$12 sps:$4 sm:$0xff]   ;;  %v21319_v52 = vld [vmem:[%s28894_s11 + $0xdc] ss:$12 sps:$4 sm:$0xff]  }
 0xc8b   :  { %10869 = vmatprep.mubr.bf16.mxu0 %v10390_v28  ;;  %19395 = vmatprep.subr.bf16.mxu1 %v21253_v7  ;;  %v21311_v7 = vld [vmem:[%s28894_s11 + $0xf0] ss:$12 sps:$4 sm:$0xff]  }
 0xc8c   :  { %10870 = vmatmul.mubr.bf16.vlgmr.msra.gmra.mxu0 %v10389_v38  ;;  %10955 = vmatprep.mubr.bf16.mxu1 %v10390_v28  ;;  %v21322_v28 = vld [vmem:[%s28894_s11 + $0x1b4] ss:$12 sps:$4 sm:$0xff]  }
 0xc8d   :  { %11361 = vmatpush1.bf16.msra.mxu0 %v21250_v26  ;;  %11392 = vmatprep.mubr.bf16.mxu0 %v27045_v34  ;;  %v21317_v26 = vld [vmem:[%s28894_s11 + $0xd8] ss:$12 sps:$4 sm:$0xff]  }
 0xc8e   :  { %19396 = vmatpush3.bf16.msra.mxu1 %v21254_v46  ;;  %11362 = vmatprep.subr.bf16.mxu0 %v21257_v1  ;;  %v21320_v46 = vld [vmem:[%s28894_s11 + $0x1b0] ss:$12 sps:$4 sm:$0xff]  }
 0xc8f   :  { %19397 = vmatprep.subr.bf16.mxu1 %v21258_v2  ;;  %v21325_v1 = vld [vmem:[%s28894_s11 + $0xc4] ss:$12 sps:$4 sm:$0xff]   ;;  %v21328_v2 = vld [vmem:[%s28894_s11 + $0x19c] ss:$12 sps:$4 sm:$0xff]  }
 0xc91   :  { %11363 = vmatpush1.bf16.msra.mxu0 %v21255_v17  ;;  %v21323_v17 = vld [vmem:[%s28894_s11 + $0xc0] ss:$12 sps:$4 sm:$0xff]  }
 0xc92   :  { %19398 = vmatpush3.bf16.msra.mxu1 %v21259_v55  ;;  %11364 = vmatprep.subr.bf16.mxu0 %v21262_v33  ;;  %v21326_v55 = vld [vmem:[%s28894_s11 + $0x198] ss:$12 sps:$4 sm:$0xff]  }
 0xc93   :  { %19399 = vmatprep.subr.bf16.mxu1 %v21263_v58  ;;  %v21331_v33 = vld [vmem:[%s28894_s11 + $0x184] ss:$12 sps:$4 sm:$0xff]   ;;  %v21332_v58 = vld [vmem:[%s28894_s11 + $0x200] ss:$12 sps:$4 sm:$0xff]  }
 0xc95   :  { %11365 = vmatpush1.bf16.msra.mxu0 %v21260_v51  ;;  %v21329_v51 = vld [vmem:[%s28894_s11 + $0x180] ss:$12 sps:$4 sm:$0xff]  }
 0xc96   :  { %19400 = vmatpush3.bf16.msra.mxu1 %v21264_v48  ;;  %11366 = vmatprep.subr.bf16.mxu0 %v21267_v9  ;;  %v21333_v48 = vld [vmem:[%s28894_s11 + $0x170] ss:$12 sps:$4 sm:$0xff]   ;;  %v21334_v9 = vld [vmem:[%s28894_s11 + $0x1e8] ss:$12 sps:$4 sm:$0xff]  }
 0xc97   :  { %19401 = vmatprep.subr.bf16.mxu1 %v21268_v41  ;;  %v21335_v41 = vld [vmem:[%s28894_s11 + $0xb0] ss:$12 sps:$4 sm:$0xff]  }
 0xc99   :  { %11367 = vmatpush1.bf16.msra.mxu0 %v21265_v19  ;;  %v21336_v19 = vld [vmem:[%s28894_s11 + $0x158] ss:$12 sps:$4 sm:$0xff]  }
 0xc9a   :  { %19402 = vmatpush3.bf16.msra.mxu1 %v21269_v3  ;;  %11368 = vmatprep.subr.bf16.mxu0 %v21272_v24  ;;  %v21337_v3 = vld [vmem:[%s28894_s11 + $0x1d0] ss:$12 sps:$4 sm:$0xff]   ;;  %v21338_v24 = vld [vmem:[%s28894_s11 + $0x98] ss:$12 sps:$4 sm:$0xff]  }
 0xc9b   :  { %19403 = vmatprep.subr.bf16.mxu1 %v21273_v11  ;;  %v21339_v11 = vld [vmem:[%s28894_s11 + $0x140] ss:$12 sps:$4 sm:$0xff]  }
 0xc9d   :  { %11369 = vmatpush1.bf16.msra.mxu0 %v21270_v20  ;;  %v21340_v20 = vld [vmem:[%s28894_s11 + $0x1b8] ss:$12 sps:$4 sm:$0xff]  }
 0xc9e   :  { %19404 = vmatpush3.bf16.msra.mxu1 %v21274_v56  ;;  %11370 = vmatprep.subr.bf16.mxu0 %v21277_v16  ;;  %v21342_v56 = vld [vmem:[%s28894_s11 + $0x128] ss:$12 sps:$4 sm:$0xff]   ;;  %v21343_v16 = vld [vmem:[%s28894_s11 + $0x1a0] ss:$12 sps:$4 sm:$0xff]  }
 0xc9f   :  { %19962 = vmatprep.subr.bf16.mxu1 %v29046_v8 }
 0xca1   :  { %11371 = vmatpush1.bf16.msra.mxu0 %v21275_v53  ;;  %10956 = vmatmul.mubr.bf16.vlgmr.msra.gmra.mxu1 %v10389_v38  ;;  %v21314_v38 = vld [vmem:[%s28894_s11 + $0x1c8] ss:$12 sps:$4 sm:$0xff]  }
 0xca2   :  { %19963 = vmatpush3.bf16.msra.mxu1 %v21278_v42  ;;  %11372 = vmatprep.subr.bf16.mxu0 %v21281_v50  ;;  %v21344_v53 = vld [vmem:[%s28894_s11 + $0x68] ss:$12 sps:$4 sm:$0xff]   ;;  %v21345_v42 = vld [vmem:[%s28894_s11 + $0x110] ss:$12 sps:$4 sm:$0xff]  }
 0xca3   :  { %19964 = vmatprep.subr.bf16.mxu1 %v29046_v8  ;;  %19974 = vmatprep.mubr.msk.bf16.mxu1 %vm22041_vm1, %v29046_v8  ;;  %v21346_v50 = vld [vmem:[%s28894_s11 + $0x188] ss:$12 sps:$4 sm:$0xff]  }
 0xca5   :  { %11373 = vmatpush1.bf16.msra.mxu0 %v21279_v57  ;;  %v21347_v57 = vld [vmem:[%s28894_s11 + $0x50] ss:$12 sps:$4 sm:$0xff]  }
 0xca6   :  { %19965 = vmatpush3.bf16.msra.mxu1 %v21282_v4  ;;  %11374 = vmatprep.subr.bf16.mxu0 %v21285_v15  ;;  %v21348_v4 = vld [vmem:[%s28894_s11 + $0xf8] ss:$12 sps:$4 sm:$0xff]  }
 0xca7   :  { %19966 = vmatprep.subr.bf16.mxu1 %v29046_v8  ;;  %v21349_v15 = vld [vmem:[%s28894_s11 + $0x38] ss:$12 sps:$4 sm:$0xff]  }
 0xca9   :  { %11375 = vmatpush1.bf16.msra.mxu0 %v21283_v43  ;;  %v21350_v43 = vld [vmem:[%s28894_s11 + $0xe0] ss:$12 sps:$4 sm:$0xff]  }
 0xcaa   :  { %19967 = vmatpush3.bf16.msra.mxu1 %v21286_v59  ;;  %11376 = vmatprep.subr.bf16.mxu0 %v21289_v22  ;;  %v21351_v59 = vld [vmem:[%s28894_s11 + $0x20] ss:$12 sps:$4 sm:$0xff]   ;;  %v21352_v22 = vld [vmem:[%s28894_s11 + $0xc8] ss:$12 sps:$4 sm:$0xff]  }
 0xcab   :  { %19968 = vmatprep.subr.bf16.mxu1 %v29046_v8 }
 0xcad   :  { %11377 = vmatpush2.bf16.msra.mxu0 %v21287_v47  ;;  %v21353_v47 = vld [vmem:[%s28894_s11 + $0x8] ss:$12 sps:$4 sm:$0xff]  }
 0xcae   :  { %19969 = vmatpush3.bf16.msra.mxu1 %v21290_v18  ;;  %11378 = vmatprep.subr.bf16.mxu0 %v21293_v23  ;;  %v21364_v18 = vld [vmem:[%s28894_s11 + $0x480] ss:$12 sps:$4 sm:$0xff]  }
 0xcaf   :  { %19970 = vmatprep.subr.bf16.mxu1 %v29046_v8  ;;  %v21369_v23 = vld [vmem:[%s28894_s11 + $0x46c] ss:$12 sps:$4 sm:$0xff]  }
 0xcb1   :  { %11379 = vmatpush2.bf16.msra.mxu0 %v21291_v44  ;;  %v21367_v44 = vld [vmem:[%s28894_s11 + $0x468] ss:$12 sps:$4 sm:$0xff]  }
 0xcb2   :  { %19971 = vmatpush3.bf16.msra.mxu1 %v21294_v49  ;;  %11380 = vmatprep.subr.bf16.mxu0 %v21297_v62  ;;  %v21372_v49 = vld [vmem:[%s28894_s11 + $0x454] ss:$12 sps:$4 sm:$0xff]   ;;  %v21370_v62 = vld [vmem:[%s28894_s11 + $0x450] ss:$12 sps:$4 sm:$0xff]  }
 0xcb3   :  { %19972 = vmatprep.subr.bf16.mxu1 %v29046_v8 }
 0xcb5   :  { %11381 = vmatpush2.bf16.msra.mxu0 %v21295_v25  ;;  %v21373_v25 = vld [vmem:[%s28894_s11 + $0x438] ss:$12 sps:$4 sm:$0xff]  }
 0xcb6   :  { %19973 = vmatpush3.bf16.msra.mxu1 %v21298_v12  ;;  %11382 = vmatprep.subr.bf16.mxu0 %v21301_v60  ;;  %v21375_v12 = vld [vmem:[%s28894_s11 + $0x43c] ss:$12 sps:$4 sm:$0xff]   ;;  %v21378_v60 = vld [vmem:[%s28894_s11 + $0x424] ss:$12 sps:$4 sm:$0xff]  }
 0xcb7   :  { %11407 = vmatprep.subr.bf16.mxu1 %v21304_v29  ;;  %v21376_v29 = vld [vmem:[%s28894_s11 + $0x420] ss:$12 sps:$4 sm:$0xff]  }
 0xcb9   :  { %19975 = vmatmul.mubr.msk.bf16.vlgmr.msra.gmra.mxu1 %vm10833_vm10, %v27017_v37  ;;  %11383 = vmatpush2.bf16.msra.mxu0 %v21299_v27  ;;  %v21316_v37 = vld [vmem:[%s28894_s11 + $0x1cc] ss:$12 sps:$4 sm:$0xff]  }
 0xcba   :  { %11408 = vmatpush1.bf16.msra.mxu1 %v21302_v5  ;;  %11384 = vmatprep.subr.bf16.mxu0 %v21307_v13  ;;  %v21381_v27 = vld [vmem:[%s28894_s11 + $0x58c] ss:$12 sps:$4 sm:$0xff]   ;;  %v21379_v5 = vld [vmem:[%s28894_s11 + $0x588] ss:$12 sps:$4 sm:$0xff]  }
 0xcbb   :  { %11409 = vmatprep.subr.bf16.mxu1 %v21310_v14  ;;  %11435 = vmatprep.mubr.bf16.mxu1 %v29027_v10  ;;  %v21384_v13 = vld [vmem:[%s28894_s11 + $0x574] ss:$12 sps:$4 sm:$0xff]   ;;  %v21382_v14 = vld [vmem:[%s28894_s11 + $0x570] ss:$12 sps:$4 sm:$0xff]  }
 0xcbd   :  { %11385 = vmatpush2.bf16.msra.mxu0 %v21305_v40  ;;  %v21390_v40 = vld [vmem:[%s28894_s11 + $0x55c] ss:$12 sps:$4 sm:$0xff]  }
 0xcbe   :  { %11410 = vmatpush1.bf16.msra.mxu1 %v21308_v36  ;;  %11386 = vmatprep.subr.bf16.mxu0 %v21313_v61  ;;  %v21385_v36 = vld [vmem:[%s28894_s11 + $0x618] ss:$12 sps:$4 sm:$0xff]   ;;  %v21387_v61 = vld [vmem:[%s28894_s11 + $0x61c] ss:$12 sps:$4 sm:$0xff]  }
 0xcbf   :  { %11411 = vmatprep.subr.bf16.mxu1 %v21316_v37  ;;  %v21388_v37 = vld [vmem:[%s28894_s11 + $0x558] ss:$12 sps:$4 sm:$0xff]  }
 0xcc1   :  { %11387 = vmatpush2.bf16.msra.mxu0 %v21311_v7  ;;  %v21396_v7 = vld [vmem:[%s28894_s11 + $0x544] ss:$12 sps:$4 sm:$0xff]  }
 0xcc2   :  { %11412 = vmatpush1.bf16.msra.mxu1 %v21314_v38  ;;  %11388 = vmatprep.subr.bf16.mxu0 %v21319_v52  ;;  %v21394_v38 = vld [vmem:[%s28894_s11 + $0x540] ss:$12 sps:$4 sm:$0xff]   ;;  %v21393_v52 = vld [vmem:[%s28894_s11 + $0x604] ss:$12 sps:$4 sm:$0xff]  }
 0xcc3   :  { %11413 = vmatprep.subr.bf16.mxu1 %v21322_v28  ;;  %v21402_v28 = vld [vmem:[%s28894_s11 + $0x52c] ss:$12 sps:$4 sm:$0xff]  }
 0xcc5   :  { %11389 = vmatpush2.bf16.msra.mxu0 %v21317_v26  ;;  %v21391_v26 = vld [vmem:[%s28894_s11 + $0x600] ss:$12 sps:$4 sm:$0xff]  }
 0xcc6   :  { %11414 = vmatpush1.bf16.msra.mxu1 %v21320_v46  ;;  %11390 = vmatprep.subr.bf16.mxu0 %v21325_v1  ;;  %v21400_v46 = vld [vmem:[%s28894_s11 + $0x528] ss:$12 sps:$4 sm:$0xff]   ;;  %v21399_v1 = vld [vmem:[%s28894_s11 + $0x5ec] ss:$12 sps:$4 sm:$0xff]  }
 0xcc7   :  { %11415 = vmatprep.subr.bf16.mxu1 %v21328_v2  ;;  %v21408_v2 = vld [vmem:[%s28894_s11 + $0x514] ss:$12 sps:$4 sm:$0xff]  }
 0xcc9   :  { %11391 = vmatpush2.bf16.msra.mxu0 %v21323_v17  ;;  %v21397_v17 = vld [vmem:[%s28894_s11 + $0x5e8] ss:$12 sps:$4 sm:$0xff]  }
 0xcca   :  { %11416 = vmatpush1.bf16.msra.mxu1 %v21326_v55  ;;  %19978 = vmatprep.subr.bf16.mxu0 %v29046_v8  ;;  %v21406_v55 = vld [vmem:[%s28894_s11 + $0x510] ss:$12 sps:$4 sm:$0xff]  }
 0xccb   :  { %11417 = vmatprep.subr.bf16.mxu1 %v21331_v33  ;;  %v21405_v33 = vld [vmem:[%s28894_s11 + $0x5d4] ss:$12 sps:$4 sm:$0xff]  }
 0xccc   :  { %11393 = vmatmul.mubr.bf16.vlgmr.msra.gmra.mxu0 %v27010_v63 }
 0xccd   :  { %19979 = vmatpush3.bf16.msra.mxu0 %v21332_v58  ;;  %19990 = vmatprep.mubr.msk.bf16.mxu0 %vm22041_vm1, %v29046_v8  ;;  %v21414_v58 = vld [vmem:[%s28894_s11 + $0x4fc] ss:$12 sps:$4 sm:$0xff]  }
 0xcce   :  { %11418 = vmatpush1.bf16.msra.mxu1 %v21329_v51  ;;  %19980 = vmatprep.subr.bf16.mxu0 %v29046_v8  ;;  %v21403_v51 = vld [vmem:[%s28894_s11 + $0x5d0] ss:$12 sps:$4 sm:$0xff]  }
 0xccf   :  { %19418 = vmatprep.subr.bf16.mxu1 %v21333_v48  ;;  %v21412_v48 = vld [vmem:[%s28894_s11 + $0x4f8] ss:$12 sps:$4 sm:$0xff]  }
 0xcd1   :  { %18010 = vmatmul.mubr.msk.bf16.vlgmr.msra.gmra.mxu1 %vm10833_vm10, %v27015_v6  ;;  %19981 = vmatpush3.bf16.msra.mxu0 %v21334_v9  ;;  %v21411_v9 = vld [vmem:[%s28894_s11 + $0x5bc] ss:$12 sps:$4 sm:$0xff]  }
 0xcd2   :  { %19419 = vmatpush3.bf16.msra.mxu1 %v21335_v41  ;;  %11478 = vmatprep.mubr.bf16.mxu1 %v27045_v34  ;;  %v21341_v34 = vld [vmem:[%s28894_s11 + $0x80] ss:$12 sps:$4 sm:$0xff]   ;;  %v21420_v41 = vld [vmem:[%s28894_s11 + $0x4e4] ss:$12 sps:$4 sm:$0xff]  }
 0xcd3   :  { %19982 = vmatprep.subr.bf16.mxu0 %v29046_v8  ;;  %19420 = vmatprep.subr.bf16.mxu1 %v21336_v19  ;;  %v21409_v19 = vld [vmem:[%s28894_s11 + $0x5b8] ss:$12 sps:$4 sm:$0xff]  }
 0xcd5   :  { %19983 = vmatpush3.bf16.msra.mxu0 %v21337_v3  ;;  %v21418_v3 = vld [vmem:[%s28894_s11 + $0x4e0] ss:$12 sps:$4 sm:$0xff]  }
 0xcd6   :  { %19421 = vmatpush3.bf16.msra.mxu1 %v21338_v24  ;;  %19984 = vmatprep.subr.bf16.mxu0 %v29046_v8  ;;  %v21417_v24 = vld [vmem:[%s28894_s11 + $0x5a4] ss:$12 sps:$4 sm:$0xff]  }
 0xcd7   :  { %19422 = vmatprep.subr.bf16.mxu1 %v21339_v11  ;;  %v21415_v11 = vld [vmem:[%s28894_s11 + $0x5a0] ss:$12 sps:$4 sm:$0xff]  }
 0xcd9   :  { %19985 = vmatpush3.bf16.msra.mxu0 %v21340_v20  ;;  %v21421_v20 = vld [vmem:[%s28894_s11 + $0x590] ss:$12 sps:$4 sm:$0xff]  }
 0xcda   :  { %19423 = vmatpush3.bf16.msra.mxu1 %v21341_v34  ;;  %19986 = vmatprep.subr.bf16.mxu0 %v29046_v8 }
 0xcdb   :  { %19424 = vmatprep.subr.bf16.mxu1 %v21342_v56 }
 0xcdd   :  { %19987 = vmatpush3.bf16.msra.mxu0 %v21343_v16 }
 0xcde   :  { %19425 = vmatpush3.bf16.msra.mxu1 %v21344_v53  ;;  %19988 = vmatprep.subr.bf16.mxu0 %v29046_v8 }
 0xcdf   :  { %19426 = vmatprep.subr.bf16.mxu1 %v21345_v42 }
 0xce1   :  { %19989 = vmatpush3.bf16.msra.mxu0 %v21346_v50 }
 0xce2   :  { %19427 = vmatpush3.bf16.msra.mxu1 %v21347_v57 }
 0xce3   :  { %19428 = vmatprep.subr.bf16.mxu1 %v21348_v4 }
 0xce4   :  { %19991 = vmatmul.mubr.msk.bf16.vlgmr.msra.gmra.mxu0 %vm10833_vm10, %v27015_v6  ;;  %v21354_v6 = vld [vmem:[%s28893_s10 + $0x10] sm:$0x1f]  }
 0xce6   :  { %19429 = vmatpush3.bf16.msra.mxu1 %v21349_v15 }
 0xce7   :  { %19430 = vmatprep.subr.bf16.mxu1 %v21350_v43 }
 0xcea   :  { %19431 = vmatpush3.bf16.msra.mxu1 %v21351_v59 }
 0xceb   :  { %19432 = vmatprep.subr.bf16.mxu1 %v21352_v22 }
 0xcee   :  { %19433 = vmatpush3.bf16.msra.mxu1 %v21353_v47 }
 0xcef   :  { %18015 = vmatprep.subr.msk.bf16.mxu1 %vm10109_vm8, %v26825_v54  ;;  %v21360_v54 = vld [vmem:[%s28894_s11 + $0x4b4] ss:$12 sps:$4 sm:$0xff]  }
 0xcf1   :  { %11479 = vmatmul.mubr.bf16.vlgmr.msra.gmra.mxu1 %v27010_v63  ;;  %v21366_v63 = vld [vmem:[%s28894_s11 + $0x484] ss:$12 sps:$4 sm:$0xff]  }
 0xcf2   :  { %11552 = vmatpush1.bf16.msra.mxu1 %v26828_v21  ;;  %11571 = vmatprep.mubr.bf16.mxu1 %v29027_v10  ;;  %v21358_v21 = vld [vmem:[%s28894_s11 + $0x4b0] ss:$12 sps:$4 sm:$0xff]  }
 0xcf3   :  { %11553 = vmatprep.subr.bf16.mxu1 %v26823_v30  ;;  %v21355_v30 = vld [vmem:[%s28894_s11 + $0x4c8] ss:$12 sps:$4 sm:$0xff]  }
 0xcf6   :  { %11554 = vmatpush1.bf16.msra.mxu1 %v26821_v0  ;;  %v21357_v0 = vld [vmem:[%s28894_s11 + $0x4cc] ss:$12 sps:$4 sm:$0xff]  }
 0xcf7   :  { %19994 = vmatprep.subr.bf16.mxu1 %v29046_v8  ;;  %12070 = vmatprep.subr.bf16.mxu0 %v21357_v0 }
 0xcf8   :  { %12071 = vmatpush1.bf16.msra.mxu0 %v21355_v30 }
 0xcf9   :  { %18016 = vmatmul.mubr.msk.bf16.vlgmr.msra.gmra.mxu1 %vm10105_vm9, %v21354_v6  ;;  %12072 = vmatprep.subr.bf16.mxu0 %v21360_v54 }
 0xcfa   :  { %19995 = vmatpush3.bf16.msra.mxu1 %v26849_v39  ;;  %19998 = vmatprep.mubr.msk.bf16.mxu1 %vm22041_vm1, %v29046_v8  ;;  %v21363_v39 = vld [vmem:[%s28894_s11 + $0x49c] ss:$12 sps:$4 sm:$0xff]  }
 0xcfb   :  { %19996 = vmatprep.subr.bf16.mxu1 %v29046_v8 }
 0xcfc   :  { %12073 = vmatpush1.bf16.msra.mxu0 %v21358_v21 }
 0xcfd   :  { %12074 = vmatprep.subr.bf16.mxu0 %v21363_v39 }
 0xcfe   :  { %19997 = vmatpush3.bf16.msra.mxu1 %v26858_v31  ;;  %v21361_v31 = vld [vmem:[%s28894_s11 + $0x498] ss:$12 sps:$4 sm:$0xff]  }
 0xcff   :  { %12117 = vmatprep.subr.bf16.mxu1 %v21387_v61 }
 0xd00   :  { %12075 = vmatpush1.bf16.msra.mxu0 %v21361_v31 }
 0xd01   :  { %19999 = vmatmul.mubr.msk.bf16.vlgmr.msra.gmra.mxu1 %vm10105_vm9, %v21354_v6  ;;  %12076 = vmatprep.subr.bf16.mxu0 %v21366_v63 }
 0xd02   :  { %12145 = vmatprep.mubr.bf16.mxu1 %v29027_v10  ;;  %12118 = vmatpush1.bf16.msra.mxu1 %v21385_v36 }
 0xd03   :  { %12119 = vmatprep.subr.bf16.mxu1 %v21393_v52 }
 0xd04   :  { %12077 = vmatpush1.bf16.msra.mxu0 %v21364_v18 }
 0xd05   :  { %12078 = vmatprep.subr.bf16.mxu0 %v21369_v23 }
 0xd06   :  { %12120 = vmatpush1.bf16.msra.mxu1 %v21391_v26 }
 0xd07   :  { %12121 = vmatprep.subr.bf16.mxu1 %v21399_v1 }
 0xd08   :  { %12079 = vmatpush1.bf16.msra.mxu0 %v21367_v44 }
 0xd09   :  { %12080 = vmatprep.subr.bf16.mxu0 %v21372_v49 }
 0xd0a   :  { %12122 = vmatpush1.bf16.msra.mxu1 %v21397_v17 }
 0xd0b   :  { %12123 = vmatprep.subr.bf16.mxu1 %v21405_v33 }
 0xd0c   :  { %12081 = vmatpush1.bf16.msra.mxu0 %v21370_v62 }
 0xd0d   :  { %12082 = vmatprep.subr.bf16.mxu0 %v21375_v12 }
 0xd0e   :  { %12124 = vmatpush1.bf16.msra.mxu1 %v21403_v51 }
 0xd0f   :  { %12125 = vmatprep.subr.bf16.mxu1 %v21411_v9 }
 0xd10   :  { %12083 = vmatpush1.bf16.msra.mxu0 %v21373_v25 }
 0xd11   :  { %12084 = vmatprep.subr.bf16.mxu0 %v21378_v60 }
 0xd12   :  { %12126 = vmatpush1.bf16.msra.mxu1 %v21409_v19 }
 0xd13   :  { %12127 = vmatprep.subr.bf16.mxu1 %v21417_v24 }
 0xd14   :  { %12085 = vmatpush1.bf16.msra.mxu0 %v21376_v29 }
 0xd15   :  { %12086 = vmatprep.subr.bf16.mxu0 %v21381_v27 }
 0xd16   :  { %12128 = vmatpush1.bf16.msra.mxu1 %v21415_v11 }
 0xd17   :  { %19450 = vmatprep.subr.bf16.mxu1 %v21421_v20 }
 0xd18   :  { %12087 = vmatpush2.bf16.msra.mxu0 %v21379_v5 }
 0xd19   :  { %12088 = vmatprep.subr.bf16.mxu0 %v21384_v13 }
 0xd1c   :  { %12089 = vmatpush2.bf16.msra.mxu0 %v21382_v14 }
 0xd1d   :  { %12090 = vmatprep.subr.bf16.mxu0 %v21390_v40 }
 0xd20   :  { %12091 = vmatpush2.bf16.msra.mxu0 %v21388_v37 }
 0xd21   :  { %12092 = vmatprep.subr.bf16.mxu0 %v21396_v7 }
 0xd24   :  { %12093 = vmatpush2.bf16.msra.mxu0 %v21394_v38 }
 0xd25   :  { %12094 = vmatprep.subr.bf16.mxu0 %v21402_v28 }
 0xd28   :  { %12095 = vmatpush2.bf16.msra.mxu0 %v21400_v46 }
 0xd29   :  { %12096 = vmatprep.subr.bf16.mxu0 %v21408_v2 }
 0xd2c   :  { %12097 = vmatpush2.bf16.msra.mxu0 %v21406_v55 }
 0xd2d   :  { %12098 = vmatprep.subr.bf16.mxu0 %v21414_v58 }
 0xd30   :  { %12099 = vmatpush2.bf16.msra.mxu0 %v21412_v48 }
 0xd31   :  { %12100 = vmatprep.subr.bf16.mxu0 %v21420_v41 }
 0xd34   :  { %12101 = vmatpush2.bf16.msra.mxu0 %v21418_v3 }
 0xd41   :  { %v10914_v34 = vpop.f32.mrf.mxu1 }
 0xd43   :  { %v10916_v56 = vpop.f32.mrf.mxu1 }
 0xd45   :  { %v10918_v50 = vpop.f32.mrf.mxu1 }
 0xd47   :  { %v10920_v43 = vpop.f32.mrf.mxu1 }
 0xd4c   :  { %v10871_v16 = vpop.f32.mrf.mxu0 }
 0xd4d   :  { %v10915_v53 = vadd.f32 %v10914_v34, %v10871_v16 }
 0xd4e   :  { %v10873_v42 = vpop.f32.mrf.mxu0 }
 0xd4f   :  { %v10917_v57 = vadd.f32 %v10916_v56, %v10873_v42  ;;  %v21422_v42 = vld [vmem:[%s28894_s11 + $0x4d0] ss:$12 sps:$4 sm:$0xff]  }
 0xd50   :  { %v10875_v4 = vpop.f32.mrf.mxu0 }
 0xd51   :  { %v10919_v15 = vadd.f32 %v10918_v50, %v10875_v4 }
 0xd52   :  { %v10877_v59 = vpop.f32.mrf.mxu0 }
 0xd53   :  { %v10921_v22 = vadd.f32 %v10920_v43, %v10877_v59  ;;  %v21425_v43 = vld [vmem:[%s28894_s11 + $0x560] ss:$12 sps:$4 sm:$0xff]  }
 0xd54   :  { %v21426_v59 = vld [vmem:[%s28894_s11 + $0x4a0] ss:$12 sps:$4 sm:$0xff]  }
 0xd61   :  { %v19405_v47 = vpop.f32.mrf.mxu1 }
 0xd63   :  { %v19406_v6 = vpop.f32.mrf.mxu1 }
 0xd64   :  { %v19407_v30 = vadd.f32 %v19406_v6, %v19405_v47  ;;  %v21428_v47 = vld [vmem:[%s28894_s11 + $0x488] ss:$12 sps:$4 sm:$0xff]   ;;  %v21429_v6 = vld [vmem:[%s28894_s11 + $0x530] ss:$12 sps:$4 sm:$0xff]  }
 0xd65   :  { %v19408_v0 = vpop.f32.mrf.mxu1 }
 0xd67   :  { %v19409_v54 = vpop.f32.mrf.mxu1 }
 0xd68   :  { %v19410_v21 = vadd.f32 %v19409_v54, %v19408_v0  ;;  %v21431_v0 = vld [vmem:[%s28894_s11 + $0x518] ss:$12 sps:$4 sm:$0xff]  }
 0xd69   :  { %v21432_v54 = vld [vmem:[%s28894_s11 + $0x458] ss:$12 sps:$4 sm:$0xff]  }
 0xd79   :  { %v10998_v39 = vpop.f32.mrf.mxu1 }
 0xd7a   :  { %v10999_v31 = vadd.f32 %v19407_v30, %v10998_v39  ;;  %v21430_v30 = vld [vmem:[%s28894_s11 + $0x470] ss:$12 sps:$4 sm:$0xff]   ;;  %v21434_v39 = vld [vmem:[%s28894_s11 + $0x440] ss:$12 sps:$4 sm:$0xff]  }
 0xd7b   :  { %v19976_v63 = vpop.f32.mrf.mxu1 }
 0xd7c   :  { %v21436_v63 = vld [vmem:[%s28894_s11 + $0x428] ss:$12 sps:$4 sm:$0xff]  }
 0xd7d   :  { %v11001_v18 = vpop.f32.mrf.mxu1 }
 0xd7e   :  { %v11002_v23 = vadd.f32 %v19410_v21, %v11001_v18  ;;  %v21433_v21 = vld [vmem:[%s28894_s11 + $0x500] ss:$12 sps:$4 sm:$0xff]  }
 0xd7f   :  { %v19977_v44 = vpop.f32.mrf.mxu1  ;;  %v21437_v18 = vld [vmem:[%s28894_s11 + $0x620] ss:$12 sps:$4 sm:$0xff]  }
 0xd80   :  { %v21439_v44 = vld [vmem:[%s28894_s11 + $0x5f0] ss:$12 sps:$4 sm:$0xff]  }
 0xd8c   :  { %v11394_v49 = vpop.f32.mrf.mxu0 }
 0xd8d   :  { %v11395_v62 = vadd.f32 %v11394_v49, %v10915_v53  ;;  %v21440_v49 = vld [vmem:[%s28894_s11 + $0x5d8] ss:$12 sps:$4 sm:$0xff]  }
 0xd8e   :  { %v11396_v25 = vpop.f32.mrf.mxu0 }
 0xd8f   :  { %v11397_v12 = vadd.f32 %v11396_v25, %v10917_v57  ;;  %v21423_v57 = vld [vmem:[%s28894_s11 + $0x578] ss:$12 sps:$4 sm:$0xff]   ;;  %v21442_v25 = vld [vmem:[%s28894_s11 + $0x5a8] ss:$12 sps:$4 sm:$0xff]  }
 0xd90   :  { %v11398_v60 = vpop.f32.mrf.mxu0 }
 0xd91   :  { %v11399_v29 = vadd.f32 %v11398_v60, %v10919_v15  ;;  %v11437_v27 = vpop.f32.mrf.mxu1  ;;  %v21424_v15 = vld [vmem:[%s28894_s11 + $0x4b8] ss:$12 sps:$4 sm:$0xff]   ;;  %v12244_v60 = vld [vmem:[%s28897_s12] sm:$0x7] }
 0xd92   :  { %v27458_v5 = vadd.f32 %v11437_v27, %v11395_v62  ;;  %v11400_v13 = vpop.f32.mrf.mxu0  ;;  %v21441_v62 = vld [vmem:[%s28894_s11 + $0x5c0] ss:$12 sps:$4 sm:$0xff]  }
 0xd93   :  { %v11401_v14 = vadd.f32 %v11400_v13, %v10921_v22  ;;  %v11439_v40 = vpop.f32.mrf.mxu1  ;;  %v21427_v22 = vld [vmem:[%s28894_s11 + $0x548] ss:$12 sps:$4 sm:$0xff]  }
 0xd94   :  { %v27460_v36 = vadd.f32 %v11439_v40, %v11397_v12 }
 0xd95   :  { %v11441_v61 = vpop.f32.mrf.mxu1 }
 0xd96   :  { %v27462_v37 = vadd.f32 %v11441_v61, %v11399_v29 }
 0xd97   :  { %v11443_v7 = vpop.f32.mrf.mxu1 }
 0xd98   :  { %v27464_v38 = vadd.f32 %v11443_v7, %v11401_v14  ;;  %v12249_v14 = vrot.slane %v12244_v60, %v29047_v32 }
 0xda4   :  { %v11521_v52 = vpop.f32.mrf.mxu0 }
 0xda6   :  { %v19992_v28 = vpop.f32.mrf.mxu0 }
 0xda7   :  { %v12253_v28 = vrot.slane %v12244_v60, %v24546_v45 }
 0xda8   :  { %v11524_v26 = vpop.f32.mrf.mxu0 }
 0xdaa   :  { %v19993_v46 = vpop.f32.mrf.mxu0 }
 0xdb1   :  { %v19434_v1 = vpop.f32.mrf.mxu1 }
 0xdb3   :  { %v19435_v2 = vpop.f32.mrf.mxu1 }
 0xdb4   :  { %v19436_v17 = vadd.f32 %v19435_v2, %v19434_v1 }
 0xdb5   :  { %v19437_v55 = vpop.f32.mrf.mxu1 }
 0xdb6   :  { %v11481_v33 = vadd.f32 %v19436_v17, %v10999_v31  ;;  %v21435_v31 = vld [vmem:[%s28894_s11 + $0x4e8] ss:$12 sps:$4 sm:$0xff]  }
 0xdb7   :  { %v19438_v58 = vpop.f32.mrf.mxu1 }
 0xdb8   :  { %v19439_v51 = vadd.f32 %v19438_v58, %v19437_v55  ;;  %v27466_v48 = vadd.f32 %v11521_v52, %v11481_v33 }
 0xdb9   :  { %v11573_v9 = vpop.f32.mrf.mxu1 }
 0xdba   :  { %v11484_v41 = vadd.f32 %v19439_v51, %v11002_v23  ;;  %v21438_v23 = vld [vmem:[%s28894_s11 + $0x608] ss:$12 sps:$4 sm:$0xff]  }
 0xdbb   :  { %v11575_v19 = vpop.f32.mrf.mxu1 }
 0xdbc   :  { %v27468_v3 = vadd.f32 %v11524_v26, %v11484_v41 }
 0xdbd   :  { %v11577_v24 = vpop.f32.mrf.mxu1 }
 0xdbe   :  { %v11623_v34 = vpack.c.bf16 %v11577_v24, %v11573_v9 }
 0xdbf   :  { %v11579_v11 = vpop.f32.mrf.mxu1 }
 0xdc0   :  { %v11624_v20 = vpack.c.bf16 %v11579_v11, %v11575_v19 }
 0xdc1   :  { %v11616_v56 = vpop.f32.mrf.mxu1 }
 0xdc2   :  { %12102 = vmatprep.mubr.bf16.mxu0 %v11624_v20 }
 0xdc3   :  { %v20000_v16 = vpop.f32.mrf.mxu1  ;;  %12103 = vmatmul.mubr.bf16.vlgmr.msra.gmra.mxu0 %v11623_v34 }
 0xdc4   :  { %12323 = vmatprep.mubr.bf16.mxu0 %v29027_v10  ;;  %v12276_v16 = vld [vmem:[%s28898_s13] sm:$0x7] }
 0xdc5   :  { %v11619_v53 = vpop.f32.mrf.mxu1 }
 0xdc6   :  { %v11625_v50 = vpack.c.bf16 %v11619_v53, %v11616_v56 }
 0xdc7   :  { %v20001_v4 = vpop.f32.mrf.mxu1 }
 0xdc8   :  { %18172 = vmatmul.mubr.msk.bf16.vlgmr.msra.gmra.mxu1 %vm10833_vm10, %v11625_v50 }
 0xdc9   :  { %19451 = vmatpush3.bf16.msra.mxu1 %v21422_v42  ;;  %12188 = vmatprep.mubr.bf16.mxu1 %v11624_v20 }
 0xdca   :  { %19452 = vmatprep.subr.bf16.mxu1 %v21423_v57 }
 0xdcd   :  { %19453 = vmatpush3.bf16.msra.mxu1 %v21424_v15 }
 0xdce   :  { %19454 = vmatprep.subr.bf16.mxu1 %v21425_v43 }
 0xdd1   :  { %19455 = vmatpush3.bf16.msra.mxu1 %v21426_v59 }
 0xdd2   :  { %19456 = vmatprep.subr.bf16.mxu1 %v21427_v22  ;;  %v12257_v22 = vrot.slane %v12244_v60, %v24566_v35  ;;  %v21446_v60 = vld [vmem:[%s28896_s14 + $0x270] ss:$12 sps:$4 sm:$0xff]  }
 0xdd5   :  { %19457 = vmatpush3.bf16.msra.mxu1 %v21428_v47 }
 0xdd6   :  { %19458 = vmatprep.subr.bf16.mxu1 %v21429_v6 }
 0xdd9   :  { %19459 = vmatpush3.bf16.msra.mxu1 %v21430_v30 }
 0xdda   :  { %19460 = vmatprep.subr.bf16.mxu1 %v21431_v0 }
 0xddd   :  { %19461 = vmatpush3.bf16.msra.mxu1 %v21432_v54 }
 0xdde   :  { %19462 = vmatprep.subr.bf16.mxu1 %v21433_v21 }
 0xde1   :  { %19463 = vmatpush3.bf16.msra.mxu1 %v21434_v39 }
 0xde2   :  { %19464 = vmatprep.subr.bf16.mxu1 %v21435_v31 }
 0xde5   :  { %19465 = vmatpush3.bf16.msra.mxu1 %v21436_v63 }
 0xde6   :  { %20002 = vmatprep.subr.bf16.mxu1 %v29046_v8 }
 0xde8   :  { %12189 = vmatmul.mubr.bf16.vlgmr.msra.gmra.mxu1 %v11623_v34 }
 0xde9   :  { %20003 = vmatpush3.bf16.msra.mxu1 %v21437_v18  ;;  %20014 = vmatprep.mubr.msk.bf16.mxu1 %vm22041_vm1, %v29046_v8  ;;  %v21475_v18 = vld [vmem:[%s28896_s14 + $0x3ac] ss:$12 sps:$4 sm:$0xff]  }
 0xdea   :  { %20004 = vmatprep.subr.bf16.mxu1 %v29046_v8 }
 0xded   :  { %20005 = vmatpush3.bf16.msra.mxu1 %v21438_v23 }
 0xdee   :  { %20006 = vmatprep.subr.bf16.mxu1 %v29046_v8 }
 0xdf1   :  { %20007 = vmatpush3.bf16.msra.mxu1 %v21439_v44  ;;  %v21473_v44 = vld [vmem:[%s28896_s14 + $0x3a8] ss:$12 sps:$4 sm:$0xff]  }
 0xdf2   :  { %20008 = vmatprep.subr.bf16.mxu1 %v29046_v8 }
 0xdf5   :  { %20009 = vmatpush3.bf16.msra.mxu1 %v21440_v49  ;;  %v21481_v49 = vld [vmem:[%s28896_s14 + $0x394] ss:$12 sps:$4 sm:$0xff]  }
 0xdf6   :  { %20010 = vmatprep.subr.bf16.mxu1 %v29046_v8 }
 0xdf9   :  { %20011 = vmatpush3.bf16.msra.mxu1 %v21441_v62  ;;  %v21479_v62 = vld [vmem:[%s28896_s14 + $0x390] ss:$12 sps:$4 sm:$0xff]  }
 0xdfa   :  { %20012 = vmatprep.subr.bf16.mxu1 %v29046_v8 }
 0xdfd   :  { %20013 = vmatpush3.bf16.msra.mxu1 %v21442_v25  ;;  %v21443_v25 = vld [vmem:[%s28896_s14 + $0x288] ss:$12 sps:$4 sm:$0xff]  }
 0xdfe   :  { %20024 = vmatprep.subr.bf16.mxu1 %v29046_v8 }
 0xe00   :  { %20015 = vmatmul.mubr.msk.bf16.vlgmr.msra.gmra.mxu1 %vm10833_vm10, %v11625_v50 }
 0xe01   :  { %20026 = vmatprep.mubr.msk.bf16.mxu1 %vm22041_vm1, %v29046_v8 }
 0xe83   :  { %v12104_v12 = vpop.f32.mrf.mxu0 }
 0xe85   :  { %v12106_v29 = vpop.f32.mrf.mxu0 }
 0xe87   :  { %v12108_v61 = vpop.f32.mrf.mxu0 }
 0xe88   :  { %v12147_v27 = vpop.f32.mrf.mxu1 }
 0xe89   :  { %v12148_v13 = vadd.f32 %v12147_v27, %v12104_v12  ;;  %v12110_v17 = vpop.f32.mrf.mxu0  ;;  %v21448_v12 = vld [vmem:[%s28896_s14 + $0x274] ss:$12 sps:$4 sm:$0xff]   ;;  %v21449_v27 = vld [vmem:[%s28896_s14 + $0x258] ss:$12 sps:$4 sm:$0xff]  }
 0xe8a   :  { %v12149_v40 = vpop.f32.mrf.mxu1 }
 0xe8b   :  { %v12238_v7 = vadd.f32 %v12148_v13, %v27458_v5  ;;  %v12150_v52 = vadd.f32 %v12149_v40, %v12106_v29  ;;  %v21451_v29 = vld [vmem:[%s28896_s14 + $0x25c] ss:$12 sps:$4 sm:$0xff]   ;;  %v21485_v13 = vld [vmem:[%s28896_s14 + $0x378] ss:$12 sps:$4 sm:$0xff]  }
 0xe8c   :  { %v12151_v26 = vpop.f32.mrf.mxu1  ;;  %v21454_v40 = vld [vmem:[%s28896_s14 + $0x244] ss:$12 sps:$4 sm:$0xff]  }
 0xe8d   :  { %v12261_v46 = vadd.f32 %v12249_v14, %v12238_v7  ;;  %v12239_v1 = vadd.f32 %v12150_v52, %v27460_v36  ;;  %v12152_v2 = vadd.f32 %v12151_v26, %v12108_v61  ;;  %v21491_v61 = vld [vmem:[%s28896_s14 + $0x360] ss:$12 sps:$4 sm:$0xff]   ;;  %v21493_v7 = vld [vmem:[%s28896_s14 + $0x364] ss:$12 sps:$4 sm:$0xff]   ;;  %v21455_v26 = vld [vmem:[%s28896_s14 + $0x228] ss:$12 sps:$4 sm:$0xff]  }
 0xe8e   :  { %v12153_v55 = vpop.f32.mrf.mxu1  ;;  %v21452_v52 = vld [vmem:[%s28896_s14 + $0x240] ss:$12 sps:$4 sm:$0xff]  }
 0xe8f   :  { %v12267_v33 = vmax.f32 %v12261_v46, 0.0  ;;  %v12262_v58 = vadd.f32 %v12253_v28, %v12239_v1  ;;  %v12241_v51 = vadd.f32 %v12152_v2, %v27462_v37  ;;  %v12154_v9 = vadd.f32 %v12153_v55, %v12110_v17  ;;  %v21460_v46 = vld [vmem:[%s28896_s14 + $0x214] ss:$12 sps:$4 sm:$0xff]   ;;  %v21458_v1 = vld [vmem:[%s28896_s14 + $0x210] ss:$12 sps:$4 sm:$0xff]  }
 0xe90   :  { %v21463_v2 = vld [vmem:[%s28896_s14 + $0x1fc] ss:$12 sps:$4 sm:$0xff]   ;;  %v21461_v17 = vld [vmem:[%s28896_s14 + $0x1f8] ss:$12 sps:$4 sm:$0xff]  }
 0xe91   :  { %v12268_v41 = vmax.f32 %v12262_v58, 0.0  ;;  %v12264_v19 = vadd.f32 %v12249_v14, %v12241_v51  ;;  %v12242_v5 = vadd.f32 %v12154_v9, %v27464_v38  ;;  %v21487_v14 = vld [vmem:[%s28896_s14 + $0x37c] ss:$12 sps:$4 sm:$0xff]   ;;  %v21466_v55 = vld [vmem:[%s28896_s14 + $0x1e4] ss:$12 sps:$4 sm:$0xff]  }
 0xe92   :  { %v21469_v58 = vld [vmem:[%s28896_s14 + $0x34c] ss:$12 sps:$4 sm:$0xff]   ;;  %v21467_v51 = vld [vmem:[%s28896_s14 + $0x348] ss:$12 sps:$4 sm:$0xff]  }
 0xe93   :  { %v12270_v24 = vmax.f32 %v12264_v19, 0.0  ;;  %v12265_v11 = vadd.f32 %v12253_v28, %v12242_v5  ;;  %v21457_v28 = vld [vmem:[%s28896_s14 + $0x22c] ss:$12 sps:$4 sm:$0xff]   ;;  %v21472_v9 = vld [vmem:[%s28896_s14 + $0x334] ss:$12 sps:$4 sm:$0xff]  }
 0xe94   :  { %v21478_v19 = vld [vmem:[%s28896_s14 + $0x31c] ss:$12 sps:$4 sm:$0xff]   ;;  %v21476_v5 = vld [vmem:[%s28896_s14 + $0x318] ss:$12 sps:$4 sm:$0xff]  }
 0xe95   :  { %v12271_v20 = vmax.f32 %v12265_v11, 0.0  ;;  %v12273_v34 = vpack.c.bf16 %v12270_v24, %v12267_v33  ;;  %v21464_v33 = vld [vmem:[%s28896_s14 + $0x1e0] ss:$12 sps:$4 sm:$0xff]   ;;  %v21484_v24 = vld [vmem:[%s28896_s14 + $0x304] ss:$12 sps:$4 sm:$0xff]  }
 0xe96   :  { %v21482_v11 = vld [vmem:[%s28896_s14 + $0x300] ss:$12 sps:$4 sm:$0xff]  }
 0xe97   :  { %v27556_v56 = vpack.c.bf16 %v12271_v20, %v12268_v41  ;;  %v27559_v36 = vsel %vm12281_vm11, %v12273_v34, 0  ;;  %v21470_v41 = vld [vmem:[%s28896_s14 + $0x330] ss:$12 sps:$4 sm:$0xff]   ;;  %v21490_v20 = vld [vmem:[%s28896_s14 + $0x2ec] ss:$12 sps:$4 sm:$0xff]  }
 0xe98   :  { %v21488_v34 = vld [vmem:[%s28896_s14 + $0x2e8] ss:$12 sps:$4 sm:$0xff]  }
 0xe99   :  { %18174 = vmatprep.subr.msk.bf16.mxu0 %vm12281_vm11, %v27556_v56 }
 0xe9a   :  { %12306 = vmatpush1.bf16.msra.mxu0 %v27559_v36 }
 0xe9b   :  { %20018 = vmatprep.subr.bf16.mxu0 %v29046_v8 }
 0xe9d   :  { %18175 = vmatmul.mubr.msk.bf16.vlgmr.msra.gmra.mxu0 %vm12277_vm12, %v12276_v16 }
 0xe9e   :  { %20020 = vmatprep.mubr.msk.bf16.mxu0 %vm22041_vm1, %v29046_v8 }
 0xea8   :  { %v19466_v37 = vpop.f32.mrf.mxu1 }
 0xeaa   :  { %v19467_v38 = vpop.f32.mrf.mxu1 }
 0xeab   :  { %v19468_v50 = vadd.f32 %v19467_v38, %v19466_v37  ;;  %v21494_v37 = vld [vmem:[%s28896_s14 + $0x2d0] ss:$12 sps:$4 sm:$0xff]  }
 0xeac   :  { %v19469_v53 = vpop.f32.mrf.mxu1  ;;  %v21497_v38 = vld [vmem:[%s28896_s14 + $0x350] ss:$12 sps:$4 sm:$0xff]  }
 0xeae   :  { %v19470_v42 = vpop.f32.mrf.mxu1 }
 0xeaf   :  { %v19471_v43 = vadd.f32 %v19470_v42, %v19469_v53  ;;  %v21499_v53 = vld [vmem:[%s28896_s14 + $0x2b8] ss:$12 sps:$4 sm:$0xff]   ;;  %v21501_v42 = vld [vmem:[%s28896_s14 + $0x2bc] ss:$12 sps:$4 sm:$0xff]  }
 0xec0   :  { %v12231_v57 = vpop.f32.mrf.mxu1 }
 0xec1   :  { %v12232_v4 = vadd.f32 %v19468_v50, %v12231_v57  ;;  %v21506_v50 = vld [vmem:[%s28896_s14 + $0x2a4] ss:$12 sps:$4 sm:$0xff]   ;;  %v21504_v57 = vld [vmem:[%s28896_s14 + $0x2a0] ss:$12 sps:$4 sm:$0xff]  }
 0xec2   :  { %v20016_v15 = vpop.f32.mrf.mxu1 }
 0xec3   :  { %v12240_v59 = vadd.f32 %v12232_v4, %v27466_v48  ;;  %v18177_v48 = vld [vmem:[%s28898_s13 + $0x4] sm:$0x7]  ;;  %v21511_v4 = vld [vmem:[%s28896_s14 + $0xac] ss:$12 sps:$4 sm:$0xff]  }
 0xec4   :  { %v12234_v47 = vpop.f32.mrf.mxu1 }
 0xec5   :  { %v12235_v6 = vadd.f32 %v19471_v43, %v12234_v47  ;;  %v12263_v0 = vadd.f32 %v12257_v22, %v12240_v59 }
 0xec6   :  { %v20017_v30 = vpop.f32.mrf.mxu1 }
 0xec7   :  { %v12243_v54 = vadd.f32 %v12235_v6, %v27468_v3  ;;  %v12269_v39 = vmax.f32 %v12263_v0, 0.0  ;;  %v21445_v3 = vld [vmem:[%s28896_s14 + $0x28c] ss:$12 sps:$4 sm:$0xff]   ;;  %v21498_v30 = vld [vmem:[%s28896_s14 + $0x290] ss:$12 sps:$4 sm:$0xff]  }
 0xec9   :  { %v12266_v21 = vadd.f32 %v12257_v22, %v12243_v54  ;;  %v21502_v54 = vld [vmem:[%s28896_s14 + $0x338] ss:$12 sps:$4 sm:$0xff]  }
 0xecb   :  { %v12272_v31 = vmax.f32 %v12266_v21, 0.0 }
 0xecd   :  { %v12275_v63 = vpack.c.bf16 %v12272_v31, %v12269_v39 }
 0xecf   :  { %v27578_v23 = vsel %vm12281_vm11, %v12275_v63, 0  ;;  %v21503_v63 = vld [vmem:[%s28896_s14 + $0x278] ss:$12 sps:$4 sm:$0xff]  }
 0xed0   :  { %20019 = vmatpush3.bf16.msra.mxu0 %v27578_v23  ;;  %20025 = vmatpush3.bf16.msra.mxu1 %v27578_v23 }
 0xed1   :  { %18178 = vmatprep.subr.msk.bf16.mxu0 %vm12281_vm11, %v27556_v56  ;;  %12997 = vmatprep.subr.bf16.mxu1 %v21475_v18 }
 0xed3   :  { %20021 = vmatmul.mubr.msk.bf16.vlgmr.msra.gmra.mxu0 %vm12277_vm12, %v12276_v16  ;;  %20027 = vmatmul.mubr.msk.bf16.vlgmr.msra.gmra.mxu1 %vm12277_vm12, %v18177_v48  ;;  %v21496_v16 = vld [vmem:[%s28896_s14 + $0x2d4] ss:$12 sps:$4 sm:$0xff]  }
 0xed4   :  { %12475 = vmatpush1.bf16.msra.mxu0 %v27559_v36  ;;  %12492 = vmatprep.mubr.bf16.mxu0 %v29027_v10 }
 0xed5   :  { %12948 = vmatprep.subr.bf16.mxu0 %v21445_v3  ;;  %12998 = vmatpush1.bf16.msra.mxu1 %v21473_v44 }
 0xed6   :  { %12999 = vmatprep.subr.bf16.mxu1 %v21481_v49  ;;  %13021 = vmatprep.mubr.bf16.mxu1 %v29027_v10 }
 0xed9   :  { %13000 = vmatpush1.bf16.msra.mxu1 %v21479_v62  ;;  %v21508_v62 = vld [vmem:[%s28896_s14 + $0x260] ss:$12 sps:$4 sm:$0xff]  }
 0xeda   :  { %13001 = vmatprep.subr.bf16.mxu1 %v21487_v14  ;;  %v21513_v14 = vld [vmem:[%s28896_s14 + $0x248] ss:$12 sps:$4 sm:$0xff]  }
 0xedb   :  { %18179 = vmatmul.mubr.msk.bf16.vlgmr.msra.gmra.mxu0 %vm12277_vm12, %v18177_v48  ;;  %v21507_v48 = vld [vmem:[%s28896_s14 + $0x320] ss:$12 sps:$4 sm:$0xff]  }
 0xedc   :  { %12949 = vmatpush1.bf16.msra.mxu0 %v21443_v25  ;;  %v21512_v25 = vld [vmem:[%s28896_s14 + $0x308] ss:$12 sps:$4 sm:$0xff]  }
 0xedd   :  { %12950 = vmatprep.subr.bf16.mxu0 %v21448_v12  ;;  %13002 = vmatpush1.bf16.msra.mxu1 %v21485_v13  ;;  %v21509_v13 = vld [vmem:[%s28896_s14 + $0xa8] ss:$12 sps:$4 sm:$0xff]  }
 0xede   :  { %13003 = vmatprep.subr.bf16.mxu1 %v21493_v7  ;;  %v21517_v7 = vld [vmem:[%s28896_s14 + $0x2f0] ss:$12 sps:$4 sm:$0xff]  }
 0xee0   :  { %12951 = vmatpush1.bf16.msra.mxu0 %v21446_v60 }
 0xee1   :  { %12952 = vmatprep.subr.bf16.mxu0 %v21451_v29  ;;  %13004 = vmatpush1.bf16.msra.mxu1 %v21491_v61 }
 0xee2   :  { %19483 = vmatprep.subr.bf16.mxu1 %v21497_v38  ;;  %v21544_v38 = vld [vmem:[%s28896_s14 + $0x4] ss:$12 sps:$4 sm:$0xff]  }
 0xee4   :  { %12953 = vmatpush1.bf16.msra.mxu0 %v21449_v27 }
 0xee5   :  { %12954 = vmatprep.subr.bf16.mxu0 %v21454_v40  ;;  %v21516_v40 = vld [vmem:[%s28896_s14 + $0x94] ss:$12 sps:$4 sm:$0xff]  }
 0xee8   :  { %12955 = vmatpush1.bf16.msra.mxu0 %v21452_v52 }
 0xee9   :  { %12956 = vmatprep.subr.bf16.mxu0 %v21457_v28  ;;  %v21514_v28 = vld [vmem:[%s28896_s14 + $0x90] ss:$12 sps:$4 sm:$0xff]  }
 0xeec   :  { %12957 = vmatpush1.bf16.msra.mxu0 %v21455_v26  ;;  %v21518_v26 = vld [vmem:[%s28896_s14 + $0x230] ss:$12 sps:$4 sm:$0xff]  }
 0xeed   :  { %12958 = vmatprep.subr.bf16.mxu0 %v21460_v46  ;;  %v21521_v46 = vld [vmem:[%s28896_s14 + $0x7c] ss:$12 sps:$4 sm:$0xff]  }
 0xef0   :  { %12959 = vmatpush1.bf16.msra.mxu0 %v21458_v1  ;;  %v21522_v1 = vld [vmem:[%s28896_s14 + $0x2d8] ss:$12 sps:$4 sm:$0xff]  }
 0xef1   :  { %12960 = vmatprep.subr.bf16.mxu0 %v21463_v2  ;;  %v21519_v2 = vld [vmem:[%s28896_s14 + $0x78] ss:$12 sps:$4 sm:$0xff]  }
 0xef4   :  { %12961 = vmatpush1.bf16.msra.mxu0 %v21461_v17  ;;  %v21523_v17 = vld [vmem:[%s28896_s14 + $0x218] ss:$12 sps:$4 sm:$0xff]  }
 0xef5   :  { %12962 = vmatprep.subr.bf16.mxu0 %v21466_v55  ;;  %v21526_v55 = vld [vmem:[%s28896_s14 + $0x64] ss:$12 sps:$4 sm:$0xff]  }
 0xef8   :  { %12963 = vmatpush1.bf16.msra.mxu0 %v21464_v33  ;;  %v21527_v33 = vld [vmem:[%s28896_s14 + $0x2c0] ss:$12 sps:$4 sm:$0xff]  }
 0xef9   :  { %12964 = vmatprep.subr.bf16.mxu0 %v21469_v58  ;;  %v21524_v58 = vld [vmem:[%s28896_s14 + $0x60] ss:$12 sps:$4 sm:$0xff]  }
 0xefc   :  { %12965 = vmatpush2.bf16.msra.mxu0 %v21467_v51  ;;  %v21528_v51 = vld [vmem:[%s28896_s14 + $0x200] ss:$12 sps:$4 sm:$0xff]  }
 0xefd   :  { %12966 = vmatprep.subr.bf16.mxu0 %v21472_v9  ;;  %v21531_v9 = vld [vmem:[%s28896_s14 + $0x4c] ss:$12 sps:$4 sm:$0xff]  }
 0xf00   :  { %12967 = vmatpush2.bf16.msra.mxu0 %v21470_v41  ;;  %v21532_v41 = vld [vmem:[%s28896_s14 + $0x2a8] ss:$12 sps:$4 sm:$0xff]  }
 0xf01   :  { %12968 = vmatprep.subr.bf16.mxu0 %v21478_v19  ;;  %v21529_v19 = vld [vmem:[%s28896_s14 + $0x48] ss:$12 sps:$4 sm:$0xff]  }
 0xf04   :  { %12969 = vmatpush2.bf16.msra.mxu0 %v21476_v5  ;;  %v21533_v5 = vld [vmem:[%s28896_s14 + $0x1e8] ss:$12 sps:$4 sm:$0xff]  }
 0xf05   :  { %12970 = vmatprep.subr.bf16.mxu0 %v21484_v24  ;;  %v21536_v24 = vld [vmem:[%s28896_s14 + $0x34] ss:$12 sps:$4 sm:$0xff]  }
 0xf08   :  { %12971 = vmatpush2.bf16.msra.mxu0 %v21482_v11  ;;  %v21534_v11 = vld [vmem:[%s28896_s14 + $0x30] ss:$12 sps:$4 sm:$0xff]  }
 0xf09   :  { %12972 = vmatprep.subr.bf16.mxu0 %v21490_v20  ;;  %v21537_v20 = vld [vmem:[%s28896_s14 + $0x3b0] ss:$12 sps:$4 sm:$0xff]  }
 0xf0c   :  { %12973 = vmatpush2.bf16.msra.mxu0 %v21488_v34  ;;  %v21540_v34 = vld [vmem:[%s28896_s14 + $0x1c] ss:$12 sps:$4 sm:$0xff]  }
 0xf0d   :  { %12974 = vmatprep.subr.bf16.mxu0 %v21496_v16  ;;  %v21538_v16 = vld [vmem:[%s28896_s14 + $0x18] ss:$12 sps:$4 sm:$0xff]  }
 0xf10   :  { %12975 = vmatpush2.bf16.msra.mxu0 %v21494_v37  ;;  %v21541_v37 = vld [vmem:[%s28896_s14 + $0x398] ss:$12 sps:$4 sm:$0xff]  }
 0xf11   :  { %12976 = vmatprep.subr.bf16.mxu0 %v21501_v42  ;;  %v21545_v42 = vld [vmem:[%s28896_s14 + $0x380] ss:$12 sps:$4 sm:$0xff]  }
 0xf14   :  { %12977 = vmatpush2.bf16.msra.mxu0 %v21499_v53  ;;  %v21542_v53 = vld [vmem:[%s28896_s14] ss:$12 sps:$4 sm:$0xff]  }
 0xf15   :  { %12978 = vmatprep.subr.bf16.mxu0 %v21506_v50  ;;  %v21548_v50 = vld [vmem:[%s28896_s14 + $0x16c] ss:$12 sps:$4 sm:$0xff]  }
 0xf18   :  { %12979 = vmatpush2.bf16.msra.mxu0 %v21504_v57  ;;  %v21546_v57 = vld [vmem:[%s28896_s14 + $0x168] ss:$12 sps:$4 sm:$0xff]  }
 0xf19   :  { %13433 = vmatprep.subr.bf16.mxu0 %v21511_v4  ;;  %v21549_v4 = vld [vmem:[%s28896_s14 + $0x368] ss:$12 sps:$4 sm:$0xff]  }
 0xf5d   :  { %v27716_v15 = vpop.f32.mrf.mxu0 }
 0xf5f   :  { %v12327_v43 = vpop.f32.mrf.mxu0 }
 0xf60   :  { %v27742_v29 = vpack.c.bf16 %v12327_v43, %v12327_v43  ;;  %v21552_v43 = vld [vmem:[%s28896_s14 + $0x154] ss:$12 sps:$4 sm:$0xff]  }
 0xf61   :  { %v12329_v59 = vpop.f32.mrf.mxu0 }
 0xf62   :  { %v21555_v59 = vld [vmem:[%s28896_s14 + $0x1cc] ss:$12 sps:$4 sm:$0xff]  }
 0xf63   :  { %v12330_v22 = vpop.f32.mrf.mxu0 }
 0xf64   :  { %v21550_v22 = vld [vmem:[%s28896_s14 + $0x150] ss:$12 sps:$4 sm:$0xff]  }
 0xf93   :  { %v27718_v47 = vpop.f32.mrf.mxu0  ;;  %v12535_v6 = vpop.f32.mrf.mxu1 }
 0xf94   :  { %v27723_v0 = vpack.c.bf16 %v12535_v6, %v12535_v6  ;;  %v21553_v6 = vld [vmem:[%s28896_s14 + $0x1c8] ss:$12 sps:$4 sm:$0xff]  }
 0xf95   :  { %v20022_v21 = vpop.f32.mrf.mxu0  ;;  %v20028_v39 = vpop.f32.mrf.mxu1 }
 0xf96   :  { %18321 = vmatmul.mubr.msk.bf16.vlgmr.msra.gmra.mxu1 %vm381_vm0, %v27723_v0  ;;  %v21556_v21 = vld [vmem:[%s28896_s14 + $0x138] ss:$12 sps:$4 sm:$0xff]   ;;  %v21559_v39 = vld [vmem:[%s28896_s14 + $0x1b0] ss:$12 sps:$4 sm:$0xff]  }
 0xf97   :  { %19484 = vmatpush3.bf16.msra.mxu1 %v21498_v30  ;;  %v12369_v31 = vpop.f32.mrf.mxu0  ;;  %v12538_v18 = vpop.f32.mrf.mxu1  ;;  %v21558_v30 = vld [vmem:[%s28896_s14 + $0x13c] ss:$12 sps:$4 sm:$0xff]  }
 0xf98   :  { %19485 = vmatprep.subr.bf16.mxu1 %v21502_v54  ;;  %v21561_v54 = vld [vmem:[%s28896_s14 + $0x1b4] ss:$12 sps:$4 sm:$0xff]   ;;  %v21564_v31 = vld [vmem:[%s28896_s14 + $0x124] ss:$12 sps:$4 sm:$0xff]  }
 0xf99   :  { %v20023_v3 = vpop.f32.mrf.mxu0  ;;  %v20029_v44 = vpop.f32.mrf.mxu1  ;;  %v21565_v18 = vld [vmem:[%s28896_s14 + $0x198] ss:$12 sps:$4 sm:$0xff]  }
 0xf9a   :  { %v21573_v3 = vld [vmem:[%s28896_s14 + $0x184] ss:$12 sps:$4 sm:$0xff]   ;;  %v21568_v44 = vld [vmem:[%s28896_s14 + $0x108] ss:$12 sps:$4 sm:$0xff]  }
 0xf9b   :  { %19486 = vmatpush3.bf16.msra.mxu1 %v21503_v63  ;;  %v12494_v49 = vpop.f32.mrf.mxu0  ;;  %v21562_v63 = vld [vmem:[%s28896_s14 + $0x120] ss:$12 sps:$4 sm:$0xff]  }
 0xf9c   :  { %19487 = vmatprep.subr.bf16.mxu1 %v21507_v48  ;;  %v12541_v12 = vpack.c.bf16 %v12494_v49, %v12494_v49  ;;  %v21570_v48 = vld [vmem:[%s28896_s14 + $0x10c] ss:$12 sps:$4 sm:$0xff]  }
 0xf9d   :  { %v12496_v60 = vpop.f32.mrf.mxu0  ;;  %v21571_v49 = vld [vmem:[%s28896_s14 + $0x180] ss:$12 sps:$4 sm:$0xff]  }
 0xf9e   :  { %v12542_v27 = vpack.c.bf16 %v12496_v60, %v12496_v60  ;;  %v21578_v60 = vld [vmem:[%s28896_s14 + $0xb0] ss:$12 sps:$4 sm:$0xff]  }
 0xf9f   :  { %19488 = vmatpush3.bf16.msra.mxu1 %v21508_v62  ;;  %v12498_v61 = vpop.f32.mrf.mxu0  ;;  %v21576_v62 = vld [vmem:[%s28896_s14 + $0xf4] ss:$12 sps:$4 sm:$0xff]  }
 0xfa0   :  { %12980 = vmatprep.mubr.bf16.mxu0 %v12542_v27  ;;  %19489 = vmatprep.subr.bf16.mxu1 %v21512_v25  ;;  %v21577_v25 = vld [vmem:[%s28896_s14 + $0x170] ss:$12 sps:$4 sm:$0xff]  }
 0xfa1   :  { %12981 = vmatmul.mubr.bf16.vlgmr.msra.gmra.mxu0 %v12541_v12  ;;  %13062 = vmatprep.mubr.bf16.mxu1 %v12542_v27  ;;  %v12499_v52 = vpop.f32.mrf.mxu0  ;;  %v27906_v27 = vpack.c.bf16 %v27718_v47, %v27718_v47  ;;  %v21583_v47 = vld [vmem:[%s28896_s14 + $0x98] ss:$12 sps:$4 sm:$0xff]  }
 0xfa2   :  { %13434 = vmatpush1.bf16.msra.mxu0 %v21509_v13  ;;  %13465 = vmatprep.mubr.bf16.mxu0 %v27742_v29  ;;  %v21581_v13 = vld [vmem:[%s28896_s14 + $0xdc] ss:$12 sps:$4 sm:$0xff]   ;;  %v21586_v61 = vld [vmem:[%s28896_s14 + $0xc4] ss:$12 sps:$4 sm:$0xff]   ;;  %v21584_v52 = vld [vmem:[%s28896_s14 + $0xc0] ss:$12 sps:$4 sm:$0xff]  }
 0xfa3   :  { %19490 = vmatpush3.bf16.msra.mxu1 %v21513_v14  ;;  %13435 = vmatprep.subr.bf16.mxu0 %v21516_v40  ;;  %v21582_v14 = vld [vmem:[%s28896_s14 + $0x158] ss:$12 sps:$4 sm:$0xff]  }
 0xfa4   :  { %19491 = vmatprep.subr.bf16.mxu1 %v21517_v7  ;;  %v21579_v40 = vld [vmem:[%s28896_s14 + $0xd8] ss:$12 sps:$4 sm:$0xff]   ;;  %v21587_v7 = vld [vmem:[%s28896_s14 + $0x140] ss:$12 sps:$4 sm:$0xff]  }
 0xfa6   :  { %13436 = vmatpush1.bf16.msra.mxu0 %v21514_v28  ;;  %v21589_v28 = vld [vmem:[%s28896_s14 + $0x128] ss:$12 sps:$4 sm:$0xff]  }
 0xfa7   :  { %19492 = vmatpush3.bf16.msra.mxu1 %v21518_v26  ;;  %13437 = vmatprep.subr.bf16.mxu0 %v21521_v46  ;;  %v12372_v26 = vpack.c.bf16 %v27716_v15, %v27716_v15  ;;  %v21590_v46 = vld [vmem:[%s28896_s14 + $0x68] ss:$12 sps:$4 sm:$0xff]   ;;  %v21592_v15 = vld [vmem:[%s28896_s14 + $0x50] ss:$12 sps:$4 sm:$0xff]  }
 0xfa8   :  { %19493 = vmatprep.subr.bf16.mxu1 %v21522_v1  ;;  %v21591_v1 = vld [vmem:[%s28896_s14 + $0x110] ss:$12 sps:$4 sm:$0xff]  }
 0xfaa   :  { %13438 = vmatpush1.bf16.msra.mxu0 %v21519_v2  ;;  %v18385_v2 = vld [vmem:[%s28898_s13 + $0x8] sm:$0x7] }
 0xfab   :  { %19494 = vmatpush3.bf16.msra.mxu1 %v21523_v17  ;;  %13439 = vmatprep.subr.bf16.mxu0 %v21526_v55  ;;  %v21595_v17 = vld [vmem:[%s28896_s14 + $0xe0] ss:$12 sps:$4 sm:$0xff]  }
 0xfac   :  { %19495 = vmatprep.subr.bf16.mxu1 %v21527_v33  ;;  %v21596_v55 = vld [vmem:[%s28896_s14 + $0x20] ss:$12 sps:$4 sm:$0xff]   ;;  %v21597_v33 = vld [vmem:[%s28896_s14 + $0xc8] ss:$12 sps:$4 sm:$0xff]  }
 0xfae   :  { %13440 = vmatpush1.bf16.msra.mxu0 %v21524_v58  ;;  %v21598_v58 = vld [vmem:[%s28896_s14 + $0x8] ss:$12 sps:$4 sm:$0xff]  }
 0xfaf   :  { %19496 = vmatpush3.bf16.msra.mxu1 %v21528_v51  ;;  %13441 = vmatprep.subr.bf16.mxu0 %v21531_v9  ;;  %v21599_v51 = vld [vmem:[%s28896_s14 + $0x1d0] ss:$12 sps:$4 sm:$0xff]   ;;  %v21600_v9 = vld [vmem:[%s28896_s14 + $0x1b8] ss:$12 sps:$4 sm:$0xff]  }
 0xfb0   :  { %19497 = vmatprep.subr.bf16.mxu1 %v21532_v41  ;;  %v21601_v41 = vld [vmem:[%s28896_s14 + $0x1a0] ss:$12 sps:$4 sm:$0xff]  }
 0xfb2   :  { %13442 = vmatpush1.bf16.msra.mxu0 %v21529_v19  ;;  %v21602_v19 = vld [vmem:[%s28896_s14 + $0x188] ss:$12 sps:$4 sm:$0xff]  }
 0xfb3   :  { %19498 = vmatpush3.bf16.msra.mxu1 %v21533_v5  ;;  %13443 = vmatprep.subr.bf16.mxu0 %v21536_v24  ;;  %v21603_v5 = vld [vmem:[%s28896_s14 + $0x468] ss:$12 sps:$4 sm:$0xff]   ;;  %v21605_v24 = vld [vmem:[%s28896_s14 + $0x46c] ss:$12 sps:$4 sm:$0xff]  }
 0xfb4   :  { %20030 = vmatprep.subr.bf16.mxu1 %v29046_v8 }
 0xfb6   :  { %13444 = vmatpush1.bf16.msra.mxu0 %v21534_v11  ;;  %13063 = vmatmul.mubr.bf16.vlgmr.msra.gmra.mxu1 %v12541_v12  ;;  %v21574_v12 = vld [vmem:[%s28896_s14 + $0xf0] ss:$12 sps:$4 sm:$0xff]   ;;  %v21608_v11 = vld [vmem:[%s28896_s14 + $0x454] ss:$12 sps:$4 sm:$0xff]  }
 0xfb7   :  { %20031 = vmatpush3.bf16.msra.mxu1 %v21537_v20  ;;  %13445 = vmatprep.subr.bf16.mxu0 %v21540_v34  ;;  %v21611_v20 = vld [vmem:[%s28896_s14 + $0x43c] ss:$12 sps:$4 sm:$0xff]   ;;  %v21609_v34 = vld [vmem:[%s28896_s14 + $0x438] ss:$12 sps:$4 sm:$0xff]  }
 0xfb8   :  { %20032 = vmatprep.subr.bf16.mxu1 %v29046_v8  ;;  %20038 = vmatprep.mubr.msk.bf16.mxu1 %vm22041_vm1, %v29046_v8 }
 0xfba   :  { %13446 = vmatpush1.bf16.msra.mxu0 %v21538_v16  ;;  %v21614_v16 = vld [vmem:[%s28896_s14 + $0x424] ss:$12 sps:$4 sm:$0xff]  }
 0xfbb   :  { %20033 = vmatpush3.bf16.msra.mxu1 %v21541_v37  ;;  %13447 = vmatprep.subr.bf16.mxu0 %v21544_v38  ;;  %v21612_v37 = vld [vmem:[%s28896_s14 + $0x420] ss:$12 sps:$4 sm:$0xff]  }
 0xfbc   :  { %20034 = vmatprep.subr.bf16.mxu1 %v29046_v8  ;;  %v21617_v38 = vld [vmem:[%s28896_s14 + $0x40c] ss:$12 sps:$4 sm:$0xff]  }
 0xfbe   :  { %13448 = vmatpush1.bf16.msra.mxu0 %v21542_v53  ;;  %v21615_v53 = vld [vmem:[%s28896_s14 + $0x408] ss:$12 sps:$4 sm:$0xff]  }
 0xfbf   :  { %20035 = vmatpush3.bf16.msra.mxu1 %v21545_v42  ;;  %13449 = vmatprep.subr.bf16.mxu0 %v21548_v50  ;;  %v21620_v42 = vld [vmem:[%s28896_s14 + $0x3f4] ss:$12 sps:$4 sm:$0xff]   ;;  %v21618_v50 = vld [vmem:[%s28896_s14 + $0x3f0] ss:$12 sps:$4 sm:$0xff]  }
 0xfc0   :  { %20036 = vmatprep.subr.bf16.mxu1 %v29046_v8 }
 0xfc2   :  { %13450 = vmatpush2.bf16.msra.mxu0 %v21546_v57  ;;  %v21621_v57 = vld [vmem:[%s28896_s14 + $0x3d8] ss:$12 sps:$4 sm:$0xff]  }
 0xfc3   :  { %20037 = vmatpush3.bf16.msra.mxu1 %v21549_v4  ;;  %13451 = vmatprep.subr.bf16.mxu0 %v21552_v43  ;;  %v21623_v4 = vld [vmem:[%s28896_s14 + $0x3dc] ss:$12 sps:$4 sm:$0xff]   ;;  %v21626_v43 = vld [vmem:[%s28896_s14 + $0x3c4] ss:$12 sps:$4 sm:$0xff]  }
 0xfc4   :  { %13482 = vmatprep.subr.bf16.mxu1 %v21555_v59  ;;  %v21624_v59 = vld [vmem:[%s28896_s14 + $0x3c0] ss:$12 sps:$4 sm:$0xff]  }
 0xfc6   :  { %20039 = vmatmul.mubr.msk.bf16.vlgmr.msra.gmra.mxu1 %vm381_vm0, %v27723_v0  ;;  %13452 = vmatpush2.bf16.msra.mxu0 %v21550_v22  ;;  %v21567_v0 = vld [vmem:[%s28896_s14 + $0x19c] ss:$12 sps:$4 sm:$0xff]   ;;  %v21629_v22 = vld [vmem:[%s28896_s14 + $0x52c] ss:$12 sps:$4 sm:$0xff]  }
 0xfc7   :  { %13483 = vmatpush1.bf16.msra.mxu1 %v21553_v6  ;;  %13453 = vmatprep.subr.bf16.mxu0 %v21558_v30  ;;  %v21627_v6 = vld [vmem:[%s28896_s14 + $0x528] ss:$12 sps:$4 sm:$0xff]  }
 0xfc8   :  { %13484 = vmatprep.subr.bf16.mxu1 %v21561_v54  ;;  %13506 = vmatprep.mubr.bf16.mxu1 %v29027_v10  ;;  %v21632_v30 = vld [vmem:[%s28896_s14 + $0x514] ss:$12 sps:$4 sm:$0xff]   ;;  %v21630_v54 = vld [vmem:[%s28896_s14 + $0x510] ss:$12 sps:$4 sm:$0xff]  }
 0xfca   :  { %13454 = vmatpush2.bf16.msra.mxu0 %v21556_v21  ;;  %v21635_v21 = vld [vmem:[%s28896_s14 + $0x4fc] ss:$12 sps:$4 sm:$0xff]  }
 0xfcb   :  { %13485 = vmatpush1.bf16.msra.mxu1 %v21559_v39  ;;  %13455 = vmatprep.subr.bf16.mxu0 %v21564_v31  ;;  %v21633_v39 = vld [vmem:[%s28896_s14 + $0x4f8] ss:$12 sps:$4 sm:$0xff]  }
 0xfcc   :  { %13486 = vmatprep.subr.bf16.mxu1 %v21567_v0  ;;  %v21638_v31 = vld [vmem:[%s28896_s14 + $0x4e4] ss:$12 sps:$4 sm:$0xff]   ;;  %v21636_v0 = vld [vmem:[%s28896_s14 + $0x4e0] ss:$12 sps:$4 sm:$0xff]  }
 0xfce   :  { %13456 = vmatpush2.bf16.msra.mxu0 %v21562_v63  ;;  %v21639_v63 = vld [vmem:[%s28896_s14 + $0x588] ss:$12 sps:$4 sm:$0xff]  }
 0xfcf   :  { %13487 = vmatpush1.bf16.msra.mxu1 %v21565_v18  ;;  %13457 = vmatprep.subr.bf16.mxu0 %v21570_v48  ;;  %v21641_v18 = vld [vmem:[%s28896_s14 + $0x58c] ss:$12 sps:$4 sm:$0xff]  }
 0xfd0   :  { %13488 = vmatprep.subr.bf16.mxu1 %v21573_v3  ;;  %v21644_v48 = vld [vmem:[%s28896_s14 + $0x4cc] ss:$12 sps:$4 sm:$0xff]   ;;  %v21642_v3 = vld [vmem:[%s28896_s14 + $0x4c8] ss:$12 sps:$4 sm:$0xff]  }
 0xfd2   :  { %13458 = vmatpush2.bf16.msra.mxu0 %v21568_v44  ;;  %v21647_v44 = vld [vmem:[%s28896_s14 + $0x574] ss:$12 sps:$4 sm:$0xff]  }
 0xfd3   :  { %13489 = vmatpush1.bf16.msra.mxu1 %v21571_v49  ;;  %13459 = vmatprep.subr.bf16.mxu0 %v21576_v62  ;;  %v21645_v49 = vld [vmem:[%s28896_s14 + $0x570] ss:$12 sps:$4 sm:$0xff]   ;;  %v21650_v62 = vld [vmem:[%s28896_s14 + $0x4b4] ss:$12 sps:$4 sm:$0xff]  }
 0xfd4   :  { %19510 = vmatprep.subr.bf16.mxu1 %v21577_v25  ;;  %v21648_v25 = vld [vmem:[%s28896_s14 + $0x4b0] ss:$12 sps:$4 sm:$0xff]  }
 0xfd6   :  { %13460 = vmatpush2.bf16.msra.mxu0 %v21574_v12  ;;  %18383 = vmatmul.mubr.msk.bf16.vlgmr.msra.gmra.mxu1 %vm381_vm0, %v27906_v27  ;;  %v21653_v12 = vld [vmem:[%s28896_s14 + $0x55c] ss:$12 sps:$4 sm:$0xff]  }
 0xfd7   :  { %19511 = vmatpush3.bf16.msra.mxu1 %v21578_v60  ;;  %13547 = vmatprep.mubr.bf16.mxu1 %v27742_v29  ;;  %v21588_v29 = vld [vmem:[%s28896_s14 + $0x80] ss:$12 sps:$4 sm:$0xff]   ;;  %v21651_v60 = vld [vmem:[%s28896_s14 + $0x558] ss:$12 sps:$4 sm:$0xff]  }
 0xfd8   :  { %13461 = vmatprep.subr.bf16.mxu0 %v21581_v13  ;;  %19512 = vmatprep.subr.bf16.mxu1 %v21582_v14  ;;  %v21654_v13 = vld [vmem:[%s28896_s14 + $0x498] ss:$12 sps:$4 sm:$0xff]  }
 0xfd9   :  { %v21659_v14 = vld [vmem:[%s28896_s14 + $0x544] ss:$12 sps:$4 sm:$0xff]  }
 0xfda   :  { %13462 = vmatpush2.bf16.msra.mxu0 %v21579_v40  ;;  %v21657_v40 = vld [vmem:[%s28896_s14 + $0x540] ss:$12 sps:$4 sm:$0xff]  }
 0xfdb   :  { %19513 = vmatpush3.bf16.msra.mxu1 %v21583_v47  ;;  %13463 = vmatprep.subr.bf16.mxu0 %v21586_v61  ;;  %v21662_v47 = vld [vmem:[%s28896_s14 + $0x484] ss:$12 sps:$4 sm:$0xff]   ;;  %v21660_v61 = vld [vmem:[%s28896_s14 + $0x480] ss:$12 sps:$4 sm:$0xff]  }
 0xfdc   :  { %19514 = vmatprep.subr.bf16.mxu1 %v21587_v7  ;;  %v21663_v7 = vld [vmem:[%s28896_s14 + $0x530] ss:$12 sps:$4 sm:$0xff]  }
 0xfde   :  { %13464 = vmatpush2.bf16.msra.mxu0 %v21584_v52 }
 0xfdf   :  { %19515 = vmatpush3.bf16.msra.mxu1 %v21588_v29  ;;  %18386 = vmatprep.subr.msk.bf16.mxu0 %vm12281_vm11, %v27556_v56  ;;  %v21593_v56 = vld [vmem:[%s28896_s14 + $0xf8] ss:$12 sps:$4 sm:$0xff]  }
 0xfe0   :  { %19516 = vmatprep.subr.bf16.mxu1 %v21589_v28 }
 0xfe1   :  { %13466 = vmatmul.mubr.bf16.vlgmr.msra.gmra.mxu0 %v12372_v26 }
 0xfe2   :  { %13615 = vmatpush1.bf16.msra.mxu0 %v27559_v36  ;;  %13632 = vmatprep.mubr.bf16.mxu0 %v29027_v10  ;;  %v21594_v36 = vld [vmem:[%s28896_s14 + $0x38] ss:$12 sps:$4 sm:$0xff]  }
 0xfe3   :  { %19517 = vmatpush3.bf16.msra.mxu1 %v21590_v46  ;;  %14088 = vmatprep.subr.bf16.mxu0 %v21605_v24 }
 0xfe4   :  { %19518 = vmatprep.subr.bf16.mxu1 %v21591_v1 }
 0xfe7   :  { %19519 = vmatpush3.bf16.msra.mxu1 %v21592_v15 }
 0xfe8   :  { %19520 = vmatprep.subr.bf16.mxu1 %v21593_v56 }
 0xfe9   :  { %18387 = vmatmul.mubr.msk.bf16.vlgmr.msra.gmra.mxu0 %vm12277_vm12, %v18385_v2 }
 0xfea   :  { %14089 = vmatpush1.bf16.msra.mxu0 %v21603_v5 }
 0xfeb   :  { %19521 = vmatpush3.bf16.msra.mxu1 %v21594_v36  ;;  %14090 = vmatprep.subr.bf16.mxu0 %v21608_v11 }
 0xfec   :  { %19522 = vmatprep.subr.bf16.mxu1 %v21595_v17 }
 0xfef   :  { %19523 = vmatpush3.bf16.msra.mxu1 %v21596_v55 }
 0xff0   :  { %19524 = vmatprep.subr.bf16.mxu1 %v21597_v33 }
 0xff3   :  { %19525 = vmatpush3.bf16.msra.mxu1 %v21598_v58 }
 0xff4   :  { %20042 = vmatprep.subr.bf16.mxu1 %v29046_v8 }
 0xff6   :  { %13548 = vmatmul.mubr.bf16.vlgmr.msra.gmra.mxu1 %v12372_v26 }
 0xff7   :  { %20043 = vmatpush3.bf16.msra.mxu1 %v21599_v51  ;;  %20050 = vmatprep.mubr.msk.bf16.mxu1 %vm22041_vm1, %v29046_v8 }
 0xff8   :  { %20044 = vmatprep.subr.bf16.mxu1 %v29046_v8 }
 0xffb   :  { %20045 = vmatpush3.bf16.msra.mxu1 %v21600_v9 }
 0xffc   :  { %20046 = vmatprep.subr.bf16.mxu1 %v29046_v8 }
 0xfff   :  { %20047 = vmatpush3.bf16.msra.mxu1 %v21601_v41 }
0x1000   :  { %20048 = vmatprep.subr.bf16.mxu1 %v29046_v8 }
0x1003   :  { %20049 = vmatpush3.bf16.msra.mxu1 %v21602_v19 }
0x1004   :  { %20054 = vmatprep.subr.bf16.mxu1 %v29046_v8 }
0x1006   :  { %20051 = vmatmul.mubr.msk.bf16.vlgmr.msra.gmra.mxu1 %vm381_vm0, %v27906_v27  ;;  %v21656_v27 = vld [vmem:[%s28896_s14 + $0x49c] ss:$12 sps:$4 sm:$0xff]  }
0x1007   :  { %20055 = vmatpush3.bf16.msra.mxu1 %v27578_v23  ;;  %20056 = vmatprep.mubr.msk.bf16.mxu1 %vm22041_vm1, %v29046_v8  ;;  %v21606_v23 = vld [vmem:[%s28896_s14 + $0x450] ss:$12 sps:$4 sm:$0xff]  }
0x1008   :  { %14091 = vmatpush1.bf16.msra.mxu0 %v21606_v23  ;;  %14137 = vmatprep.subr.bf16.mxu1 %v21641_v18 }
0x1009   :  { %14092 = vmatprep.subr.bf16.mxu0 %v21611_v20 }
0x100c   :  { %14093 = vmatpush1.bf16.msra.mxu0 %v21609_v34 }
0x100d   :  { %14094 = vmatprep.subr.bf16.mxu0 %v21614_v16 }
0x100e   :  { %20057 = vmatmul.mubr.msk.bf16.vlgmr.msra.gmra.mxu1 %vm12277_vm12, %v18385_v2 }
0x100f   :  { %14161 = vmatprep.mubr.bf16.mxu1 %v29027_v10  ;;  %14138 = vmatpush1.bf16.msra.mxu1 %v21639_v63 }
0x1010   :  { %14095 = vmatpush1.bf16.msra.mxu0 %v21612_v37  ;;  %14139 = vmatprep.subr.bf16.mxu1 %v21647_v44 }
0x1011   :  { %14096 = vmatprep.subr.bf16.mxu0 %v21617_v38 }
0x1013   :  { %14140 = vmatpush1.bf16.msra.mxu1 %v21645_v49 }
0x1014   :  { %14097 = vmatpush1.bf16.msra.mxu0 %v21615_v53  ;;  %14141 = vmatprep.subr.bf16.mxu1 %v21653_v12  ;;  %v21664_v12 = vld [vmem:[%s28896_s14 + $0x470] ss:$12 sps:$4 sm:$0xff]  }
0x1015   :  { %14098 = vmatprep.subr.bf16.mxu0 %v21620_v42 }
0x1017   :  { %14142 = vmatpush1.bf16.msra.mxu1 %v21651_v60 }
0x1018   :  { %14099 = vmatpush1.bf16.msra.mxu0 %v21618_v50  ;;  %14143 = vmatprep.subr.bf16.mxu1 %v21659_v14  ;;  %v21666_v14 = vld [vmem:[%s28896_s14 + $0x458] ss:$12 sps:$4 sm:$0xff]  }
0x1019   :  { %14100 = vmatprep.subr.bf16.mxu0 %v21623_v4 }
0x101b   :  { %14144 = vmatpush1.bf16.msra.mxu1 %v21657_v40 }
0x101c   :  { %14101 = vmatpush1.bf16.msra.mxu0 %v21621_v57  ;;  %19539 = vmatprep.subr.bf16.mxu1 %v21663_v7  ;;  %v21668_v7 = vld [vmem:[%s28896_s14 + $0x440] ss:$12 sps:$4 sm:$0xff]  }
0x101d   :  { %14102 = vmatprep.subr.bf16.mxu0 %v21626_v43 }
0x1020   :  { %14103 = vmatpush1.bf16.msra.mxu0 %v21624_v59 }
0x1021   :  { %14104 = vmatprep.subr.bf16.mxu0 %v21629_v22 }
0x1024   :  { %14105 = vmatpush2.bf16.msra.mxu0 %v21627_v6 }
0x1025   :  { %14106 = vmatprep.subr.bf16.mxu0 %v21632_v30 }
0x1028   :  { %14107 = vmatpush2.bf16.msra.mxu0 %v21630_v54 }
0x1029   :  { %14108 = vmatprep.subr.bf16.mxu0 %v21635_v21 }
0x102c   :  { %14109 = vmatpush2.bf16.msra.mxu0 %v21633_v39 }
0x102d   :  { %14110 = vmatprep.subr.bf16.mxu0 %v21638_v31 }
0x1030   :  { %14111 = vmatpush2.bf16.msra.mxu0 %v21636_v0 }
0x1031   :  { %14112 = vmatprep.subr.bf16.mxu0 %v21644_v48 }
0x1034   :  { %14113 = vmatpush2.bf16.msra.mxu0 %v21642_v3 }
0x1035   :  { %14114 = vmatprep.subr.bf16.mxu0 %v21650_v62 }
0x1038   :  { %14115 = vmatpush2.bf16.msra.mxu0 %v21648_v25 }
0x1039   :  { %14116 = vmatprep.subr.bf16.mxu0 %v21656_v27  ;;  %v21665_v27 = vld [vmem:[%s28896_s14 + $0x518] ss:$12 sps:$4 sm:$0xff]  }
0x103c   :  { %14117 = vmatpush2.bf16.msra.mxu0 %v21654_v13 }
0x103d   :  { %14118 = vmatprep.subr.bf16.mxu0 %v21662_v47  ;;  %v21667_v47 = vld [vmem:[%s28896_s14 + $0x500] ss:$12 sps:$4 sm:$0xff]  }
0x1040   :  { %14119 = vmatpush2.bf16.msra.mxu0 %v21660_v61 }
0x1056   :  { %v13023_v52 = vpop.f32.mrf.mxu1 }
0x1058   :  { %v13025_v29 = vpop.f32.mrf.mxu1 }
0x105a   :  { %v13027_v28 = vpop.f32.mrf.mxu1 }
0x105b   :  { %v21671_v28 = vld [vmem:[%s28896_s14 + $0x4d0] ss:$12 sps:$4 sm:$0xff]  }
0x105c   :  { %v13028_v26 = vpop.f32.mrf.mxu1 }
0x105d   :  { %v21672_v26 = vld [vmem:[%s28896_s14 + $0x410] ss:$12 sps:$4 sm:$0xff]  }
0x1061   :  { %v12982_v46 = vpop.f32.mrf.mxu0 }
0x1062   :  { %v13024_v1 = vadd.f32 %v13023_v52, %v12982_v46  ;;  %v21669_v52 = vld [vmem:[%s28896_s14 + $0x4e8] ss:$12 sps:$4 sm:$0xff]   ;;  %v21673_v46 = vld [vmem:[%s28896_s14 + $0x4b8] ss:$12 sps:$4 sm:$0xff]  }
0x1063   :  { %v12984_v15 = vpop.f32.mrf.mxu0 }
0x1064   :  { %v13026_v56 = vadd.f32 %v13025_v29, %v12984_v15  ;;  %v21670_v29 = vld [vmem:[%s28896_s14 + $0x428] ss:$12 sps:$4 sm:$0xff]   ;;  %v21675_v15 = vld [vmem:[%s28896_s14 + $0x4a0] ss:$12 sps:$4 sm:$0xff]  }
0x1065   :  { %v12986_v2 = vpop.f32.mrf.mxu0 }
0x1066   :  { %v21677_v2 = vld [vmem:[%s28896_s14 + $0x488] ss:$12 sps:$4 sm:$0xff]  }
0x1067   :  { %v12987_v36 = vpop.f32.mrf.mxu0 }
0x1068   :  { %v21678_v36 = vld [vmem:[%s28896_s14 + $0x3c8] ss:$12 sps:$4 sm:$0xff]  }
0x1076   :  { %v19499_v17 = vpop.f32.mrf.mxu1 }
0x1078   :  { %v19500_v55 = vpop.f32.mrf.mxu1 }
0x1079   :  { %v19501_v33 = vadd.f32 %v19500_v55, %v19499_v17  ;;  %v21679_v17 = vld [vmem:[%s28896_s14 + $0x590] ss:$12 sps:$4 sm:$0xff]   ;;  %v21680_v55 = vld [vmem:[%s28896_s14 + $0x578] ss:$12 sps:$4 sm:$0xff]  }
0x107a   :  { %v19502_v58 = vpop.f32.mrf.mxu1 }
0x107b   :  { %v21682_v58 = vld [vmem:[%s28896_s14 + $0x548] ss:$12 sps:$4 sm:$0xff]  }
0x107c   :  { %v19503_v51 = vpop.f32.mrf.mxu1 }
0x1086   :  { %v13104_v9 = vpop.f32.mrf.mxu1 }
0x1087   :  { %v13105_v41 = vadd.f32 %v19501_v33, %v13104_v9  ;;  %v21681_v33 = vld [vmem:[%s28896_s14 + $0x560] ss:$12 sps:$4 sm:$0xff]  }
0x1088   :  { %v20040_v19 = vpop.f32.mrf.mxu1 }
0x108a   :  { %v13107_v5 = vpop.f32.mrf.mxu1 }
0x108b   :  { %v28202_v5 = vld [vmem:[%s28900_s15] sm:$0x7] }
0x108c   :  { %v20041_v24 = vpop.f32.mrf.mxu1 }
0x1096   :  { %v13508_v11 = vpop.f32.mrf.mxu1 }
0x1098   :  { %v13510_v23 = vpop.f32.mrf.mxu1 }
0x109a   :  { %v13512_v20 = vpop.f32.mrf.mxu1 }
0x109c   :  { %v13513_v34 = vpop.f32.mrf.mxu1 }
0x10a1   :  { %v13467_v16 = vpop.f32.mrf.mxu0 }
0x10a2   :  { %v13468_v37 = vadd.f32 %v13467_v16, %v13024_v1  ;;  %v21674_v1 = vld [vmem:[%s28896_s14 + $0x3f8] ss:$12 sps:$4 sm:$0xff]  }
0x10a3   :  { %v13469_v38 = vpop.f32.mrf.mxu0 }
0x10a4   :  { %v28124_v53 = vadd.f32 %v13508_v11, %v13468_v37  ;;  %v13470_v42 = vadd.f32 %v13469_v38, %v13026_v56  ;;  %v21676_v56 = vld [vmem:[%s28896_s14 + $0x3e0] ss:$12 sps:$4 sm:$0xff]   ;;  %v14262_v37 = vrot.slane %v28202_v5, %v24546_v45 }
0x10a5   :  { %v13471_v50 = vpop.f32.mrf.mxu0 }
0x10a6   :  { %v28126_v57 = vadd.f32 %v13510_v23, %v13470_v42  ;;  %v14258_v23 = vrot.slane %v28202_v5, %v29047_v32 }
0x10a7   :  { %v13472_v4 = vpop.f32.mrf.mxu0 }
0x10a9   :  { %v13634_v43 = vpop.f32.mrf.mxu0 }
0x10aa   :  { %v13681_v59 = vpack.c.bf16 %v13634_v43, %v13634_v43 }
0x10ab   :  { %v13636_v22 = vpop.f32.mrf.mxu0 }
0x10ac   :  { %v13682_v6 = vpack.c.bf16 %v13636_v22, %v13636_v22 }
0x10ad   :  { %v13638_v30 = vpop.f32.mrf.mxu0 }
0x10ae   :  { %14120 = vmatprep.mubr.bf16.mxu0 %v13682_v6 }
0x10af   :  { %14121 = vmatmul.mubr.bf16.vlgmr.msra.gmra.mxu0 %v13681_v59  ;;  %v13639_v54 = vpop.f32.mrf.mxu0 }
0x10b0   :  { %14325 = vmatprep.mubr.bf16.mxu0 %v29027_v10  ;;  %v28221_v54 = vld [vmem:[%s28901_s16] sm:$0x1] }
0x10b6   :  { %v19526_v21 = vpop.f32.mrf.mxu1 }
0x10b8   :  { %v19527_v39 = vpop.f32.mrf.mxu1 }
0x10b9   :  { %v19528_v31 = vadd.f32 %v19527_v39, %v19526_v21  ;;  %v28235_v21 = vld [vmem:[%s28901_s16 + $0x1] sm:$0x1]  ;;  %v21683_v39 = vld [vmem:[%s28899_s17 + $0x1f0] ss:$8 sps:$4 sm:$0xff]  }
0x10ba   :  { %v19529_v0 = vpop.f32.mrf.mxu1 }
0x10bb   :  { %v13550_v63 = vadd.f32 %v19528_v31, %v13105_v41  ;;  %v21688_v31 = vld [vmem:[%s28899_s17 + $0x1e4] ss:$8 sps:$4 sm:$0xff]   ;;  %v21686_v0 = vld [vmem:[%s28899_s17 + $0x1e0] ss:$8 sps:$4 sm:$0xff]  }
0x10bc   :  { %v19530_v18 = vpop.f32.mrf.mxu1 }
0x10bd   :  { %v21689_v18 = vld [vmem:[%s28899_s17 + $0x1d0] ss:$8 sps:$4 sm:$0xff]  }
0x10c6   :  { %v13589_v48 = vpop.f32.mrf.mxu1 }
0x10c7   :  { %v28129_v3 = vadd.f32 %v13589_v48, %v13550_v63  ;;  %v21691_v63 = vld [vmem:[%s28899_s17 + $0x1d4] ss:$8 sps:$4 sm:$0xff]   ;;  %v21694_v48 = vld [vmem:[%s28899_s17 + $0x1c4] ss:$8 sps:$4 sm:$0xff]  }
0x10c8   :  { %v20052_v44 = vpop.f32.mrf.mxu1 }
0x10ca   :  { %v13592_v49 = vpop.f32.mrf.mxu1 }
0x10cc   :  { %v20053_v62 = vpop.f32.mrf.mxu1 }
0x10cd   :  { %v21692_v62 = vld [vmem:[%s28899_s17 + $0x1c0] ss:$8 sps:$4 sm:$0xff]  }
0x10ce   :  { %v13675_v25 = vpop.f32.mrf.mxu1 }
0x10cf   :  { %v13683_v60 = vpack.c.bf16 %v13675_v25, %v13675_v25  ;;  %v21697_v25 = vld [vmem:[%s28899_s17 + $0x1b4] ss:$8 sps:$4 sm:$0xff]  }
0x10d0   :  { %v20058_v13 = vpop.f32.mrf.mxu1 }
0x10d1   :  { %18529 = vmatmul.mubr.msk.bf16.vlgmr.msra.gmra.mxu1 %vm381_vm0, %v13683_v60  ;;  %v21700_v13 = vld [vmem:[%s28899_s17 + $0x1a4] ss:$8 sps:$4 sm:$0xff]  }
0x10d2   :  { %19540 = vmatpush3.bf16.msra.mxu1 %v21664_v12  ;;  %v13678_v40 = vpop.f32.mrf.mxu1  ;;  %14202 = vmatprep.mubr.bf16.mxu1 %v13682_v6 }
0x10d3   :  { %19541 = vmatprep.subr.bf16.mxu1 %v21665_v27  ;;  %v21695_v27 = vld [vmem:[%s28899_s17 + $0x1b0] ss:$8 sps:$4 sm:$0xff]   ;;  %v21703_v40 = vld [vmem:[%s28899_s17 + $0x194] ss:$8 sps:$4 sm:$0xff]  }
0x10d4   :  { %v20059_v61 = vpop.f32.mrf.mxu1 }
0x10d6   :  { %19542 = vmatpush3.bf16.msra.mxu1 %v21666_v14  ;;  %v21698_v14 = vld [vmem:[%s28899_s17 + $0x1a0] ss:$8 sps:$4 sm:$0xff]  }
0x10d7   :  { %19543 = vmatprep.subr.bf16.mxu1 %v21667_v47  ;;  %v21701_v47 = vld [vmem:[%s28899_s17 + $0x190] ss:$8 sps:$4 sm:$0xff]  }
0x10da   :  { %19544 = vmatpush3.bf16.msra.mxu1 %v21668_v7  ;;  %v21706_v7 = vld [vmem:[%s28899_s17 + $0x184] ss:$8 sps:$4 sm:$0xff]  }
0x10db   :  { %19545 = vmatprep.subr.bf16.mxu1 %v21669_v52 }
0x10de   :  { %19546 = vmatpush3.bf16.msra.mxu1 %v21670_v29 }
0x10df   :  { %19547 = vmatprep.subr.bf16.mxu1 %v21671_v28  ;;  %v14266_v28 = vrot.slane %v28202_v5, %v24566_v35  ;;  %v21707_v35 = vld [vmem:[%s28899_s17 + $0x270] ss:$8 sps:$4 sm:$0xff]   ;;  %v21721_v5 = vld [vmem:[%s28899_s17 + $0x234] ss:$8 sps:$4 sm:$0xff]  }
0x10e2   :  { %19548 = vmatpush3.bf16.msra.mxu1 %v21672_v26 }
0x10e3   :  { %19549 = vmatprep.subr.bf16.mxu1 %v21673_v46  ;;  %v21704_v46 = vld [vmem:[%s28899_s17 + $0x180] ss:$8 sps:$4 sm:$0xff]  }
0x10e6   :  { %19550 = vmatpush3.bf16.msra.mxu1 %v21674_v1 }
0x10e7   :  { %19551 = vmatprep.subr.bf16.mxu1 %v21675_v15  ;;  %v21709_v15 = vld [vmem:[%s28899_s17 + $0x274] ss:$8 sps:$4 sm:$0xff]  }
0x10ea   :  { %19552 = vmatpush3.bf16.msra.mxu1 %v21676_v56 }
0x10eb   :  { %19553 = vmatprep.subr.bf16.mxu1 %v21677_v2 }
0x10ee   :  { %19554 = vmatpush3.bf16.msra.mxu1 %v21678_v36 }
0x10ef   :  { %20060 = vmatprep.subr.bf16.mxu1 %v29046_v8 }
0x10f1   :  { %14203 = vmatmul.mubr.bf16.vlgmr.msra.gmra.mxu1 %v13681_v59 }
0x10f2   :  { %20061 = vmatpush3.bf16.msra.mxu1 %v21679_v17  ;;  %20068 = vmatprep.mubr.msk.bf16.mxu1 %vm22041_vm1, %v29046_v8 }
0x10f3   :  { %20062 = vmatprep.subr.bf16.mxu1 %v29046_v8 }
0x10f6   :  { %20063 = vmatpush3.bf16.msra.mxu1 %v21680_v55  ;;  %v21712_v55 = vld [vmem:[%s28899_s17 + $0x264] ss:$8 sps:$4 sm:$0xff]  }
0x10f7   :  { %20064 = vmatprep.subr.bf16.mxu1 %v29046_v8 }
0x10fa   :  { %20065 = vmatpush3.bf16.msra.mxu1 %v21681_v33  ;;  %v21710_v33 = vld [vmem:[%s28899_s17 + $0x260] ss:$8 sps:$4 sm:$0xff]  }
0x10fb   :  { %20066 = vmatprep.subr.bf16.mxu1 %v29046_v8 }
0x10fe   :  { %20067 = vmatpush3.bf16.msra.mxu1 %v21682_v58 }
0x10ff   :  { %20072 = vmatprep.subr.bf16.mxu1 %v29046_v8 }
0x1101   :  { %20069 = vmatmul.mubr.msk.bf16.vlgmr.msra.gmra.mxu1 %vm381_vm0, %v13683_v60 }
0x1102   :  { %20074 = vmatprep.mubr.msk.bf16.mxu1 %vm22041_vm1, %v29046_v8 }
0x116f   :  { %v14122_v51 = vpop.f32.mrf.mxu0 }
0x1171   :  { %v14124_v9 = vpop.f32.mrf.mxu0 }
0x1173   :  { %v14126_v41 = vpop.f32.mrf.mxu0 }
0x1174   :  { %v21718_v41 = vld [vmem:[%s28899_s17 + $0x244] ss:$8 sps:$4 sm:$0xff]  }
0x1175   :  { %v14127_v19 = vpop.f32.mrf.mxu0 }
0x1176   :  { %v21716_v19 = vld [vmem:[%s28899_s17 + $0x240] ss:$8 sps:$4 sm:$0xff]  }
0x1191   :  { %v14163_v24 = vpop.f32.mrf.mxu1 }
0x1192   :  { %v14164_v11 = vadd.f32 %v14163_v24, %v14122_v51  ;;  %v21715_v51 = vld [vmem:[%s28899_s17 + $0x254] ss:$8 sps:$4 sm:$0xff]   ;;  %v21719_v24 = vld [vmem:[%s28899_s17 + $0x230] ss:$8 sps:$4 sm:$0xff]  }
0x1193   :  { %v14165_v20 = vpop.f32.mrf.mxu1 }
0x1194   :  { %v14250_v34 = vadd.f32 %v14164_v11, %v28124_v53  ;;  %v14166_v16 = vadd.f32 %v14165_v20, %v14124_v9  ;;  %v21713_v9 = vld [vmem:[%s28899_s17 + $0x250] ss:$8 sps:$4 sm:$0xff]   ;;  %v21724_v11 = vld [vmem:[%s28899_s17 + $0x224] ss:$8 sps:$4 sm:$0xff]  }
0x1195   :  { %v14167_v38 = vpop.f32.mrf.mxu1  ;;  %v21725_v20 = vld [vmem:[%s28899_s17 + $0x210] ss:$8 sps:$4 sm:$0xff]  }
0x1196   :  { %v14270_v42 = vadd.f32 %v14258_v23, %v14250_v34  ;;  %v14251_v50 = vadd.f32 %v14166_v16, %v28126_v57  ;;  %v21685_v57 = vld [vmem:[%s28899_s17 + $0x1f4] ss:$8 sps:$4 sm:$0xff]   ;;  %v21722_v23 = vld [vmem:[%s28899_s17 + $0x220] ss:$8 sps:$4 sm:$0xff]   ;;  %v21730_v16 = vld [vmem:[%s28899_s17 + $0x204] ss:$8 sps:$4 sm:$0xff]  }
0x1197   :  { %v14168_v4 = vpop.f32.mrf.mxu1  ;;  %v21727_v34 = vld [vmem:[%s28899_s17 + $0x214] ss:$8 sps:$4 sm:$0xff]  }
0x1198   :  { %v14273_v43 = vmax.f32 %v14270_v42, 0.0  ;;  %v14271_v59 = vadd.f32 %v14262_v37, %v14251_v50  ;;  %v21728_v37 = vld [vmem:[%s28899_s17 + $0x200] ss:$8 sps:$4 sm:$0xff]   ;;  %v21733_v38 = vld [vmem:[%s28899_s17 + $0x174] ss:$8 sps:$4 sm:$0xff]  }
0x1199   :  { %v21742_v42 = vld [vmem:[%s28899_s17 + $0x2f4] ss:$8 sps:$4 sm:$0xff]   ;;  %v21740_v50 = vld [vmem:[%s28899_s17 + $0x2f0] ss:$8 sps:$4 sm:$0xff]   ;;  %v21748_v4 = vld [vmem:[%s28899_s17 + $0x2e4] ss:$8 sps:$4 sm:$0xff]  }
0x119a   :  { %v14274_v22 = vmax.f32 %v14271_v59, 0.0  ;;  %v14276_v6 = vpack.c.bf16 %v14273_v43, %v14273_v43  ;;  %v21746_v43 = vld [vmem:[%s28899_s17 + $0x2e0] ss:$8 sps:$4 sm:$0xff]   ;;  %v21754_v59 = vld [vmem:[%s28899_s17 + $0x2d4] ss:$8 sps:$4 sm:$0xff]  }
0x119c   :  { %v28210_v30 = vpack.c.bf16 %v14274_v22, %v14274_v22  ;;  %v28215_v53 = vsel %vm10109_vm8, %v14276_v6, 0  ;;  %v21752_v22 = vld [vmem:[%s28899_s17 + $0x2d0] ss:$8 sps:$4 sm:$0xff]   ;;  %v21760_v6 = vld [vmem:[%s28899_s17 + $0x2c4] ss:$8 sps:$4 sm:$0xff]  }
0x119e   :  { %18531 = vmatprep.subr.msk.bf16.mxu0 %vm10109_vm8, %v28210_v30 }
0x119f   :  { %14308 = vmatpush1.bf16.msra.mxu0 %v28215_v53 }
0x11a0   :  { %18535 = vmatprep.subr.msk.bf16.mxu0 %vm10109_vm8, %v28210_v30 }
0x11a2   :  { %18532 = vmatmul.mubr.msk.bf16.vlgmr.msra.gmra.mxu0 %vm14280_vm13, %v28221_v54 }
0x11a3   :  { %14445 = vmatpush1.bf16.msra.mxu0 %v28215_v53  ;;  %14462 = vmatprep.mubr.bf16.mxu0 %v29027_v10 }
0x11a4   :  { %14803 = vmatprep.subr.bf16.mxu0 %v21685_v57  ;;  %v21766_v57 = vld [vmem:[%s28899_s17 + $0x2b4] ss:$8 sps:$4 sm:$0xff]  }
0x11aa   :  { %18536 = vmatmul.mubr.msk.bf16.vlgmr.msra.gmra.mxu0 %vm14280_vm13, %v28235_v21 }
0x11ab   :  { %14804 = vmatpush1.bf16.msra.mxu0 %v21683_v39  ;;  %v21772_v39 = vld [vmem:[%s28899_s17 + $0x2a4] ss:$8 sps:$4 sm:$0xff]  }
0x11ac   :  { %14805 = vmatprep.subr.bf16.mxu0 %v21688_v31  ;;  %v21770_v31 = vld [vmem:[%s28899_s17 + $0x2a0] ss:$8 sps:$4 sm:$0xff]  }
0x11af   :  { %14806 = vmatpush1.bf16.msra.mxu0 %v21686_v0  ;;  %v21775_v0 = vld [vmem:[%s28899_s17 + $0x294] ss:$8 sps:$4 sm:$0xff]  }
0x11b0   :  { %14807 = vmatprep.subr.bf16.mxu0 %v21691_v63  ;;  %v21773_v63 = vld [vmem:[%s28899_s17 + $0x290] ss:$8 sps:$4 sm:$0xff]  }
0x11b1   :  { %v19555_v44 = vpop.f32.mrf.mxu1 }
0x11b3   :  { %v19556_v49 = vpop.f32.mrf.mxu1  ;;  %14808 = vmatpush1.bf16.msra.mxu0 %v21689_v18  ;;  %v21778_v18 = vld [vmem:[%s28899_s17 + $0x284] ss:$8 sps:$4 sm:$0xff]  }
0x11b4   :  { %14809 = vmatprep.subr.bf16.mxu0 %v21694_v48  ;;  %v19557_v61 = vadd.f32 %v19556_v49, %v19555_v44  ;;  %v21776_v48 = vld [vmem:[%s28899_s17 + $0x280] ss:$8 sps:$4 sm:$0xff]   ;;  %v21781_v44 = vld [vmem:[%s28899_s17 + $0x74] ss:$8 sps:$4 sm:$0xff]  }
0x11b5   :  { %v19558_v12 = vpop.f32.mrf.mxu1 }
0x11b7   :  { %v19559_v60 = vpop.f32.mrf.mxu1  ;;  %14810 = vmatpush1.bf16.msra.mxu0 %v21692_v62 }
0x11b8   :  { %14811 = vmatprep.subr.bf16.mxu0 %v21697_v25 }
0x11bb   :  { %14812 = vmatpush1.bf16.msra.mxu0 %v21695_v27 }
0x11bc   :  { %14813 = vmatprep.subr.bf16.mxu0 %v21700_v13 }
0x11bf   :  { %14814 = vmatpush1.bf16.msra.mxu0 %v21698_v14 }
0x11c0   :  { %14815 = vmatprep.subr.bf16.mxu0 %v21703_v40  ;;  %v21731_v40 = vld [vmem:[%s28899_s17 + $0x170] ss:$8 sps:$4 sm:$0xff]  }
0x11c1   :  { %v14244_v52 = vpop.f32.mrf.mxu1 }
0x11c2   :  { %v14245_v29 = vadd.f32 %v19557_v61, %v14244_v52  ;;  %v21734_v52 = vld [vmem:[%s28899_s17 + $0x160] ss:$8 sps:$4 sm:$0xff]  }
0x11c3   :  { %v20070_v26 = vpop.f32.mrf.mxu1  ;;  %14816 = vmatpush1.bf16.msra.mxu0 %v21701_v47  ;;  %v21736_v47 = vld [vmem:[%s28899_s17 + $0x164] ss:$8 sps:$4 sm:$0xff]  }
0x11c4   :  { %v14252_v1 = vadd.f32 %v14245_v29, %v28129_v3  ;;  %14817 = vmatprep.subr.bf16.mxu0 %v21706_v7  ;;  %v21739_v29 = vld [vmem:[%s28899_s17 + $0x154] ss:$8 sps:$4 sm:$0xff]   ;;  %v21745_v26 = vld [vmem:[%s28899_s17 + $0x144] ss:$8 sps:$4 sm:$0xff]  }
0x11c5   :  { %v14247_v56 = vpop.f32.mrf.mxu1 }
0x11c6   :  { %v14272_v2 = vadd.f32 %v14266_v28, %v14252_v1  ;;  %v21737_v28 = vld [vmem:[%s28899_s17 + $0x150] ss:$8 sps:$4 sm:$0xff]   ;;  %v21751_v1 = vld [vmem:[%s28899_s17 + $0x134] ss:$8 sps:$4 sm:$0xff]   ;;  %v21757_v56 = vld [vmem:[%s28899_s17 + $0x124] ss:$8 sps:$4 sm:$0xff]  }
0x11c7   :  { %v20071_v36 = vpop.f32.mrf.mxu1  ;;  %14818 = vmatpush1.bf16.msra.mxu0 %v21704_v46  ;;  %v21743_v46 = vld [vmem:[%s28899_s17 + $0x140] ss:$8 sps:$4 sm:$0xff]  }
0x11c8   :  { %v14275_v17 = vmax.f32 %v14272_v2, 0.0  ;;  %14819 = vmatprep.subr.bf16.mxu0 %v21709_v15  ;;  %v21749_v15 = vld [vmem:[%s28899_s17 + $0x130] ss:$8 sps:$4 sm:$0xff]   ;;  %v21755_v2 = vld [vmem:[%s28899_s17 + $0x120] ss:$8 sps:$4 sm:$0xff]  }
0x11c9   :  { %v21763_v36 = vld [vmem:[%s28899_s17 + $0x114] ss:$8 sps:$4 sm:$0xff]  }
0x11ca   :  { %v14278_v3 = vpack.c.bf16 %v14275_v17, %v14275_v17  ;;  %v21769_v17 = vld [vmem:[%s28899_s17 + $0x104] ss:$8 sps:$4 sm:$0xff]  }
0x11cb   :  { %14820 = vmatpush2.bf16.msra.mxu0 %v21707_v35  ;;  %v21761_v35 = vld [vmem:[%s28899_s17 + $0x110] ss:$8 sps:$4 sm:$0xff]  }
0x11cc   :  { %v28300_v58 = vsel %vm10109_vm8, %v14278_v3, 0  ;;  %14821 = vmatprep.subr.bf16.mxu0 %v21712_v55  ;;  %v21767_v55 = vld [vmem:[%s28899_s17 + $0x100] ss:$8 sps:$4 sm:$0xff]  }
0x11cd   :  { %20073 = vmatpush3.bf16.msra.mxu1 %v28300_v58 }
0x11ce   :  { %20078 = vmatprep.subr.bf16.mxu1 %v29046_v8 }
0x11cf   :  { %14822 = vmatpush2.bf16.msra.mxu0 %v21710_v33 }
0x11d0   :  { %20075 = vmatmul.mubr.msk.bf16.vlgmr.msra.gmra.mxu1 %vm14280_vm13, %v28221_v54  ;;  %14823 = vmatprep.subr.bf16.mxu0 %v21715_v51  ;;  %v21758_v54 = vld [vmem:[%s28899_s17 + $0x2c0] ss:$8 sps:$4 sm:$0xff]  }
0x11d1   :  { %20079 = vmatpush3.bf16.msra.mxu1 %v28300_v58  ;;  %20080 = vmatprep.mubr.msk.bf16.mxu1 %vm22041_vm1, %v29046_v8 }
0x11d2   :  { %14844 = vmatprep.subr.bf16.mxu1 %v21742_v42  ;;  %v21790_v42 = vld [vmem:[%s28899_s17 + $0x44] ss:$8 sps:$4 sm:$0xff]  }
0x11d3   :  { %14824 = vmatpush2.bf16.msra.mxu0 %v21713_v9 }
0x11d4   :  { %14825 = vmatprep.subr.bf16.mxu0 %v21718_v41 }
0x11d7   :  { %14826 = vmatpush2.bf16.msra.mxu0 %v21716_v19 }
0x11d8   :  { %20081 = vmatmul.mubr.msk.bf16.vlgmr.msra.gmra.mxu1 %vm14280_vm13, %v28235_v21  ;;  %14827 = vmatprep.subr.bf16.mxu0 %v21721_v5  ;;  %v21764_v21 = vld [vmem:[%s28899_s17 + $0x2b0] ss:$8 sps:$4 sm:$0xff]  }
0x11d9   :  { %14876 = vmatprep.mubr.bf16.mxu1 %v29027_v10  ;;  %14845 = vmatpush1.bf16.msra.mxu1 %v21740_v50  ;;  %v21788_v50 = vld [vmem:[%s28899_s17 + $0x40] ss:$8 sps:$4 sm:$0xff]  }
0x11da   :  { %14846 = vmatprep.subr.bf16.mxu1 %v21748_v4  ;;  %v21793_v4 = vld [vmem:[%s28899_s17 + $0x34] ss:$8 sps:$4 sm:$0xff]  }
0x11db   :  { %14828 = vmatpush2.bf16.msra.mxu0 %v21719_v24  ;;  %v21779_v24 = vld [vmem:[%s28899_s17 + $0x70] ss:$8 sps:$4 sm:$0xff]  }
0x11dc   :  { %14829 = vmatprep.subr.bf16.mxu0 %v21724_v11 }
0x11dd   :  { %14847 = vmatpush1.bf16.msra.mxu1 %v21746_v43  ;;  %v21791_v43 = vld [vmem:[%s28899_s17 + $0x30] ss:$8 sps:$4 sm:$0xff]  }
0x11de   :  { %14848 = vmatprep.subr.bf16.mxu1 %v21754_v59  ;;  %v21796_v59 = vld [vmem:[%s28899_s17 + $0x24] ss:$8 sps:$4 sm:$0xff]  }
0x11df   :  { %14830 = vmatpush2.bf16.msra.mxu0 %v21722_v23 }
0x11e0   :  { %14831 = vmatprep.subr.bf16.mxu0 %v21727_v34 }
0x11e1   :  { %14849 = vmatpush1.bf16.msra.mxu1 %v21752_v22  ;;  %v21794_v22 = vld [vmem:[%s28899_s17 + $0x20] ss:$8 sps:$4 sm:$0xff]  }
0x11e2   :  { %14850 = vmatprep.subr.bf16.mxu1 %v21760_v6  ;;  %v21799_v6 = vld [vmem:[%s28899_s17 + $0x14] ss:$8 sps:$4 sm:$0xff]  }
0x11e3   :  { %14832 = vmatpush2.bf16.msra.mxu0 %v21725_v20  ;;  %v21782_v20 = vld [vmem:[%s28899_s17 + $0x60] ss:$8 sps:$4 sm:$0xff]  }
0x11e4   :  { %14833 = vmatprep.subr.bf16.mxu0 %v21730_v16  ;;  %v21787_v16 = vld [vmem:[%s28899_s17 + $0x54] ss:$8 sps:$4 sm:$0xff]  }
0x11e5   :  { %14851 = vmatpush1.bf16.msra.mxu1 %v21758_v54  ;;  %v21797_v54 = vld [vmem:[%s28899_s17 + $0x10] ss:$8 sps:$4 sm:$0xff]  }
0x11e6   :  { %14852 = vmatprep.subr.bf16.mxu1 %v21766_v57  ;;  %v21802_v57 = vld [vmem:[%s28899_s17 + $0x4] ss:$8 sps:$4 sm:$0xff]  }
0x11e7   :  { %14834 = vmatpush2.bf16.msra.mxu0 %v21728_v37 }
0x11e8   :  { %15166 = vmatprep.subr.bf16.mxu0 %v21733_v38  ;;  %v21785_v38 = vld [vmem:[%s28899_s17 + $0x50] ss:$8 sps:$4 sm:$0xff]  }
0x11e9   :  { %14853 = vmatpush1.bf16.msra.mxu1 %v21764_v21  ;;  %v21800_v21 = vld [vmem:[%s28899_s17] ss:$8 sps:$4 sm:$0xff]  }
0x11ea   :  { %14854 = vmatprep.subr.bf16.mxu1 %v21772_v39  ;;  %v21805_v39 = vld [vmem:[%s28899_s17 + $0xf4] ss:$8 sps:$4 sm:$0xff]  }
0x11ed   :  { %14855 = vmatpush1.bf16.msra.mxu1 %v21770_v31  ;;  %v21803_v31 = vld [vmem:[%s28899_s17 + $0xf0] ss:$8 sps:$4 sm:$0xff]  }
0x11ee   :  { %14856 = vmatprep.subr.bf16.mxu1 %v21775_v0  ;;  %v21808_v0 = vld [vmem:[%s28899_s17 + $0xe4] ss:$8 sps:$4 sm:$0xff]  }
0x11f1   :  { %14857 = vmatpush1.bf16.msra.mxu1 %v21773_v63  ;;  %v21806_v63 = vld [vmem:[%s28899_s17 + $0xe0] ss:$8 sps:$4 sm:$0xff]  }
0x11f2   :  { %14858 = vmatprep.subr.bf16.mxu1 %v21778_v18  ;;  %v21811_v18 = vld [vmem:[%s28899_s17 + $0xd4] ss:$8 sps:$4 sm:$0xff]  }
0x11f5   :  { %14859 = vmatpush1.bf16.msra.mxu1 %v21776_v48  ;;  %v21809_v48 = vld [vmem:[%s28899_s17 + $0xd0] ss:$8 sps:$4 sm:$0xff]  }
0x11f6   :  { %15125 = vmatprep.subr.bf16.mxu1 %v21781_v44  ;;  %v21814_v44 = vld [vmem:[%s28899_s17 + $0xc4] ss:$8 sps:$4 sm:$0xff]  }
0x1262   :  { %v28402_v49 = vpop.f32.mrf.mxu0 }
0x1264   :  { %v28404_v62 = vpop.f32.mrf.mxu0 }
0x1265   :  { %v14375_v19 = vpack.c.bf16 %v28404_v62, %v28404_v62  ;;  %v21812_v62 = vld [vmem:[%s28899_s17 + $0xc0] ss:$8 sps:$4 sm:$0xff]  }
0x1266   :  { %v14331_v25 = vpop.f32.mrf.mxu0 }
0x1267   :  { %v21817_v25 = vld [vmem:[%s28899_s17 + $0xb4] ss:$8 sps:$4 sm:$0xff]  }
0x1268   :  { %v14332_v12 = vpop.f32.mrf.mxu0 }
0x1269   :  { %v21815_v12 = vld [vmem:[%s28899_s17 + $0xb0] ss:$8 sps:$4 sm:$0xff]  }
0x126a   :  { %v14464_v60 = vpop.f32.mrf.mxu0 }
0x126b   :  { %v14511_v27 = vpack.c.bf16 %v14464_v60, %v14464_v60  ;;  %v21820_v60 = vld [vmem:[%s28899_s17 + $0xa4] ss:$8 sps:$4 sm:$0xff]  }
0x126c   :  { %v14466_v13 = vpop.f32.mrf.mxu0 }
0x126d   :  { %v14512_v14 = vpack.c.bf16 %v14466_v13, %v14466_v13  ;;  %v21823_v13 = vld [vmem:[%s28899_s17 + $0x94] ss:$8 sps:$4 sm:$0xff]  }
0x126e   :  { %v14468_v61 = vpop.f32.mrf.mxu0 }
0x126f   :  { %14835 = vmatprep.mubr.bf16.mxu0 %v14512_v14  ;;  %v21821_v14 = vld [vmem:[%s28899_s17 + $0x90] ss:$8 sps:$4 sm:$0xff]   ;;  %v21829_v61 = vld [vmem:[%s28899_s17 + $0x374] ss:$8 sps:$4 sm:$0xff]  }
0x1270   :  { %14836 = vmatmul.mubr.bf16.vlgmr.msra.gmra.mxu0 %v14511_v27  ;;  %v14469_v7 = vpop.f32.mrf.mxu0  ;;  %v21818_v27 = vld [vmem:[%s28899_s17 + $0xa0] ss:$8 sps:$4 sm:$0xff]  }
0x1271   :  { %15167 = vmatpush1.bf16.msra.mxu0 %v21731_v40  ;;  %15198 = vmatprep.mubr.bf16.mxu0 %v29027_v10  ;;  %v21826_v40 = vld [vmem:[%s28899_s17 + $0x84] ss:$8 sps:$4 sm:$0xff]   ;;  %v21824_v7 = vld [vmem:[%s28899_s17 + $0x80] ss:$8 sps:$4 sm:$0xff]  }
0x1272   :  { %15168 = vmatprep.subr.bf16.mxu0 %v21736_v47  ;;  %v21827_v47 = vld [vmem:[%s28899_s17 + $0x370] ss:$8 sps:$4 sm:$0xff]  }
0x1275   :  { %15169 = vmatpush1.bf16.msra.mxu0 %v21734_v52  ;;  %v21830_v52 = vld [vmem:[%s28899_s17 + $0x360] ss:$8 sps:$4 sm:$0xff]  }
0x1276   :  { %15170 = vmatprep.subr.bf16.mxu0 %v21739_v29  ;;  %v21832_v29 = vld [vmem:[%s28899_s17 + $0x364] ss:$8 sps:$4 sm:$0xff]  }
0x1279   :  { %15171 = vmatpush1.bf16.msra.mxu0 %v21737_v28  ;;  %v14374_v28 = vpack.c.bf16 %v28402_v49, %v28402_v49  ;;  %v21836_v49 = vld [vmem:[%s28899_s17 + $0x340] ss:$8 sps:$4 sm:$0xff]  }
0x127a   :  { %15172 = vmatprep.subr.bf16.mxu0 %v21745_v26  ;;  %v21833_v26 = vld [vmem:[%s28899_s17 + $0x350] ss:$8 sps:$4 sm:$0xff]  }
0x127d   :  { %15173 = vmatpush1.bf16.msra.mxu0 %v21743_v46  ;;  %v21835_v46 = vld [vmem:[%s28899_s17 + $0x354] ss:$8 sps:$4 sm:$0xff]  }
0x127e   :  { %15174 = vmatprep.subr.bf16.mxu0 %v21751_v1  ;;  %v21839_v1 = vld [vmem:[%s28899_s17 + $0x330] ss:$8 sps:$4 sm:$0xff]  }
0x1281   :  { %15175 = vmatpush1.bf16.msra.mxu0 %v21749_v15  ;;  %v21844_v15 = vld [vmem:[%s28899_s17 + $0x324] ss:$8 sps:$4 sm:$0xff]  }
0x1282   :  { %15176 = vmatprep.subr.bf16.mxu0 %v21757_v56  ;;  %v21854_v56 = vld [vmem:[%s28899_s17 + $0x470] ss:$8 sps:$4 sm:$0xff]  }
0x1285   :  { %15177 = vmatpush1.bf16.msra.mxu0 %v21755_v2  ;;  %v21856_v2 = vld [vmem:[%s28899_s17 + $0x474] ss:$8 sps:$4 sm:$0xff]  }
0x1286   :  { %15178 = vmatprep.subr.bf16.mxu0 %v21763_v36  ;;  %v21862_v36 = vld [vmem:[%s28899_s17 + $0x464] ss:$8 sps:$4 sm:$0xff]  }
0x1289   :  { %15179 = vmatpush1.bf16.msra.mxu0 %v21761_v35  ;;  %v21842_v35 = vld [vmem:[%s28899_s17 + $0x320] ss:$8 sps:$4 sm:$0xff]  }
0x128a   :  { %15180 = vmatprep.subr.bf16.mxu0 %v21769_v17  ;;  %v21860_v17 = vld [vmem:[%s28899_s17 + $0x460] ss:$8 sps:$4 sm:$0xff]  }
0x128d   :  { %15181 = vmatpush1.bf16.msra.mxu0 %v21767_v55  ;;  %v21868_v55 = vld [vmem:[%s28899_s17 + $0x454] ss:$8 sps:$4 sm:$0xff]  }
0x128e   :  { %18683 = vmatprep.subr.msk.bf16.mxu0 %vm10109_vm8, %v28210_v30  ;;  %v28464_v30 = vld [vmem:[%s28901_s16 + $0x2] sm:$0x1] }
0x1290   :  { %v14368_v3 = vpop.f32.mrf.mxu1 }
0x1291   :  { %v14376_v33 = vpack.c.bf16 %v14368_v3, %v14368_v3  ;;  %v21845_v3 = vld [vmem:[%s28899_s17 + $0x310] ss:$8 sps:$4 sm:$0xff]  }
0x1292   :  { %v20076_v51 = vpop.f32.mrf.mxu1 }
0x1293   :  { %15199 = vmatmul.mubr.bf16.vlgmr.msra.gmra.mxu0 %v14376_v33  ;;  %v21866_v33 = vld [vmem:[%s28899_s17 + $0x450] ss:$8 sps:$4 sm:$0xff]   ;;  %v21850_v51 = vld [vmem:[%s28899_s17 + $0x304] ss:$8 sps:$4 sm:$0xff]  }
0x1294   :  { %15227 = vmatpush1.bf16.msra.mxu0 %v28215_v53  ;;  %v14371_v9 = vpop.f32.mrf.mxu1  ;;  %15244 = vmatprep.mubr.bf16.mxu0 %v29027_v10  ;;  %v21784_v53 = vld [vmem:[%s28899_s17 + $0x64] ss:$8 sps:$4 sm:$0xff]  }
0x1295   :  { %15585 = vmatprep.subr.bf16.mxu0 %v21829_v61  ;;  %v21874_v9 = vld [vmem:[%s28899_s17 + $0x444] ss:$8 sps:$4 sm:$0xff]  }
0x1296   :  { %v20077_v41 = vpop.f32.mrf.mxu1 }
0x1297   :  { %v21848_v41 = vld [vmem:[%s28899_s17 + $0x300] ss:$8 sps:$4 sm:$0xff]  }
0x1298   :  { %v14505_v5 = vpop.f32.mrf.mxu1 }
0x1299   :  { %v14513_v11 = vpack.c.bf16 %v14505_v5, %v14505_v5  ;;  %v21853_v5 = vld [vmem:[%s28899_s17 + $0x3f4] ss:$8 sps:$4 sm:$0xff]  }
0x129a   :  { %v20082_v23 = vpop.f32.mrf.mxu1 }
0x129b   :  { %14877 = vmatmul.mubr.bf16.vlgmr.msra.gmra.mxu1 %v14513_v11  ;;  %18684 = vmatmul.mubr.msk.bf16.vlgmr.msra.gmra.mxu0 %vm14280_vm13, %v28464_v30  ;;  %v21878_v11 = vld [vmem:[%s28899_s17 + $0x430] ss:$8 sps:$4 sm:$0xff]   ;;  %v21886_v23 = vld [vmem:[%s28899_s17 + $0x424] ss:$8 sps:$4 sm:$0xff]  }
0x129c   :  { %15126 = vmatpush1.bf16.msra.mxu1 %v21779_v24  ;;  %v14508_v34 = vpop.f32.mrf.mxu1  ;;  %15157 = vmatprep.mubr.bf16.mxu1 %v14375_v19  ;;  %v21872_v19 = vld [vmem:[%s28899_s17 + $0x440] ss:$8 sps:$4 sm:$0xff]   ;;  %v21880_v24 = vld [vmem:[%s28899_s17 + $0x434] ss:$8 sps:$4 sm:$0xff]  }
0x129d   :  { %15127 = vmatprep.subr.bf16.mxu1 %v21784_v53  ;;  %15586 = vmatpush1.bf16.msra.mxu0 %v21827_v47  ;;  %v21859_v53 = vld [vmem:[%s28899_s17 + $0x3e4] ss:$8 sps:$4 sm:$0xff]   ;;  %v21884_v34 = vld [vmem:[%s28899_s17 + $0x420] ss:$8 sps:$4 sm:$0xff]  }
0x129e   :  { %v20083_v37 = vpop.f32.mrf.mxu1  ;;  %15587 = vmatprep.subr.bf16.mxu0 %v21832_v29 }
0x129f   :  { %v21863_v37 = vld [vmem:[%s28899_s17 + $0x3d0] ss:$8 sps:$4 sm:$0xff]  }
0x12a0   :  { %15128 = vmatpush1.bf16.msra.mxu1 %v21782_v20  ;;  %v21857_v20 = vld [vmem:[%s28899_s17 + $0x3e0] ss:$8 sps:$4 sm:$0xff]  }
0x12a1   :  { %15129 = vmatprep.subr.bf16.mxu1 %v21787_v16  ;;  %15588 = vmatpush1.bf16.msra.mxu0 %v21830_v52  ;;  %v21865_v16 = vld [vmem:[%s28899_s17 + $0x3d4] ss:$8 sps:$4 sm:$0xff]  }
0x12a2   :  { %15589 = vmatprep.subr.bf16.mxu0 %v21835_v46 }
0x12a4   :  { %15130 = vmatpush1.bf16.msra.mxu1 %v21785_v38  ;;  %v21871_v38 = vld [vmem:[%s28899_s17 + $0x3c4] ss:$8 sps:$4 sm:$0xff]  }
0x12a5   :  { %15131 = vmatprep.subr.bf16.mxu1 %v21790_v42  ;;  %15590 = vmatpush1.bf16.msra.mxu0 %v21833_v26  ;;  %v21869_v42 = vld [vmem:[%s28899_s17 + $0x3c0] ss:$8 sps:$4 sm:$0xff]  }
0x12a8   :  { %15132 = vmatpush1.bf16.msra.mxu1 %v21788_v50  ;;  %v21877_v50 = vld [vmem:[%s28899_s17 + $0x3b4] ss:$8 sps:$4 sm:$0xff]  }
0x12a9   :  { %15133 = vmatprep.subr.bf16.mxu1 %v21793_v4  ;;  %v21875_v4 = vld [vmem:[%s28899_s17 + $0x3b0] ss:$8 sps:$4 sm:$0xff]  }
0x12ac   :  { %15134 = vmatpush1.bf16.msra.mxu1 %v21791_v43  ;;  %v21883_v43 = vld [vmem:[%s28899_s17 + $0x3a4] ss:$8 sps:$4 sm:$0xff]  }
0x12ad   :  { %15135 = vmatprep.subr.bf16.mxu1 %v21796_v59  ;;  %v21881_v59 = vld [vmem:[%s28899_s17 + $0x3a0] ss:$8 sps:$4 sm:$0xff]  }
0x12b0   :  { %15136 = vmatpush1.bf16.msra.mxu1 %v21794_v22  ;;  %v21889_v22 = vld [vmem:[%s28899_s17 + $0x394] ss:$8 sps:$4 sm:$0xff]  }
0x12b1   :  { %15137 = vmatprep.subr.bf16.mxu1 %v21799_v6  ;;  %v21887_v6 = vld [vmem:[%s28899_s17 + $0x390] ss:$8 sps:$4 sm:$0xff]  }
0x12b4   :  { %15138 = vmatpush1.bf16.msra.mxu1 %v21797_v54  ;;  %v21895_v54 = vld [vmem:[%s28899_s17 + $0x384] ss:$8 sps:$4 sm:$0xff]  }
0x12b5   :  { %15139 = vmatprep.subr.bf16.mxu1 %v21802_v57  ;;  %v21893_v57 = vld [vmem:[%s28899_s17 + $0x380] ss:$8 sps:$4 sm:$0xff]  }
0x12b8   :  { %15140 = vmatpush1.bf16.msra.mxu1 %v21800_v21  ;;  %v21892_v21 = vld [vmem:[%s28899_s17 + $0x414] ss:$8 sps:$4 sm:$0xff]  }
0x12b9   :  { %15141 = vmatprep.subr.bf16.mxu1 %v21805_v39  ;;  %v21890_v39 = vld [vmem:[%s28899_s17 + $0x410] ss:$8 sps:$4 sm:$0xff]  }
0x12bc   :  { %15142 = vmatpush2.bf16.msra.mxu1 %v21803_v31  ;;  %v21898_v31 = vld [vmem:[%s28899_s17 + $0x404] ss:$8 sps:$4 sm:$0xff]  }
0x12bd   :  { %15143 = vmatprep.subr.bf16.mxu1 %v21808_v0  ;;  %v21896_v0 = vld [vmem:[%s28899_s17 + $0x400] ss:$8 sps:$4 sm:$0xff]  }
0x12c0   :  { %15144 = vmatpush2.bf16.msra.mxu1 %v21806_v63  ;;  %v21901_v63 = vld [vmem:[%s28902_s19 + $0x74] ss:$8 sps:$4 sm:$0xff]  }
0x12c1   :  { %15145 = vmatprep.subr.bf16.mxu1 %v21811_v18 }
0x12c4   :  { %15146 = vmatpush2.bf16.msra.mxu1 %v21809_v48 }
0x12c5   :  { %15147 = vmatprep.subr.bf16.mxu1 %v21814_v44 }
0x12c8   :  { %15148 = vmatpush2.bf16.msra.mxu1 %v21812_v62 }
0x12c9   :  { %15149 = vmatprep.subr.bf16.mxu1 %v21817_v25 }
0x12cc   :  { %15150 = vmatpush2.bf16.msra.mxu1 %v21815_v12 }
0x12cd   :  { %15151 = vmatprep.subr.bf16.mxu1 %v21820_v60 }
0x12d0   :  { %15152 = vmatpush2.bf16.msra.mxu1 %v21818_v27 }
0x12d1   :  { %15153 = vmatprep.subr.bf16.mxu1 %v21823_v13 }
0x12d4   :  { %15154 = vmatpush2.bf16.msra.mxu1 %v21821_v14 }
0x12d5   :  { %15155 = vmatprep.subr.bf16.mxu1 %v21826_v40 }
0x12d8   :  { %15156 = vmatpush2.bf16.msra.mxu1 %v21824_v7 }
0x12d9   :  { %20084 = vmatprep.subr.bf16.mxu1 %v29046_v8 }
0x12db   :  { %15158 = vmatmul.mubr.bf16.vlgmr.msra.gmra.mxu1 %v14374_v28 }
0x12dc   :  { %20085 = vmatpush3.bf16.msra.mxu1 %v28300_v58  ;;  %20086 = vmatprep.mubr.msk.bf16.mxu1 %vm22041_vm1, %v29046_v8  ;;  %v21838_v58 = vld [vmem:[%s28899_s17 + $0x344] ss:$8 sps:$4 sm:$0xff]   ;;  %v21841_v8 = vld [vmem:[%s28899_s17 + $0x334] ss:$8 sps:$4 sm:$0xff]  }
0x12dd   :  { %15591 = vmatprep.subr.bf16.mxu0 %v21838_v58  ;;  %15626 = vmatprep.subr.bf16.mxu1 %v21856_v2 }
0x12de   :  { %15592 = vmatpush1.bf16.msra.mxu0 %v21836_v49 }
0x12df   :  { %15593 = vmatprep.subr.bf16.mxu0 %v21841_v8 }
0x12e2   :  { %15594 = vmatpush1.bf16.msra.mxu0 %v21839_v1 }
0x12e3   :  { %20087 = vmatmul.mubr.msk.bf16.vlgmr.msra.gmra.mxu1 %vm14280_vm13, %v28464_v30  ;;  %15595 = vmatprep.subr.bf16.mxu0 %v21844_v15  ;;  %v21851_v30 = vld [vmem:[%s28899_s17 + $0x3f0] ss:$8 sps:$4 sm:$0xff]  }
0x12e4   :  { %15658 = vmatprep.mubr.bf16.mxu1 %v29027_v10  ;;  %15627 = vmatpush1.bf16.msra.mxu1 %v21854_v56  ;;  %v21847_v10 = vld [vmem:[%s28899_s17 + $0x314] ss:$8 sps:$4 sm:$0xff]  }
0x12e5   :  { %15628 = vmatprep.subr.bf16.mxu1 %v21862_v36 }
0x12e6   :  { %15596 = vmatpush1.bf16.msra.mxu0 %v21842_v35  ;;  %v21899_v35 = vld [vmem:[%s28902_s19 + $0x70] ss:$8 sps:$4 sm:$0xff]  }
0x12e7   :  { %15597 = vmatprep.subr.bf16.mxu0 %v21847_v10  ;;  %v21904_v10 = vld [vmem:[%s28902_s19 + $0x64] ss:$8 sps:$4 sm:$0xff]  }
0x12e8   :  { %15629 = vmatpush1.bf16.msra.mxu1 %v21860_v17 }
0x12e9   :  { %15630 = vmatprep.subr.bf16.mxu1 %v21868_v55 }
0x12ea   :  { %15598 = vmatpush1.bf16.msra.mxu0 %v21845_v3 }
0x12eb   :  { %15599 = vmatprep.subr.bf16.mxu0 %v21850_v51  ;;  %v21907_v51 = vld [vmem:[%s28902_s19 + $0x54] ss:$8 sps:$4 sm:$0xff]  }
0x12ec   :  { %15631 = vmatpush1.bf16.msra.mxu1 %v21866_v33  ;;  %v21902_v33 = vld [vmem:[%s28902_s19 + $0x60] ss:$8 sps:$4 sm:$0xff]  }
0x12ed   :  { %15632 = vmatprep.subr.bf16.mxu1 %v21874_v9 }
0x12ee   :  { %15600 = vmatpush1.bf16.msra.mxu0 %v21848_v41  ;;  %v21905_v41 = vld [vmem:[%s28902_s19 + $0x50] ss:$8 sps:$4 sm:$0xff]  }
0x12ef   :  { %15601 = vmatprep.subr.bf16.mxu0 %v21853_v5  ;;  %v21908_v5 = vld [vmem:[%s28902_s19 + $0x40] ss:$8 sps:$4 sm:$0xff]  }
0x12f0   :  { %15633 = vmatpush1.bf16.msra.mxu1 %v21872_v19  ;;  %v21910_v19 = vld [vmem:[%s28902_s19 + $0x44] ss:$8 sps:$4 sm:$0xff]  }
0x12f1   :  { %15634 = vmatprep.subr.bf16.mxu1 %v21880_v24  ;;  %v21913_v24 = vld [vmem:[%s28902_s19 + $0x34] ss:$8 sps:$4 sm:$0xff]  }
0x12f2   :  { %15602 = vmatpush2.bf16.msra.mxu0 %v21851_v30  ;;  %v21911_v30 = vld [vmem:[%s28902_s19 + $0x30] ss:$8 sps:$4 sm:$0xff]  }
0x12f3   :  { %15603 = vmatprep.subr.bf16.mxu0 %v21859_v53  ;;  %v21914_v53 = vld [vmem:[%s28902_s19 + $0x20] ss:$8 sps:$4 sm:$0xff]  }
0x12f4   :  { %15635 = vmatpush1.bf16.msra.mxu1 %v21878_v11  ;;  %v21916_v11 = vld [vmem:[%s28902_s19 + $0x24] ss:$8 sps:$4 sm:$0xff]  }
0x12f5   :  { %15636 = vmatprep.subr.bf16.mxu1 %v21886_v23  ;;  %v21919_v23 = vld [vmem:[%s28902_s19 + $0x14] ss:$8 sps:$4 sm:$0xff]  }
0x12f6   :  { %15604 = vmatpush2.bf16.msra.mxu0 %v21857_v20  ;;  %v21917_v20 = vld [vmem:[%s28902_s19 + $0x10] ss:$8 sps:$4 sm:$0xff]  }
0x12f7   :  { %15605 = vmatprep.subr.bf16.mxu0 %v21865_v16  ;;  %v21920_v16 = vld [vmem:[%s28902_s19] ss:$8 sps:$4 sm:$0xff]  }
0x12f8   :  { %15637 = vmatpush1.bf16.msra.mxu1 %v21884_v34  ;;  %v21922_v34 = vld [vmem:[%s28902_s19 + $0x4] ss:$8 sps:$4 sm:$0xff]  }
0x12f9   :  { %15638 = vmatprep.subr.bf16.mxu1 %v21892_v21  ;;  %v21938_v21 = vld [vmem:[%s28902_s19 + $0xa0] ss:$8 sps:$4 sm:$0xff]  }
0x12fa   :  { %15606 = vmatpush2.bf16.msra.mxu0 %v21863_v37  ;;  %v21925_v37 = vld [vmem:[%s28902_s19 + $0xf4] ss:$8 sps:$4 sm:$0xff]  }
0x12fb   :  { %15607 = vmatprep.subr.bf16.mxu0 %v21871_v38  ;;  %v21923_v38 = vld [vmem:[%s28902_s19 + $0xf0] ss:$8 sps:$4 sm:$0xff]  }
0x12fc   :  { %15639 = vmatpush1.bf16.msra.mxu1 %v21890_v39  ;;  %v21943_v39 = vld [vmem:[%s28902_s19 + $0x94] ss:$8 sps:$4 sm:$0xff]  }
0x12fd   :  { %15640 = vmatprep.subr.bf16.mxu1 %v21898_v31  ;;  %v21941_v31 = vld [vmem:[%s28902_s19 + $0x90] ss:$8 sps:$4 sm:$0xff]  }
0x12fe   :  { %15608 = vmatpush2.bf16.msra.mxu0 %v21869_v42  ;;  %v21928_v42 = vld [vmem:[%s28902_s19 + $0xe4] ss:$8 sps:$4 sm:$0xff]  }
0x12ff   :  { %15609 = vmatprep.subr.bf16.mxu0 %v21877_v50  ;;  %v21926_v50 = vld [vmem:[%s28902_s19 + $0xe0] ss:$8 sps:$4 sm:$0xff]  }
0x1300   :  { %15641 = vmatpush1.bf16.msra.mxu1 %v21896_v0  ;;  %v21946_v0 = vld [vmem:[%s28902_s19 + $0x84] ss:$8 sps:$4 sm:$0xff]  }
0x1301   :  { %15891 = vmatprep.subr.bf16.mxu1 %v21901_v63  ;;  %v21944_v63 = vld [vmem:[%s28902_s19 + $0x80] ss:$8 sps:$4 sm:$0xff]  }
0x1302   :  { %15610 = vmatpush2.bf16.msra.mxu0 %v21875_v4  ;;  %v21931_v4 = vld [vmem:[%s28902_s19 + $0xd4] ss:$8 sps:$4 sm:$0xff]  }
0x1303   :  { %15611 = vmatprep.subr.bf16.mxu0 %v21883_v43  ;;  %v21929_v43 = vld [vmem:[%s28902_s19 + $0xd0] ss:$8 sps:$4 sm:$0xff]  }
0x1306   :  { %15612 = vmatpush2.bf16.msra.mxu0 %v21881_v59  ;;  %v21934_v59 = vld [vmem:[%s28902_s19 + $0xc4] ss:$8 sps:$4 sm:$0xff]  }
0x1307   :  { %15613 = vmatprep.subr.bf16.mxu0 %v21889_v22  ;;  %v21932_v22 = vld [vmem:[%s28902_s19 + $0xc0] ss:$8 sps:$4 sm:$0xff]  }
0x130a   :  { %15614 = vmatpush2.bf16.msra.mxu0 %v21887_v6  ;;  %v21937_v6 = vld [vmem:[%s28902_s19 + $0xb4] ss:$8 sps:$4 sm:$0xff]  }
0x130b   :  { %15615 = vmatprep.subr.bf16.mxu0 %v21895_v54  ;;  %v21935_v54 = vld [vmem:[%s28902_s19 + $0xb0] ss:$8 sps:$4 sm:$0xff]  }
0x130e   :  { %15616 = vmatpush2.bf16.msra.mxu0 %v21893_v57  ;;  %v21940_v57 = vld [vmem:[%s28902_s19 + $0xa4] ss:$8 sps:$4 sm:$0xff]  }
0x1330   :  { %v14837_v18 = vpop.f32.mrf.mxu0 }
0x1332   :  { %v14839_v48 = vpop.f32.mrf.mxu0 }
0x1334   :  { %v14841_v44 = vpop.f32.mrf.mxu0 }
0x1335   :  { %v21949_v44 = vld [vmem:[%s28903_s21 + $0x70] sm:$0xff]  }
0x1336   :  { %v14842_v62 = vpop.f32.mrf.mxu0 }
0x1337   :  { %v21950_v62 = vld [vmem:[%s28903_s21 + $0x30] sm:$0xff]  }
0x1353   :  { %v28714_v25 = vpop.f32.mrf.mxu0 }
0x1355   :  { %v28716_v12 = vpop.f32.mrf.mxu0 }
0x1357   :  { %v15204_v60 = vpop.f32.mrf.mxu0 }
0x1358   :  { %v21951_v60 = vld [vmem:[%s28903_s21 + $0x68] sm:$0xff]  }
0x1359   :  { %v15205_v27 = vpop.f32.mrf.mxu0 }
0x135a   :  { %v21952_v27 = vld [vmem:[%s28903_s21 + $0x28] sm:$0xff]  }
0x135b   :  { %v14878_v13 = vpop.f32.mrf.mxu1  ;;  %v15246_v14 = vpop.f32.mrf.mxu0 }
0x135c   :  { %v14879_v40 = vadd.f32 %v14878_v13, %v14837_v18  ;;  %v15293_v61 = vpack.c.bf16 %v15246_v14, %v15246_v14  ;;  %v21947_v18 = vld [vmem:[%s28903_s21 + $0x78] sm:$0xff]   ;;  %v21953_v13 = vld [vmem:[%s28903_s21 + $0x60] sm:$0xff]  }
0x135d   :  { %v14880_v47 = vpop.f32.mrf.mxu1  ;;  %v15248_v7 = vpop.f32.mrf.mxu0  ;;  %19572 = vmatprep.subr.bf16.mxu0 %v21947_v18  ;;  %v21954_v14 = vld [vmem:[%s28903_s21 + $0x20] sm:$0xff]   ;;  %v29048_v18 = vlaneseq }
0x135e   :  { %v14881_v52 = vadd.f32 %v14880_v47, %v14839_v48  ;;  %v15294_v29 = vpack.c.bf16 %v15248_v7, %v15248_v7  ;;  %v21948_v48 = vld [vmem:[%s28903_s21 + $0x38] sm:$0xff]   ;;  %v21958_v7 = vld [vmem:[%s28903_s21 + $0x10] sm:$0xff]  }
0x135f   :  { %v14882_v28 = vpop.f32.mrf.mxu1  ;;  %v15250_v26 = vpop.f32.mrf.mxu0  ;;  %v21956_v47 = vld [vmem:[%s28903_s21 + $0x18] sm:$0xff]  }
0x1360   :  { %15617 = vmatprep.mubr.bf16.mxu0 %v15294_v29 }
0x1361   :  { %v14883_v46 = vpop.f32.mrf.mxu1  ;;  %15618 = vmatmul.mubr.bf16.vlgmr.msra.gmra.mxu0 %v15293_v61  ;;  %v15251_v49 = vpop.f32.mrf.mxu0  ;;  %v21957_v61 = vld [vmem:[%s28903_s21 + $0x50] sm:$0xff]  }
0x1362   :  { %19573 = vmatpush3.bf16.msra.mxu0 %v21948_v48  ;;  %v15669_v46 = vld [vmem:[%s28904_s18] sm:$0x3]  ;;  %v16112_v48 = vand.u32 127, %v29048_v18 }
0x1363   :  { %19574 = vmatprep.subr.bf16.mxu0 %v21949_v44 }
0x1364   :  { %vm16113_vm14 = vcmp.ge.s32.totalorder %v16112_v48, 1  ;;  %vm16114_vm15 = vcmp.lt.s32.totalorder %v16112_v48, 7 }
0x1365   :  { %vm16115_vm2 = vmand %vm16113_vm14, %vm16114_vm15 }
0x1366   :  { %19575 = vmatpush3.bf16.msra.mxu0 %v21950_v62 }
0x1367   :  { %19576 = vmatprep.subr.bf16.mxu0 %v21951_v60 }
0x136a   :  { %19577 = vmatpush3.bf16.msra.mxu0 %v21952_v27 }
0x136b   :  { %19578 = vmatprep.subr.bf16.mxu0 %v21953_v13 }
0x136e   :  { %19579 = vmatpush3.bf16.msra.mxu0 %v21954_v14 }
0x139b   :  { %v15159_v58 = vpop.f32.mrf.mxu1 }
0x139c   :  { %v28718_v8 = vadd.f32 %v15159_v58, %v14879_v40  ;;  %v21955_v40 = vld [vmem:[%s28903_s21 + $0x58] sm:$0xff]  }
0x139d   :  { %v15161_v1 = vpop.f32.mrf.mxu1  ;;  %19580 = vmatprep.subr.bf16.mxu0 %v21955_v40 }
0x139e   :  { %v28720_v15 = vadd.f32 %v15161_v1, %v14881_v52  ;;  %19581 = vmatpush3.bf16.msra.mxu0 %v21956_v47  ;;  %v15201_v58 = vadd.f32 %v28714_v25, %v28718_v8  ;;  %v21959_v8 = vld [vmem:[%s28903_s21 + $0x48] sm:$0xff]  }
0x139f   :  { %v15163_v56 = vpop.f32.mrf.mxu1  ;;  %19582 = vmatprep.subr.bf16.mxu0 %v21957_v61 }
0x13a0   :  { %v15674_v56 = vrot.slane %v15669_v46, %v29047_v32 }
0x13a1   :  { %v15164_v2 = vpop.f32.mrf.mxu1 }
0x13a2   :  { %19583 = vmatpush3.bf16.msra.mxu0 %v21958_v7 }
0x13a3   :  { %v15287_v36 = vpop.f32.mrf.mxu1  ;;  %19584 = vmatprep.subr.bf16.mxu0 %v21959_v8 }
0x13a4   :  { %v15295_v17 = vpack.c.bf16 %v15287_v36, %v15287_v36  ;;  %v15203_v36 = vadd.f32 %v28716_v12, %v28720_v15  ;;  %v21960_v12 = vld [vmem:[%s28903_s21 + $0x8] sm:$0xff]   ;;  %v21961_v15 = vld [vmem:[%s28903_s21 + $0x40] sm:$0xff]  }
0x13a5   :  { %v20088_v55 = vpop.f32.mrf.mxu1 }
0x13a6   :  { %15659 = vmatmul.mubr.bf16.vlgmr.msra.gmra.mxu1 %v15295_v17  ;;  %19585 = vmatpush3.bf16.msra.mxu0 %v21960_v12 }
0x13a7   :  { %v15290_v3 = vpop.f32.mrf.mxu1  ;;  %15892 = vmatpush1.bf16.msra.mxu1 %v21899_v35  ;;  %19586 = vmatprep.subr.bf16.mxu0 %v21961_v15 }
0x13a8   :  { %15893 = vmatprep.subr.bf16.mxu1 %v21904_v10  ;;  %v15678_v10 = vrot.slane %v15669_v46, %v24546_v45 }
0x13a9   :  { %v20089_v9 = vpop.f32.mrf.mxu1 }
0x13ab   :  { %15894 = vmatpush1.bf16.msra.mxu1 %v21902_v33 }
0x13ac   :  { %15895 = vmatprep.subr.bf16.mxu1 %v21907_v51 }
0x13af   :  { %15896 = vmatpush1.bf16.msra.mxu1 %v21905_v41 }
0x13b0   :  { %15897 = vmatprep.subr.bf16.mxu1 %v21910_v19 }
0x13b3   :  { %15898 = vmatpush1.bf16.msra.mxu1 %v21908_v5 }
0x13b4   :  { %15899 = vmatprep.subr.bf16.mxu1 %v21913_v24  ;;  %v21962_v24 = vld [vmem:[%s28903_s21] sm:$0xff]  }
0x13b5   :  { %19587 = vmatpush3.bf16.msra.mxu0 %v21962_v24 }
0x13b7   :  { %15900 = vmatpush1.bf16.msra.mxu1 %v21911_v30  ;;  %v15719_v30 = vld [vmem:[%s28905_s20] sm:$0x3] }
0x13b8   :  { %15901 = vmatprep.subr.bf16.mxu1 %v21916_v11  ;;  %v15724_v11 = vrot.slane %v15719_v30, %v29047_v32 }
0x13bb   :  { %15902 = vmatpush1.bf16.msra.mxu1 %v21914_v53  ;;  %v15728_v53 = vrot.slane %v15719_v30, %v24546_v45 }
0x13bc   :  { %15903 = vmatprep.subr.bf16.mxu1 %v21919_v23 }
0x13bf   :  { %15904 = vmatpush1.bf16.msra.mxu1 %v21917_v20 }
0x13c0   :  { %15905 = vmatprep.subr.bf16.mxu1 %v21922_v34 }
0x13c3   :  { %15906 = vmatpush1.bf16.msra.mxu1 %v21920_v16 }
0x13c4   :  { %15907 = vmatprep.subr.bf16.mxu1 %v21925_v37 }
0x13c7   :  { %15908 = vmatpush2.bf16.msra.mxu1 %v21923_v38 }
0x13c8   :  { %15909 = vmatprep.subr.bf16.mxu1 %v21928_v42 }
0x13cb   :  { %15910 = vmatpush2.bf16.msra.mxu1 %v21926_v50 }
0x13cc   :  { %15911 = vmatprep.subr.bf16.mxu1 %v21931_v4 }
0x13cf   :  { %15912 = vmatpush2.bf16.msra.mxu1 %v21929_v43 }
0x13d0   :  { %15913 = vmatprep.subr.bf16.mxu1 %v21934_v59 }
0x13d3   :  { %15914 = vmatpush2.bf16.msra.mxu1 %v21932_v22  ;;  %v18814_v22 = vld [vmem:[%s28906_s22] ss:$0 sm:$0xff] }
0x13d4   :  { %15915 = vmatprep.subr.bf16.mxu1 %v21937_v6 }
0x13d7   :  { %15916 = vmatpush2.bf16.msra.mxu1 %v21935_v54 }
0x13d8   :  { %15917 = vmatprep.subr.bf16.mxu1 %v21940_v57 }
0x13db   :  { %15918 = vmatpush2.bf16.msra.mxu1 %v21938_v21 }
0x13dc   :  { %15919 = vmatprep.subr.bf16.mxu1 %v21943_v39 }
0x13df   :  { %15920 = vmatpush2.bf16.msra.mxu1 %v21941_v31 }
0x13e0   :  { %15921 = vmatprep.subr.bf16.mxu1 %v21946_v0 }
0x13e3   :  { %15922 = vmatpush2.bf16.msra.mxu1 %v21944_v63 }
0x1421   :  { %v15619_v52 = vpop.f32.mrf.mxu0 }
0x1423   :  { %v15621_v29 = vpop.f32.mrf.mxu0 }
0x1425   :  { %v15623_v28 = vpop.f32.mrf.mxu0 }
0x1427   :  { %v15624_v26 = vpop.f32.mrf.mxu0 }
0x1466   :  { %v15660_v49 = vpop.f32.mrf.mxu1 }
0x1467   :  { %v15661_v1 = vadd.f32 %v15660_v49, %v15619_v52 }
0x1468   :  { %v15662_v2 = vpop.f32.mrf.mxu1 }
0x1469   :  { %v15667_v35 = vadd.f32 %v15661_v1, %v15201_v58  ;;  %v15663_v17 = vadd.f32 %v15662_v2, %v15621_v29 }
0x146a   :  { %v15664_v55 = vpop.f32.mrf.mxu1 }
0x146b   :  { %v15681_v3 = vadd.f32 %v15674_v56, %v15667_v35  ;;  %v15668_v33 = vadd.f32 %v15663_v17, %v15203_v36 }
0x146c   :  { %v15665_v51 = vpop.f32.mrf.mxu1 }
0x146d   :  { %v15682_v9 = vadd.f32 %v15678_v10, %v15668_v33  ;;  %v15683_v41 = vmax.f32 %v15681_v3, 0.0 }
0x146f   :  { %v15684_v19 = vmax.f32 %v15682_v9, 0.0  ;;  %v15685_v25 = vpack.c.bf16 %v15683_v41, %v15683_v41 }
0x1471   :  { %v15686_v5 = vpack.c.bf16 %v15684_v19, %v15684_v19 }
0x1473   :  { %15923 = vmatprep.mubr.bf16.mxu1 %v15686_v5 }
0x1474   :  { %15924 = vmatmul.mubr.bf16.vlgmr.msra.gmra.mxu1 %v15685_v25 }
0x1534   :  { %v15925_v23 = vpop.f32.mrf.mxu1 }
0x1535   :  { %v15926_v20 = vadd.f32 %v15925_v23, %v15724_v11 }
0x1536   :  { %v15927_v34 = vpop.f32.mrf.mxu1 }
0x1537   :  { %v15928_v16 = vadd.f32 %v15927_v34, %v15728_v53  ;;  %v15932_v37 = vmax.f32 %v15926_v20, 0.0 }
0x1538   :  { %v15929_v38 = vpop.f32.mrf.mxu1 }
0x1539   :  { %v15933_v42 = vmax.f32 %v15928_v16, 0.0  ;;  %v15934_v43 = vpack.c.bf16 %v15932_v37, %v15932_v37 }
0x153a   :  { %v15930_v50 = vpop.f32.mrf.mxu1 }
0x153b   :  { %v15935_v4 = vpack.c.bf16 %v15933_v42, %v15933_v42 }
0x153d   :  { %16103 = vmatprep.mubr.bf16.mxu0 %v15935_v4 }
0x153e   :  { %16104 = vmatmul.mubr.bf16.vlgmr.msra.gmra.mxu0 %v15934_v43 }
0x15fe   :  { %v19588_v59 = vpop.f32.mrf.mxu0 }
0x1600   :  { %v19589_v32 = vpop.f32.mrf.mxu0 }
0x1601   :  { %v19590_v6 = vadd.f32 %v19589_v32, %v19588_v59 }
0x1602   :  { %v19591_v45 = vpop.f32.mrf.mxu0 }
0x1603   :  { %v16106_v54 = vadd.f32 %v19590_v6, %v18814_v22 }
0x1604   :  { %v19592_v57 = vpop.f32.mrf.mxu0 }
0x1605   :  { %v16117_v21 = vmin.f32 %v16106_v54, 20.0  ;;  %vm16116_vm1 = vcmp.gt.f32.partialorder %v16106_v54, 20.0 }
0x1607   :  { %v16118_v39 = vmul.f32 1.442695, %v16117_v21 }
0x1609   :  { %21963 = vpow2.f32 %v16118_v39 }
0x1616   :  { %v21964_v31 = vpop.eup %21963 }
0x1617   :  { %v16120_v0 = vadd.f32 1.0, %v21964_v31  ;;  %v16123_v63 = vmul.f32 -0.5, %v21964_v31  ;;  %v16126_v62 = vand.u32 2147483647, %v21964_v31 }
0x1619   :  { %21965 = vlog2.f32 %v16120_v0  ;;  %v16124_v44 = vadd.f32 1.0, %v16123_v63  ;;  %vm16127_vm0 = vcmp.lt.f32.partialorder %v16126_v62, 0.0004427343 }
0x161b   :  { %v16125_v13 = vmul.f32 %v21964_v31, %v16124_v44 }
0x1626   :  { %v21966_v60 = vpop.eup %21965 }
0x1627   :  { %v16122_v27 = vmul.f32 0.6931472, %v21966_v60 }
0x1629   :  { %v16128_v14 = vsel %vm16127_vm0, %v16125_v13, %v16122_v27 }
0x162a   :  { %v16129_v40 = vsel %vm16116_vm1, %v16106_v54, %v16128_v14 }
0x162b   :  { %v16130_v47 = vadd.f32 1.0, %v16129_v40 }
0x162d   :  { %v16131_v61 = vsel %vm16115_vm2, %v16130_v47, %v16106_v54 }
0x162e   :  { %16132 = vst [vmem:[%s28907_s23] sm:$0x3] %v16131_v61 }

</bundles_post_ra>
